<compile_context>
chip_gen: v7x
topology: tpu7x:2x2x1
jax: 0.10.0
libtpu: 0.0.40
codegen_flags: <defaults>
</compile_context>

<pallas_src>
import functools

import jax
import jax.numpy as jnp
from jax.experimental import pallas as pl
from jax.experimental.pallas import tpu as pltpu

IMAGENET_MEAN = jnp.array([0.485, 0.456, 0.406], dtype=jnp.float32)
IMAGENET_STD = jnp.array([0.229, 0.224, 0.225], dtype=jnp.float32)

STEM_CIN_PAD = 8  # pad the 3 image channels to 8 for a friendlier lane layout


def _round_up(x, m):
    return (x + m - 1) // m * m


def _cdiv(a, b):
    return (a + b - 1) // b


# --------------------------- Pallas kernels ---------------------------------

def _conv3x3_kernel(x_ref, w_ref, b_ref, o_ref, *, dilation, out_h, out_w,
                    apply_relu):
    """Implicit-GEMM 3x3 conv for one image / one Cout tile.

    x_ref: (1, Hp, Wp, Cin)   padded bf16 activation (read once from HBM)
    w_ref: (3, 3, Cin, tn)    bf16 weights (VMEM-resident across the batch)
    b_ref: (1, tn)            f32 bias
    o_ref: (1, out_h, out_w, tn) bf16 output

    The nine tap windows are static slices of the VMEM block; each feeds one
    MXU matmul accumulated in f32.  Bias + ReLU + bf16 cast in the epilogue.
    """
    d = dilation
    cin = x_ref.shape[-1]
    tn = o_ref.shape[-1]
    m = out_h * out_w

    acc = jnp.zeros((m, tn), jnp.float32)
    for ki in range(3):
        for kj in range(3):
            xs = x_ref[0, ki * d:ki * d + out_h, kj * d:kj * d + out_w, :]
            acc = acc + jnp.dot(xs.reshape(m, cin), w_ref[ki, kj],
                                preferred_element_type=jnp.float32)

    r = acc + b_ref[...]
    if apply_relu:
        r = jnp.maximum(r, 0.0)
    o_ref[0] = r.reshape(out_h, out_w, tn).astype(o_ref.dtype)


def _mse_partial_kernel(a_ref, b_ref, o_ref):
    """Sum-of-squared-diff partials.

    Hot loop is pure VPU: squared diffs are folded into an (8,128) f32
    accumulator (the output block itself); the cross-lane reduce and the
    divide happen in JAX on the tiny (2,8,128) result.
    """
    step = pl.program_id(1)

    @pl.when(step == 0)
    def _init():
        o_ref[...] = jnp.zeros_like(o_ref)

    d = a_ref[...].astype(jnp.float32) - b_ref[...].astype(jnp.float32)
    d2 = d * d
    o_ref[...] += d2.reshape(-1, 8, 128).sum(axis=0)[None]


# --------------------------- conv wrapper ------------------------------------

def conv3x3_bias_relu(x_nhwc, w_oihw, b, dilation, pad_value=None,
                      apply_relu=True):
    """3x3 stride-1 conv (padding=dilation, PyTorch semantics) + bias + ReLU.

    Returns (y_nhwc bf16 with Cout padded to a multiple of 128, real Cout).
    Extra input channels of x beyond the weight's Cin are treated as zero by
    zero-padding the weight, so channel-padded activations flow through
    unchanged (padded output channels are exactly 0).
    """
    bsz, h, w_sp, cin_x = x_nhwc.shape
    cout, cin_w, kh, kw = w_oihw.shape
    assert kh == 3 and kw == 3 and cin_x >= cin_w
    p = dilation

    # Spatial padding (zeros, or per-channel `pad_value` for the folded stem).
    if pad_value is None:
        xp = jnp.pad(x_nhwc, ((0, 0), (p, p), (p, p), (0, 0)))
    else:
        pv = jnp.asarray(pad_value, x_nhwc.dtype).reshape(1, 1, 1, -1)
        xp = jnp.pad(x_nhwc - pv, ((0, 0), (p, p), (p, p), (0, 0))) + pv
    xp = xp.astype(jnp.bfloat16)

    # Weight -> (3, 3, cin_x, cout_pad) bf16, bias -> (1, cout_pad) f32.
    cout_pad = _round_up(cout, 128)
    wt = w_oihw
    if cin_x > cin_w:
        wt = jnp.pad(wt, ((0, 0), (0, cin_x - cin_w), (0, 0), (0, 0)))
    wt = wt.transpose(2, 3, 1, 0)
    if cout_pad > cout:
        wt = jnp.pad(wt, ((0, 0), (0, 0), (0, 0), (0, cout_pad - cout)))
    wt = wt.astype(jnp.bfloat16)
    bias = jnp.pad(b.astype(jnp.float32), (0, cout_pad - cout)).reshape(1, cout_pad)

    tn = min(256, cout_pad)
    hp, wp = h + 2 * p, w_sp + 2 * p

    kern = functools.partial(_conv3x3_kernel, dilation=p, out_h=h, out_w=w_sp,
                             apply_relu=apply_relu)
    # Grid: (batch, cout tiles).  The weight's block index is constant across
    # the batch axis, so its DMA is skipped by the revolving buffer; with
    # cout_pad <= 256 it is fetched exactly once per layer.
    y = pl.pallas_call(
        kern,
        grid=(bsz, cout_pad // tn),
        out_shape=jax.ShapeDtypeStruct((bsz, h, w_sp, cout_pad), jnp.bfloat16),
        in_specs=[
            pl.BlockSpec((1, hp, wp, cin_x), lambda bi, ni: (bi, 0, 0, 0)),
            pl.BlockSpec((3, 3, cin_x, tn), lambda bi, ni: (0, 0, 0, ni)),
            pl.BlockSpec((1, tn), lambda bi, ni: (0, ni)),
        ],
        out_specs=pl.BlockSpec((1, h, w_sp, tn), lambda bi, ni: (bi, 0, 0, ni)),
        compiler_params=pltpu.CompilerParams(
            dimension_semantics=("parallel", "parallel")),
    )(xp, wt, bias)
    return y, cout


# --------------------------- MSE wrapper --------------------------------------

def mse_loss(a, b, real_count):
    """mean((a-b)^2) over `real_count` real elements.

    Padded channels / rows are identical in a and b, so they contribute 0 to
    the sum.  Two per-core partial (8,128) accumulators (leading parallel grid
    axis) are summed in JAX — megacore-friendly on v7x, harmless on v5e/v6e.
    """
    a2 = a.reshape(-1, 128)
    b2 = b.reshape(-1, 128)
    m = a2.shape[0]

    tm = min(1024, _round_up(max(m // 2, 8), 8))
    m_half = _round_up(_cdiv(m, 2), tm)
    m_pad = 2 * m_half
    if m_pad > m:
        a2 = jnp.pad(a2, ((0, m_pad - m), (0, 0)))
        b2 = jnp.pad(b2, ((0, m_pad - m), (0, 0)))
    half_tiles = m_half // tm

    partial = pl.pallas_call(
        _mse_partial_kernel,
        grid=(2, half_tiles),
        out_shape=jax.ShapeDtypeStruct((2, 8, 128), jnp.float32),
        in_specs=[
            pl.BlockSpec((tm, 128), lambda ci, i: (ci * half_tiles + i, 0)),
            pl.BlockSpec((tm, 128), lambda ci, i: (ci * half_tiles + i, 0)),
        ],
        out_specs=pl.BlockSpec((1, 8, 128), lambda ci, i: (ci, 0, 0)),
        compiler_params=pltpu.CompilerParams(
            dimension_semantics=("parallel", "arbitrary")),
    )(a2, b2)
    return jnp.sum(partial) * (1.0 / float(real_count))


# --------------------------- synthetic frozen encoder -------------------------

def init_encoder_params(key):
    # (cin, cout, dilation); dilation replaces stride (resnet50dilated style).
    cfgs = [
        (3, 64, 1),      # stem (normalization folded in)
        (64, 64, 1),     # layer1 -> feature map 1
        (64, 128, 1),    # layer2 -> feature map 2
        (128, 128, 2),   # layer3 (dilated) -> feature map 3
        (128, 128, 4),   # layer4 (dilated) -> feature map 4
    ]
    params = []
    for cin, cout, dil in cfgs:
        key, k1, k2 = jax.random.split(key, 3)
        w = jax.random.normal(k1, (cout, cin, 3, 3), jnp.float32) / jnp.sqrt(9.0 * cin)
        b = 0.01 * jax.random.normal(k2, (cout,), jnp.float32)
        params.append({"w": w, "b": b, "dilation": dil})
    return params


def _fold_imagenet_norm(w_oihw, b):
    """Fold (x-mean)/std into conv1: w' = w/std, b' = b - sum(w*mean/std)."""
    inv_std = 1.0 / IMAGENET_STD
    w_f = w_oihw * inv_std[None, :, None, None]
    b_f = b - jnp.sum(w_oihw * (IMAGENET_MEAN * inv_std)[None, :, None, None],
                      axis=(1, 2, 3))
    return w_f, b_f


def encoder_forward(x_nchw, params):
    x = x_nchw.transpose(0, 2, 3, 1)                       # NCHW -> NHWC, f32
    x = jnp.pad(x, ((0, 0), (0, 0), (0, 0), (0, STEM_CIN_PAD - 3)))
    feats = []
    for idx, prm in enumerate(params):
        if idx == 0:
            # Normalization folded into conv1; padding with the per-channel
            # mean reproduces zero-padding in normalized space exactly.
            w, b = _fold_imagenet_norm(prm["w"], prm["b"])
            pad_value = jnp.concatenate(
                [IMAGENET_MEAN, jnp.zeros((STEM_CIN_PAD - 3,), jnp.float32)])
        else:
            w, b = prm["w"], prm["b"]
            pad_value = None
        x, c_real = conv3x3_bias_relu(x, w, b, prm["dilation"],
                                      pad_value=pad_value)
        if idx >= 1:  # stem output is not a returned feature map
            feats.append((x, c_real))
    return feats


# --------------------------- ResNetPL forward --------------------------------

def resnet_pl_loss(pred_nchw, target_nchw, params, weight=1.0):
    n = pred_nchw.shape[0]
    # Batch pred+target through the encoder together: each weight block is
    # DMA'd / pushed to the MXU once for both inputs.
    x = jnp.concatenate([pred_nchw, target_nchw], axis=0)
    feats = encoder_forward(x, params)

    losses = []
    for f, c_real in feats:
        pf = f[:n]
        tf = f[n:]
        real_count = n * f.shape[1] * f.shape[2] * c_real
        losses.append(mse_loss(pf, tf, real_count))
    return jnp.stack(losses).sum() * weight


if __name__ == "__main__":
    key = jax.random.PRNGKey(0)
    kp, kt, kw = jax.random.split(key, 3)
    pred = jax.random.uniform(kp, (2, 3, 16, 16), dtype=jnp.float32)
    target = jax.random.uniform(kt, (2, 3, 16, 16), dtype=jnp.float32)
    params = init_encoder_params(kw)

    loss_fn = jax.jit(functools.partial(resnet_pl_loss, params=params, weight=1.0))
    loss = loss_fn(pred, target)
    jax.block_until_ready(loss)
    assert loss.shape == () and bool(jnp.isfinite(loss))
    print("KERNEL_OK")
</pallas_src>

<mosaic_0001>
module attributes {stable_mosaic.version = 11 : i64} {
  func.func @_conv3x3_kernel(%arg0: i32, %arg1: i32, %arg2: memref<1x18x18x8xbf16, #tpu.memory_space<vmem>>, %arg3: memref<3x3x8x128xbf16, #tpu.memory_space<vmem>>, %arg4: memref<1x128xf32, #tpu.memory_space<vmem>>, %arg5: memref<1x16x16x128xbf16, #tpu.memory_space<vmem>>) attributes {dimension_semantics = [#tpu.dimension_semantics<parallel>, #tpu.dimension_semantics<parallel>], iteration_bounds = array<i64: 4, 1>, scalar_prefetch = 0 : i64, scratch_operands = 0 : i64, tpu.core_type = #tpu.core_type<tc>, window_params = [{transform_indices = @transform_0, window_bounds = array<i64: 1, 18, 18, 8>}, {transform_indices = @transform_1, window_bounds = array<i64: 3, 3, 8, 128>}, {transform_indices = @transform_2, window_bounds = array<i64: 1, 128>}, {transform_indices = @transform_3, window_bounds = array<i64: 1, 16, 16, 128>}]} {
    %cst = arith.constant 0.000000e+00 : f32
    %0 = vector.broadcast %cst : f32 to vector<256x128xf32>
    %c0 = arith.constant 0 : index
    %c0_0 = arith.constant 0 : index
    %c0_1 = arith.constant 0 : index
    %c0_2 = arith.constant 0 : index
    %1 = vector.load %arg2[%c0, %c0_0, %c0_1, %c0_2] : memref<1x18x18x8xbf16, #tpu.memory_space<vmem>>, vector<1x16x16x8xbf16>
    %2 = vector.shape_cast %1 : vector<1x16x16x8xbf16> to vector<16x16x8xbf16>
    %3 = vector.shape_cast %2 : vector<16x16x8xbf16> to vector<256x8xbf16>
    %c0_3 = arith.constant 0 : index
    %c0_4 = arith.constant 0 : index
    %c0_5 = arith.constant 0 : index
    %c0_6 = arith.constant 0 : index
    %4 = vector.load %arg3[%c0_3, %c0_4, %c0_5, %c0_6] : memref<3x3x8x128xbf16, #tpu.memory_space<vmem>>, vector<1x1x8x128xbf16>
    %5 = vector.shape_cast %4 : vector<1x1x8x128xbf16> to vector<8x128xbf16>
    %cst_7 = arith.constant dense<0.000000e+00> : vector<256x128xf32>
    %6 = tpu.matmul %3, %5, %cst_7 {dimension_numbers = #tpu.dot_dimension_numbers<[1], [0], [0], [1], [0, 0, 1, 1], [], []>} : vector<256x8xbf16>, vector<8x128xbf16>, vector<256x128xf32> -> vector<256x128xf32>
    %7 = arith.addf %0, %6 : vector<256x128xf32>
    %c0_8 = arith.constant 0 : index
    %c0_9 = arith.constant 0 : index
    %c1 = arith.constant 1 : index
    %c0_10 = arith.constant 0 : index
    %8 = vector.load %arg2[%c0_8, %c0_9, %c1, %c0_10] : memref<1x18x18x8xbf16, #tpu.memory_space<vmem>>, vector<1x16x16x8xbf16>
    %9 = vector.shape_cast %8 : vector<1x16x16x8xbf16> to vector<16x16x8xbf16>
    %10 = vector.shape_cast %9 : vector<16x16x8xbf16> to vector<256x8xbf16>
    %c0_11 = arith.constant 0 : index
    %c1_12 = arith.constant 1 : index
    %c0_13 = arith.constant 0 : index
    %c0_14 = arith.constant 0 : index
    %11 = vector.load %arg3[%c0_11, %c1_12, %c0_13, %c0_14] : memref<3x3x8x128xbf16, #tpu.memory_space<vmem>>, vector<1x1x8x128xbf16>
    %12 = vector.shape_cast %11 : vector<1x1x8x128xbf16> to vector<8x128xbf16>
    %cst_15 = arith.constant dense<0.000000e+00> : vector<256x128xf32>
    %13 = tpu.matmul %10, %12, %cst_15 {dimension_numbers = #tpu.dot_dimension_numbers<[1], [0], [0], [1], [0, 0, 1, 1], [], []>} : vector<256x8xbf16>, vector<8x128xbf16>, vector<256x128xf32> -> vector<256x128xf32>
    %14 = arith.addf %7, %13 : vector<256x128xf32>
    %c0_16 = arith.constant 0 : index
    %c0_17 = arith.constant 0 : index
    %c2 = arith.constant 2 : index
    %c0_18 = arith.constant 0 : index
    %15 = vector.load %arg2[%c0_16, %c0_17, %c2, %c0_18] : memref<1x18x18x8xbf16, #tpu.memory_space<vmem>>, vector<1x16x16x8xbf16>
    %16 = vector.shape_cast %15 : vector<1x16x16x8xbf16> to vector<16x16x8xbf16>
    %17 = vector.shape_cast %16 : vector<16x16x8xbf16> to vector<256x8xbf16>
    %c0_19 = arith.constant 0 : index
    %c2_20 = arith.constant 2 : index
    %c0_21 = arith.constant 0 : index
    %c0_22 = arith.constant 0 : index
    %18 = vector.load %arg3[%c0_19, %c2_20, %c0_21, %c0_22] : memref<3x3x8x128xbf16, #tpu.memory_space<vmem>>, vector<1x1x8x128xbf16>
    %19 = vector.shape_cast %18 : vector<1x1x8x128xbf16> to vector<8x128xbf16>
    %cst_23 = arith.constant dense<0.000000e+00> : vector<256x128xf32>
    %20 = tpu.matmul %17, %19, %cst_23 {dimension_numbers = #tpu.dot_dimension_numbers<[1], [0], [0], [1], [0, 0, 1, 1], [], []>} : vector<256x8xbf16>, vector<8x128xbf16>, vector<256x128xf32> -> vector<256x128xf32>
    %21 = arith.addf %14, %20 : vector<256x128xf32>
    %c0_24 = arith.constant 0 : index
    %c1_25 = arith.constant 1 : index
    %c0_26 = arith.constant 0 : index
    %c0_27 = arith.constant 0 : index
    %22 = vector.load %arg2[%c0_24, %c1_25, %c0_26, %c0_27] : memref<1x18x18x8xbf16, #tpu.memory_space<vmem>>, vector<1x16x16x8xbf16>
    %23 = vector.shape_cast %22 : vector<1x16x16x8xbf16> to vector<16x16x8xbf16>
    %24 = vector.shape_cast %23 : vector<16x16x8xbf16> to vector<256x8xbf16>
    %c1_28 = arith.constant 1 : index
    %c0_29 = arith.constant 0 : index
    %c0_30 = arith.constant 0 : index
    %c0_31 = arith.constant 0 : index
    %25 = vector.load %arg3[%c1_28, %c0_29, %c0_30, %c0_31] : memref<3x3x8x128xbf16, #tpu.memory_space<vmem>>, vector<1x1x8x128xbf16>
    %26 = vector.shape_cast %25 : vector<1x1x8x128xbf16> to vector<8x128xbf16>
    %cst_32 = arith.constant dense<0.000000e+00> : vector<256x128xf32>
    %27 = tpu.matmul %24, %26, %cst_32 {dimension_numbers = #tpu.dot_dimension_numbers<[1], [0], [0], [1], [0, 0, 1, 1], [], []>} : vector<256x8xbf16>, vector<8x128xbf16>, vector<256x128xf32> -> vector<256x128xf32>
    %28 = arith.addf %21, %27 : vector<256x128xf32>
    %c0_33 = arith.constant 0 : index
    %c1_34 = arith.constant 1 : index
    %c1_35 = arith.constant 1 : index
    %c0_36 = arith.constant 0 : index
    %29 = vector.load %arg2[%c0_33, %c1_34, %c1_35, %c0_36] : memref<1x18x18x8xbf16, #tpu.memory_space<vmem>>, vector<1x16x16x8xbf16>
    %30 = vector.shape_cast %29 : vector<1x16x16x8xbf16> to vector<16x16x8xbf16>
    %31 = vector.shape_cast %30 : vector<16x16x8xbf16> to vector<256x8xbf16>
    %c1_37 = arith.constant 1 : index
    %c1_38 = arith.constant 1 : index
    %c0_39 = arith.constant 0 : index
    %c0_40 = arith.constant 0 : index
    %32 = vector.load %arg3[%c1_37, %c1_38, %c0_39, %c0_40] : memref<3x3x8x128xbf16, #tpu.memory_space<vmem>>, vector<1x1x8x128xbf16>
    %33 = vector.shape_cast %32 : vector<1x1x8x128xbf16> to vector<8x128xbf16>
    %cst_41 = arith.constant dense<0.000000e+00> : vector<256x128xf32>
    %34 = tpu.matmul %31, %33, %cst_41 {dimension_numbers = #tpu.dot_dimension_numbers<[1], [0], [0], [1], [0, 0, 1, 1], [], []>} : vector<256x8xbf16>, vector<8x128xbf16>, vector<256x128xf32> -> vector<256x128xf32>
    %35 = arith.addf %28, %34 : vector<256x128xf32>
    %c0_42 = arith.constant 0 : index
    %c1_43 = arith.constant 1 : index
    %c2_44 = arith.constant 2 : index
    %c0_45 = arith.constant 0 : index
    %36 = vector.load %arg2[%c0_42, %c1_43, %c2_44, %c0_45] : memref<1x18x18x8xbf16, #tpu.memory_space<vmem>>, vector<1x16x16x8xbf16>
    %37 = vector.shape_cast %36 : vector<1x16x16x8xbf16> to vector<16x16x8xbf16>
    %38 = vector.shape_cast %37 : vector<16x16x8xbf16> to vector<256x8xbf16>
    %c1_46 = arith.constant 1 : index
    %c2_47 = arith.constant 2 : index
    %c0_48 = arith.constant 0 : index
    %c0_49 = arith.constant 0 : index
    %39 = vector.load %arg3[%c1_46, %c2_47, %c0_48, %c0_49] : memref<3x3x8x128xbf16, #tpu.memory_space<vmem>>, vector<1x1x8x128xbf16>
    %40 = vector.shape_cast %39 : vector<1x1x8x128xbf16> to vector<8x128xbf16>
    %cst_50 = arith.constant dense<0.000000e+00> : vector<256x128xf32>
    %41 = tpu.matmul %38, %40, %cst_50 {dimension_numbers = #tpu.dot_dimension_numbers<[1], [0], [0], [1], [0, 0, 1, 1], [], []>} : vector<256x8xbf16>, vector<8x128xbf16>, vector<256x128xf32> -> vector<256x128xf32>
    %42 = arith.addf %35, %41 : vector<256x128xf32>
    %c0_51 = arith.constant 0 : index
    %c2_52 = arith.constant 2 : index
    %c0_53 = arith.constant 0 : index
    %c0_54 = arith.constant 0 : index
    %43 = vector.load %arg2[%c0_51, %c2_52, %c0_53, %c0_54] : memref<1x18x18x8xbf16, #tpu.memory_space<vmem>>, vector<1x16x16x8xbf16>
    %44 = vector.shape_cast %43 : vector<1x16x16x8xbf16> to vector<16x16x8xbf16>
    %45 = vector.shape_cast %44 : vector<16x16x8xbf16> to vector<256x8xbf16>
    %c2_55 = arith.constant 2 : index
    %c0_56 = arith.constant 0 : index
    %c0_57 = arith.constant 0 : index
    %c0_58 = arith.constant 0 : index
    %46 = vector.load %arg3[%c2_55, %c0_56, %c0_57, %c0_58] : memref<3x3x8x128xbf16, #tpu.memory_space<vmem>>, vector<1x1x8x128xbf16>
    %47 = vector.shape_cast %46 : vector<1x1x8x128xbf16> to vector<8x128xbf16>
    %cst_59 = arith.constant dense<0.000000e+00> : vector<256x128xf32>
    %48 = tpu.matmul %45, %47, %cst_59 {dimension_numbers = #tpu.dot_dimension_numbers<[1], [0], [0], [1], [0, 0, 1, 1], [], []>} : vector<256x8xbf16>, vector<8x128xbf16>, vector<256x128xf32> -> vector<256x128xf32>
    %49 = arith.addf %42, %48 : vector<256x128xf32>
    %c0_60 = arith.constant 0 : index
    %c2_61 = arith.constant 2 : index
    %c1_62 = arith.constant 1 : index
    %c0_63 = arith.constant 0 : index
    %50 = vector.load %arg2[%c0_60, %c2_61, %c1_62, %c0_63] : memref<1x18x18x8xbf16, #tpu.memory_space<vmem>>, vector<1x16x16x8xbf16>
    %51 = vector.shape_cast %50 : vector<1x16x16x8xbf16> to vector<16x16x8xbf16>
    %52 = vector.shape_cast %51 : vector<16x16x8xbf16> to vector<256x8xbf16>
    %c2_64 = arith.constant 2 : index
    %c1_65 = arith.constant 1 : index
    %c0_66 = arith.constant 0 : index
    %c0_67 = arith.constant 0 : index
    %53 = vector.load %arg3[%c2_64, %c1_65, %c0_66, %c0_67] : memref<3x3x8x128xbf16, #tpu.memory_space<vmem>>, vector<1x1x8x128xbf16>
    %54 = vector.shape_cast %53 : vector<1x1x8x128xbf16> to vector<8x128xbf16>
    %cst_68 = arith.constant dense<0.000000e+00> : vector<256x128xf32>
    %55 = tpu.matmul %52, %54, %cst_68 {dimension_numbers = #tpu.dot_dimension_numbers<[1], [0], [0], [1], [0, 0, 1, 1], [], []>} : vector<256x8xbf16>, vector<8x128xbf16>, vector<256x128xf32> -> vector<256x128xf32>
    %56 = arith.addf %49, %55 : vector<256x128xf32>
    %c0_69 = arith.constant 0 : index
    %c2_70 = arith.constant 2 : index
    %c2_71 = arith.constant 2 : index
    %c0_72 = arith.constant 0 : index
    %57 = vector.load %arg2[%c0_69, %c2_70, %c2_71, %c0_72] : memref<1x18x18x8xbf16, #tpu.memory_space<vmem>>, vector<1x16x16x8xbf16>
    %58 = vector.shape_cast %57 : vector<1x16x16x8xbf16> to vector<16x16x8xbf16>
    %59 = vector.shape_cast %58 : vector<16x16x8xbf16> to vector<256x8xbf16>
    %c2_73 = arith.constant 2 : index
    %c2_74 = arith.constant 2 : index
    %c0_75 = arith.constant 0 : index
    %c0_76 = arith.constant 0 : index
    %60 = vector.load %arg3[%c2_73, %c2_74, %c0_75, %c0_76] : memref<3x3x8x128xbf16, #tpu.memory_space<vmem>>, vector<1x1x8x128xbf16>
    %61 = vector.shape_cast %60 : vector<1x1x8x128xbf16> to vector<8x128xbf16>
    %cst_77 = arith.constant dense<0.000000e+00> : vector<256x128xf32>
    %62 = tpu.matmul %59, %61, %cst_77 {dimension_numbers = #tpu.dot_dimension_numbers<[1], [0], [0], [1], [0, 0, 1, 1], [], []>} : vector<256x8xbf16>, vector<8x128xbf16>, vector<256x128xf32> -> vector<256x128xf32>
    %63 = arith.addf %56, %62 : vector<256x128xf32>
    %c0_78 = arith.constant 0 : index
    %c0_79 = arith.constant 0 : index
    %64 = vector.load %arg4[%c0_78, %c0_79] : memref<1x128xf32, #tpu.memory_space<vmem>>, vector<1x128xf32>
    %65 = vector.broadcast %64 : vector<1x128xf32> to vector<256x128xf32>
    %66 = arith.addf %63, %65 : vector<256x128xf32>
    %cst_80 = arith.constant 0.000000e+00 : f32
    %67 = vector.broadcast %cst_80 : f32 to vector<256x128xf32>
    %68 = arith.maximumf %66, %67 : vector<256x128xf32>
    %69 = vector.shape_cast %68 : vector<256x128xf32> to vector<16x16x128xf32>
    %70 = arith.truncf %69 : vector<16x16x128xf32> to vector<16x16x128xbf16>
    %c0_81 = arith.constant 0 : index
    %c0_82 = arith.constant 0 : index
    %c0_83 = arith.constant 0 : index
    %c0_84 = arith.constant 0 : index
    %71 = vector.load %arg5[%c0_81, %c0_82, %c0_83, %c0_84] : memref<1x16x16x128xbf16, #tpu.memory_space<vmem>>, vector<1x16x16x128xbf16>
    %72 = vector.shape_cast %71 : vector<1x16x16x128xbf16> to vector<16x16x128xbf16>
    %73 = vector.shape_cast %70 : vector<16x16x128xbf16> to vector<1x16x16x128xbf16>
    tpu.vector_store %arg5[%c0_81, %c0_82, %c0_83, %c0_84], %73 {strides = array<i32>} : memref<1x16x16x128xbf16, #tpu.memory_space<vmem>>, vector<1x16x16x128xbf16>,
    return
  }
  func.func @transform_0(%arg0: i32, %arg1: i32) -> (i32, i32, i32, i32) {
    %c0_i32 = arith.constant 0 : i32
    %c0_i32_0 = arith.constant 0 : i32
    %c0_i32_1 = arith.constant 0 : i32
    %c0_i32_2 = arith.constant 0 : i32
    return %arg0, %c0_i32, %c0_i32_0, %c0_i32_1 : i32, i32, i32, i32
  }
  func.func @transform_1(%arg0: i32, %arg1: i32) -> (i32, i32, i32, i32) {
    %c0_i32 = arith.constant 0 : i32
    %c0_i32_0 = arith.constant 0 : i32
    %c0_i32_1 = arith.constant 0 : i32
    %c0_i32_2 = arith.constant 0 : i32
    return %c0_i32, %c0_i32_0, %c0_i32_1, %arg1 : i32, i32, i32, i32
  }
  func.func @transform_2(%arg0: i32, %arg1: i32) -> (i32, i32) {
    %c0_i32 = arith.constant 0 : i32
    %c0_i32_0 = arith.constant 0 : i32
    return %c0_i32, %arg1 : i32, i32
  }
  func.func @transform_3(%arg0: i32, %arg1: i32) -> (i32, i32, i32, i32) {
    %c0_i32 = arith.constant 0 : i32
    %c0_i32_0 = arith.constant 0 : i32
    %c0_i32_1 = arith.constant 0 : i32
    return %arg0, %c0_i32, %c0_i32_0, %arg1 : i32, i32, i32, i32
  }
}

module attributes {stable_mosaic.version = 11 : i64} {
  func.func @_conv3x3_kernel(%arg0: i32, %arg1: i32, %arg2: memref<1x18x18x128xbf16, #tpu.memory_space<vmem>>, %arg3: memref<3x3x128x128xbf16, #tpu.memory_space<vmem>>, %arg4: memref<1x128xf32, #tpu.memory_space<vmem>>, %arg5: memref<1x16x16x128xbf16, #tpu.memory_space<vmem>>) attributes {dimension_semantics = [#tpu.dimension_semantics<parallel>, #tpu.dimension_semantics<parallel>], iteration_bounds = array<i64: 4, 1>, scalar_prefetch = 0 : i64, scratch_operands = 0 : i64, tpu.core_type = #tpu.core_type<tc>, window_params = [{transform_indices = @transform_0, window_bounds = array<i64: 1, 18, 18, 128>}, {transform_indices = @transform_1, window_bounds = array<i64: 3, 3, 128, 128>}, {transform_indices = @transform_2, window_bounds = array<i64: 1, 128>}, {transform_indices = @transform_3, window_bounds = array<i64: 1, 16, 16, 128>}]} {
    %cst = arith.constant 0.000000e+00 : f32
    %0 = vector.broadcast %cst : f32 to vector<256x128xf32>
    %c0 = arith.constant 0 : index
    %c0_0 = arith.constant 0 : index
    %c0_1 = arith.constant 0 : index
    %c0_2 = arith.constant 0 : index
    %1 = vector.load %arg2[%c0, %c0_0, %c0_1, %c0_2] : memref<1x18x18x128xbf16, #tpu.memory_space<vmem>>, vector<1x16x16x128xbf16>
    %2 = vector.shape_cast %1 : vector<1x16x16x128xbf16> to vector<16x16x128xbf16>
    %3 = vector.shape_cast %2 : vector<16x16x128xbf16> to vector<256x128xbf16>
    %c0_3 = arith.constant 0 : index
    %c0_4 = arith.constant 0 : index
    %c0_5 = arith.constant 0 : index
    %c0_6 = arith.constant 0 : index
    %4 = vector.load %arg3[%c0_3, %c0_4, %c0_5, %c0_6] : memref<3x3x128x128xbf16, #tpu.memory_space<vmem>>, vector<1x1x128x128xbf16>
    %5 = vector.shape_cast %4 : vector<1x1x128x128xbf16> to vector<128x128xbf16>
    %cst_7 = arith.constant dense<0.000000e+00> : vector<256x128xf32>
    %6 = tpu.matmul %3, %5, %cst_7 {dimension_numbers = #tpu.dot_dimension_numbers<[1], [0], [0], [1], [0, 0, 1, 1], [], []>} : vector<256x128xbf16>, vector<128x128xbf16>, vector<256x128xf32> -> vector<256x128xf32>
    %7 = arith.addf %0, %6 : vector<256x128xf32>
    %c0_8 = arith.constant 0 : index
    %c0_9 = arith.constant 0 : index
    %c1 = arith.constant 1 : index
    %c0_10 = arith.constant 0 : index
    %8 = vector.load %arg2[%c0_8, %c0_9, %c1, %c0_10] : memref<1x18x18x128xbf16, #tpu.memory_space<vmem>>, vector<1x16x16x128xbf16>
    %9 = vector.shape_cast %8 : vector<1x16x16x128xbf16> to vector<16x16x128xbf16>
    %10 = vector.shape_cast %9 : vector<16x16x128xbf16> to vector<256x128xbf16>
    %c0_11 = arith.constant 0 : index
    %c1_12 = arith.constant 1 : index
    %c0_13 = arith.constant 0 : index
    %c0_14 = arith.constant 0 : index
    %11 = vector.load %arg3[%c0_11, %c1_12, %c0_13, %c0_14] : memref<3x3x128x128xbf16, #tpu.memory_space<vmem>>, vector<1x1x128x128xbf16>
    %12 = vector.shape_cast %11 : vector<1x1x128x128xbf16> to vector<128x128xbf16>
    %cst_15 = arith.constant dense<0.000000e+00> : vector<256x128xf32>
    %13 = tpu.matmul %10, %12, %cst_15 {dimension_numbers = #tpu.dot_dimension_numbers<[1], [0], [0], [1], [0, 0, 1, 1], [], []>} : vector<256x128xbf16>, vector<128x128xbf16>, vector<256x128xf32> -> vector<256x128xf32>
    %14 = arith.addf %7, %13 : vector<256x128xf32>
    %c0_16 = arith.constant 0 : index
    %c0_17 = arith.constant 0 : index
    %c2 = arith.constant 2 : index
    %c0_18 = arith.constant 0 : index
    %15 = vector.load %arg2[%c0_16, %c0_17, %c2, %c0_18] : memref<1x18x18x128xbf16, #tpu.memory_space<vmem>>, vector<1x16x16x128xbf16>
    %16 = vector.shape_cast %15 : vector<1x16x16x128xbf16> to vector<16x16x128xbf16>
    %17 = vector.shape_cast %16 : vector<16x16x128xbf16> to vector<256x128xbf16>
    %c0_19 = arith.constant 0 : index
    %c2_20 = arith.constant 2 : index
    %c0_21 = arith.constant 0 : index
    %c0_22 = arith.constant 0 : index
    %18 = vector.load %arg3[%c0_19, %c2_20, %c0_21, %c0_22] : memref<3x3x128x128xbf16, #tpu.memory_space<vmem>>, vector<1x1x128x128xbf16>
    %19 = vector.shape_cast %18 : vector<1x1x128x128xbf16> to vector<128x128xbf16>
    %cst_23 = arith.constant dense<0.000000e+00> : vector<256x128xf32>
    %20 = tpu.matmul %17, %19, %cst_23 {dimension_numbers = #tpu.dot_dimension_numbers<[1], [0], [0], [1], [0, 0, 1, 1], [], []>} : vector<256x128xbf16>, vector<128x128xbf16>, vector<256x128xf32> -> vector<256x128xf32>
    %21 = arith.addf %14, %20 : vector<256x128xf32>
    %c0_24 = arith.constant 0 : index
    %c1_25 = arith.constant 1 : index
    %c0_26 = arith.constant 0 : index
    %c0_27 = arith.constant 0 : index
    %22 = vector.load %arg2[%c0_24, %c1_25, %c0_26, %c0_27] : memref<1x18x18x128xbf16, #tpu.memory_space<vmem>>, vector<1x16x16x128xbf16>
    %23 = vector.shape_cast %22 : vector<1x16x16x128xbf16> to vector<16x16x128xbf16>
    %24 = vector.shape_cast %23 : vector<16x16x128xbf16> to vector<256x128xbf16>
    %c1_28 = arith.constant 1 : index
    %c0_29 = arith.constant 0 : index
    %c0_30 = arith.constant 0 : index
    %c0_31 = arith.constant 0 : index
    %25 = vector.load %arg3[%c1_28, %c0_29, %c0_30, %c0_31] : memref<3x3x128x128xbf16, #tpu.memory_space<vmem>>, vector<1x1x128x128xbf16>
    %26 = vector.shape_cast %25 : vector<1x1x128x128xbf16> to vector<128x128xbf16>
    %cst_32 = arith.constant dense<0.000000e+00> : vector<256x128xf32>
    %27 = tpu.matmul %24, %26, %cst_32 {dimension_numbers = #tpu.dot_dimension_numbers<[1], [0], [0], [1], [0, 0, 1, 1], [], []>} : vector<256x128xbf16>, vector<128x128xbf16>, vector<256x128xf32> -> vector<256x128xf32>
    %28 = arith.addf %21, %27 : vector<256x128xf32>
    %c0_33 = arith.constant 0 : index
    %c1_34 = arith.constant 1 : index
    %c1_35 = arith.constant 1 : index
    %c0_36 = arith.constant 0 : index
    %29 = vector.load %arg2[%c0_33, %c1_34, %c1_35, %c0_36] : memref<1x18x18x128xbf16, #tpu.memory_space<vmem>>, vector<1x16x16x128xbf16>
    %30 = vector.shape_cast %29 : vector<1x16x16x128xbf16> to vector<16x16x128xbf16>
    %31 = vector.shape_cast %30 : vector<16x16x128xbf16> to vector<256x128xbf16>
    %c1_37 = arith.constant 1 : index
    %c1_38 = arith.constant 1 : index
    %c0_39 = arith.constant 0 : index
    %c0_40 = arith.constant 0 : index
    %32 = vector.load %arg3[%c1_37, %c1_38, %c0_39, %c0_40] : memref<3x3x128x128xbf16, #tpu.memory_space<vmem>>, vector<1x1x128x128xbf16>
    %33 = vector.shape_cast %32 : vector<1x1x128x128xbf16> to vector<128x128xbf16>
    %cst_41 = arith.constant dense<0.000000e+00> : vector<256x128xf32>
    %34 = tpu.matmul %31, %33, %cst_41 {dimension_numbers = #tpu.dot_dimension_numbers<[1], [0], [0], [1], [0, 0, 1, 1], [], []>} : vector<256x128xbf16>, vector<128x128xbf16>, vector<256x128xf32> -> vector<256x128xf32>
    %35 = arith.addf %28, %34 : vector<256x128xf32>
    %c0_42 = arith.constant 0 : index
    %c1_43 = arith.constant 1 : index
    %c2_44 = arith.constant 2 : index
    %c0_45 = arith.constant 0 : index
    %36 = vector.load %arg2[%c0_42, %c1_43, %c2_44, %c0_45] : memref<1x18x18x128xbf16, #tpu.memory_space<vmem>>, vector<1x16x16x128xbf16>
    %37 = vector.shape_cast %36 : vector<1x16x16x128xbf16> to vector<16x16x128xbf16>
    %38 = vector.shape_cast %37 : vector<16x16x128xbf16> to vector<256x128xbf16>
    %c1_46 = arith.constant 1 : index
    %c2_47 = arith.constant 2 : index
    %c0_48 = arith.constant 0 : index
    %c0_49 = arith.constant 0 : index
    %39 = vector.load %arg3[%c1_46, %c2_47, %c0_48, %c0_49] : memref<3x3x128x128xbf16, #tpu.memory_space<vmem>>, vector<1x1x128x128xbf16>
    %40 = vector.shape_cast %39 : vector<1x1x128x128xbf16> to vector<128x128xbf16>
    %cst_50 = arith.constant dense<0.000000e+00> : vector<256x128xf32>
    %41 = tpu.matmul %38, %40, %cst_50 {dimension_numbers = #tpu.dot_dimension_numbers<[1], [0], [0], [1], [0, 0, 1, 1], [], []>} : vector<256x128xbf16>, vector<128x128xbf16>, vector<256x128xf32> -> vector<256x128xf32>
    %42 = arith.addf %35, %41 : vector<256x128xf32>
    %c0_51 = arith.constant 0 : index
    %c2_52 = arith.constant 2 : index
    %c0_53 = arith.constant 0 : index
    %c0_54 = arith.constant 0 : index
    %43 = vector.load %arg2[%c0_51, %c2_52, %c0_53, %c0_54] : memref<1x18x18x128xbf16, #tpu.memory_space<vmem>>, vector<1x16x16x128xbf16>
    %44 = vector.shape_cast %43 : vector<1x16x16x128xbf16> to vector<16x16x128xbf16>
    %45 = vector.shape_cast %44 : vector<16x16x128xbf16> to vector<256x128xbf16>
    %c2_55 = arith.constant 2 : index
    %c0_56 = arith.constant 0 : index
    %c0_57 = arith.constant 0 : index
    %c0_58 = arith.constant 0 : index
    %46 = vector.load %arg3[%c2_55, %c0_56, %c0_57, %c0_58] : memref<3x3x128x128xbf16, #tpu.memory_space<vmem>>, vector<1x1x128x128xbf16>
    %47 = vector.shape_cast %46 : vector<1x1x128x128xbf16> to vector<128x128xbf16>
    %cst_59 = arith.constant dense<0.000000e+00> : vector<256x128xf32>
    %48 = tpu.matmul %45, %47, %cst_59 {dimension_numbers = #tpu.dot_dimension_numbers<[1], [0], [0], [1], [0, 0, 1, 1], [], []>} : vector<256x128xbf16>, vector<128x128xbf16>, vector<256x128xf32> -> vector<256x128xf32>
    %49 = arith.addf %42, %48 : vector<256x128xf32>
    %c0_60 = arith.constant 0 : index
    %c2_61 = arith.constant 2 : index
    %c1_62 = arith.constant 1 : index
    %c0_63 = arith.constant 0 : index
    %50 = vector.load %arg2[%c0_60, %c2_61, %c1_62, %c0_63] : memref<1x18x18x128xbf16, #tpu.memory_space<vmem>>, vector<1x16x16x128xbf16>
    %51 = vector.shape_cast %50 : vector<1x16x16x128xbf16> to vector<16x16x128xbf16>
    %52 = vector.shape_cast %51 : vector<16x16x128xbf16> to vector<256x128xbf16>
    %c2_64 = arith.constant 2 : index
    %c1_65 = arith.constant 1 : index
    %c0_66 = arith.constant 0 : index
    %c0_67 = arith.constant 0 : index
    %53 = vector.load %arg3[%c2_64, %c1_65, %c0_66, %c0_67] : memref<3x3x128x128xbf16, #tpu.memory_space<vmem>>, vector<1x1x128x128xbf16>
    %54 = vector.shape_cast %53 : vector<1x1x128x128xbf16> to vector<128x128xbf16>
    %cst_68 = arith.constant dense<0.000000e+00> : vector<256x128xf32>
    %55 = tpu.matmul %52, %54, %cst_68 {dimension_numbers = #tpu.dot_dimension_numbers<[1], [0], [0], [1], [0, 0, 1, 1], [], []>} : vector<256x128xbf16>, vector<128x128xbf16>, vector<256x128xf32> -> vector<256x128xf32>
    %56 = arith.addf %49, %55 : vector<256x128xf32>
    %c0_69 = arith.constant 0 : index
    %c2_70 = arith.constant 2 : index
    %c2_71 = arith.constant 2 : index
    %c0_72 = arith.constant 0 : index
    %57 = vector.load %arg2[%c0_69, %c2_70, %c2_71, %c0_72] : memref<1x18x18x128xbf16, #tpu.memory_space<vmem>>, vector<1x16x16x128xbf16>
    %58 = vector.shape_cast %57 : vector<1x16x16x128xbf16> to vector<16x16x128xbf16>
    %59 = vector.shape_cast %58 : vector<16x16x128xbf16> to vector<256x128xbf16>
    %c2_73 = arith.constant 2 : index
    %c2_74 = arith.constant 2 : index
    %c0_75 = arith.constant 0 : index
    %c0_76 = arith.constant 0 : index
    %60 = vector.load %arg3[%c2_73, %c2_74, %c0_75, %c0_76] : memref<3x3x128x128xbf16, #tpu.memory_space<vmem>>, vector<1x1x128x128xbf16>
    %61 = vector.shape_cast %60 : vector<1x1x128x128xbf16> to vector<128x128xbf16>
    %cst_77 = arith.constant dense<0.000000e+00> : vector<256x128xf32>
    %62 = tpu.matmul %59, %61, %cst_77 {dimension_numbers = #tpu.dot_dimension_numbers<[1], [0], [0], [1], [0, 0, 1, 1], [], []>} : vector<256x128xbf16>, vector<128x128xbf16>, vector<256x128xf32> -> vector<256x128xf32>
    %63 = arith.addf %56, %62 : vector<256x128xf32>
    %c0_78 = arith.constant 0 : index
    %c0_79 = arith.constant 0 : index
    %64 = vector.load %arg4[%c0_78, %c0_79] : memref<1x128xf32, #tpu.memory_space<vmem>>, vector<1x128xf32>
    %65 = vector.broadcast %64 : vector<1x128xf32> to vector<256x128xf32>
    %66 = arith.addf %63, %65 : vector<256x128xf32>
    %cst_80 = arith.constant 0.000000e+00 : f32
    %67 = vector.broadcast %cst_80 : f32 to vector<256x128xf32>
    %68 = arith.maximumf %66, %67 : vector<256x128xf32>
    %69 = vector.shape_cast %68 : vector<256x128xf32> to vector<16x16x128xf32>
    %70 = arith.truncf %69 : vector<16x16x128xf32> to vector<16x16x128xbf16>
    %c0_81 = arith.constant 0 : index
    %c0_82 = arith.constant 0 : index
    %c0_83 = arith.constant 0 : index
    %c0_84 = arith.constant 0 : index
    %71 = vector.load %arg5[%c0_81, %c0_82, %c0_83, %c0_84] : memref<1x16x16x128xbf16, #tpu.memory_space<vmem>>, vector<1x16x16x128xbf16>
    %72 = vector.shape_cast %71 : vector<1x16x16x128xbf16> to vector<16x16x128xbf16>
    %73 = vector.shape_cast %70 : vector<16x16x128xbf16> to vector<1x16x16x128xbf16>
    tpu.vector_store %arg5[%c0_81, %c0_82, %c0_83, %c0_84], %73 {strides = array<i32>} : memref<1x16x16x128xbf16, #tpu.memory_space<vmem>>, vector<1x16x16x128xbf16>,
    return
  }
  func.func @transform_0(%arg0: i32, %arg1: i32) -> (i32, i32, i32, i32) {
    %c0_i32 = arith.constant 0 : i32
    %c0_i32_0 = arith.constant 0 : i32
    %c0_i32_1 = arith.constant 0 : i32
    %c0_i32_2 = arith.constant 0 : i32
    return %arg0, %c0_i32, %c0_i32_0, %c0_i32_1 : i32, i32, i32, i32
  }
  func.func @transform_1(%arg0: i32, %arg1: i32) -> (i32, i32, i32, i32) {
    %c0_i32 = arith.constant 0 : i32
    %c0_i32_0 = arith.constant 0 : i32
    %c0_i32_1 = arith.constant 0 : i32
    %c0_i32_2 = arith.constant 0 : i32
    return %c0_i32, %c0_i32_0, %c0_i32_1, %arg1 : i32, i32, i32, i32
  }
  func.func @transform_2(%arg0: i32, %arg1: i32) -> (i32, i32) {
    %c0_i32 = arith.constant 0 : i32
    %c0_i32_0 = arith.constant 0 : i32
    return %c0_i32, %arg1 : i32, i32
  }
  func.func @transform_3(%arg0: i32, %arg1: i32) -> (i32, i32, i32, i32) {
    %c0_i32 = arith.constant 0 : i32
    %c0_i32_0 = arith.constant 0 : i32
    %c0_i32_1 = arith.constant 0 : i32
    return %arg0, %c0_i32, %c0_i32_0, %arg1 : i32, i32, i32, i32
  }
}

module attributes {stable_mosaic.version = 11 : i64} {
  func.func @_mse_partial_kernel(%arg0: i32, %arg1: i32, %arg2: memref<256x128xbf16, #tpu.memory_space<vmem>>, %arg3: memref<256x128xbf16, #tpu.memory_space<vmem>>, %arg4: memref<1x8x128xf32, #tpu.memory_space<vmem>>) attributes {dimension_semantics = [#tpu.dimension_semantics<parallel>, #tpu.dimension_semantics<arbitrary>], iteration_bounds = array<i64: 2, 1>, scalar_prefetch = 0 : i64, scratch_operands = 0 : i64, tpu.core_type = #tpu.core_type<tc>, window_params = [{transform_indices = @transform_0, window_bounds = array<i64: 256, 128>}, {transform_indices = @transform_1, window_bounds = array<i64: 256, 128>}, {transform_indices = @transform_2, window_bounds = array<i64: 1, 8, 128>}]} {
    %c0_i32 = arith.constant 0 : i32
    %0 = arith.cmpi eq, %arg1, %c0_i32 : i32
    %1 = arith.extui %0 : i1 to i32
    %c0_i32_0 = arith.constant 0 : i32
    %2 = arith.cmpi ne, %1, %c0_i32_0 : i32
    scf.if %2 {
      %cst_10 = arith.constant 0.000000e+00 : f32
      %15 = vector.broadcast %cst_10 : f32 to vector<1x8x128xf32>
      %c0_11 = arith.constant 0 : index
      %c0_12 = arith.constant 0 : index
      %c0_13 = arith.constant 0 : index
      %16 = vector.load %arg4[%c0_11, %c0_12, %c0_13] : memref<1x8x128xf32, #tpu.memory_space<vmem>>, vector<1x8x128xf32>
      tpu.vector_store %arg4[%c0_11, %c0_12, %c0_13], %15 {strides = array<i32>} : memref<1x8x128xf32, #tpu.memory_space<vmem>>, vector<1x8x128xf32>,
    } else {
    }
    %c0 = arith.constant 0 : index
    %c0_1 = arith.constant 0 : index
    %3 = vector.load %arg2[%c0, %c0_1] : memref<256x128xbf16, #tpu.memory_space<vmem>>, vector<256x128xbf16>
    %4 = arith.extf %3 : vector<256x128xbf16> to vector<256x128xf32>
    %c0_2 = arith.constant 0 : index
    %c0_3 = arith.constant 0 : index
    %5 = vector.load %arg3[%c0_2, %c0_3] : memref<256x128xbf16, #tpu.memory_space<vmem>>, vector<256x128xbf16>
    %6 = arith.extf %5 : vector<256x128xbf16> to vector<256x128xf32>
    %7 = arith.subf %4, %6 : vector<256x128xf32>
    %8 = arith.mulf %7, %7 : vector<256x128xf32>
    %c0_4 = arith.constant 0 : index
    %c0_5 = arith.constant 0 : index
    %c0_6 = arith.constant 0 : index
    %9 = vector.load %arg4[%c0_4, %c0_5, %c0_6] : memref<1x8x128xf32, #tpu.memory_space<vmem>>, vector<1x8x128xf32>
    %10 = vector.shape_cast %8 : vector<256x128xf32> to vector<32x8x128xf32>
    %cst = arith.constant dense<0.000000e+00> : vector<8x128xf32>
    %11 = vector.multi_reduction <add>, %10, %cst [0] : vector<32x8x128xf32> to vector<8x128xf32>
    %12 = vector.shape_cast %11 : vector<8x128xf32> to vector<1x8x128xf32>
    %13 = arith.addf %9, %12 : vector<1x8x128xf32>
    %c0_7 = arith.constant 0 : index
    %c0_8 = arith.constant 0 : index
    %c0_9 = arith.constant 0 : index
    %14 = vector.load %arg4[%c0_7, %c0_8, %c0_9] : memref<1x8x128xf32, #tpu.memory_space<vmem>>, vector<1x8x128xf32>
    tpu.vector_store %arg4[%c0_7, %c0_8, %c0_9], %13 {strides = array<i32>} : memref<1x8x128xf32, #tpu.memory_space<vmem>>, vector<1x8x128xf32>,
    return
  }
  func.func @transform_0(%arg0: i32, %arg1: i32) -> (i32, i32) {
    %c1_i32 = arith.constant 1 : i32
    %0 = arith.muli %arg0, %c1_i32 : i32
    %1 = arith.addi %0, %arg1 : i32
    %c0_i32 = arith.constant 0 : i32
    %c0_i32_0 = arith.constant 0 : i32
    return %1, %c0_i32 : i32, i32
  }
  func.func @transform_1(%arg0: i32, %arg1: i32) -> (i32, i32) {
    %c1_i32 = arith.constant 1 : i32
    %0 = arith.muli %arg0, %c1_i32 : i32
    %1 = arith.addi %0, %arg1 : i32
    %c0_i32 = arith.constant 0 : i32
    %c0_i32_0 = arith.constant 0 : i32
    return %1, %c0_i32 : i32, i32
  }
  func.func @transform_2(%arg0: i32, %arg1: i32) -> (i32, i32, i32) {
    %c0_i32 = arith.constant 0 : i32
    %c0_i32_0 = arith.constant 0 : i32
    %c0_i32_1 = arith.constant 0 : i32
    return %arg0, %c0_i32, %c0_i32_0 : i32, i32, i32
  }
}

module attributes {stable_mosaic.version = 11 : i64} {
  func.func @_conv3x3_kernel(%arg0: i32, %arg1: i32, %arg2: memref<1x20x20x128xbf16, #tpu.memory_space<vmem>>, %arg3: memref<3x3x128x128xbf16, #tpu.memory_space<vmem>>, %arg4: memref<1x128xf32, #tpu.memory_space<vmem>>, %arg5: memref<1x16x16x128xbf16, #tpu.memory_space<vmem>>) attributes {dimension_semantics = [#tpu.dimension_semantics<parallel>, #tpu.dimension_semantics<parallel>], iteration_bounds = array<i64: 4, 1>, scalar_prefetch = 0 : i64, scratch_operands = 0 : i64, tpu.core_type = #tpu.core_type<tc>, window_params = [{transform_indices = @transform_0, window_bounds = array<i64: 1, 20, 20, 128>}, {transform_indices = @transform_1, window_bounds = array<i64: 3, 3, 128, 128>}, {transform_indices = @transform_2, window_bounds = array<i64: 1, 128>}, {transform_indices = @transform_3, window_bounds = array<i64: 1, 16, 16, 128>}]} {
    %cst = arith.constant 0.000000e+00 : f32
    %0 = vector.broadcast %cst : f32 to vector<256x128xf32>
    %c0 = arith.constant 0 : index
    %c0_0 = arith.constant 0 : index
    %c0_1 = arith.constant 0 : index
    %c0_2 = arith.constant 0 : index
    %1 = vector.load %arg2[%c0, %c0_0, %c0_1, %c0_2] : memref<1x20x20x128xbf16, #tpu.memory_space<vmem>>, vector<1x16x16x128xbf16>
    %2 = vector.shape_cast %1 : vector<1x16x16x128xbf16> to vector<16x16x128xbf16>
    %3 = vector.shape_cast %2 : vector<16x16x128xbf16> to vector<256x128xbf16>
    %c0_3 = arith.constant 0 : index
    %c0_4 = arith.constant 0 : index
    %c0_5 = arith.constant 0 : index
    %c0_6 = arith.constant 0 : index
    %4 = vector.load %arg3[%c0_3, %c0_4, %c0_5, %c0_6] : memref<3x3x128x128xbf16, #tpu.memory_space<vmem>>, vector<1x1x128x128xbf16>
    %5 = vector.shape_cast %4 : vector<1x1x128x128xbf16> to vector<128x128xbf16>
    %cst_7 = arith.constant dense<0.000000e+00> : vector<256x128xf32>
    %6 = tpu.matmul %3, %5, %cst_7 {dimension_numbers = #tpu.dot_dimension_numbers<[1], [0], [0], [1], [0, 0, 1, 1], [], []>} : vector<256x128xbf16>, vector<128x128xbf16>, vector<256x128xf32> -> vector<256x128xf32>
    %7 = arith.addf %0, %6 : vector<256x128xf32>
    %c0_8 = arith.constant 0 : index
    %c0_9 = arith.constant 0 : index
    %c2 = arith.constant 2 : index
    %c0_10 = arith.constant 0 : index
    %8 = vector.load %arg2[%c0_8, %c0_9, %c2, %c0_10] : memref<1x20x20x128xbf16, #tpu.memory_space<vmem>>, vector<1x16x16x128xbf16>
    %9 = vector.shape_cast %8 : vector<1x16x16x128xbf16> to vector<16x16x128xbf16>
    %10 = vector.shape_cast %9 : vector<16x16x128xbf16> to vector<256x128xbf16>
    %c0_11 = arith.constant 0 : index
    %c1 = arith.constant 1 : index
    %c0_12 = arith.constant 0 : index
    %c0_13 = arith.constant 0 : index
    %11 = vector.load %arg3[%c0_11, %c1, %c0_12, %c0_13] : memref<3x3x128x128xbf16, #tpu.memory_space<vmem>>, vector<1x1x128x128xbf16>
    %12 = vector.shape_cast %11 : vector<1x1x128x128xbf16> to vector<128x128xbf16>
    %cst_14 = arith.constant dense<0.000000e+00> : vector<256x128xf32>
    %13 = tpu.matmul %10, %12, %cst_14 {dimension_numbers = #tpu.dot_dimension_numbers<[1], [0], [0], [1], [0, 0, 1, 1], [], []>} : vector<256x128xbf16>, vector<128x128xbf16>, vector<256x128xf32> -> vector<256x128xf32>
    %14 = arith.addf %7, %13 : vector<256x128xf32>
    %c0_15 = arith.constant 0 : index
    %c0_16 = arith.constant 0 : index
    %c4 = arith.constant 4 : index
    %c0_17 = arith.constant 0 : index
    %15 = vector.load %arg2[%c0_15, %c0_16, %c4, %c0_17] : memref<1x20x20x128xbf16, #tpu.memory_space<vmem>>, vector<1x16x16x128xbf16>
    %16 = vector.shape_cast %15 : vector<1x16x16x128xbf16> to vector<16x16x128xbf16>
    %17 = vector.shape_cast %16 : vector<16x16x128xbf16> to vector<256x128xbf16>
    %c0_18 = arith.constant 0 : index
    %c2_19 = arith.constant 2 : index
    %c0_20 = arith.constant 0 : index
    %c0_21 = arith.constant 0 : index
    %18 = vector.load %arg3[%c0_18, %c2_19, %c0_20, %c0_21] : memref<3x3x128x128xbf16, #tpu.memory_space<vmem>>, vector<1x1x128x128xbf16>
    %19 = vector.shape_cast %18 : vector<1x1x128x128xbf16> to vector<128x128xbf16>
    %cst_22 = arith.constant dense<0.000000e+00> : vector<256x128xf32>
    %20 = tpu.matmul %17, %19, %cst_22 {dimension_numbers = #tpu.dot_dimension_numbers<[1], [0], [0], [1], [0, 0, 1, 1], [], []>} : vector<256x128xbf16>, vector<128x128xbf16>, vector<256x128xf32> -> vector<256x128xf32>
    %21 = arith.addf %14, %20 : vector<256x128xf32>
    %c0_23 = arith.constant 0 : index
    %c2_24 = arith.constant 2 : index
    %c0_25 = arith.constant 0 : index
    %c0_26 = arith.constant 0 : index
    %22 = vector.load %arg2[%c0_23, %c2_24, %c0_25, %c0_26] : memref<1x20x20x128xbf16, #tpu.memory_space<vmem>>, vector<1x16x16x128xbf16>
    %23 = vector.shape_cast %22 : vector<1x16x16x128xbf16> to vector<16x16x128xbf16>
    %24 = vector.shape_cast %23 : vector<16x16x128xbf16> to vector<256x128xbf16>
    %c1_27 = arith.constant 1 : index
    %c0_28 = arith.constant 0 : index
    %c0_29 = arith.constant 0 : index
    %c0_30 = arith.constant 0 : index
    %25 = vector.load %arg3[%c1_27, %c0_28, %c0_29, %c0_30] : memref<3x3x128x128xbf16, #tpu.memory_space<vmem>>, vector<1x1x128x128xbf16>
    %26 = vector.shape_cast %25 : vector<1x1x128x128xbf16> to vector<128x128xbf16>
    %cst_31 = arith.constant dense<0.000000e+00> : vector<256x128xf32>
    %27 = tpu.matmul %24, %26, %cst_31 {dimension_numbers = #tpu.dot_dimension_numbers<[1], [0], [0], [1], [0, 0, 1, 1], [], []>} : vector<256x128xbf16>, vector<128x128xbf16>, vector<256x128xf32> -> vector<256x128xf32>
    %28 = arith.addf %21, %27 : vector<256x128xf32>
    %c0_32 = arith.constant 0 : index
    %c2_33 = arith.constant 2 : index
    %c2_34 = arith.constant 2 : index
    %c0_35 = arith.constant 0 : index
    %29 = vector.load %arg2[%c0_32, %c2_33, %c2_34, %c0_35] : memref<1x20x20x128xbf16, #tpu.memory_space<vmem>>, vector<1x16x16x128xbf16>
    %30 = vector.shape_cast %29 : vector<1x16x16x128xbf16> to vector<16x16x128xbf16>
    %31 = vector.shape_cast %30 : vector<16x16x128xbf16> to vector<256x128xbf16>
    %c1_36 = arith.constant 1 : index
    %c1_37 = arith.constant 1 : index
    %c0_38 = arith.constant 0 : index
    %c0_39 = arith.constant 0 : index
    %32 = vector.load %arg3[%c1_36, %c1_37, %c0_38, %c0_39] : memref<3x3x128x128xbf16, #tpu.memory_space<vmem>>, vector<1x1x128x128xbf16>
    %33 = vector.shape_cast %32 : vector<1x1x128x128xbf16> to vector<128x128xbf16>
    %cst_40 = arith.constant dense<0.000000e+00> : vector<256x128xf32>
    %34 = tpu.matmul %31, %33, %cst_40 {dimension_numbers = #tpu.dot_dimension_numbers<[1], [0], [0], [1], [0, 0, 1, 1], [], []>} : vector<256x128xbf16>, vector<128x128xbf16>, vector<256x128xf32> -> vector<256x128xf32>
    %35 = arith.addf %28, %34 : vector<256x128xf32>
    %c0_41 = arith.constant 0 : index
    %c2_42 = arith.constant 2 : index
    %c4_43 = arith.constant 4 : index
    %c0_44 = arith.constant 0 : index
    %36 = vector.load %arg2[%c0_41, %c2_42, %c4_43, %c0_44] : memref<1x20x20x128xbf16, #tpu.memory_space<vmem>>, vector<1x16x16x128xbf16>
    %37 = vector.shape_cast %36 : vector<1x16x16x128xbf16> to vector<16x16x128xbf16>
    %38 = vector.shape_cast %37 : vector<16x16x128xbf16> to vector<256x128xbf16>
    %c1_45 = arith.constant 1 : index
    %c2_46 = arith.constant 2 : index
    %c0_47 = arith.constant 0 : index
    %c0_48 = arith.constant 0 : index
    %39 = vector.load %arg3[%c1_45, %c2_46, %c0_47, %c0_48] : memref<3x3x128x128xbf16, #tpu.memory_space<vmem>>, vector<1x1x128x128xbf16>
    %40 = vector.shape_cast %39 : vector<1x1x128x128xbf16> to vector<128x128xbf16>
    %cst_49 = arith.constant dense<0.000000e+00> : vector<256x128xf32>
    %41 = tpu.matmul %38, %40, %cst_49 {dimension_numbers = #tpu.dot_dimension_numbers<[1], [0], [0], [1], [0, 0, 1, 1], [], []>} : vector<256x128xbf16>, vector<128x128xbf16>, vector<256x128xf32> -> vector<256x128xf32>
    %42 = arith.addf %35, %41 : vector<256x128xf32>
    %c0_50 = arith.constant 0 : index
    %c4_51 = arith.constant 4 : index
    %c0_52 = arith.constant 0 : index
    %c0_53 = arith.constant 0 : index
    %43 = vector.load %arg2[%c0_50, %c4_51, %c0_52, %c0_53] : memref<1x20x20x128xbf16, #tpu.memory_space<vmem>>, vector<1x16x16x128xbf16>
    %44 = vector.shape_cast %43 : vector<1x16x16x128xbf16> to vector<16x16x128xbf16>
    %45 = vector.shape_cast %44 : vector<16x16x128xbf16> to vector<256x128xbf16>
    %c2_54 = arith.constant 2 : index
    %c0_55 = arith.constant 0 : index
    %c0_56 = arith.constant 0 : index
    %c0_57 = arith.constant 0 : index
    %46 = vector.load %arg3[%c2_54, %c0_55, %c0_56, %c0_57] : memref<3x3x128x128xbf16, #tpu.memory_space<vmem>>, vector<1x1x128x128xbf16>
    %47 = vector.shape_cast %46 : vector<1x1x128x128xbf16> to vector<128x128xbf16>
    %cst_58 = arith.constant dense<0.000000e+00> : vector<256x128xf32>
    %48 = tpu.matmul %45, %47, %cst_58 {dimension_numbers = #tpu.dot_dimension_numbers<[1], [0], [0], [1], [0, 0, 1, 1], [], []>} : vector<256x128xbf16>, vector<128x128xbf16>, vector<256x128xf32> -> vector<256x128xf32>
    %49 = arith.addf %42, %48 : vector<256x128xf32>
    %c0_59 = arith.constant 0 : index
    %c4_60 = arith.constant 4 : index
    %c2_61 = arith.constant 2 : index
    %c0_62 = arith.constant 0 : index
    %50 = vector.load %arg2[%c0_59, %c4_60, %c2_61, %c0_62] : memref<1x20x20x128xbf16, #tpu.memory_space<vmem>>, vector<1x16x16x128xbf16>
    %51 = vector.shape_cast %50 : vector<1x16x16x128xbf16> to vector<16x16x128xbf16>
    %52 = vector.shape_cast %51 : vector<16x16x128xbf16> to vector<256x128xbf16>
    %c2_63 = arith.constant 2 : index
    %c1_64 = arith.constant 1 : index
    %c0_65 = arith.constant 0 : index
    %c0_66 = arith.constant 0 : index
    %53 = vector.load %arg3[%c2_63, %c1_64, %c0_65, %c0_66] : memref<3x3x128x128xbf16, #tpu.memory_space<vmem>>, vector<1x1x128x128xbf16>
    %54 = vector.shape_cast %53 : vector<1x1x128x128xbf16> to vector<128x128xbf16>
    %cst_67 = arith.constant dense<0.000000e+00> : vector<256x128xf32>
    %55 = tpu.matmul %52, %54, %cst_67 {dimension_numbers = #tpu.dot_dimension_numbers<[1], [0], [0], [1], [0, 0, 1, 1], [], []>} : vector<256x128xbf16>, vector<128x128xbf16>, vector<256x128xf32> -> vector<256x128xf32>
    %56 = arith.addf %49, %55 : vector<256x128xf32>
    %c0_68 = arith.constant 0 : index
    %c4_69 = arith.constant 4 : index
    %c4_70 = arith.constant 4 : index
    %c0_71 = arith.constant 0 : index
    %57 = vector.load %arg2[%c0_68, %c4_69, %c4_70, %c0_71] : memref<1x20x20x128xbf16, #tpu.memory_space<vmem>>, vector<1x16x16x128xbf16>
    %58 = vector.shape_cast %57 : vector<1x16x16x128xbf16> to vector<16x16x128xbf16>
    %59 = vector.shape_cast %58 : vector<16x16x128xbf16> to vector<256x128xbf16>
    %c2_72 = arith.constant 2 : index
    %c2_73 = arith.constant 2 : index
    %c0_74 = arith.constant 0 : index
    %c0_75 = arith.constant 0 : index
    %60 = vector.load %arg3[%c2_72, %c2_73, %c0_74, %c0_75] : memref<3x3x128x128xbf16, #tpu.memory_space<vmem>>, vector<1x1x128x128xbf16>
    %61 = vector.shape_cast %60 : vector<1x1x128x128xbf16> to vector<128x128xbf16>
    %cst_76 = arith.constant dense<0.000000e+00> : vector<256x128xf32>
    %62 = tpu.matmul %59, %61, %cst_76 {dimension_numbers = #tpu.dot_dimension_numbers<[1], [0], [0], [1], [0, 0, 1, 1], [], []>} : vector<256x128xbf16>, vector<128x128xbf16>, vector<256x128xf32> -> vector<256x128xf32>
    %63 = arith.addf %56, %62 : vector<256x128xf32>
    %c0_77 = arith.constant 0 : index
    %c0_78 = arith.constant 0 : index
    %64 = vector.load %arg4[%c0_77, %c0_78] : memref<1x128xf32, #tpu.memory_space<vmem>>, vector<1x128xf32>
    %65 = vector.broadcast %64 : vector<1x128xf32> to vector<256x128xf32>
    %66 = arith.addf %63, %65 : vector<256x128xf32>
    %cst_79 = arith.constant 0.000000e+00 : f32
    %67 = vector.broadcast %cst_79 : f32 to vector<256x128xf32>
    %68 = arith.maximumf %66, %67 : vector<256x128xf32>
    %69 = vector.shape_cast %68 : vector<256x128xf32> to vector<16x16x128xf32>
    %70 = arith.truncf %69 : vector<16x16x128xf32> to vector<16x16x128xbf16>
    %c0_80 = arith.constant 0 : index
    %c0_81 = arith.constant 0 : index
    %c0_82 = arith.constant 0 : index
    %c0_83 = arith.constant 0 : index
    %71 = vector.load %arg5[%c0_80, %c0_81, %c0_82, %c0_83] : memref<1x16x16x128xbf16, #tpu.memory_space<vmem>>, vector<1x16x16x128xbf16>
    %72 = vector.shape_cast %71 : vector<1x16x16x128xbf16> to vector<16x16x128xbf16>
    %73 = vector.shape_cast %70 : vector<16x16x128xbf16> to vector<1x16x16x128xbf16>
    tpu.vector_store %arg5[%c0_80, %c0_81, %c0_82, %c0_83], %73 {strides = array<i32>} : memref<1x16x16x128xbf16, #tpu.memory_space<vmem>>, vector<1x16x16x128xbf16>,
    return
  }
  func.func @transform_0(%arg0: i32, %arg1: i32) -> (i32, i32, i32, i32) {
    %c0_i32 = arith.constant 0 : i32
    %c0_i32_0 = arith.constant 0 : i32
    %c0_i32_1 = arith.constant 0 : i32
    %c0_i32_2 = arith.constant 0 : i32
    return %arg0, %c0_i32, %c0_i32_0, %c0_i32_1 : i32, i32, i32, i32
  }
  func.func @transform_1(%arg0: i32, %arg1: i32) -> (i32, i32, i32, i32) {
    %c0_i32 = arith.constant 0 : i32
    %c0_i32_0 = arith.constant 0 : i32
    %c0_i32_1 = arith.constant 0 : i32
    %c0_i32_2 = arith.constant 0 : i32
    return %c0_i32, %c0_i32_0, %c0_i32_1, %arg1 : i32, i32, i32, i32
  }
  func.func @transform_2(%arg0: i32, %arg1: i32) -> (i32, i32) {
    %c0_i32 = arith.constant 0 : i32
    %c0_i32_0 = arith.constant 0 : i32
    return %c0_i32, %arg1 : i32, i32
  }
  func.func @transform_3(%arg0: i32, %arg1: i32) -> (i32, i32, i32, i32) {
    %c0_i32 = arith.constant 0 : i32
    %c0_i32_0 = arith.constant 0 : i32
    %c0_i32_1 = arith.constant 0 : i32
    return %arg0, %c0_i32, %c0_i32_0, %arg1 : i32, i32, i32, i32
  }
}

module attributes {stable_mosaic.version = 11 : i64} {
  func.func @_conv3x3_kernel(%arg0: i32, %arg1: i32, %arg2: memref<1x24x24x128xbf16, #tpu.memory_space<vmem>>, %arg3: memref<3x3x128x128xbf16, #tpu.memory_space<vmem>>, %arg4: memref<1x128xf32, #tpu.memory_space<vmem>>, %arg5: memref<1x16x16x128xbf16, #tpu.memory_space<vmem>>) attributes {dimension_semantics = [#tpu.dimension_semantics<parallel>, #tpu.dimension_semantics<parallel>], iteration_bounds = array<i64: 4, 1>, scalar_prefetch = 0 : i64, scratch_operands = 0 : i64, tpu.core_type = #tpu.core_type<tc>, window_params = [{transform_indices = @transform_0, window_bounds = array<i64: 1, 24, 24, 128>}, {transform_indices = @transform_1, window_bounds = array<i64: 3, 3, 128, 128>}, {transform_indices = @transform_2, window_bounds = array<i64: 1, 128>}, {transform_indices = @transform_3, window_bounds = array<i64: 1, 16, 16, 128>}]} {
    %cst = arith.constant 0.000000e+00 : f32
    %0 = vector.broadcast %cst : f32 to vector<256x128xf32>
    %c0 = arith.constant 0 : index
    %c0_0 = arith.constant 0 : index
    %c0_1 = arith.constant 0 : index
    %c0_2 = arith.constant 0 : index
    %1 = vector.load %arg2[%c0, %c0_0, %c0_1, %c0_2] : memref<1x24x24x128xbf16, #tpu.memory_space<vmem>>, vector<1x16x16x128xbf16>
    %2 = vector.shape_cast %1 : vector<1x16x16x128xbf16> to vector<16x16x128xbf16>
    %3 = vector.shape_cast %2 : vector<16x16x128xbf16> to vector<256x128xbf16>
    %c0_3 = arith.constant 0 : index
    %c0_4 = arith.constant 0 : index
    %c0_5 = arith.constant 0 : index
    %c0_6 = arith.constant 0 : index
    %4 = vector.load %arg3[%c0_3, %c0_4, %c0_5, %c0_6] : memref<3x3x128x128xbf16, #tpu.memory_space<vmem>>, vector<1x1x128x128xbf16>
    %5 = vector.shape_cast %4 : vector<1x1x128x128xbf16> to vector<128x128xbf16>
    %cst_7 = arith.constant dense<0.000000e+00> : vector<256x128xf32>
    %6 = tpu.matmul %3, %5, %cst_7 {dimension_numbers = #tpu.dot_dimension_numbers<[1], [0], [0], [1], [0, 0, 1, 1], [], []>} : vector<256x128xbf16>, vector<128x128xbf16>, vector<256x128xf32> -> vector<256x128xf32>
    %7 = arith.addf %0, %6 : vector<256x128xf32>
    %c0_8 = arith.constant 0 : index
    %c0_9 = arith.constant 0 : index
    %c4 = arith.constant 4 : index
    %c0_10 = arith.constant 0 : index
    %8 = vector.load %arg2[%c0_8, %c0_9, %c4, %c0_10] : memref<1x24x24x128xbf16, #tpu.memory_space<vmem>>, vector<1x16x16x128xbf16>
    %9 = vector.shape_cast %8 : vector<1x16x16x128xbf16> to vector<16x16x128xbf16>
    %10 = vector.shape_cast %9 : vector<16x16x128xbf16> to vector<256x128xbf16>
    %c0_11 = arith.constant 0 : index
    %c1 = arith.constant 1 : index
    %c0_12 = arith.constant 0 : index
    %c0_13 = arith.constant 0 : index
    %11 = vector.load %arg3[%c0_11, %c1, %c0_12, %c0_13] : memref<3x3x128x128xbf16, #tpu.memory_space<vmem>>, vector<1x1x128x128xbf16>
    %12 = vector.shape_cast %11 : vector<1x1x128x128xbf16> to vector<128x128xbf16>
    %cst_14 = arith.constant dense<0.000000e+00> : vector<256x128xf32>
    %13 = tpu.matmul %10, %12, %cst_14 {dimension_numbers = #tpu.dot_dimension_numbers<[1], [0], [0], [1], [0, 0, 1, 1], [], []>} : vector<256x128xbf16>, vector<128x128xbf16>, vector<256x128xf32> -> vector<256x128xf32>
    %14 = arith.addf %7, %13 : vector<256x128xf32>
    %c0_15 = arith.constant 0 : index
    %c0_16 = arith.constant 0 : index
    %c8 = arith.constant 8 : index
    %c0_17 = arith.constant 0 : index
    %15 = vector.load %arg2[%c0_15, %c0_16, %c8, %c0_17] : memref<1x24x24x128xbf16, #tpu.memory_space<vmem>>, vector<1x16x16x128xbf16>
    %16 = vector.shape_cast %15 : vector<1x16x16x128xbf16> to vector<16x16x128xbf16>
    %17 = vector.shape_cast %16 : vector<16x16x128xbf16> to vector<256x128xbf16>
    %c0_18 = arith.constant 0 : index
    %c2 = arith.constant 2 : index
    %c0_19 = arith.constant 0 : index
    %c0_20 = arith.constant 0 : index
    %18 = vector.load %arg3[%c0_18, %c2, %c0_19, %c0_20] : memref<3x3x128x128xbf16, #tpu.memory_space<vmem>>, vector<1x1x128x128xbf16>
    %19 = vector.shape_cast %18 : vector<1x1x128x128xbf16> to vector<128x128xbf16>
    %cst_21 = arith.constant dense<0.000000e+00> : vector<256x128xf32>
    %20 = tpu.matmul %17, %19, %cst_21 {dimension_numbers = #tpu.dot_dimension_numbers<[1], [0], [0], [1], [0, 0, 1, 1], [], []>} : vector<256x128xbf16>, vector<128x128xbf16>, vector<256x128xf32> -> vector<256x128xf32>
    %21 = arith.addf %14, %20 : vector<256x128xf32>
    %c0_22 = arith.constant 0 : index
    %c4_23 = arith.constant 4 : index
    %c0_24 = arith.constant 0 : index
    %c0_25 = arith.constant 0 : index
    %22 = vector.load %arg2[%c0_22, %c4_23, %c0_24, %c0_25] : memref<1x24x24x128xbf16, #tpu.memory_space<vmem>>, vector<1x16x16x128xbf16>
    %23 = vector.shape_cast %22 : vector<1x16x16x128xbf16> to vector<16x16x128xbf16>
    %24 = vector.shape_cast %23 : vector<16x16x128xbf16> to vector<256x128xbf16>
    %c1_26 = arith.constant 1 : index
    %c0_27 = arith.constant 0 : index
    %c0_28 = arith.constant 0 : index
    %c0_29 = arith.constant 0 : index
    %25 = vector.load %arg3[%c1_26, %c0_27, %c0_28, %c0_29] : memref<3x3x128x128xbf16, #tpu.memory_space<vmem>>, vector<1x1x128x128xbf16>
    %26 = vector.shape_cast %25 : vector<1x1x128x128xbf16> to vector<128x128xbf16>
    %cst_30 = arith.constant dense<0.000000e+00> : vector<256x128xf32>
    %27 = tpu.matmul %24, %26, %cst_30 {dimension_numbers = #tpu.dot_dimension_numbers<[1], [0], [0], [1], [0, 0, 1, 1], [], []>} : vector<256x128xbf16>, vector<128x128xbf16>, vector<256x128xf32> -> vector<256x128xf32>
    %28 = arith.addf %21, %27 : vector<256x128xf32>
    %c0_31 = arith.constant 0 : index
    %c4_32 = arith.constant 4 : index
    %c4_33 = arith.constant 4 : index
    %c0_34 = arith.constant 0 : index
    %29 = vector.load %arg2[%c0_31, %c4_32, %c4_33, %c0_34] : memref<1x24x24x128xbf16, #tpu.memory_space<vmem>>, vector<1x16x16x128xbf16>
    %30 = vector.shape_cast %29 : vector<1x16x16x128xbf16> to vector<16x16x128xbf16>
    %31 = vector.shape_cast %30 : vector<16x16x128xbf16> to vector<256x128xbf16>
    %c1_35 = arith.constant 1 : index
    %c1_36 = arith.constant 1 : index
    %c0_37 = arith.constant 0 : index
    %c0_38 = arith.constant 0 : index
    %32 = vector.load %arg3[%c1_35, %c1_36, %c0_37, %c0_38] : memref<3x3x128x128xbf16, #tpu.memory_space<vmem>>, vector<1x1x128x128xbf16>
    %33 = vector.shape_cast %32 : vector<1x1x128x128xbf16> to vector<128x128xbf16>
    %cst_39 = arith.constant dense<0.000000e+00> : vector<256x128xf32>
    %34 = tpu.matmul %31, %33, %cst_39 {dimension_numbers = #tpu.dot_dimension_numbers<[1], [0], [0], [1], [0, 0, 1, 1], [], []>} : vector<256x128xbf16>, vector<128x128xbf16>, vector<256x128xf32> -> vector<256x128xf32>
    %35 = arith.addf %28, %34 : vector<256x128xf32>
    %c0_40 = arith.constant 0 : index
    %c4_41 = arith.constant 4 : index
    %c8_42 = arith.constant 8 : index
    %c0_43 = arith.constant 0 : index
    %36 = vector.load %arg2[%c0_40, %c4_41, %c8_42, %c0_43] : memref<1x24x24x128xbf16, #tpu.memory_space<vmem>>, vector<1x16x16x128xbf16>
    %37 = vector.shape_cast %36 : vector<1x16x16x128xbf16> to vector<16x16x128xbf16>
    %38 = vector.shape_cast %37 : vector<16x16x128xbf16> to vector<256x128xbf16>
    %c1_44 = arith.constant 1 : index
    %c2_45 = arith.constant 2 : index
    %c0_46 = arith.constant 0 : index
    %c0_47 = arith.constant 0 : index
    %39 = vector.load %arg3[%c1_44, %c2_45, %c0_46, %c0_47] : memref<3x3x128x128xbf16, #tpu.memory_space<vmem>>, vector<1x1x128x128xbf16>
    %40 = vector.shape_cast %39 : vector<1x1x128x128xbf16> to vector<128x128xbf16>
    %cst_48 = arith.constant dense<0.000000e+00> : vector<256x128xf32>
    %41 = tpu.matmul %38, %40, %cst_48 {dimension_numbers = #tpu.dot_dimension_numbers<[1], [0], [0], [1], [0, 0, 1, 1], [], []>} : vector<256x128xbf16>, vector<128x128xbf16>, vector<256x128xf32> -> vector<256x128xf32>
    %42 = arith.addf %35, %41 : vector<256x128xf32>
    %c0_49 = arith.constant 0 : index
    %c8_50 = arith.constant 8 : index
    %c0_51 = arith.constant 0 : index
    %c0_52 = arith.constant 0 : index
    %43 = vector.load %arg2[%c0_49, %c8_50, %c0_51, %c0_52] : memref<1x24x24x128xbf16, #tpu.memory_space<vmem>>, vector<1x16x16x128xbf16>
    %44 = vector.shape_cast %43 : vector<1x16x16x128xbf16> to vector<16x16x128xbf16>
    %45 = vector.shape_cast %44 : vector<16x16x128xbf16> to vector<256x128xbf16>
    %c2_53 = arith.constant 2 : index
    %c0_54 = arith.constant 0 : index
    %c0_55 = arith.constant 0 : index
    %c0_56 = arith.constant 0 : index
    %46 = vector.load %arg3[%c2_53, %c0_54, %c0_55, %c0_56] : memref<3x3x128x128xbf16, #tpu.memory_space<vmem>>, vector<1x1x128x128xbf16>
    %47 = vector.shape_cast %46 : vector<1x1x128x128xbf16> to vector<128x128xbf16>
    %cst_57 = arith.constant dense<0.000000e+00> : vector<256x128xf32>
    %48 = tpu.matmul %45, %47, %cst_57 {dimension_numbers = #tpu.dot_dimension_numbers<[1], [0], [0], [1], [0, 0, 1, 1], [], []>} : vector<256x128xbf16>, vector<128x128xbf16>, vector<256x128xf32> -> vector<256x128xf32>
    %49 = arith.addf %42, %48 : vector<256x128xf32>
    %c0_58 = arith.constant 0 : index
    %c8_59 = arith.constant 8 : index
    %c4_60 = arith.constant 4 : index
    %c0_61 = arith.constant 0 : index
    %50 = vector.load %arg2[%c0_58, %c8_59, %c4_60, %c0_61] : memref<1x24x24x128xbf16, #tpu.memory_space<vmem>>, vector<1x16x16x128xbf16>
    %51 = vector.shape_cast %50 : vector<1x16x16x128xbf16> to vector<16x16x128xbf16>
    %52 = vector.shape_cast %51 : vector<16x16x128xbf16> to vector<256x128xbf16>
    %c2_62 = arith.constant 2 : index
    %c1_63 = arith.constant 1 : index
    %c0_64 = arith.constant 0 : index
    %c0_65 = arith.constant 0 : index
    %53 = vector.load %arg3[%c2_62, %c1_63, %c0_64, %c0_65] : memref<3x3x128x128xbf16, #tpu.memory_space<vmem>>, vector<1x1x128x128xbf16>
    %54 = vector.shape_cast %53 : vector<1x1x128x128xbf16> to vector<128x128xbf16>
    %cst_66 = arith.constant dense<0.000000e+00> : vector<256x128xf32>
    %55 = tpu.matmul %52, %54, %cst_66 {dimension_numbers = #tpu.dot_dimension_numbers<[1], [0], [0], [1], [0, 0, 1, 1], [], []>} : vector<256x128xbf16>, vector<128x128xbf16>, vector<256x128xf32> -> vector<256x128xf32>
    %56 = arith.addf %49, %55 : vector<256x128xf32>
    %c0_67 = arith.constant 0 : index
    %c8_68 = arith.constant 8 : index
    %c8_69 = arith.constant 8 : index
    %c0_70 = arith.constant 0 : index
    %57 = vector.load %arg2[%c0_67, %c8_68, %c8_69, %c0_70] : memref<1x24x24x128xbf16, #tpu.memory_space<vmem>>, vector<1x16x16x128xbf16>
    %58 = vector.shape_cast %57 : vector<1x16x16x128xbf16> to vector<16x16x128xbf16>
    %59 = vector.shape_cast %58 : vector<16x16x128xbf16> to vector<256x128xbf16>
    %c2_71 = arith.constant 2 : index
    %c2_72 = arith.constant 2 : index
    %c0_73 = arith.constant 0 : index
    %c0_74 = arith.constant 0 : index
    %60 = vector.load %arg3[%c2_71, %c2_72, %c0_73, %c0_74] : memref<3x3x128x128xbf16, #tpu.memory_space<vmem>>, vector<1x1x128x128xbf16>
    %61 = vector.shape_cast %60 : vector<1x1x128x128xbf16> to vector<128x128xbf16>
    %cst_75 = arith.constant dense<0.000000e+00> : vector<256x128xf32>
    %62 = tpu.matmul %59, %61, %cst_75 {dimension_numbers = #tpu.dot_dimension_numbers<[1], [0], [0], [1], [0, 0, 1, 1], [], []>} : vector<256x128xbf16>, vector<128x128xbf16>, vector<256x128xf32> -> vector<256x128xf32>
    %63 = arith.addf %56, %62 : vector<256x128xf32>
    %c0_76 = arith.constant 0 : index
    %c0_77 = arith.constant 0 : index
    %64 = vector.load %arg4[%c0_76, %c0_77] : memref<1x128xf32, #tpu.memory_space<vmem>>, vector<1x128xf32>
    %65 = vector.broadcast %64 : vector<1x128xf32> to vector<256x128xf32>
    %66 = arith.addf %63, %65 : vector<256x128xf32>
    %cst_78 = arith.constant 0.000000e+00 : f32
    %67 = vector.broadcast %cst_78 : f32 to vector<256x128xf32>
    %68 = arith.maximumf %66, %67 : vector<256x128xf32>
    %69 = vector.shape_cast %68 : vector<256x128xf32> to vector<16x16x128xf32>
    %70 = arith.truncf %69 : vector<16x16x128xf32> to vector<16x16x128xbf16>
    %c0_79 = arith.constant 0 : index
    %c0_80 = arith.constant 0 : index
    %c0_81 = arith.constant 0 : index
    %c0_82 = arith.constant 0 : index
    %71 = vector.load %arg5[%c0_79, %c0_80, %c0_81, %c0_82] : memref<1x16x16x128xbf16, #tpu.memory_space<vmem>>, vector<1x16x16x128xbf16>
    %72 = vector.shape_cast %71 : vector<1x16x16x128xbf16> to vector<16x16x128xbf16>
    %73 = vector.shape_cast %70 : vector<16x16x128xbf16> to vector<1x16x16x128xbf16>
    tpu.vector_store %arg5[%c0_79, %c0_80, %c0_81, %c0_82], %73 {strides = array<i32>} : memref<1x16x16x128xbf16, #tpu.memory_space<vmem>>, vector<1x16x16x128xbf16>,
    return
  }
  func.func @transform_0(%arg0: i32, %arg1: i32) -> (i32, i32, i32, i32) {
    %c0_i32 = arith.constant 0 : i32
    %c0_i32_0 = arith.constant 0 : i32
    %c0_i32_1 = arith.constant 0 : i32
    %c0_i32_2 = arith.constant 0 : i32
    return %arg0, %c0_i32, %c0_i32_0, %c0_i32_1 : i32, i32, i32, i32
  }
  func.func @transform_1(%arg0: i32, %arg1: i32) -> (i32, i32, i32, i32) {
    %c0_i32 = arith.constant 0 : i32
    %c0_i32_0 = arith.constant 0 : i32
    %c0_i32_1 = arith.constant 0 : i32
    %c0_i32_2 = arith.constant 0 : i32
    return %c0_i32, %c0_i32_0, %c0_i32_1, %arg1 : i32, i32, i32, i32
  }
  func.func @transform_2(%arg0: i32, %arg1: i32) -> (i32, i32) {
    %c0_i32 = arith.constant 0 : i32
    %c0_i32_0 = arith.constant 0 : i32
    return %c0_i32, %arg1 : i32, i32
  }
  func.func @transform_3(%arg0: i32, %arg1: i32) -> (i32, i32, i32, i32) {
    %c0_i32 = arith.constant 0 : i32
    %c0_i32_0 = arith.constant 0 : i32
    %c0_i32_1 = arith.constant 0 : i32
    return %arg0, %c0_i32, %c0_i32_0, %arg1 : i32, i32, i32, i32
  }
}

</mosaic_0001>

<bundles_post_ra>
// kernel: resnet_pl_loss.14
= control target key start
LH: loop header
LB: loop body
LE: loop exit
PB: predicated region body
PF: predicated region fallthrough
CT: control target
= control target key end

     0   :  { %s730_s9 = smov 0   ;;  %s732_s10 = smov 0   ;;  %s807_s0 = inlined_call_operand.vmem [shape: bf16[512,128], index: 0, kind: input, shape index: {}]   ;;  %s808_s1 = inlined_call_operand.vmem [shape: bf16[512,128], index: 1, kind: input, shape index: {}]   ;;  %s809_s2 = inlined_call_operand.vmem [shape: f32[2,8,128], index: 2, kind: output, shape index: {}]  }
   0x1   :  { %s734_s11 = smov 0  }
   0x2 LB: > { %s24_s12 = sadd.s32 1, %s709_s10  ;;  %p500_p0 = scmp.ge.s32.totalorder %s713_s11, 1  ;;  %s713_s11 = sphi %s734_s11, %s12_s11   ;;  %s709_s10 = sphi %s732_s10, %s811_s10   ;;  %s705_s9 = sphi %s730_s9, %s810_s9  }
   0x3   : > { %p26_p1 = scmp.ge.s32.totalorder %s24_s12, 2  ;;  %p144_p2 = scmp.lt.s32.totalorder %s713_s11, 3 }
   0x5   : > { %s813_s12 = smov (%p26_p1, %s24_s12), 0  ;;  %p145_p3 = pnand %p500_p0, %p144_p2 }
   0x6   : > { %s501_s13 = sshll.u32 (!%p145_p3), %s705_s9, 5  ;;  %p188_p5 = scmp.lt.s32.totalorder (!%p145_p3), %s705_s9, 1 }
   0x7   : > { %148 = sbr.rel (%p145_p3) target bundleno = 88 (0x58), region = 28  ;;  %p174_p4 = scmp.lt.s32.totalorder (!%p145_p3), %s501_s13, 63 }
   0xe   : > { %s815_s13 = smov (!%p174_p4, %s501_s13), 63  ;;  %s817_s9 = smov (!%p188_p5, %s705_s9), 1 }
   0xf   : > { %s502_s14 = sshll.u32 %s815_s13, 2  ;;  %s505_s21 = sshll.u32 %s817_s9, 3 }
  0x10   : > { %s754_s17 = scalar_lea.vmem %s807_s0, %s502_s14  ;;  %s759_s20 = scalar_lea.vmem %s808_s1, %s502_s14 }
  0x11   : > { %v509_v0 = vld [vmem:[%s754_s17] sm:$0xff]   ;;  %v636_v2 = vld [vmem:[%s754_s17 + $0x8] sm:$0xff]   ;;  %v637_v10 = vld [vmem:[%s754_s17 + $0x10] sm:$0xff]   ;;  %s191_s24 = scalar_lea.vmem %s809_s2, %s505_s21 }
  0x12   : > { %v573_v1 = vld [vmem:[%s759_s20] sm:$0xff]   ;;  %v651_v3 = vld [vmem:[%s759_s20 + $0x8] sm:$0xff]   ;;  %v510_v4 = vunpack.c.l.bf16 %v509_v0  ;;  %v511_v5 = vunpack.c.h.bf16 %v509_v0  ;;  %v514_v8 = vunpack.c.l.bf16 %v636_v2  ;;  %v652_v11 = vld [vmem:[%s759_s20 + $0x10] sm:$0xff]   ;;  %v515_v12 = vunpack.c.h.bf16 %v636_v2 }
  0x13   : > { %v574_v6 = vunpack.c.l.bf16 %v573_v1  ;;  %v575_v7 = vunpack.c.h.bf16 %v573_v1  ;;  %v578_v9 = vunpack.c.l.bf16 %v651_v3  ;;  %v579_v13 = vunpack.c.h.bf16 %v651_v3  ;;  %v638_v20 = vld [vmem:[%s754_s17 + $0x18] sm:$0xff]   ;;  %v639_v27 = vld [vmem:[%s754_s17 + $0x20] sm:$0xff]   ;;  %v640_v38 = vld [vmem:[%s754_s17 + $0x28] sm:$0xff]  }
  0x14   : > { %v518_v16 = vunpack.c.l.bf16 %v637_v10  ;;  %v582_v17 = vunpack.c.l.bf16 %v652_v11  ;;  %v519_v19 = vunpack.c.h.bf16 %v637_v10  ;;  %v653_v21 = vld [vmem:[%s759_s20 + $0x18] sm:$0xff]   ;;  %v583_v22 = vunpack.c.h.bf16 %v652_v11  ;;  %v654_v32 = vld [vmem:[%s759_s20 + $0x20] sm:$0xff]   ;;  %v655_v44 = vld [vmem:[%s759_s20 + $0x28] sm:$0xff]  }
  0x15   : > { %v325_v14 = vsub.f32 %v510_v4, %v574_v6  ;;  %v326_v15 = vsub.f32 %v511_v5, %v575_v7  ;;  %v327_v18 = vsub.f32 %v514_v8, %v578_v9  ;;  %v328_v23 = vsub.f32 %v515_v12, %v579_v13  ;;  %v641_v50 = vld [vmem:[%s754_s17 + $0x30] sm:$0xff]   ;;  %v642_v62 = vld [vmem:[%s754_s17 + $0x38] sm:$0xff]   ;;  %v643_v10 = vld [vmem:[%s754_s17 + $0x40] sm:$0xff]  }
  0x16   : > { %v522_v26 = vunpack.c.l.bf16 %v638_v20  ;;  %v586_v28 = vunpack.c.l.bf16 %v653_v21  ;;  %v329_v29 = vsub.f32 %v518_v16, %v582_v17  ;;  %v523_v31 = vunpack.c.h.bf16 %v638_v20  ;;  %v656_v56 = vld [vmem:[%s759_s20 + $0x30] sm:$0xff]   ;;  %v657_v4 = vld [vmem:[%s759_s20 + $0x38] sm:$0xff]   ;;  %v658_v16 = vld [vmem:[%s759_s20 + $0x40] sm:$0xff]  }
  0x17   : > { %v357_v24 = vmul.f32 %v325_v14, %v325_v14  ;;  %v358_v25 = vmul.f32 %v326_v15, %v326_v15  ;;  %v359_v30 = vmul.f32 %v327_v18, %v327_v18  ;;  %v587_v33 = vunpack.c.h.bf16 %v653_v21 }
  0x18   : > { %v330_v34 = vsub.f32 %v519_v19, %v583_v22  ;;  %v360_v35 = vmul.f32 %v328_v23, %v328_v23  ;;  %v526_v37 = vunpack.c.l.bf16 %v639_v27  ;;  %v590_v39 = vunpack.c.l.bf16 %v654_v32  ;;  %v644_v22 = vld [vmem:[%s754_s17 + $0x48] sm:$0xff]  }
  0x19   : > { %v390_v36 = vadd.f32 %v358_v25, %v357_v24  ;;  %v331_v40 = vsub.f32 %v522_v26, %v586_v28  ;;  %v361_v41 = vmul.f32 %v329_v29, %v329_v29  ;;  %v527_v43 = vunpack.c.h.bf16 %v639_v27  ;;  %v659_v28 = vld [vmem:[%s759_s20 + $0x48] sm:$0xff]  }
  0x1a   : > { %v591_v45 = vunpack.c.h.bf16 %v654_v32  ;;  %v332_v46 = vsub.f32 %v523_v31, %v587_v33  ;;  %v362_v47 = vmul.f32 %v330_v34, %v330_v34  ;;  %v530_v49 = vunpack.c.l.bf16 %v640_v38  ;;  %v645_v34 = vld [vmem:[%s754_s17 + $0x50] sm:$0xff]  }
  0x1b   : > { %v391_v42 = vadd.f32 %v390_v36, %v359_v30  ;;  %v594_v51 = vunpack.c.l.bf16 %v655_v44  ;;  %v333_v52 = vsub.f32 %v526_v37, %v590_v39  ;;  %v363_v53 = vmul.f32 %v331_v40, %v331_v40  ;;  %v660_v40 = vld [vmem:[%s759_s20 + $0x50] sm:$0xff]  }
  0x1c   : > { %v531_v55 = vunpack.c.h.bf16 %v640_v38  ;;  %v595_v57 = vunpack.c.h.bf16 %v655_v44  ;;  %v334_v58 = vsub.f32 %v527_v43, %v591_v45  ;;  %v364_v59 = vmul.f32 %v332_v46, %v332_v46  ;;  %v646_v46 = vld [vmem:[%s754_s17 + $0x58] sm:$0xff]  }
  0x1d   : > { %v392_v48 = vadd.f32 %v391_v42, %v360_v35  ;;  %v534_v61 = vunpack.c.l.bf16 %v641_v50  ;;  %v598_v63 = vunpack.c.l.bf16 %v656_v56  ;;  %v335_v0 = vsub.f32 %v530_v49, %v594_v51 }
  0x1e   : > { %v365_v1 = vmul.f32 %v333_v52, %v333_v52  ;;  %v535_v3 = vunpack.c.h.bf16 %v641_v50  ;;  %v599_v5 = vunpack.c.h.bf16 %v656_v56  ;;  %v336_v6 = vsub.f32 %v531_v55, %v595_v57  ;;  %v661_v52 = vld [vmem:[%s759_s20 + $0x58] sm:$0xff]  }
  0x1f   : > { %v393_v54 = vadd.f32 %v392_v48, %v361_v41  ;;  %v366_v7 = vmul.f32 %v334_v58, %v334_v58  ;;  %v538_v9 = vunpack.c.l.bf16 %v642_v62  ;;  %v602_v11 = vunpack.c.l.bf16 %v657_v4  ;;  %v647_v58 = vld [vmem:[%s754_s17 + $0x60] sm:$0xff]  }
  0x20   : > { %v337_v12 = vsub.f32 %v534_v61, %v598_v63  ;;  %v367_v13 = vmul.f32 %v335_v0, %v335_v0  ;;  %v539_v15 = vunpack.c.h.bf16 %v642_v62  ;;  %v603_v17 = vunpack.c.h.bf16 %v657_v4  ;;  %v662_v0 = vld [vmem:[%s759_s20 + $0x60] sm:$0xff]  }
  0x21   : > { %v394_v60 = vadd.f32 %v393_v54, %v362_v47  ;;  %v338_v18 = vsub.f32 %v535_v3, %v599_v5  ;;  %v368_v19 = vmul.f32 %v336_v6, %v336_v6  ;;  %v542_v21 = vunpack.c.l.bf16 %v643_v10  ;;  %v648_v6 = vld [vmem:[%s754_s17 + $0x68] sm:$0xff]  }
  0x22   : > { %v606_v23 = vunpack.c.l.bf16 %v658_v16  ;;  %v339_v24 = vsub.f32 %v538_v9, %v602_v11  ;;  %v369_v25 = vmul.f32 %v337_v12, %v337_v12  ;;  %v543_v27 = vunpack.c.h.bf16 %v643_v10  ;;  %v663_v12 = vld [vmem:[%s759_s20 + $0x68] sm:$0xff]  }
  0x23   : > { %v395_v2 = vadd.f32 %v394_v60, %v363_v53  ;;  %v607_v29 = vunpack.c.h.bf16 %v658_v16  ;;  %v340_v30 = vsub.f32 %v539_v15, %v603_v17  ;;  %v370_v31 = vmul.f32 %v338_v18, %v338_v18  ;;  %v649_v18 = vld [vmem:[%s754_s17 + $0x70] sm:$0xff]  }
  0x24   : > { %v546_v33 = vunpack.c.l.bf16 %v644_v22  ;;  %v610_v35 = vunpack.c.l.bf16 %v659_v28  ;;  %v341_v36 = vsub.f32 %v542_v21, %v606_v23  ;;  %v371_v37 = vmul.f32 %v339_v24, %v339_v24  ;;  %v664_v24 = vld [vmem:[%s759_s20 + $0x70] sm:$0xff]  }
  0x25   : > { %v396_v8 = vadd.f32 %v395_v2, %v364_v59  ;;  %v547_v39 = vunpack.c.h.bf16 %v644_v22  ;;  %v611_v41 = vunpack.c.h.bf16 %v659_v28  ;;  %v342_v42 = vsub.f32 %v543_v27, %v607_v29 }
  0x26   : > { %v372_v43 = vmul.f32 %v340_v30, %v340_v30  ;;  %v550_v45 = vunpack.c.l.bf16 %v645_v34  ;;  %v614_v47 = vunpack.c.l.bf16 %v660_v40  ;;  %v343_v48 = vsub.f32 %v546_v33, %v610_v35  ;;  %v650_v30 = vld [vmem:[%s754_s17 + $0x78] sm:$0xff]  }
  0x27   : > { %v397_v14 = vadd.f32 %v396_v8, %v365_v1  ;;  %v373_v49 = vmul.f32 %v341_v36, %v341_v36  ;;  %v551_v51 = vunpack.c.h.bf16 %v645_v34  ;;  %v615_v53 = vunpack.c.h.bf16 %v660_v40  ;;  %v665_v36 = vld [vmem:[%s759_s20 + $0x78] sm:$0xff]  }
  0x28   : > { %v344_v54 = vsub.f32 %v547_v39, %v611_v41  ;;  %v374_v55 = vmul.f32 %v342_v42, %v342_v42  ;;  %v554_v57 = vunpack.c.l.bf16 %v646_v46  ;;  %v618_v59 = vunpack.c.l.bf16 %v661_v52 }
  0x29   : > { %v398_v20 = vadd.f32 %v397_v14, %v366_v7  ;;  %v345_v60 = vsub.f32 %v550_v45, %v614_v47  ;;  %v375_v61 = vmul.f32 %v343_v48, %v343_v48  ;;  %v555_v63 = vunpack.c.h.bf16 %v646_v46 }
  0x2a   : > { %v619_v1 = vunpack.c.h.bf16 %v661_v52  ;;  %v346_v2 = vsub.f32 %v551_v51, %v615_v53  ;;  %v376_v3 = vmul.f32 %v344_v54, %v344_v54  ;;  %v558_v5 = vunpack.c.l.bf16 %v647_v58 }
  0x2b   : > { %v399_v26 = vadd.f32 %v398_v20, %v367_v13  ;;  %v622_v7 = vunpack.c.l.bf16 %v662_v0  ;;  %v347_v8 = vsub.f32 %v554_v57, %v618_v59  ;;  %v377_v9 = vmul.f32 %v345_v60, %v345_v60 }
  0x2c   : > { %v559_v11 = vunpack.c.h.bf16 %v647_v58  ;;  %v623_v13 = vunpack.c.h.bf16 %v662_v0  ;;  %v348_v14 = vsub.f32 %v555_v63, %v619_v1  ;;  %v378_v15 = vmul.f32 %v346_v2, %v346_v2 }
  0x2d   : > { %v400_v32 = vadd.f32 %v399_v26, %v368_v19  ;;  %v562_v17 = vunpack.c.l.bf16 %v648_v6  ;;  %v626_v19 = vunpack.c.l.bf16 %v663_v12  ;;  %v349_v20 = vsub.f32 %v558_v5, %v622_v7 }
  0x2e   : > { %v379_v21 = vmul.f32 %v347_v8, %v347_v8  ;;  %v563_v23 = vunpack.c.h.bf16 %v648_v6  ;;  %v350_v26 = vsub.f32 %v559_v11, %v623_v13  ;;  %v380_v27 = vmul.f32 %v348_v14, %v348_v14 }
  0x2f   : > { %v401_v38 = vadd.f32 %v400_v32, %v369_v25  ;;  %v627_v25 = vunpack.c.h.bf16 %v663_v12  ;;  %v566_v29 = vunpack.c.l.bf16 %v649_v18  ;;  %v351_v32 = vsub.f32 %v562_v17, %v626_v19 }
  0x30   : > { %v381_v33 = vmul.f32 %v349_v20, %v349_v20  ;;  %v567_v35 = vunpack.c.h.bf16 %v649_v18  ;;  %v382_v39 = vmul.f32 %v350_v26, %v350_v26  ;;  %v570_v41 = vunpack.c.l.bf16 %v650_v30 }
  0x31   : > { %v402_v44 = vadd.f32 %v401_v38, %v370_v31  ;;  %v630_v31 = vunpack.c.l.bf16 %v664_v24  ;;  %v352_v38 = vsub.f32 %v563_v23, %v627_v25  ;;  %v634_v42 = vunpack.c.l.bf16 %v665_v36 }
  0x32   : > { %v571_v46 = vunpack.c.h.bf16 %v650_v30  ;;  %v635_v47 = vunpack.c.h.bf16 %v665_v36 }
  0x33   : > { %v403_v50 = vadd.f32 %v402_v44, %v371_v37  ;;  %v631_v37 = vunpack.c.h.bf16 %v664_v24  ;;  %v383_v44 = vmul.f32 %v351_v32, %v351_v32  ;;  %v355_v51 = vsub.f32 %v570_v41, %v634_v42 }
  0x34   : > { %v356_v54 = vsub.f32 %v571_v46, %v635_v47 }
  0x35   : > { %v404_v56 = vadd.f32 %v403_v50, %v372_v43  ;;  %v353_v43 = vsub.f32 %v566_v29, %v630_v31  ;;  %v354_v48 = vsub.f32 %v567_v35, %v631_v37  ;;  %v387_v57 = vmul.f32 %v355_v51, %v355_v51 }
  0x36   : > { %v388_v59 = vmul.f32 %v356_v54, %v356_v54 }
  0x37   : > { %v405_v62 = vadd.f32 %v404_v56, %v373_v49  ;;  %v384_v49 = vmul.f32 %v352_v38, %v352_v38  ;;  %v385_v52 = vmul.f32 %v353_v43, %v353_v43 }
  0x39   : > { %v406_v4 = vadd.f32 %v405_v62, %v374_v55  ;;  %v386_v55 = vmul.f32 %v354_v48, %v354_v48 }
  0x3b   : > { %v407_v10 = vadd.f32 %v406_v4, %v375_v61 }
  0x3d   : > { %v408_v16 = vadd.f32 %v407_v10, %v376_v3 }
  0x3f   : > { %v409_v22 = vadd.f32 %v408_v16, %v377_v9 }
  0x41   : > { %v410_v28 = vadd.f32 %v409_v22, %v378_v15 }
  0x43   : > { %v411_v34 = vadd.f32 %v410_v28, %v379_v21 }
  0x45   : > { %v412_v40 = vadd.f32 %v411_v34, %v380_v27 }
  0x47   : > { %v413_v45 = vadd.f32 %v412_v40, %v381_v33 }
  0x49   : > { %v414_v50 = vadd.f32 %v413_v45, %v382_v39 }
  0x4b   : > { %v415_v53 = vadd.f32 %v414_v50, %v383_v44 }
  0x4d   : > { %v416_v56 = vadd.f32 %v415_v53, %v384_v49 }
  0x4f   : > { %v417_v58 = vadd.f32 %v416_v56, %v385_v52 }
  0x51   : > { %v418_v60 = vadd.f32 %v417_v58, %v386_v55 }
  0x53   : > { %v419_v61 = vadd.f32 %v418_v60, %v387_v57 }
  0x55   : > { %v420_v62 = vadd.f32 %v419_v61, %v388_v59 }
  0x57   : > { %422 = vst [vmem:[%s191_s24] sm:$0xff] %v420_v62 }
  0x58 PF: > { %s12_s11 = sadd.s32 1, %s713_s11   ;;  %s810_s9 = smov %s709_s10 }
  0x59   : > { %p9_p6 = scmp.ge.s32.totalorder %s12_s11, 4   ;;  %s811_s10 = smov %s813_s12 }
  0x5b   :  { %11 = sbr.rel (!%p9_p6) target bundleno = 2 (0x2), region = 65 }

// kernel: resnet_pl_loss.9
= control target key start
LH: loop header
LB: loop body
LE: loop exit
PB: predicated region body
PF: predicated region fallthrough
CT: control target
= control target key end

     0   :  { %s6728_s12 = smov 0   ;;  %s6730_s13 = smov 0   ;;  %s8529_s0 = inlined_call_operand.vmem [shape: bf16[4,18,18,8], index: 0, kind: input, shape index: {}]   ;;  %s8530_s1 = inlined_call_operand.vmem [shape: bf16[3,3,8,128], index: 1, kind: input, shape index: {}]   ;;  %s8531_s2 = inlined_call_operand.vmem [shape: f32[1,128], index: 2, kind: input, shape index: {}]   ;;  %s8532_s3 = inlined_call_operand.vmem [shape: bf16[4,16,16,128], index: 3, kind: output, shape index: {}]  }
   0x1   :  { %s6732_s14 = smov 0  }
   0x2 LB: > { %s25_s15 = sadd.s32 1, %s6702_s13  ;;  %p5124_p0 = scmp.ge.s32.totalorder %s6706_s14, 1  ;;  %s6706_s14 = sphi %s6732_s14, %s13_s14   ;;  %s6702_s13 = sphi %s6730_s13, %s8601_s13   ;;  %s6698_s12 = sphi %s6728_s12, %s8600_s12  }
   0x3   : > { %p27_p1 = scmp.ge.s32.totalorder %s25_s15, 4  ;;  %p168_p2 = scmp.lt.s32.totalorder %s6706_s14, 5 }
   0x5   : > { %s8603_s15 = smov (%p27_p1, %s25_s15), 0  ;;  %p169_p3 = pnand %p5124_p0, %p168_p2 }
   0x7   : > { %172 = sbr.rel (%p169_p3) target bundleno = 590 (0x24e), region = 32 }
   0xe   : > { %v5128_v0 = vld [vmem:[%s8530_s1 + $0x4] sm:$0xf]  ;;  %vm758_vm0 = vcmask 1043456   ;;  %v5355_v1 = vld [vmem:[%s8530_s1 + $0x10] sm:$0xf]  ;;  %p202_p4 = scmp.lt.s32.totalorder %s6698_s12, 3 }
   0xf   : > { %6544 = vmatprep.subr.msk.bf16.mxu1 %vm758_vm0, %v5128_v0  ;;  %6548 = vmatprep.subr.msk.bf16.mxu0 %vm758_vm0, %v5355_v1  ;;  %v760_v2 = vsel %vm758_vm0, %v5128_v0, 0  ;;  %v6756_v3 = vsel %vm758_vm0, %v5355_v1, 0  ;;  %v255_v4 = vld [vmem:[%s8530_s1] sm:$0xf]  ;;  %v5420_v5 = vld [vmem:[%s8530_s1 + $0x14] sm:$0xf] }
  0x10   : > { %8546 = vst [vmem:[#allocation2_spill] sm:$0xff] %v6756_v3  ;;  %5981 = vmatpush3.bf16.msra.mxu1 %v760_v2  ;;  %6117 = vmatpush3.bf16.msra.mxu0 %v6756_v3  ;;  %s8605_s12 = smov (!%p202_p4, %s6698_s12), 3  ;;  %vm272_vm1 = vsmask.f32 3328  ;;  %vm273_vm2 = vsmask.f32 7440 }
  0x11   : > { %6545 = vmatprep.subr.msk.bf16.mxu1 %vm758_vm0, %v255_v4  ;;  %6550 = vmatprep.subr.msk.bf16.mxu0 %vm758_vm0, %v5420_v5  ;;  %s6554_s24 = smul.u32 216, %s8605_s12  ;;  %vm709_vm3 = vcmask 64512   ;;  %v6786_v17 = vsel %vm758_vm0, %v255_v4, 0  ;;  %v6792_v26 = vld [vmem:[%s8530_s1 + $0x18] sm:$0xf]  ;;  %vm6799_vm4 = vmor %vm272_vm1, %vm273_vm2  ;;  %v6805_v37 = vsel %vm758_vm0, %v5420_v5, 0 }
  0x12   : > { %v6809_v41 = vsel %vm758_vm0, %v6792_v26, 0  ;;  %vm1263_vm5 = vcmask 1042432   ;;  %vm1264_vm6 = vcmask 1046532   ;;  %s5699_s21 = sshll.u32 %s8605_s12, 7 }
  0x13   : > { %s6773_s27 = scalar_lea.vmem %s8529_s0, %s6554_s24  ;;  %vm7025_vm7 = vmor %vm1263_vm5, %vm1264_vm6  ;;  %s8470_s24 = scalar_lea.vmem %s8532_s3, %s5699_s21 }
  0x14   : > { %v223_v6 = vld [vmem:[%s6773_s27] sm:$0xf]  ;;  %v224_v7 = vld [vmem:[%s6773_s27 + $0x4] sm:$0xf]  ;;  %v256_v8 = vld [vmem:[%s6773_s27 + $0x8] sm:$0x1] }
  0x15   : > { %v276_v9 = vshrl.u32 %v223_v6, 16  ;;  %v279_v10 = vshll.u32 %v223_v6, 16  ;;  %v285_v11 = vshll.u32 %v224_v7, 16  ;;  %v289_v12 = vshrl.u32 %v224_v7, 16  ;;  %v5307_v13 = vld [vmem:[%s6773_s27 + $0xc] sm:$0xf] }
  0x16   : > { %v295_v14 = vshll.u32 %v256_v8, 16  ;;  %v6780_v15 = vld [vmem:[%s6773_s27 + $0x10] sm:$0xf]  ;;  %v6783_v16 = vld [vmem:[%s6773_s27 + $0x14] sm:$0x1]  ;;  %v2080_v23 = vshrl.u32 %v5307_v13, 16 }
  0x17   : > { %v278_v18 = vrot.slane %v276_v9, 4  ;;  %v281_v19 = vrot.slane %v279_v10, 5  ;;  %v287_v20 = vrot.slane %v285_v11, 5  ;;  %v291_v21 = vrot.slane %v289_v12, 4  ;;  %v225_v31 = vld [vmem:[%s6773_s27 + $0xc] sm:$0xf] }
  0x18   : > { %v297_v22 = vrot.slane %v295_v14, 5  ;;  %v2083_v24 = vshll.u32 %v5307_v13, 16  ;;  %v2089_v25 = vshll.u32 %v6780_v15, 16  ;;  %v2093_v29 = vshrl.u32 %v6780_v15, 16  ;;  %v226_v36 = vld [vmem:[%s6773_s27 + $0x10] sm:$0xf] }
  0x19   : > { %v282_v27 = vor.u32 %v281_v19, %v278_v18  ;;  %v292_v28 = vor.u32 %v291_v21, %v287_v20  ;;  %v2099_v30 = vshll.u32 %v6783_v16, 16  ;;  %v2082_v33 = vrot.slane %v2080_v23, 4  ;;  %v257_v44 = vld [vmem:[%s6773_s27 + $0x14] sm:$0x1]  ;;  %v5310_v55 = vld [vmem:[%s6773_s27 + $0x18] sm:$0xf] }
  0x1a   : > { %v2085_v34 = vrot.slane %v2083_v24, 5  ;;  %v2091_v35 = vrot.slane %v2089_v25, 5  ;;  %v2095_v40 = vrot.slane %v2093_v29, 4  ;;  %v300_v45 = vshrl.u32 %v225_v31, 16  ;;  %v6818_v60 = vld [vmem:[%s6773_s27 + $0x1c] sm:$0xf] }
  0x1b   : > { %v283_v38 = vrot.slane %v282_v27, 4  ;;  %v293_v39 = vrot.slane %v292_v28, 4  ;;  %v2101_v43 = vrot.slane %v2099_v30, 5  ;;  %v303_v46 = vshll.u32 %v225_v31, 16  ;;  %v6826_v1 = vld [vmem:[%s6773_s27 + $0x20] sm:$0x1] }
  0x1c   : > { %v2086_v42 = vor.u32 %v2085_v34, %v2082_v33  ;;  %v2096_v49 = vor.u32 %v2095_v40, %v2091_v35  ;;  %v309_v50 = vshll.u32 %v226_v36, 16  ;;  %v302_v53 = vrot.slane %v300_v45, 4  ;;  %v227_v18 = vld [vmem:[%s6773_s27 + $0x18] sm:$0xf]  ;;  %v228_v23 = vld [vmem:[%s6773_s27 + $0x1c] sm:$0xf] }
  0x1d   : > { %v288_v47 = vsel %vm6799_vm4, %v283_v38, %v287_v20  ;;  %v298_v48 = vsel %vm6799_vm4, %v293_v39, %v297_v22  ;;  %v305_v54 = vrot.slane %v303_v46, 5  ;;  %v313_v58 = vshrl.u32 %v226_v36, 16  ;;  %v258_v31 = vld [vmem:[%s6773_s27 + $0x20] sm:$0x1]  ;;  %v5313_v40 = vld [vmem:[%s6773_s27 + $0x24] sm:$0xf] }
  0x1e   : > { %v5129_v51 = vcombine.low %v288_v47, %v298_v48  ;;  %v2087_v52 = vrot.slane %v2086_v42, 4  ;;  %v2097_v56 = vrot.slane %v2096_v49, 4  ;;  %v311_v57 = vrot.slane %v309_v50, 5  ;;  %v6849_v46 = vld [vmem:[%s6773_s27 + $0x28] sm:$0xf] }
  0x1f   : > { %v319_v59 = vshll.u32 %v257_v44, 16  ;;  %v2823_v62 = vrot.slane %v6780_v15, 5  ;;  %v2826_v63 = vrot.slane %v6783_v16, 5  ;;  %v306_v0 = vor.u32 %v305_v54, %v302_v53  ;;  %v6858_v54 = vld [vmem:[%s6773_s27 + $0x2c] sm:$0x1] }
  0x20   : > { %5982 = vmatprep.mubr.msk.bf16.mxu1 %vm709_vm3, %v5129_v51  ;;  %v2092_v61 = vsel %vm6799_vm4, %v2087_v52, %v2091_v35  ;;  %v2102_v2 = vsel %vm6799_vm4, %v2097_v56, %v2101_v43  ;;  %v315_v4 = vrot.slane %v313_v58, 4  ;;  %v2104_v6 = vshrl.u32 %v5310_v55, 16  ;;  %v5209_v51 = vld [vmem:[%s8530_s1 + $0x8] sm:$0xf]  ;;  %v7058_v16 = vld [vmem:[%s6773_s27 + $0x7c] sm:$0xf] }
  0x21   : > { %v321_v5 = vrot.slane %v319_v59, 5  ;;  %v5356_v7 = vcombine.low %v2092_v61, %v2102_v2  ;;  %v307_v8 = vrot.slane %v306_v0, 4  ;;  %v2107_v9 = vshll.u32 %v5310_v55, 16  ;;  %v229_v0 = vld [vmem:[%s6773_s27 + $0x24] sm:$0xf] }
  0x22   : > { %v2113_v10 = vshll.u32 %v6818_v60, 16  ;;  %v316_v11 = vor.u32 %v315_v4, %v311_v57  ;;  %v2106_v12 = vrot.slane %v2104_v6, 4  ;;  %v2117_v13 = vshrl.u32 %v6818_v60, 16 }
  0x23   : > { %v2123_v14 = vshll.u32 %v6826_v1, 16  ;;  %6118 = vmatprep.mubr.msk.bf16.mxu0 %vm709_vm3, %v5356_v7  ;;  %v312_v19 = vsel %vm6799_vm4, %v307_v8, %v311_v57  ;;  %v2109_v20 = vrot.slane %v2107_v9, 5  ;;  %v2830_v22 = vrot.slane %v6818_v60, 5  ;;  %v230_v7 = vld [vmem:[%s6773_s27 + $0x28] sm:$0xf] }
  0x24   : > { %v2115_v21 = vrot.slane %v2113_v10, 5  ;;  %v317_v24 = vrot.slane %v316_v11, 4  ;;  %v2119_v25 = vrot.slane %v2117_v13, 4  ;;  %v2833_v28 = vrot.slane %v6826_v1, 5  ;;  %v259_v13 = vld [vmem:[%s6773_s27 + $0x2c] sm:$0x1] }
  0x25   : > { %v2125_v27 = vrot.slane %v2123_v14, 5  ;;  %v2110_v29 = vor.u32 %v2109_v20, %v2106_v12  ;;  %v6842_v30 = vrot.slane %v2830_v22, 4  ;;  %v324_v33 = vshrl.u32 %v227_v18, 16 }
  0x26   : > { %v327_v34 = vshll.u32 %v227_v18, 16  ;;  %v322_v35 = vsel %vm6799_vm4, %v317_v24, %v321_v5  ;;  %v2120_v36 = vor.u32 %v2119_v25, %v2115_v21  ;;  %v333_v38 = vshll.u32 %v228_v23, 16  ;;  %v5316_v24 = vld [vmem:[%s6773_s27 + $0x30] sm:$0xf] }
  0x27   : > { %v337_v39 = vshrl.u32 %v228_v23, 16  ;;  %v5130_v42 = vcombine.low %v312_v19, %v322_v35  ;;  %v2111_v43 = vrot.slane %v2110_v29, 4  ;;  %v326_v44 = vrot.slane %v324_v33, 4  ;;  %v6878_v33 = vld [vmem:[%s6773_s27 + $0x34] sm:$0xf] }
  0x28   : > { %v329_v45 = vrot.slane %v327_v34, 5  ;;  %v2121_v47 = vrot.slane %v2120_v36, 4  ;;  %v335_v48 = vrot.slane %v333_v38, 5  ;;  %v343_v50 = vshll.u32 %v258_v31, 16 }
  0x29   : > { %v339_v49 = vrot.slane %v337_v39, 4  ;;  %5983 = vmatmul.mubr.msk.bf16.vlgmr.msra.gmra.mrb[0].mxu1 %vm709_vm3, %v5130_v42  ;;  %v2116_v52 = vsel %vm6799_vm4, %v2111_v43, %v2115_v21  ;;  %v2128_v55 = vshrl.u32 %v5313_v40, 16  ;;  %v2131_v56 = vshll.u32 %v5313_v40, 16  ;;  %v6886_v40 = vld [vmem:[%s6773_s27 + $0x38] sm:$0x1] }
  0x2a   : > { %v330_v53 = vor.u32 %v329_v45, %v326_v44  ;;  %6015 = vmatpush3.bf16.msra.mxu1 %v6786_v17  ;;  %v2126_v57 = vsel %vm6799_vm4, %v2121_v47, %v2125_v27  ;;  %v345_v59 = vrot.slane %v343_v50, 5  ;;  %v2137_v61 = vshll.u32 %v6849_v46, 16 }
  0x2b   : > { %v340_v58 = vor.u32 %v339_v49, %v335_v48  ;;  %v5357_v2 = vcombine.low %v2116_v52, %v2126_v57  ;;  %v2130_v5 = vrot.slane %v2128_v55, 4  ;;  %v2133_v6 = vrot.slane %v2131_v56, 5  ;;  %6546 = vmatprep.subr.msk.bf16.mxu1 %vm758_vm0, %v5209_v51  ;;  %v231_v52 = vld [vmem:[%s6773_s27 + $0x30] sm:$0xf] }
  0x2c   : > { %v331_v4 = vrot.slane %v330_v53, 4  ;;  %v2139_v9 = vrot.slane %v2137_v61, 5  ;;  %v2141_v17 = vshrl.u32 %v6849_v46, 16  ;;  %v2147_v10 = vshll.u32 %v6858_v54, 16 }
  0x2d   : > { %v341_v8 = vrot.slane %v340_v58, 4  ;;  %6119 = vmatmul.mubr.msk.bf16.vlgmr.msra.gmra.mrb[0].mxu0 %vm709_vm3, %v5357_v2  ;;  %v2134_v12 = vor.u32 %v2133_v6, %v2130_v5  ;;  %v348_v14 = vshrl.u32 %v229_v0, 16  ;;  %v351_v18 = vshll.u32 %v229_v0, 16  ;;  %v232_v58 = vld [vmem:[%s6773_s27 + $0x34] sm:$0xf] }
  0x2e   : > { %v336_v11 = vsel %vm6799_vm4, %v331_v4, %v335_v48  ;;  %6151 = vmatpush3.bf16.msra.mxu0 %v6805_v37  ;;  %v2143_v20 = vrot.slane %v2141_v17, 4  ;;  %v2149_v21 = vrot.slane %v2147_v10, 5  ;;  %v357_v23 = vshll.u32 %v230_v7, 16  ;;  %v260_v4 = vld [vmem:[%s6773_s27 + $0x38] sm:$0x1] }
  0x2f   : > { %v346_v19 = vsel %vm6799_vm4, %v341_v8, %v345_v59  ;;  %v2135_v27 = vrot.slane %v2134_v12, 4  ;;  %v350_v29 = vrot.slane %v348_v14, 4  ;;  %v353_v31 = vrot.slane %v351_v18, 5  ;;  %6551 = vmatprep.subr.msk.bf16.mxu0 %vm758_vm0, %v6792_v26  ;;  %v5319_v12 = vld [vmem:[%s6773_s27 + $0x3c] sm:$0xf] }
  0x30   : > { %v5131_v25 = vcombine.low %v336_v11, %v346_v19  ;;  %v2144_v34 = vor.u32 %v2143_v20, %v2139_v9  ;;  %v359_v35 = vrot.slane %v357_v23, 5  ;;  %v361_v37 = vshrl.u32 %v230_v7, 16  ;;  %v6903_v20 = vld [vmem:[%s6773_s27 + $0x40] sm:$0xf] }
  0x31   : > { %v367_v36 = vshll.u32 %v259_v13, 16  ;;  %v2140_v38 = vsel %vm6799_vm4, %v2135_v27, %v2139_v9  ;;  %v354_v39 = vor.u32 %v353_v31, %v350_v29  ;;  %v2152_v42 = vshrl.u32 %v5316_v24, 16 }
  0x32   : > { %5986 = vmatprep.mubr.msk.bf16.mxu1 %vm709_vm3, %v5131_v25  ;;  %v2155_v43 = vshll.u32 %v5316_v24, 16  ;;  %v2145_v44 = vrot.slane %v2144_v34, 4  ;;  %v363_v45 = vrot.slane %v361_v37, 4  ;;  %v2161_v26 = vshll.u32 %v6878_v33, 16  ;;  %v6908_v34 = vld [vmem:[%s6773_s27 + $0x44] sm:$0x1] }
  0x33   : > { %v369_v47 = vrot.slane %v367_v36, 5  ;;  %v355_v48 = vrot.slane %v354_v39, 4  ;;  %v2154_v49 = vrot.slane %v2152_v42, 4  ;;  %v2165_v51 = vshrl.u32 %v6878_v33, 16  ;;  %v233_v42 = vld [vmem:[%s6773_s27 + $0x3c] sm:$0xf] }
  0x34   : > { %v2157_v50 = vrot.slane %v2155_v43, 5  ;;  %v2150_v53 = vsel %vm6799_vm4, %v2145_v44, %v2149_v21  ;;  %v364_v55 = vor.u32 %v363_v45, %v359_v35  ;;  %v2163_v56 = vrot.slane %v2161_v26, 5  ;;  %v234_v26 = vld [vmem:[%s6773_s27 + $0x40] sm:$0xf] }
  0x35   : > { %v2171_v57 = vshll.u32 %v6886_v40, 16  ;;  %v5358_v59 = vcombine.low %v2140_v38, %v2150_v53  ;;  %v360_v61 = vsel %vm6799_vm4, %v355_v48, %v359_v35  ;;  %v2167_v2 = vrot.slane %v2165_v51, 4 }
  0x36   : > { %v2158_v0 = vor.u32 %v2157_v50, %v2154_v49  ;;  %v365_v5 = vrot.slane %v364_v55, 4  ;;  %v372_v7 = vshrl.u32 %v231_v52, 16  ;;  %v375_v8 = vshll.u32 %v231_v52, 16 }
  0x37   : > { %v2173_v6 = vrot.slane %v2171_v57, 5  ;;  %6122 = vmatprep.mubr.msk.bf16.mxu0 %vm709_vm3, %v5358_v59  ;;  %v2168_v17 = vor.u32 %v2167_v2, %v2163_v56  ;;  %v381_v10 = vshll.u32 %v232_v58, 16  ;;  %v385_v11 = vshrl.u32 %v232_v58, 16  ;;  %v5322_v2 = vld [vmem:[%s6773_s27 + $0x48] sm:$0xf] }
  0x38   : > { %v2159_v9 = vrot.slane %v2158_v0, 4  ;;  %v370_v13 = vsel %vm6799_vm4, %v365_v5, %v369_v47  ;;  %v374_v14 = vrot.slane %v372_v7, 4  ;;  %v377_v18 = vrot.slane %v375_v8, 5  ;;  %v6926_v8 = vld [vmem:[%s6773_s27 + $0x4c] sm:$0xf] }
  0x39   : > { %v391_v19 = vshll.u32 %v260_v4, 16  ;;  %v5132_v21 = vcombine.low %v360_v61, %v370_v13  ;;  %v2169_v24 = vrot.slane %v2168_v17, 4  ;;  %v383_v25 = vrot.slane %v381_v10, 5  ;;  %v261_v61 = vld [vmem:[%s6773_s27 + $0x44] sm:$0x1] }
  0x3a   : > { %v2164_v23 = vsel %vm6799_vm4, %v2159_v9, %v2163_v56  ;;  %v378_v27 = vor.u32 %v377_v18, %v374_v14  ;;  %v387_v29 = vrot.slane %v385_v11, 4  ;;  %v2176_v35 = vshrl.u32 %v5319_v12, 16 }
  0x3b   : > { %v393_v31 = vrot.slane %v391_v19, 5  ;;  %5987 = vmatmul.mubr.msk.bf16.gmra.mrb[4].mxu1 %vm709_vm3, %v5132_v21  ;;  %v2174_v37 = vsel %vm6799_vm4, %v2169_v24, %v2173_v6  ;;  %v2179_v36 = vshll.u32 %v5319_v12, 16  ;;  %v2185_v38 = vshll.u32 %v6903_v20, 16 }
  0x3c   : > { %v2189_v39 = vshrl.u32 %v6903_v20, 16  ;;  %v5359_v43 = vcombine.low %v2164_v23, %v2174_v37  ;;  %v379_v44 = vrot.slane %v378_v27, 4  ;;  %v388_v45 = vor.u32 %v387_v29, %v383_v25  ;;  %v6934_v23 = vld [vmem:[%s6773_s27 + $0x50] sm:$0x1]  ;;  %v6938_v27 = vld [vmem:[%s6773_s27 + $0x48] sm:$0xf] }
  0x3d   : > { %v2178_v47 = vrot.slane %v2176_v35, 4  ;;  %v2181_v48 = vrot.slane %v2179_v36, 5  ;;  %v2187_v49 = vrot.slane %v2185_v38, 5  ;;  %v2195_v51 = vshll.u32 %v6908_v34, 16  ;;  %v6941_v36 = vld [vmem:[%s6773_s27 + $0x4c] sm:$0xf] }
  0x3e   : > { %v2191_v50 = vrot.slane %v2189_v39, 4  ;;  %6123 = vmatmul.mubr.msk.bf16.gmra.mrb[4].mxu0 %vm709_vm3, %v5359_v43  ;;  %v384_v52 = vsel %vm6799_vm4, %v379_v44, %v383_v25  ;;  %v389_v53 = vrot.slane %v388_v45, 4  ;;  %v396_v55 = vshrl.u32 %v233_v42, 16 }
  0x3f   : > { %v399_v56 = vshll.u32 %v233_v42, 16  ;;  %v2182_v57 = vor.u32 %v2181_v48, %v2178_v47  ;;  %v2197_v59 = vrot.slane %v2195_v51, 5  ;;  %v405_v0 = vshll.u32 %v234_v26, 16 }
  0x40   : > { %v2192_v58 = vor.u32 %v2191_v50, %v2187_v49  ;;  %v394_v4 = vsel %vm6799_vm4, %v389_v53, %v393_v31  ;;  %v398_v5 = vrot.slane %v396_v55, 4  ;;  %v409_v7 = vshrl.u32 %v234_v26, 16  ;;  %v262_v26 = vld [vmem:[%s6773_s27 + $0x50] sm:$0x1]  ;;  %v5325_v53 = vld [vmem:[%s6773_s27 + $0x54] sm:$0xf] }
  0x41   : > { %v401_v6 = vrot.slane %v399_v56, 5  ;;  %v5133_v9 = vcombine.low %v384_v52, %v394_v4  ;;  %v2183_v17 = vrot.slane %v2182_v57, 4  ;;  %v407_v11 = vrot.slane %v405_v0, 5  ;;  %v6957_v4 = vld [vmem:[%s6773_s27 + $0x58] sm:$0xf] }
  0x42   : > { %v2193_v10 = vrot.slane %v2192_v58, 4  ;;  %v411_v13 = vrot.slane %v409_v7, 4  ;;  %v415_v14 = vshll.u32 %v261_v61, 16  ;;  %v2200_v18 = vshrl.u32 %v5322_v2, 16 }
  0x43   : > { %v402_v12 = vor.u32 %v401_v6, %v398_v5  ;;  %5990 = vmatprep.mubr.msk.bf16.mxu1 %vm709_vm3, %v5133_v9  ;;  %v2188_v19 = vsel %vm6799_vm4, %v2183_v17, %v2187_v49  ;;  %v2203_v24 = vshll.u32 %v5322_v2, 16  ;;  %v2209_v25 = vshll.u32 %v6926_v8, 16 }
  0x44   : > { %v2198_v21 = vsel %vm6799_vm4, %v2193_v10, %v2197_v59  ;;  %v412_v35 = vor.u32 %v411_v13, %v407_v11  ;;  %v417_v37 = vrot.slane %v415_v14, 5  ;;  %v2202_v38 = vrot.slane %v2200_v18, 4 }
  0x45   : > { %v5360_v29 = vcombine.low %v2188_v19, %v2198_v21  ;;  %v403_v31 = vrot.slane %v402_v12, 4  ;;  %v2205_v39 = vrot.slane %v2203_v24, 5  ;;  %v2211_v42 = vrot.slane %v2209_v25, 5  ;;  %v6963_v12 = vld [vmem:[%s6773_s27 + $0x5c] sm:$0x1] }
  0x46   : > { %v2213_v43 = vshrl.u32 %v6926_v8, 16  ;;  %v413_v45 = vrot.slane %v412_v35, 4  ;;  %v2219_v47 = vshll.u32 %v6934_v23, 16  ;;  %v420_v48 = vshrl.u32 %v6938_v27, 16  ;;  %v6967_v24 = vld [vmem:[%s6773_s27 + $0x54] sm:$0xf] }
  0x47   : > { %6126 = vmatprep.mubr.msk.bf16.mxu0 %vm709_vm3, %v5360_v29  ;;  %v408_v44 = vsel %vm6799_vm4, %v403_v31, %v407_v11  ;;  %v2206_v49 = vor.u32 %v2205_v39, %v2202_v38  ;;  %v423_v51 = vshll.u32 %v6938_v27, 16  ;;  %v429_v52 = vshll.u32 %v6941_v36, 16 }
  0x48   : > { %v2215_v50 = vrot.slane %v2213_v43, 4  ;;  %v418_v55 = vsel %vm6799_vm4, %v413_v45, %v417_v37  ;;  %v2221_v56 = vrot.slane %v2219_v47, 5  ;;  %v422_v57 = vrot.slane %v420_v48, 4  ;;  %v6973_v37 = vld [vmem:[%s6773_s27 + $0x58] sm:$0xf] }
  0x49   : > { %v433_v58 = vshrl.u32 %v6941_v36, 16  ;;  %v5134_v59 = vcombine.low %v408_v44, %v418_v55  ;;  %v2207_v61 = vrot.slane %v2206_v49, 4  ;;  %v425_v2 = vrot.slane %v423_v51, 5 }
  0x4a   : > { %v2216_v0 = vor.u32 %v2215_v50, %v2211_v42  ;;  %v431_v5 = vrot.slane %v429_v52, 5  ;;  %v439_v7 = vshll.u32 %v262_v26, 16  ;;  %v2224_v9 = vshrl.u32 %v5325_v53, 16  ;;  %v263_v26 = vld [vmem:[%s6773_s27 + $0x5c] sm:$0x1] }
  0x4b   : > { %v435_v6 = vrot.slane %v433_v58, 4  ;;  %5991 = vmatmul.mubr.msk.bf16.gmra.mrb[8].mxu1 %vm709_vm3, %v5134_v59  ;;  %v2212_v17 = vsel %vm6799_vm4, %v2207_v61, %v2211_v42  ;;  %v426_v11 = vor.u32 %v425_v2, %v422_v57  ;;  %v2227_v13 = vshll.u32 %v5325_v53, 16  ;;  %v5328_v53 = vld [vmem:[%s6773_s27 + $0x60] sm:$0xf]  ;;  %v6987_v59 = vld [vmem:[%s6773_s27 + $0x64] sm:$0xf] }
  0x4c   : > { %v2217_v10 = vrot.slane %v2216_v0, 4  ;;  %v441_v18 = vrot.slane %v439_v7, 5  ;;  %v2226_v19 = vrot.slane %v2224_v9, 4  ;;  %v2233_v21 = vshll.u32 %v6957_v4, 16  ;;  %v6994_v9 = vld [vmem:[%s6773_s27 + $0x68] sm:$0x1] }
  0x4d   : > { %v436_v14 = vor.u32 %v435_v6, %v431_v5  ;;  %v427_v29 = vrot.slane %v426_v11, 4  ;;  %v2229_v31 = vrot.slane %v2227_v13, 5  ;;  %v2237_v35 = vshrl.u32 %v6957_v4, 16 }
  0x4e   : > { %v2222_v25 = vsel %vm6799_vm4, %v2217_v10, %v2221_v56  ;;  %v2235_v42 = vrot.slane %v2233_v21, 5  ;;  %v2243_v43 = vshll.u32 %v6963_v12, 16  ;;  %v444_v48 = vshrl.u32 %v6967_v24, 16 }
  0x4f   : > { %v5361_v38 = vcombine.low %v2212_v17, %v2222_v25  ;;  %v437_v39 = vrot.slane %v436_v14, 4  ;;  %v432_v44 = vsel %vm6799_vm4, %v427_v29, %v431_v5  ;;  %v2230_v45 = vor.u32 %v2229_v31, %v2226_v19  ;;  %v6998_v19 = vld [vmem:[%s6773_s27 + $0x60] sm:$0xf] }
  0x50   : > { %v2239_v47 = vrot.slane %v2237_v35, 4  ;;  %v2245_v50 = vrot.slane %v2243_v43, 5  ;;  %v447_v51 = vshll.u32 %v6967_v24, 16  ;;  %v453_v52 = vshll.u32 %v6973_v37, 16  ;;  %v7004_v35 = vld [vmem:[%s6773_s27 + $0x64] sm:$0xf] }
  0x51   : > { %6127 = vmatmul.mubr.msk.bf16.gmra.mrb[8].mxu0 %vm709_vm3, %v5361_v38  ;;  %v442_v49 = vsel %vm6799_vm4, %v437_v39, %v441_v18  ;;  %v2231_v56 = vrot.slane %v2230_v45, 4  ;;  %v446_v58 = vrot.slane %v444_v48, 4  ;;  %v457_v2 = vshrl.u32 %v6973_v37, 16 }
  0x52   : > { %v5135_v55 = vcombine.low %v432_v44, %v442_v49  ;;  %v2240_v57 = vor.u32 %v2239_v47, %v2235_v42  ;;  %v449_v61 = vrot.slane %v447_v51, 5  ;;  %v455_v0 = vrot.slane %v453_v52, 5 }
  0x53   : > { %v463_v5 = vshll.u32 %v263_v26, 16  ;;  %v2236_v6 = vsel %vm6799_vm4, %v2231_v56, %v2235_v42  ;;  %v2248_v17 = vshrl.u32 %v5328_v53, 16  ;;  %v2251_v10 = vshll.u32 %v5328_v53, 16 }
  0x54   : > { %5994 = vmatprep.mubr.msk.bf16.mxu1 %vm709_vm3, %v5135_v55  ;;  %v2241_v7 = vrot.slane %v2240_v57, 4  ;;  %v450_v11 = vor.u32 %v449_v61, %v446_v58  ;;  %v459_v13 = vrot.slane %v457_v2, 4  ;;  %v2257_v18 = vshll.u32 %v6987_v59, 16  ;;  %v5388_v58 = vld [vmem:[%s6773_s27 + $0xc] sm:$0xe] }
  0x55   : > { %v465_v14 = vrot.slane %v463_v5, 5  ;;  %v2250_v25 = vrot.slane %v2248_v17, 4  ;;  %v2253_v29 = vrot.slane %v2251_v10, 5  ;;  %v2261_v31 = vshrl.u32 %v6987_v59, 16 }
  0x56   : > { %v2246_v21 = vsel %vm6799_vm4, %v2241_v7, %v2245_v50  ;;  %v451_v39 = vrot.slane %v450_v11, 4  ;;  %v460_v42 = vor.u32 %v459_v13, %v455_v0  ;;  %v2259_v43 = vrot.slane %v2257_v18, 5  ;;  %v264_v50 = vld [vmem:[%s6773_s27 + $0x68] sm:$0x1] }
  0x57   : > { %v5362_v38 = vcombine.low %v2236_v6, %v2246_v21  ;;  %v2254_v44 = vor.u32 %v2253_v29, %v2250_v25  ;;  %v2263_v45 = vrot.slane %v2261_v31, 4  ;;  %v2267_v47 = vshll.u32 %v6994_v9, 16  ;;  %v7032_v29 = vld [vmem:[%s6773_s27 + $0x70] sm:$0xf] }
  0x58   : > { %v468_v26 = vshrl.u32 %v6998_v19, 16  ;;  %v456_v48 = vsel %vm6799_vm4, %v451_v39, %v455_v0  ;;  %v461_v49 = vrot.slane %v460_v42, 4  ;;  %v471_v51 = vshll.u32 %v6998_v19, 16  ;;  %v7019_v0 = vld [vmem:[%s6773_s27 + $0x6c] sm:$0xf] }
  0x59   : > { %6130 = vmatprep.mubr.msk.bf16.mxu0 %vm709_vm3, %v5362_v38  ;;  %v477_v52 = vshll.u32 %v7004_v35, 16  ;;  %v2255_v53 = vrot.slane %v2254_v44, 4  ;;  %v2264_v55 = vor.u32 %v2263_v45, %v2259_v43  ;;  %v2269_v56 = vrot.slane %v2267_v47, 5 }
  0x5a   : > { %v470_v57 = vrot.slane %v468_v26, 4  ;;  %v466_v61 = vsel %vm6799_vm4, %v461_v49, %v465_v14  ;;  %v473_v2 = vrot.slane %v471_v51, 5  ;;  %v481_v6 = vshrl.u32 %v7004_v35, 16  ;;  %v265_v26 = vld [vmem:[%s6773_s27 + $0x74] sm:$0x1] }
  0x5b   : > { %v479_v5 = vrot.slane %v477_v52, 5  ;;  %v5136_v7 = vcombine.low %v456_v48, %v466_v61  ;;  %v2260_v17 = vsel %vm6799_vm4, %v2255_v53, %v2259_v43  ;;  %v2265_v10 = vrot.slane %v2264_v55, 4  ;;  %v5389_v48 = vld [vmem:[%s6773_s27 + $0x18] sm:$0xe] }
  0x5c   : > { %v487_v11 = vshll.u32 %v264_v50, 16  ;;  %v474_v14 = vor.u32 %v473_v2, %v470_v57  ;;  %v483_v18 = vrot.slane %v481_v6, 4  ;;  %v5404_v21 = vrot.slane %v5388_v58, 9  ;;  %v7051_v53 = vld [vmem:[%s6773_s27 + $0x78] sm:$0xf] }
  0x5d   : > { %v2825_v25 = vrot.slane %v2823_v62, 4  ;;  %5995 = vmatmul.mubr.msk.bf16.gmra.mrb[12].mxu1 %vm709_vm3, %v5136_v7  ;;  %v2270_v31 = vsel %vm6799_vm4, %v2265_v10, %v2269_v56  ;;  %v492_v39 = vshrl.u32 %v7019_v0, 16  ;;  %v495_v42 = vshll.u32 %v7019_v0, 16  ;;  %v266_v57 = vld [vmem:[%s6773_s27 + $0x80] sm:$0x1] }
  0x5e   : > { %v489_v38 = vrot.slane %v487_v11, 5  ;;  %v5363_v43 = vcombine.low %v2260_v17, %v2270_v31  ;;  %v475_v44 = vrot.slane %v474_v14, 4  ;;  %v484_v45 = vor.u32 %v483_v18, %v479_v5  ;;  %v5390_v10 = vld [vmem:[%s6773_s27 + $0x24] sm:$0xe] }
  0x5f   : > { %v2824_v47 = vsel %vm7025_vm7, %v5404_v21, %v2823_v62  ;;  %v2827_v49 = vsel %vm7025_vm7, %v2825_v25, %v2826_v63  ;;  %v494_v50 = vrot.slane %v492_v39, 4  ;;  %v497_v51 = vrot.slane %v495_v42, 5  ;;  %v7077_v39 = vld [vmem:[%s6773_s27 + $0x84] sm:$0xf] }
  0x60   : > { %v501_v52 = vshll.u32 %v7032_v29, 16  ;;  %6131 = vmatmul.mubr.msk.bf16.gmra.mrb[12].mxu0 %vm709_vm3, %v5363_v43  ;;  %v480_v15 = vsel %vm6799_vm4, %v475_v44, %v479_v5  ;;  %v485_v62 = vrot.slane %v484_v45, 4  ;;  %v5421_v55 = vcombine.low %v2824_v47, %v2827_v49  ;;  %v7085_v43 = vld [vmem:[%s6773_s27 + $0x88] sm:$0xf] }
  0x61   : > { %v505_v56 = vshrl.u32 %v7032_v29, 16  ;;  %v498_v63 = vor.u32 %v497_v51, %v494_v50  ;;  %v511_v61 = vshll.u32 %v265_v26, 16  ;;  %v5405_v2 = vrot.slane %v5389_v48, 9 }
  0x62   : > { %v503_v58 = vrot.slane %v501_v52, 5  ;;  %v490_v6 = vsel %vm6799_vm4, %v485_v62, %v489_v38  ;;  %6152 = vmatprep.mubr.msk.bf16.mxu0 %vm709_vm3, %v5421_v55  ;;  %v2834_v5 = vsel %vm7025_vm7, %v6842_v30, %v2833_v28  ;;  %v516_v17 = vshrl.u32 %v7051_v53, 16  ;;  %v267_v52 = vld [vmem:[%s6773_s27 + $0x8c] sm:$0x1] }
  0x63   : > { %v507_v7 = vrot.slane %v505_v56, 4  ;;  %v5137_v11 = vcombine.low %v480_v15, %v490_v6  ;;  %v499_v14 = vrot.slane %v498_v63, 4  ;;  %v513_v18 = vrot.slane %v511_v61, 5 }
  0x64   : > { %v2831_v21 = vsel %vm7025_vm7, %v5405_v2, %v2830_v22  ;;  %v518_v38 = vrot.slane %v516_v17, 4  ;;  %v519_v1 = vshll.u32 %v7051_v53, 16  ;;  %v525_v30 = vshll.u32 %v7058_v16, 16  ;;  %v7090_v22 = vld [vmem:[%s8530_s1 + $0x1c] sm:$0xf] }
  0x65   : > { %v508_v25 = vor.u32 %v507_v7, %v503_v58  ;;  %v5422_v31 = vcombine.low %v2831_v21, %v2834_v5  ;;  %5998 = vmatprep.mubr.msk.bf16.mxu1 %vm709_vm3, %v5137_v11  ;;  %v504_v28 = vsel %vm6799_vm4, %v499_v14, %v503_v58  ;;  %v529_v60 = vshrl.u32 %v7058_v16, 16  ;;  %v7109_v5 = vld [vmem:[%s6773_s27 + $0x90] sm:$0xf] }
  0x66   : > { %v535_v42 = vshll.u32 %v266_v57, 16  ;;  %v521_v45 = vrot.slane %v519_v1, 5  ;;  %v5406_v47 = vrot.slane %v5390_v10, 9  ;;  %v2837_v26 = vrot.slane %v6849_v46, 5  ;;  %v5391_v57 = vld [vmem:[%s6773_s27 + $0x30] sm:$0xe] }
  0x67   : > { %v509_v44 = vrot.slane %v508_v25, 4  ;;  %v527_v48 = vrot.slane %v525_v30, 5  ;;  %v531_v49 = vrot.slane %v529_v60, 4  ;;  %v2840_v51 = vrot.slane %v6858_v54, 5  ;;  %v7121_v30 = vld [vmem:[%s6773_s27 + $0x94] sm:$0xf] }
  0x68   : > { %v537_v50 = vrot.slane %v535_v42, 5  ;;  %6153 = vmatmul.mubr.msk.bf16.vlgmr.msra.gmra.mrb[0].mxu0 %vm709_vm3, %v5422_v31  ;;  %v522_v62 = vor.u32 %v521_v45, %v518_v38  ;;  %v2838_v55 = vsel %vm7025_vm7, %v5406_v47, %v2837_v26  ;;  %v2839_v56 = vrot.slane %v2837_v26, 4  ;;  %v268_v60 = vld [vmem:[%s6773_s27 + $0x98] sm:$0x1]  ;;  %v5392_v26 = vld [vmem:[%s6773_s27 + $0x3c] sm:$0xe] }
  0x69   : > { %v514_v15 = vsel %vm6799_vm4, %v509_v44, %v513_v18  ;;  %6185 = vmatpush3.bf16.msra.mxu0 %v6809_v41  ;;  %v532_v46 = vor.u32 %v531_v49, %v527_v48  ;;  %v540_v58 = vshrl.u32 %v7077_v39, 16  ;;  %v543_v54 = vshll.u32 %v7077_v39, 16 }
  0x6a   : > { %v5138_v63 = vcombine.low %v504_v28, %v514_v15  ;;  %v523_v61 = vrot.slane %v522_v62, 4  ;;  %v2841_v2 = vsel %vm7025_vm7, %v2839_v56, %v2840_v51  ;;  %v549_v6 = vshll.u32 %v7085_v43, 16  ;;  %6552 = vmatprep.subr.msk.bf16.mxu0 %vm758_vm0, %v7090_v22 }
  0x6b   : > { %v553_v7 = vshrl.u32 %v7085_v43, 16  ;;  %v533_v41 = vrot.slane %v532_v46, 4  ;;  %v5423_v17 = vcombine.low %v2838_v55, %v2841_v2  ;;  %v542_v10 = vrot.slane %v540_v58, 4  ;;  %v7141_v46 = vld [vmem:[%s6773_s27 + $0xa0] sm:$0xf] }
  0x6c   : > { %5999 = vmatmul.mubr.msk.bf16.gmra.mrb[16].mxu1 %vm709_vm3, %v5138_v63  ;;  %v545_v11 = vrot.slane %v543_v54, 5  ;;  %v528_v14 = vsel %vm6799_vm4, %v523_v61, %v527_v48  ;;  %v551_v18 = vrot.slane %v549_v6, 5  ;;  %v559_v25 = vshll.u32 %v267_v52, 16  ;;  %v7130_v52 = vld [vmem:[%s6773_s27 + $0x9c] sm:$0xf] }
  0x6d   : > { %v555_v21 = vrot.slane %v553_v7, 4  ;;  %v538_v31 = vsel %vm6799_vm4, %v533_v41, %v537_v50  ;;  %6156 = vmatprep.mubr.msk.bf16.mxu0 %vm709_vm3, %v5423_v17  ;;  %v5407_v1 = vrot.slane %v5391_v57, 9  ;;  %v2844_v28 = vrot.slane %v6878_v33, 5 }
  0x6e   : > { %v546_v38 = vor.u32 %v545_v11, %v542_v10  ;;  %v5139_v42 = vcombine.low %v528_v14, %v538_v31  ;;  %v561_v45 = vrot.slane %v559_v25, 5  ;;  %v2847_v47 = vrot.slane %v6886_v40, 5  ;;  %v269_v10 = vld [vmem:[%s6773_s27 + $0xa4] sm:$0x1]  ;;  %v5393_v11 = vld [vmem:[%s6773_s27 + $0x48] sm:$0xe] }
  0x6f   : > { %v556_v44 = vor.u32 %v555_v21, %v551_v18  ;;  %v2845_v49 = vsel %vm7025_vm7, %v5407_v1, %v2844_v28  ;;  %v2846_v50 = vrot.slane %v2844_v28, 4  ;;  %v564_v51 = vshrl.u32 %v7109_v5, 16 }
  0x70   : > { %v547_v48 = vrot.slane %v546_v38, 4  ;;  %6002 = vmatprep.mubr.msk.bf16.mxu1 %vm709_vm3, %v5139_v42  ;;  %v567_v15 = vshll.u32 %v7109_v5, 16  ;;  %v573_v62 = vshll.u32 %v7121_v30, 16  ;;  %v577_v40 = vshrl.u32 %v7121_v30, 16 }
  0x71   : > { %v557_v33 = vrot.slane %v556_v44, 4  ;;  %v2848_v56 = vsel %vm7025_vm7, %v2846_v50, %v2847_v47  ;;  %v566_v57 = vrot.slane %v564_v51, 4  ;;  %v583_v63 = vshll.u32 %v268_v60, 16 }
  0x72   : > { %v552_v55 = vsel %vm6799_vm4, %v547_v48, %v551_v18  ;;  %v5424_v54 = vcombine.low %v2845_v49, %v2848_v56  ;;  %v569_v61 = vrot.slane %v567_v15, 5  ;;  %v575_v2 = vrot.slane %v573_v62, 5  ;;  %v7167_v56 = vld [vmem:[%s6773_s27 + $0xac] sm:$0xf] }
  0x73   : > { %v562_v58 = vsel %vm6799_vm4, %v557_v33, %v561_v45  ;;  %v579_v7 = vrot.slane %v577_v40, 4  ;;  %v585_v41 = vrot.slane %v583_v63, 5  ;;  %v5408_v17 = vrot.slane %v5392_v26, 9  ;;  %v7162_v33 = vld [vmem:[%s6773_s27 + $0xa8] sm:$0xf] }
  0x74   : > { %v5140_v6 = vcombine.low %v552_v55, %v562_v58  ;;  %6157 = vmatmul.mubr.msk.bf16.gmra.mrb[4].mxu0 %vm709_vm3, %v5424_v54  ;;  %v570_v14 = vor.u32 %v569_v61, %v566_v57  ;;  %v2851_v18 = vrot.slane %v6903_v20, 5  ;;  %v2854_v21 = vrot.slane %v6908_v34, 5  ;;  %v270_v61 = vld [vmem:[%s6773_s27 + $0xb0] sm:$0x1] }
  0x75   : > { %v588_v25 = vshrl.u32 %v7130_v52, 16  ;;  %v580_v31 = vor.u32 %v579_v7, %v575_v2  ;;  %v591_v38 = vshll.u32 %v7130_v52, 16  ;;  %v597_v1 = vshll.u32 %v7141_v46, 16 }
  0x76   : > { %6003 = vmatmul.mubr.msk.bf16.gmra.mrb[20].mxu1 %vm709_vm3, %v5140_v6  ;;  %v601_v28 = vshrl.u32 %v7141_v46, 16  ;;  %v571_v60 = vrot.slane %v570_v14, 4  ;;  %v2852_v42 = vsel %vm7025_vm7, %v5408_v17, %v2851_v18  ;;  %v2853_v20 = vrot.slane %v2851_v18, 4  ;;  %v7182_v14 = vld [vmem:[%s6773_s27 + $0xb4] sm:$0xf] }
  0x77   : > { %v590_v44 = vrot.slane %v588_v25, 4  ;;  %v581_v34 = vrot.slane %v580_v31, 4  ;;  %v593_v45 = vrot.slane %v591_v38, 5  ;;  %v599_v47 = vrot.slane %v597_v1, 5 }
  0x78   : > { %v603_v26 = vrot.slane %v601_v28, 4  ;;  %v576_v48 = vsel %vm6799_vm4, %v571_v60, %v575_v2  ;;  %v2855_v49 = vsel %vm7025_vm7, %v2853_v20, %v2854_v21  ;;  %v607_v50 = vshll.u32 %v269_v10, 16  ;;  %v5394_v2 = vld [vmem:[%s6773_s27 + $0x54] sm:$0xe] }
  0x79   : > { %v5409_v51 = vrot.slane %v5393_v11, 9  ;;  %v586_v15 = vsel %vm6799_vm4, %v581_v34, %v585_v41  ;;  %v5425_v62 = vcombine.low %v2852_v42, %v2855_v49  ;;  %v594_v40 = vor.u32 %v593_v45, %v590_v44  ;;  %v7191_v42 = vld [vmem:[%s6773_s27 + $0xb8] sm:$0xf]  ;;  %v271_v49 = vld [vmem:[%s6773_s27 + $0xbc] sm:$0x1] }
  0x7a   : > { %v604_v55 = vor.u32 %v603_v26, %v599_v47  ;;  %v5141_v57 = vcombine.low %v576_v48, %v586_v15  ;;  %v609_v63 = vrot.slane %v607_v50, 5  ;;  %v2858_v58 = vrot.slane %v6926_v8, 5 }
  0x7b   : > { %v2861_v54 = vrot.slane %v6934_v23, 5  ;;  %6160 = vmatprep.mubr.msk.bf16.mxu0 %vm709_vm3, %v5425_v62  ;;  %v595_v6 = vrot.slane %v594_v40, 4  ;;  %v612_v41 = vshrl.u32 %v7162_v33, 16  ;;  %v615_v17 = vshll.u32 %v7162_v33, 16 }
  0x7c   : > { %v605_v7 = vrot.slane %v604_v55, 4  ;;  %6006 = vmatprep.mubr.msk.bf16.mxu1 %vm709_vm3, %v5141_v57  ;;  %v2859_v10 = vsel %vm7025_vm7, %v5409_v51, %v2858_v58  ;;  %v2860_v11 = vrot.slane %v2858_v58, 4  ;;  %v621_v8 = vshll.u32 %v7167_v56, 16  ;;  %v5395_v55 = vld [vmem:[%s6773_s27 + $0x60] sm:$0xe] }
  0x7d   : > { %v625_v23 = vshrl.u32 %v7167_v56, 16  ;;  %v600_v18 = vsel %vm6799_vm4, %v595_v6, %v599_v47  ;;  %v614_v25 = vrot.slane %v612_v41, 4  ;;  %v617_v31 = vrot.slane %v615_v17, 5  ;;  %v5396_v6 = vld [vmem:[%s6773_s27 + $0x6c] sm:$0xe] }
  0x7e   : > { %v610_v21 = vsel %vm6799_vm4, %v605_v7, %v609_v63  ;;  %v2862_v1 = vsel %vm7025_vm7, %v2860_v11, %v2861_v54  ;;  %v623_v28 = vrot.slane %v621_v8, 5  ;;  %v631_v34 = vshll.u32 %v270_v61, 16  ;;  %v5332_v11 = vld [vmem:[%s6773_s27 + $0x70] sm:$0xf]  ;;  %v5333_v8 = vld [vmem:[%s6773_s27 + $0x74] sm:$0x1] }
  0x7f   : > { %v5142_v38 = vcombine.low %v600_v18, %v610_v21  ;;  %v627_v60 = vrot.slane %v625_v23, 4  ;;  %v5426_v20 = vcombine.low %v2859_v10, %v2862_v1  ;;  %v618_v44 = vor.u32 %v617_v31, %v614_v25 }
  0x80   : > { %v5410_v45 = vrot.slane %v5394_v2, 9  ;;  %v2865_v26 = vrot.slane %v6957_v4, 5  ;;  %v2868_v48 = vrot.slane %v6963_v12, 5  ;;  %v636_v50 = vshrl.u32 %v7182_v14, 16 }
  0x81   : > { %6007 = vmatmul.mubr.msk.bf16.gmra.mrb[24].mxu1 %vm709_vm3, %v5142_v38  ;;  %v628_v47 = vor.u32 %v627_v60, %v623_v28  ;;  %6161 = vmatmul.mubr.msk.bf16.gmra.mrb[8].mxu0 %vm709_vm3, %v5426_v20  ;;  %v619_v51 = vrot.slane %v618_v44, 4  ;;  %v633_v15 = vrot.slane %v631_v34, 5  ;;  %v639_v62 = vshll.u32 %v7182_v14, 16 }
  0x82   : > { %v645_v40 = vshll.u32 %v7191_v42, 16  ;;  %v2866_v4 = vsel %vm7025_vm7, %v5410_v45, %v2865_v26  ;;  %v2867_v12 = vrot.slane %v2865_v26, 4  ;;  %v638_v63 = vrot.slane %v636_v50, 4 }
  0x83   : > { %v629_v57 = vrot.slane %v628_v47, 4  ;;  %v624_v58 = vsel %vm6799_vm4, %v619_v51, %v623_v28  ;;  %v641_v54 = vrot.slane %v639_v62, 5  ;;  %v649_v2 = vshrl.u32 %v7191_v42, 16  ;;  %v5397_v47 = vld [vmem:[%s6773_s27 + $0x78] sm:$0xe] }
  0x84   : > { %v647_v61 = vrot.slane %v645_v40, 5  ;;  %v2869_v41 = vsel %vm7025_vm7, %v2867_v12, %v2868_v48  ;;  %v655_v17 = vshll.u32 %v271_v49, 16  ;;  %v5411_v10 = vrot.slane %v5395_v55, 9  ;;  %v6627_v51 = vld [vmem:[%s6773_s27] sm:$0xf] }
  0x85   : > { %v634_v7 = vsel %vm6799_vm4, %v629_v57, %v633_v15  ;;  %v5427_v18 = vcombine.low %v2866_v4, %v2869_v41  ;;  %v642_v21 = vor.u32 %v641_v54, %v638_v63  ;;  %v651_v25 = vrot.slane %v649_v2, 4  ;;  %v7229_v15 = vld [vmem:[%s6773_s27 + $0x4] sm:$0xf]  ;;  %v7233_v40 = vld [vmem:[%s6773_s27 + $0x7c] sm:$0xf] }
  0x86   : > { %v5143_v23 = vcombine.low %v624_v58, %v634_v7  ;;  %v657_v31 = vrot.slane %v655_v17, 5  ;;  %v2872_v38 = vrot.slane %v6987_v59, 5  ;;  %v2875_v1 = vrot.slane %v6994_v9, 5  ;;  %v7236_v55 = vld [vmem:[%s6773_s27 + $0x80] sm:$0x1] }
  0x87   : > { %v5412_v28 = vrot.slane %v5396_v6, 9  ;;  %6164 = vmatprep.mubr.msk.bf16.mxu0 %vm709_vm3, %v5427_v18  ;;  %v643_v60 = vrot.slane %v642_v21, 4  ;;  %v652_v20 = vor.u32 %v651_v25, %v647_v61  ;;  %v2879_v44 = vrot.slane %v5332_v11, 5  ;;  %v5338_v57 = vld [vmem:[%s6773_s27 + $0x88] sm:$0xf] }
  0x88   : > { %6010 = vmatprep.mubr.msk.bf16.mxu1 %vm709_vm3, %v5143_v23  ;;  %v2882_v34 = vrot.slane %v5333_v8, 5  ;;  %v2873_v45 = vsel %vm7025_vm7, %v5411_v10, %v2872_v38  ;;  %v2874_v59 = vrot.slane %v2872_v38, 4  ;;  %v5161_v62 = vcombine.low %v6627_v51, %v7229_v15  ;;  %v5339_v54 = vld [vmem:[%s6773_s27 + $0x8c] sm:$0x1]  ;;  %v5341_v17 = vld [vmem:[%s6773_s27 + $0x94] sm:$0xf] }
  0x89   : > { %v648_v9 = vsel %vm6799_vm4, %v643_v60, %v647_v61  ;;  %v653_v26 = vrot.slane %v652_v20, 4  ;;  %v2880_v48 = vsel %vm7025_vm7, %v5412_v28, %v2879_v44  ;;  %v2881_v49 = vrot.slane %v2879_v44, 4  ;;  %v5398_v61 = vld [vmem:[%s6773_s27 + $0x84] sm:$0xe]  ;;  %v5399_v23 = vld [vmem:[%s6773_s27 + $0x90] sm:$0xe] }
  0x8a   : > { %v2876_v50 = vsel %vm7025_vm7, %v2874_v59, %v2875_v1  ;;  %v5413_v58 = vrot.slane %v5397_v47, 9  ;;  %v2886_v7 = vrot.slane %v7233_v40, 5  ;;  %v2889_v41 = vrot.slane %v7236_v55, 5  ;;  %v5342_v25 = vld [vmem:[%s6773_s27 + $0x98] sm:$0x1] }
  0x8b   : > { %v658_v4 = vsel %vm6799_vm4, %v653_v26, %v657_v31  ;;  %v5428_v12 = vcombine.low %v2873_v45, %v2876_v50  ;;  %v2883_v63 = vsel %vm7025_vm7, %v2881_v49, %v2882_v34  ;;  %v5414_v10 = vrot.slane %v5398_v61, 9  ;;  %v5344_v31 = vld [vmem:[%s6773_s27 + $0xa0] sm:$0xf]  ;;  %v5345_v60 = vld [vmem:[%s6773_s27 + $0xa4] sm:$0x1] }
  0x8c   : > { %v5144_v2 = vcombine.low %v648_v9, %v658_v4  ;;  %v5429_v6 = vcombine.low %v2880_v48, %v2883_v63  ;;  %v2893_v11 = vrot.slane %v5338_v57, 5  ;;  %v2896_v8 = vrot.slane %v5339_v54, 5  ;;  %v5400_v20 = vld [vmem:[%s6773_s27 + $0x9c] sm:$0xe]  ;;  %v6629_v44 = vld [vmem:[%s6773_s27 + $0xc] sm:$0xf] }
  0x8d   : > { %6165 = vmatmul.mubr.msk.bf16.gmra.mrb[12].mxu0 %vm709_vm3, %v5428_v12  ;;  %v2887_v18 = vsel %vm7025_vm7, %v5413_v58, %v2886_v7  ;;  %v2888_v21 = vrot.slane %v2886_v7, 4  ;;  %v2900_v28 = vrot.slane %v5341_v17, 5  ;;  %v7263_v34 = vld [vmem:[%s6773_s27 + $0x10] sm:$0xf]  ;;  %v6631_v47 = vld [vmem:[%s6773_s27 + $0x18] sm:$0xf] }
  0x8e   : > { %6011 = vmatmul.mubr.msk.bf16.gmra.mrb[28].mxu1 %vm709_vm3, %v5144_v2  ;;  %6168 = vmatprep.mubr.msk.bf16.mxu0 %vm709_vm3, %v5429_v6  ;;  %v2894_v38 = vsel %vm7025_vm7, %v5414_v10, %v2893_v11  ;;  %v2895_v1 = vrot.slane %v2893_v11, 4  ;;  %v5162_v45 = vcombine.low %v6629_v44, %v7263_v34  ;;  %v7270_v9 = vld [vmem:[%s6773_s27 + $0x1c] sm:$0xf]  ;;  %v5415_v48 = vrot.slane %v5399_v23, 9  ;;  %v5347_v57 = vld [vmem:[%s6773_s27 + $0xac] sm:$0xf] }
  0x8f   : > { %6016 = vmatprep.mubr.msk.bf16.mxu1 %vm709_vm3, %v5161_v62  ;;  %v2890_v59 = vsel %vm7025_vm7, %v2888_v21, %v2889_v41  ;;  %v5163_v26 = vcombine.low %v6631_v47, %v7270_v9  ;;  %v2902_v51 = vrot.slane %v2900_v28, 4  ;;  %v2903_v62 = vrot.slane %v5342_v25, 5  ;;  %v6633_v54 = vld [vmem:[%s8530_s1 + $0x8] sm:$0xf]  ;;  %v5350_v2 = vld [vmem:[%s6773_s27 + $0xb8] sm:$0xf] }
  0x90   : > { %v5430_v49 = vcombine.low %v2887_v18, %v2890_v59  ;;  %v2897_v50 = vsel %vm7025_vm7, %v2895_v1, %v2896_v8  ;;  %v5416_v12 = vrot.slane %v5400_v20, 9  ;;  %v2907_v63 = vrot.slane %v5344_v31, 5  ;;  %v7285_v7 = vld [vmem:[%s8530_s1 + $0xc] sm:$0xf]  ;;  %v5348_v10 = vld [vmem:[%s6773_s27 + $0xb0] sm:$0x1] }
  0x91   : > { %v5431_v4 = vcombine.low %v2894_v38, %v2897_v50  ;;  %v2910_v58 = vrot.slane %v5345_v60, 5  ;;  %v1477_v61 = vsel %vm758_vm0, %v6633_v54, 0  ;;  %v2901_v41 = vsel %vm7025_vm7, %v5415_v48, %v2900_v28  ;;  %v5401_v11 = vld [vmem:[%s6773_s27 + $0xa8] sm:$0xe]  ;;  %v5351_v25 = vld [vmem:[%s6773_s27 + $0xbc] sm:$0x1] }
  0x92   : > { %v2909_v6 = vrot.slane %v2907_v63, 4  ;;  %v2904_v17 = vsel %vm7025_vm7, %v2902_v51, %v2903_v62  ;;  %v2914_v8 = vrot.slane %v5347_v57, 5  ;;  %v2908_v23 = vsel %vm7025_vm7, %v5416_v12, %v2907_v63  ;;  %v5402_v31 = vld [vmem:[%s6773_s27 + $0xb4] sm:$0xe]  ;;  %v6634_v38 = vld [vmem:[%s6773_s27 + $0x24] sm:$0xf] }
  0x93   : > { %v2921_v21 = vrot.slane %v5350_v2, 5  ;;  %v7306_v1 = vld [vmem:[%s6773_s27 + $0x28] sm:$0xf]  ;;  %v5432_v60 = vcombine.low %v2901_v41, %v2904_v17  ;;  %v5417_v44 = vrot.slane %v5401_v11, 9  ;;  %v2917_v59 = vrot.slane %v5348_v10, 5 }
  0x94   : > { %v2911_v18 = vsel %vm7025_vm7, %v2909_v6, %v2910_v58  ;;  %v5164_v28 = vcombine.low %v6634_v38, %v7306_v1  ;;  %v6636_v47 = vld [vmem:[%s6773_s27 + $0x30] sm:$0xf]  ;;  %v2924_v51 = vrot.slane %v5351_v25, 5  ;;  %v5353_v62 = vld [vmem:[%s6773_s27 + $0xc4] sm:$0xf]  ;;  %v2309_v25 = vshrl.u32 %v7233_v40, 16 }
  0x95   : > { %6169 = vmatmul.mubr.msk.bf16.gmra.mrb[16].mxu0 %vm709_vm3, %v5430_v49  ;;  %v5433_v20 = vcombine.low %v2908_v23, %v2911_v18  ;;  %v5418_v49 = vrot.slane %v5402_v31, 9  ;;  %v2923_v50 = vrot.slane %v2921_v21, 4  ;;  %v2915_v57 = vsel %vm7025_vm7, %v5417_v44, %v2914_v8  ;;  %v5403_v12 = vld [vmem:[%s6773_s27 + $0xc0] sm:$0xe]  ;;  %v6638_v41 = vld [vmem:[%s6773_s27 + $0x3c] sm:$0xf] }
  0x96   : > { %6017 = vmatmul.mubr.msk.bf16.vlgmr.msra.gmra.mrb[0].mxu1 %vm709_vm3, %v5162_v45  ;;  %6172 = vmatprep.mubr.msk.bf16.mxu0 %vm709_vm3, %v5431_v4  ;;  %v2916_v45 = vrot.slane %v2914_v8, 4  ;;  %v2928_v63 = vrot.slane %v5353_v62, 5  ;;  %v5419_v6 = vrot.slane %v5403_v12, 9  ;;  %v7331_v17 = vld [vmem:[%s6773_s27 + $0x40] sm:$0xf]  ;;  %v5167_v18 = vcombine.low %v6938_v27, %v6941_v36  ;;  %v6590_v62 = vld [vmem:[%s6773_s27 + $0x24] sm:$0xff]  }
  0x97   : > { %6049 = vmatpush3.bf16.msra.mxu1 %v1477_v61  ;;  %6020 = vmatprep.mubr.msk.bf16.mxu1 %vm709_vm3, %v5163_v26  ;;  %v7311_v26 = vld [vmem:[%s6773_s27 + $0x34] sm:$0xf]  ;;  %v2922_v58 = vsel %vm7025_vm7, %v5418_v49, %v2921_v21  ;;  %v2925_v54 = vsel %vm7025_vm7, %v2923_v50, %v2924_v51  ;;  %v5354_v61 = vld [vmem:[%s6773_s27 + $0xc8] sm:$0x1]  ;;  %v5166_v10 = vcombine.low %v6638_v41, %v7331_v17  ;;  %v2305_v21 = vshll.u32 %v7233_v40, 16 }
  0x98   : > { %6547 = vmatprep.subr.msk.bf16.mxu1 %vm758_vm0, %v7285_v7  ;;  %v5165_v48 = vcombine.low %v6636_v47, %v7311_v26  ;;  %v2918_v4 = vsel %vm7025_vm7, %v2916_v45, %v2917_v59  ;;  %v5435_v11 = vcombine.low %v2922_v58, %v2925_v54  ;;  %v2930_v8 = vrot.slane %v2928_v63, 4  ;;  %v1215_v45 = vld [vmem:[%s6773_s27] sm:$0xe]  ;;  %v1216_v59 = vld [vmem:[%s6773_s27 + $0xc] sm:$0xe] }
  0x99   : > { %v5434_v2 = vcombine.low %v2915_v57, %v2918_v4  ;;  %v2931_v23 = vrot.slane %v5354_v61, 5  ;;  %v2929_v31 = vsel %vm7025_vm7, %v5419_v6, %v2928_v63  ;;  %v7346_v27 = vrot.slane %v2305_v21, 5  ;;  %v1219_v41 = vld [vmem:[%s6773_s27 + $0x30] sm:$0xe] }
  0x9a   : > { %v2311_v36 = vrot.slane %v2309_v25, 4  ;;  %v5169_v44 = vcombine.low %v6998_v19, %v7004_v35  ;;  %v2315_v47 = vshll.u32 %v7236_v55, 16  ;;  %v5193_v19 = vrot.slane %v1215_v45, 9 }
  0x9b   : > { %v2932_v38 = vsel %vm7025_vm7, %v2930_v8, %v2931_v23  ;;  %8551 = vst [vmem:[#allocation3_spill] sm:$0xff] %v7346_v27  ;;  %v5194_v35 = vrot.slane %v1216_v59, 9  ;;  %v1282_v4 = vrot.slane %v7270_v9, 5  ;;  %v1289_v12 = vrot.slane %v7306_v1, 5  ;;  %v1220_v8 = vld [vmem:[%s6773_s27 + $0x3c] sm:$0xe] }
  0x9c   : > { %v5436_v40 = vcombine.low %v2929_v31, %v2932_v38  ;;  %v2312_v49 = vor.u32 %v2311_v36, %v7346_v27  ;;  %v7366_v51 = vrot.slane %v2315_v47, 5  ;;  %v5170_v58 = vcombine.low %v7019_v0, %v7032_v29  ;;  %v1221_v31 = vld [vmem:[%s6773_s27 + $0x48] sm:$0xe]  ;;  %v6644_v59 = vld [vmem:[%s6773_s27 + $0x38] sm:$0x1] }
  0x9d   : > { %6173 = vmatmul.mubr.msk.bf16.gmra.mrb[20].mxu0 %vm709_vm3, %v5432_v60  ;;  %v5168_v60 = vcombine.low %v6967_v24, %v6973_v37  ;;  %v6641_v24 = vld [vmem:[%s6773_s27 + $0x14] sm:$0x1]  ;;  %v4117_v54 = vsel %vm758_vm0, %v7090_v22, 0  ;;  %v5171_v61 = vcombine.low %v7051_v53, %v7058_v16  ;;  %v5172_v6 = vcombine.low %v7077_v39, %v7085_v43  ;;  %v6642_v16 = vld [vmem:[%s6773_s27 + $0x20] sm:$0x1] }
  0x9e   : > { %6021 = vmatmul.mubr.msk.bf16.gmra.mrb[4].mxu1 %vm709_vm3, %v5164_v28  ;;  %6176 = vmatprep.mubr.msk.bf16.mxu0 %vm709_vm3, %v5433_v20  ;;  %v1275_v28 = vrot.slane %v7263_v34, 5  ;;  %v6588_v20 = vld [vmem:[%s6773_s27 + $0x18] sm:$0xff]   ;;  %v6640_v34 = vld [vmem:[%s6773_s27 + $0x8] sm:$0x1]  ;;  %v1278_v37 = vrot.slane %v6641_v24, 5  ;;  %8552 = vst [vmem:[#allocation4_spill] sm:$0xff] %v7366_v51  ;;  %v5173_v9 = vcombine.low %v7109_v5, %v7121_v30 }
  0x9f   : > { %6024 = vmatprep.mubr.msk.bf16.mxu1 %vm709_vm3, %v5165_v48  ;;  %v1268_v48 = vrot.slane %v7229_v15, 5  ;;  %v1271_v50 = vrot.slane %v6640_v34, 5  ;;  %v1217_v15 = vld [vmem:[%s6773_s27 + $0x18] sm:$0xe]  ;;  %v7371_v63 = vrot.slane %v2312_v49, 4  ;;  %v1285_v22 = vrot.slane %v6642_v16, 5 }
  0xa0   : > { %v1277_v55 = vrot.slane %v1275_v28, 4  ;;  %v5195_v1 = vrot.slane %v1217_v15, 9  ;;  %v7393_v29 = vsel %vm7025_vm7, %v5194_v35, %v1275_v28  ;;  %v1291_v25 = vrot.slane %v1289_v12, 4  ;;  %v5518_v24 = vld [vmem:[%s6773_s27 + $0x18] sm:$0xf] }
  0xa1   : > { %v1270_v57 = vrot.slane %v1268_v48, 4  ;;  %8553 = vst [vmem:[#allocation5_spill] sm:$0xff] %v7371_v63  ;;  %v7389_v0 = vsel %vm7025_vm7, %v5193_v19, %v1268_v48  ;;  %v1299_v47 = vrot.slane %v6644_v59, 5  ;;  %v7430_v49 = vsel %vm758_vm0, %v7285_v7, 0  ;;  %v5519_v7 = vld [vmem:[%s6773_s27 + $0x1c] sm:$0xf] }
  0xa2   : > { %v7397_v53 = vsel %vm7025_vm7, %v1277_v55, %v1278_v37  ;;  %v7434_v34 = vsel %vm7025_vm7, %v5195_v1, %v1282_v4  ;;  %v6594_v37 = vld [vmem:[%s6773_s27 + $0x3c] sm:$0xff]   ;;  %v5198_v35 = vrot.slane %v1220_v8, 9  ;;  %v6645_v55 = vld [vmem:[%s6773_s27 + $0x44] sm:$0x1]  ;;  %v3638_v8 = vshll.u32 %v5518_v24, 16 }
  0xa3   : > { %v7408_v23 = vsel %vm7025_vm7, %v1270_v57, %v1271_v50  ;;  %v1222_v50 = vld [vmem:[%s6773_s27 + $0x54] sm:$0xe]  ;;  %v1306_v15 = vrot.slane %v6645_v55, 5  ;;  %v5522_v39 = vld [vmem:[%s6773_s27 + $0x28] sm:$0xf] }
  0xa4   : > { %v6652_v5 = vld [vmem:[%s6773_s27 + $0x70] sm:$0xf] }
  0xa5   : > { %6177 = vmatmul.mubr.msk.bf16.gmra.mrb[24].mxu0 %vm709_vm3, %v5434_v2  ;;  %v1218_v2 = vld [vmem:[%s6773_s27 + $0x24] sm:$0xe]  ;;  %v1331_v30 = vrot.slane %v6652_v5, 5 }
  0xa6   : > { %6025 = vmatmul.mubr.msk.bf16.gmra.mrb[8].mxu1 %vm709_vm3, %v5166_v10  ;;  %6180 = vmatprep.mubr.msk.bf16.mxu0 %vm709_vm3, %v5435_v11  ;;  %v1296_v10 = vrot.slane %v7311_v26, 5  ;;  %v6592_v11 = vld [vmem:[%s6773_s27 + $0x30] sm:$0xff]   ;;  %v7404_v26 = vld [vmem:[%s8530_s1 + $0x20] sm:$0xf]  ;;  %v5196_v21 = vrot.slane %v1218_v2, 9 }
  0xa7   : > { %6028 = vmatprep.mubr.msk.bf16.mxu1 %vm709_vm3, %v5167_v18  ;;  %v1284_v18 = vrot.slane %v1282_v4, 4  ;;  %v1333_v48 = vrot.slane %v1331_v30, 4 }
  0xa8   : > { %v1298_v45 = vrot.slane %v1296_v10, 4  ;;  %v7441_v19 = vsel %vm7025_vm7, %v5196_v21, %v1289_v12  ;;  %v3648_v21 = vshrl.u32 %v5519_v7, 16 }
  0xa9   : > { %v7450_v4 = vsel %vm7025_vm7, %v1284_v18, %v1285_v22  ;;  %v3635_v22 = vshrl.u32 %v5518_v24, 16  ;;  %v3644_v18 = vshll.u32 %v5519_v7, 16  ;;  %v5521_v24 = vld [vmem:[%s6773_s27 + $0x24] sm:$0xf] }
  0xaa   : > { %v7463_v1 = vsel %vm7025_vm7, %v1298_v45, %v1299_v47 }
  0xab   : > { %v3637_v43 = vrot.slane %v3635_v22, 4  ;;  %v7505_v7 = vrot.slane %v3644_v18, 5  ;;  %v3662_v22 = vshll.u32 %v5521_v24, 16  ;;  %v3672_v18 = vshrl.u32 %v5522_v39, 16 }
  0xad   : > { %6181 = vmatmul.mubr.msk.bf16.gmra.mrb[28].mxu0 %vm709_vm3, %v5436_v40  ;;  %v6643_v40 = vld [vmem:[%s6773_s27 + $0x2c] sm:$0x1]  ;;  %v3664_v27 = vrot.slane %v3662_v22, 5 }
  0xae   : > { %6029 = vmatmul.mubr.msk.bf16.gmra.mrb[12].mxu1 %vm709_vm3, %v5168_v60  ;;  %6186 = vmatprep.mubr.msk.bf16.mxu0 %vm709_vm3, %v6588_v20  ;;  %v1292_v28 = vrot.slane %v6643_v40, 5  ;;  %v1303_v60 = vrot.slane %v7331_v17, 5  ;;  %v6648_v40 = vld [vmem:[%s6773_s27 + $0x50] sm:$0x1]  ;;  %v6653_v17 = vld [vmem:[%s6773_s27 + $0x74] sm:$0x1] }
  0xaf   : > { %6032 = vmatprep.mubr.msk.bf16.mxu1 %vm709_vm3, %v5169_v44  ;;  %v5197_v44 = vrot.slane %v1219_v41, 9  ;;  %v5200_v41 = vrot.slane %v1222_v50, 9  ;;  %v1223_v50 = vld [vmem:[%s6773_s27 + $0x60] sm:$0xe]  ;;  %v5523_v20 = vld [vmem:[%s6773_s27 + $0x2c] sm:$0x1] }
  0xb0   : > { %v1305_v12 = vrot.slane %v1303_v60, 4  ;;  %v7476_v45 = vsel %vm7025_vm7, %v5198_v35, %v1303_v60  ;;  %v6649_v35 = vld [vmem:[%s6773_s27 + $0x5c] sm:$0x1] }
  0xb1   : > { %v7459_v2 = vsel %vm7025_vm7, %v5197_v44, %v1296_v10  ;;  %v1320_v55 = vrot.slane %v6649_v35, 5  ;;  %v1224_v35 = vld [vmem:[%s6773_s27 + $0x6c] sm:$0xe] }
  0xb2   : > { %v7480_v59 = vsel %vm7025_vm7, %v1305_v12, %v1306_v15  ;;  %v6650_v15 = vld [vmem:[%s6773_s27 + $0x64] sm:$0xf]  ;;  %v3650_v12 = vrot.slane %v3648_v21, 4  ;;  %v5202_v5 = vrot.slane %v1224_v35, 9 }
  0xb3   : > { %v6600_v21 = vld [vmem:[%s6773_s27 + $0x60] sm:$0xff]  }
  0xb5   : > { %6187 = vmatmul.mubr.msk.bf16.vlgmr.msra.gmra.mrb[0].mxu0 %vm709_vm3, %v6590_v62  ;;  %v6646_v62 = vld [vmem:[%s6773_s27 + $0x4c] sm:$0xf] }
  0xb6   : > { %6033 = vmatmul.mubr.msk.bf16.gmra.mrb[16].mxu1 %vm709_vm3, %v5170_v58  ;;  %6219 = vmatpush3.bf16.msra.mxu0 %v4117_v54  ;;  %v1310_v57 = vrot.slane %v6646_v62, 5  ;;  %v7454_v58 = vsel %vm7025_vm7, %v1291_v25, %v1292_v28  ;;  %v5199_v54 = vrot.slane %v1221_v31, 9  ;;  %v1313_v28 = vrot.slane %v6648_v40, 5 }
  0xb7   : > { %6036 = vmatprep.mubr.msk.bf16.mxu1 %vm709_vm3, %v5171_v61  ;;  %6190 = vmatprep.mubr.msk.bf16.mxu0 %vm709_vm3, %v6592_v11  ;;  %v6596_v61 = vld [vmem:[%s6773_s27 + $0x48] sm:$0xff]   ;;  %v6647_v11 = vld [vmem:[%s6773_s27 + $0x58] sm:$0xf]  ;;  %v1324_v62 = vrot.slane %v6650_v15, 5  ;;  %v5525_v15 = vld [vmem:[%s6773_s27 + $0x34] sm:$0xf] }
  0xb8   : > { %6553 = vmatprep.subr.msk.bf16.mxu0 %vm758_vm0, %v7404_v26  ;;  %v1317_v16 = vrot.slane %v6647_v11, 5  ;;  %v1312_v31 = vrot.slane %v1310_v57, 4  ;;  %v7484_v47 = vsel %vm7025_vm7, %v5199_v54, %v1310_v57  ;;  %v5520_v57 = vld [vmem:[%s6773_s27 + $0x20] sm:$0x1]  ;;  %v5524_v54 = vld [vmem:[%s6773_s27 + $0x30] sm:$0xf] }
  0xb9   : > { %v5201_v11 = vrot.slane %v1223_v50, 9  ;;  %v3686_v50 = vshll.u32 %v5524_v54, 16  ;;  %v3654_v25 = vshll.u32 %v5520_v57, 16  ;;  %v3692_v36 = vshll.u32 %v5525_v15, 16 }
  0xba   : > { %v7495_v60 = vsel %vm7025_vm7, %v5200_v41, %v1317_v16  ;;  %v7511_v41 = vsel %vm7025_vm7, %v1312_v31, %v1313_v28  ;;  %v1326_v31 = vrot.slane %v1324_v62, 4  ;;  %v3683_v28 = vshrl.u32 %v5524_v54, 16 }
  0xbb   : > { %v7553_v35 = vrot.slane %v3692_v36, 5 }
  0xbd   : > { %6191 = vmatmul.mubr.msk.bf16.gmra.mrb[4].mxu0 %vm709_vm3, %v6594_v37  ;;  %v1319_v37 = vrot.slane %v1317_v16, 4  ;;  %v6651_v16 = vld [vmem:[%s6773_s27 + $0x68] sm:$0x1] }
  0xbe   : > { %6037 = vmatmul.mubr.msk.bf16.gmra.mrb[20].mxu1 %vm709_vm3, %v5172_v6  ;;  %6194 = vmatprep.mubr.msk.bf16.mxu0 %vm709_vm3, %v6596_v61  ;;  %v3640_v6 = vrot.slane %v3638_v8, 5  ;;  %v6598_v61 = vld [vmem:[%s6773_s27 + $0x54] sm:$0xff]   ;;  %v1327_v40 = vrot.slane %v6651_v16, 5  ;;  %v3668_v8 = vshll.u32 %v5522_v39, 16  ;;  %v3651_v16 = vor.u32 %v3650_v12, %v7505_v7 }
  0xbf   : > { %6040 = vmatprep.mubr.msk.bf16.mxu1 %vm709_vm3, %v5173_v9  ;;  %v3659_v9 = vshrl.u32 %v5521_v24, 16  ;;  %v7520_v44 = vsel %vm7025_vm7, %v1319_v37, %v1320_v55  ;;  %v1334_v24 = vrot.slane %v6653_v17, 5  ;;  %v3696_v39 = vshrl.u32 %v5525_v15, 16 }
  0xc0   : > { %v3641_v10 = vor.u32 %v3640_v6, %v3637_v43  ;;  %v7526_v37 = vrot.slane %v3668_v8, 5  ;;  %v3674_v55 = vrot.slane %v3672_v18, 4  ;;  %v8554_v43 = vcombine.low %v7130_v52, %v7141_v46  ;;  %v6654_v8 = vld [vmem:[%s6773_s27 + $0x7c] sm:$0xf]  ;;  %v7562_v18 = vld [vmem:[%s6773_s27 + $0x38] sm:$0x1] }
  0xc1   : > { %v3661_v38 = vrot.slane %v3659_v9, 4  ;;  %v7535_v17 = vsel %vm7025_vm7, %v5201_v11, %v1324_v62  ;;  %v7539_v57 = vsel %vm7025_vm7, %v1326_v31, %v1327_v40  ;;  %v3685_v6 = vrot.slane %v3683_v28, 4  ;;  %8556 = vst [vmem:[#allocation6_spill] sm:$0xff] %v7562_v18 }
  0xc2   : > { %v3688_v12 = vrot.slane %v3686_v50, 5  ;;  %v8555_v52 = vcombine.low %v7162_v33, %v7167_v56  ;;  %v3642_v46 = vrot.slane %v3641_v10, 4  ;;  %v3652_v54 = vrot.slane %v3651_v16, 4  ;;  %v6602_v33 = vld [vmem:[%s6773_s27 + $0x6c] sm:$0xff]   ;;  %v1226_v16 = vld [vmem:[%s6773_s27 + $0x84] sm:$0xe] }
  0xc3   : > { %v3678_v62 = vshll.u32 %v5523_v20, 16  ;;  %v7547_v11 = vsel %vm7025_vm7, %v5202_v5, %v1331_v30  ;;  %v7551_v40 = vsel %vm7025_vm7, %v1333_v48, %v1334_v24  ;;  %v3698_v9 = vrot.slane %v3696_v39, 4  ;;  %v6603_v48 = vld [vmem:[%s6773_s27 + $0x78] sm:$0xff]  }
  0xc4   : > { %v3665_v10 = vor.u32 %v3664_v27, %v3661_v38  ;;  %v3675_v20 = vor.u32 %v3674_v55, %v7526_v37  ;;  %v1338_v30 = vrot.slane %v6654_v8, 5  ;;  %v3689_v38 = vor.u32 %v3688_v12, %v3685_v6  ;;  %v5527_v5 = vld [vmem:[%s6773_s27 + $0x3c] sm:$0xf] }
  0xc5   : > { %6195 = vmatmul.mubr.msk.bf16.gmra.mrb[8].mxu0 %vm709_vm3, %v6598_v61  ;;  %v3656_v61 = vrot.slane %v3654_v25, 5  ;;  %v1225_v25 = vld [vmem:[%s6773_s27 + $0x78] sm:$0xe]  ;;  %v7578_v50 = vrot.slane %v3678_v62, 5  ;;  %v3699_v39 = vor.u32 %v3698_v9, %v7553_v35  ;;  %v3702_v55 = vshll.u32 %v7562_v18, 16 }
  0xc6   : > { %6041 = vmatmul.mubr.msk.bf16.gmra.mrb[24].mxu1 %vm709_vm3, %v8554_v43  ;;  %6198 = vmatprep.mubr.msk.bf16.mxu0 %vm709_vm3, %v6600_v21  ;;  %v3647_v21 = vsel %vm6799_vm4, %v3642_v46, %v7505_v7  ;;  %v5203_v24 = vrot.slane %v1225_v25, 9  ;;  %v6655_v43 = vld [vmem:[%s6773_s27 + $0x88] sm:$0xf]  ;;  %v7586_v7 = vld [vmem:[%s6773_s27 + $0x40] sm:$0xf]  ;;  %v3666_v12 = vrot.slane %v3665_v10, 4  ;;  %v8558_v62 = vcombine.low %v7182_v14, %v7191_v42 }
  0xc7   : > { %6044 = vmatprep.mubr.msk.bf16.mxu1 %vm709_vm3, %v8555_v52  ;;  %v3657_v31 = vsel %vm6799_vm4, %v3652_v54, %v3656_v61  ;;  %v1345_v6 = vrot.slane %v6655_v43, 5  ;;  %8557 = vst [vmem:[#allocation7_spill] sm:$0xff] %v7586_v7  ;;  %v3676_v52 = vrot.slane %v3675_v20, 4  ;;  %v1340_v46 = vrot.slane %v1338_v30, 4  ;;  %v6656_v54 = vld [vmem:[%s6773_s27 + $0x80] sm:$0x1] }
  0xc8   : > { %v1341_v61 = vrot.slane %v6656_v54, 5  ;;  %v3690_v9 = vrot.slane %v3689_v38, 4  ;;  %v5204_v25 = vrot.slane %v1226_v16, 9  ;;  %v3707_v8 = vshrl.u32 %v5527_v5, 16  ;;  %v6604_v10 = vld [vmem:[%s6773_s27 + $0x84] sm:$0xff]  }
  0xc9   : > { %v3710_v43 = vshll.u32 %v5527_v5, 16  ;;  %v7600_v20 = vcombine.low %v3647_v21, %v3657_v31  ;;  %v7604_v14 = vsel %vm758_vm0, %v7404_v26, 0  ;;  %v3720_v38 = vshrl.u32 %v7586_v7, 16  ;;  %v6605_v21 = vld [vmem:[%s6773_s27 + $0x90] sm:$0xff]   ;;  %v6661_v18 = vld [vmem:[%s6773_s27 + $0xa0] sm:$0xf] }
  0xca   : > { %v3700_v16 = vrot.slane %v3699_v39, 4  ;;  %v3704_v5 = vrot.slane %v3702_v55, 5  ;;  %v1347_v54 = vrot.slane %v1345_v6, 4  ;;  %v3671_v31 = vsel %vm6799_vm4, %v3666_v12, %v7526_v37 }
  0xcb   : > { %v3681_v26 = vsel %vm6799_vm4, %v3676_v52, %v7578_v50  ;;  %v7619_v39 = vsel %vm7025_vm7, %v5203_v24, %v1338_v30  ;;  %v7623_v55 = vsel %vm7025_vm7, %v1340_v46, %v1341_v61  ;;  %v3695_v37 = vsel %vm6799_vm4, %v3690_v9, %v7553_v35  ;;  %v5533_v30 = vld [vmem:[%s6773_s27 + $0x54] sm:$0xf]  ;;  %v7640_v24 = vld [vmem:[%s6773_s27 + $0x58] sm:$0xf]  ;;  %v7645_v61 = vld [vmem:[%s6773_s27 + $0x90] sm:$0xe] }
  0xcc   : > { %v7636_v12 = vsel %vm7025_vm7, %v5204_v25, %v1345_v6  ;;  %v3709_v50 = vrot.slane %v3707_v8, 4  ;;  %v3712_v52 = vrot.slane %v3710_v43, 5  ;;  %v3722_v46 = vrot.slane %v3720_v38, 4 }
  0xcd   : > { %6199 = vmatmul.mubr.msk.bf16.gmra.mrb[12].mxu0 %vm709_vm3, %v6602_v33  ;;  %v8559_v33 = vcombine.low %v7389_v0, %v7408_v23  ;;  %v6657_v0 = vld [vmem:[%s6773_s27 + $0x8c] sm:$0x1]  ;;  %v3705_v36 = vsel %vm6799_vm4, %v3700_v16, %v3704_v5  ;;  %v3755_v25 = vshrl.u32 %v5533_v30, 16  ;;  %v3758_v8 = vshll.u32 %v5533_v30, 16 }
  0xce   : > { %6045 = vmatmul.mubr.msk.bf16.gmra.mrb[28].mxu1 %vm709_vm3, %v8558_v62  ;;  %6202 = vmatprep.mubr.msk.bf16.mxu0 %vm709_vm3, %v6603_v48  ;;  %v3716_v48 = vshll.u32 %v7586_v7, 16  ;;  %v1348_v23 = vrot.slane %v6657_v0, 5  ;;  %v5530_v62 = vld [vmem:[%s6773_s27 + $0x48] sm:$0xf]  ;;  %v7629_v0 = vld [vmem:[%s6773_s27 + $0x4c] sm:$0xf]  ;;  %v8561_v38 = vcombine.low %v7393_v29, %v7397_v53  ;;  %v7663_v16 = vcombine.low %v3671_v31, %v3681_v26 }
  0xcf   : > { %6050 = vmatprep.mubr.msk.bf16.mxu1 %vm709_vm3, %v8559_v33  ;;  %v7626_v33 = vld [vmem:[%s6773_s27 + $0x44] sm:$0x1]  ;;  %v3731_v27 = vshrl.u32 %v5530_v62, 16  ;;  %v3734_v15 = vshll.u32 %v5530_v62, 16  ;;  %v3740_v6 = vshll.u32 %v7629_v0, 16  ;;  %v3744_v9 = vshrl.u32 %v7629_v0, 16 }
  0xd0   : > { %8560 = vst [vmem:[#allocation8_spill] sm:$0xff] %v7626_v33  ;;  %v7642_v28 = vrot.slane %v3716_v48, 5  ;;  %v7651_v35 = vsel %vm7025_vm7, %v1347_v54, %v1348_v23  ;;  %v3764_v43 = vshll.u32 %v7640_v24, 16  ;;  %v3768_v48 = vshrl.u32 %v7640_v24, 16  ;;  %v5536_v31 = vld [vmem:[%s6773_s27 + $0x60] sm:$0xf] }
  0xd1   : > { %v3726_v5 = vshll.u32 %v7626_v33, 16  ;;  %v5205_v54 = vrot.slane %v7645_v61, 9  ;;  %v8562_v23 = vcombine.low %v7434_v34, %v7450_v4  ;;  %v7674_v29 = vcombine.low %v3695_v37, %v3705_v36  ;;  %v6606_v26 = vld [vmem:[%s6773_s27 + $0x9c] sm:$0xff]   ;;  %v6607_v30 = vld [vmem:[%s6773_s27 + $0xa8] sm:$0xff]   ;;  %v6658_v36 = vld [vmem:[%s8530_s1 + $0x10] sm:$0xf] }
  0xd2   : > { %v3713_v53 = vor.u32 %v3712_v52, %v3709_v50  ;;  %v3733_v62 = vrot.slane %v3731_v27, 4  ;;  %v7685_v34 = vrot.slane %v3740_v6, 5  ;;  %v3746_v4 = vrot.slane %v3744_v9, 4  ;;  %v6659_v6 = vld [vmem:[%s6773_s27 + $0x94] sm:$0xf] }
  0xd3   : > { %v3757_v27 = vrot.slane %v3755_v25, 4  ;;  %v3760_v37 = vrot.slane %v3758_v8, 5  ;;  %v7694_v50 = vrot.slane %v3764_v43, 5  ;;  %v3770_v52 = vrot.slane %v3768_v48, 4  ;;  %v7700_v9 = vld [vmem:[%s6773_s27 + $0x64] sm:$0xf] }
  0xd4   : > { %8563 = vst [vmem:[#allocation9_spill] sm:$0xff] %v7700_v9  ;;  %v3779_v61 = vshrl.u32 %v5536_v31, 16  ;;  %v7702_v22 = vrot.slane %v3713_v53, 4  ;;  %v1359_v25 = vrot.slane %v6661_v18, 5  ;;  %v3747_v43 = vor.u32 %v3746_v4, %v7685_v34 }
  0xd5   : > { %6203 = vmatmul.mubr.msk.bf16.gmra.mrb[16].mxu0 %vm709_vm3, %v6604_v10  ;;  %v3782_v10 = vshll.u32 %v5536_v31, 16  ;;  %v3761_v31 = vor.u32 %v3760_v37, %v3757_v27  ;;  %v3771_v53 = vor.u32 %v3770_v52, %v7694_v50  ;;  %v8564_v18 = vcombine.low %v7441_v19, %v7454_v58  ;;  %v6608_v37 = vld [vmem:[%s6773_s27 + $0xb4] sm:$0xff]  }
  0xd6   : > { %6051 = vmatmul.mubr.msk.bf16.vlgmr.msra.gmra.mrb[0].mxu1 %vm709_vm3, %v8561_v38  ;;  %6206 = vmatprep.mubr.msk.bf16.mxu0 %vm709_vm3, %v6605_v21  ;;  %v3736_v21 = vrot.slane %v3734_v15, 5  ;;  %v7683_v38 = vld [vmem:[%s6773_s27 + $0x50] sm:$0x1]  ;;  %v7692_v15 = vld [vmem:[%s6773_s27 + $0x5c] sm:$0x1]  ;;  %v8565_v27 = vcombine.low %v7459_v2, %v7463_v1  ;;  %v1361_v52 = vrot.slane %v1359_v25, 4 }
  0xd7   : > { %6083 = vmatpush3.bf16.msra.mxu1 %v7430_v49  ;;  %6054 = vmatprep.mubr.msk.bf16.mxu1 %vm709_vm3, %v8562_v23  ;;  %v3723_v49 = vor.u32 %v3722_v46, %v7642_v28  ;;  %v7696_v46 = vrot.slane %v3726_v5, 5  ;;  %v1352_v23 = vrot.slane %v6659_v6, 5  ;;  %v3750_v48 = vshll.u32 %v7683_v38, 16  ;;  %v1228_v5 = vld [vmem:[%s6773_s27 + $0x9c] sm:$0xe] }
  0xd8   : > { %6549 = vmatprep.subr.msk.bf16.mxu1 %vm758_vm0, %v6658_v36  ;;  %v6660_v36 = vld [vmem:[%s6773_s27 + $0x98] sm:$0x1]  ;;  %v3737_v7 = vor.u32 %v3736_v21, %v3733_v62  ;;  %v3774_v6 = vshll.u32 %v7692_v15, 16  ;;  %v3792_v62 = vshrl.u32 %v7700_v9, 16  ;;  %v3784_v4 = vrot.slane %v3782_v10, 5 }
  0xd9   : > { %v1355_v33 = vrot.slane %v6660_v36, 5  ;;  %v3724_v8 = vrot.slane %v3723_v49, 4  ;;  %v3788_v36 = vshll.u32 %v7700_v9, 16  ;;  %v7721_v21 = vsel %vm7025_vm7, %v5205_v54, %v1352_v23  ;;  %v7732_v2 = vld [vmem:[%s6773_s27 + $0x68] sm:$0x1] }
  0xda   : > { %v3781_v49 = vrot.slane %v3779_v61, 4  ;;  %v3738_v19 = vrot.slane %v3737_v7, 4  ;;  %v5206_v58 = vrot.slane %v1228_v5, 9  ;;  %v3748_v3 = vrot.slane %v3747_v43, 4  ;;  %8566 = vst [vmem:[#allocation10_spill] sm:$0xff] %v7732_v2  ;;  %v6609_v5 = vld [vmem:[%s6773_s27 + $0xc0] sm:$0xff]  }
  0xdb   : > { %v3752_v54 = vrot.slane %v3750_v48, 5  ;;  %v3776_v63 = vrot.slane %v3774_v6, 5  ;;  %v1366_v61 = vrot.slane %v7167_v56, 5  ;;  %v3762_v10 = vrot.slane %v3761_v31, 4  ;;  %v1230_v31 = vld [vmem:[%s6773_s27 + $0xb4] sm:$0xe] }
  0xdc   : > { %v3772_v51 = vrot.slane %v3771_v53, 4  ;;  %v7734_v1 = vrot.slane %v3788_v36, 5  ;;  %v3794_v7 = vrot.slane %v3792_v62, 4  ;;  %v3719_v43 = vsel %vm6799_vm4, %v7702_v22, %v7642_v28  ;;  %v6663_v62 = vld [vmem:[%s6773_s27 + $0xb0] sm:$0x1] }
  0xdd   : > { %6207 = vmatmul.mubr.msk.bf16.gmra.mrb[20].mxu0 %vm709_vm3, %v6606_v26  ;;  %v1354_v26 = vrot.slane %v1352_v23, 4  ;;  %v1229_v23 = vld [vmem:[%s6773_s27 + $0xa8] sm:$0xe]  ;;  %v3729_v48 = vsel %vm6799_vm4, %v3724_v8, %v7696_v46  ;;  %v3785_v6 = vor.u32 %v3784_v4, %v3781_v49  ;;  %v3743_v53 = vsel %vm6799_vm4, %v3738_v19, %v7685_v34  ;;  %v5539_v46 = vld [vmem:[%s6773_s27 + $0x6c] sm:$0xf] }
  0xde   : > { %6055 = vmatmul.mubr.msk.bf16.gmra.mrb[4].mxu1 %vm709_vm3, %v8564_v18  ;;  %6210 = vmatprep.mubr.msk.bf16.mxu0 %vm709_vm3, %v6607_v30  ;;  %v6662_v18 = vld [vmem:[%s6773_s27 + $0xa4] sm:$0x1]  ;;  %v7754_v36 = vsel %vm7025_vm7, %v5206_v58, %v1359_v25  ;;  %v5207_v28 = vrot.slane %v1229_v23, 9  ;;  %v1368_v8 = vrot.slane %v1366_v61, 4  ;;  %v3798_v49 = vshll.u32 %v7732_v2, 16 }
  0xdf   : > { %6058 = vmatprep.mubr.msk.bf16.mxu1 %vm709_vm3, %v8565_v27  ;;  %v1362_v30 = vrot.slane %v6662_v18, 5  ;;  %v7746_v56 = vsel %vm7025_vm7, %v1354_v26, %v1355_v33  ;;  %v3753_v33 = vsel %vm6799_vm4, %v3748_v3, %v3752_v54  ;;  %v1369_v26 = vrot.slane %v6663_v62, 5  ;;  %v5542_v18 = vld [vmem:[%s6773_s27 + $0x78] sm:$0xf]  ;;  %v7809_v54 = vld [vmem:[%s6773_s27 + $0xbc] sm:$0x1] }
  0xe0   : > { %v3767_v34 = vsel %vm6799_vm4, %v3762_v10, %v7694_v50  ;;  %v3777_v25 = vsel %vm6799_vm4, %v3772_v51, %v3776_v63  ;;  %v3795_v4 = vor.u32 %v3794_v7, %v7734_v1  ;;  %v5208_v27 = vrot.slane %v1230_v31, 9  ;;  %v7783_v51 = vld [vmem:[%s6773_s27 + $0x70] sm:$0xf]  ;;  %v7813_v10 = vld [vmem:[%s6773_s27 + $0x7c] sm:$0xf] }
  0xe1   : > { %v7758_v22 = vsel %vm7025_vm7, %v1361_v52, %v1362_v30  ;;  %v8568_v3 = vcombine.low %v7476_v45, %v7480_v59  ;;  %v7779_v19 = vrot.slane %v3785_v6, 4  ;;  %v1373_v50 = vrot.slane %v7191_v42, 5  ;;  %8569 = vst [vmem:[#allocation12_spill] sm:$0xff] %v7783_v51  ;;  %8571 = vst [vmem:[#allocation13_spill] sm:$0xff] %v7813_v10  ;;  %v5545_v7 = vld [vmem:[%s6773_s27 + $0x84] sm:$0xf] }
  0xe2   : > { %8567 = vst [vmem:[#allocation11_spill] sm:$0xff] %v7758_v22  ;;  %v3803_v63 = vshrl.u32 %v5539_v46, 16  ;;  %v8570_v45 = vcombine.low %v7484_v47, %v7511_v41  ;;  %v7791_v58 = vcombine.low %v3743_v53, %v3753_v33  ;;  %v7797_v42 = vsel %vm7025_vm7, %v5207_v28, %v1366_v61  ;;  %v6610_v61 = vld [vmem:[%s6773_s27 + $0xcc] sm:$0xff]   ;;  %v7825_v31 = vld [vmem:[%s6773_s27 + $0x88] sm:$0xf] }
  0xe3   : > { %v7800_v30 = vcombine.low %v3767_v34, %v3777_v25  ;;  %v7804_v47 = vsel %vm7025_vm7, %v1368_v8, %v1369_v26  ;;  %v7806_v41 = vrot.slane %v3798_v49, 5  ;;  %v3812_v6 = vshll.u32 %v7783_v51, 16  ;;  %8572 = vst [vmem:[#allocation14_spill] sm:$0xff] %v7825_v31  ;;  %v5548_v62 = vld [vmem:[%s6773_s27 + $0x90] sm:$0xf] }
  0xe4   : > { %v7831_v28 = vrot.slane %v1373_v50, 4  ;;  %v7833_v33 = vrot.slane %v3803_v63, 4  ;;  %v3816_v8 = vshrl.u32 %v7783_v51, 16  ;;  %v3827_v26 = vshrl.u32 %v5542_v18, 16  ;;  %v7840_v25 = vld [vmem:[%s6773_s27 + $0x94] sm:$0xf] }
  0xe5   : > { %6211 = vmatmul.mubr.msk.bf16.gmra.mrb[24].mxu0 %vm709_vm3, %v6608_v37  ;;  %v7777_v37 = vcombine.low %v3719_v43, %v3729_v48  ;;  %v7821_v43 = vsel %vm7025_vm7, %v5208_v27, %v1373_v50  ;;  %v3806_v48 = vshll.u32 %v5539_v46, 16  ;;  %v3830_v49 = vshll.u32 %v5542_v18, 16  ;;  %8573 = vst [vmem:[#allocation15_spill] sm:$0xff] %v7840_v25  ;;  %v7878_v2 = vld [vmem:[%s6773_s27 + $0x8c] sm:$0x1] }
  0xe6   : > { %6059 = vmatmul.mubr.msk.bf16.gmra.mrb[8].mxu1 %vm709_vm3, %v8568_v3  ;;  %6214 = vmatprep.mubr.msk.bf16.mxu0 %vm709_vm3, %v6609_v5  ;;  %v7817_v5 = vrot.slane %v3795_v4, 4  ;;  %v3836_v46 = vshll.u32 %v7813_v10, 16  ;;  %v3840_v34 = vshrl.u32 %v7813_v10, 16  ;;  %v3851_v4 = vshrl.u32 %v5545_v7, 16 }
  0xe7   : > { %6062 = vmatprep.mubr.msk.bf16.mxu1 %vm709_vm3, %v8570_v45  ;;  %v3854_v27 = vshll.u32 %v5545_v7, 16  ;;  %v3860_v3 = vshll.u32 %v7825_v31, 16  ;;  %v3864_v50 = vshrl.u32 %v7825_v31, 16  ;;  %v7850_v45 = vld [vmem:[%s6773_s27 + $0x74] sm:$0x1]  ;;  %v3808_v18 = vrot.slane %v3806_v48, 5 }
  0xe8   : > { %v3875_v52 = vshrl.u32 %v5548_v62, 16  ;;  %v3878_v53 = vshll.u32 %v5548_v62, 16  ;;  %v8574_v7 = vcombine.low %v7495_v60, %v7520_v44  ;;  %v3818_v59 = vrot.slane %v3816_v8, 4  ;;  %v5551_v48 = vld [vmem:[%s6773_s27 + $0x9c] sm:$0xf] }
  0xe9   : > { %v3884_v63 = vshll.u32 %v7840_v25, 16  ;;  %v3888_v23 = vshrl.u32 %v7840_v25, 16  ;;  %v8575_v62 = vcombine.low %v7535_v17, %v7539_v57  ;;  %v7868_v44 = vld [vmem:[%s6773_s27 + $0x80] sm:$0x1]  ;;  %v3829_v60 = vrot.slane %v3827_v26, 4 }
  0xea   : > { %8576 = vst [vmem:[#allocation16_spill] sm:$0xff] %v7868_v44  ;;  %v3853_v31 = vrot.slane %v3851_v4, 4  ;;  %v3856_v8 = vrot.slane %v3854_v27, 5  ;;  %v7872_v10 = vrot.slane %v3860_v3, 5  ;;  %v3866_v51 = vrot.slane %v3864_v50, 4 }
  0xeb   : > { %v7875_v25 = vld [vmem:[%s6773_s27 + $0xa0] sm:$0xf]  ;;  %v3877_v17 = vrot.slane %v3875_v52, 4  ;;  %v3880_v57 = vrot.slane %v3878_v53, 5  ;;  %v3902_v9 = vshll.u32 %v5551_v48, 16  ;;  %v3809_v26 = vor.u32 %v3808_v18, %v7833_v33 }
  0xec   : > { %v3846_v27 = vshll.u32 %v7868_v44, 16  ;;  %v7887_v3 = vld [vmem:[%s6773_s27 + $0x98] sm:$0x1]  ;;  %v3908_v50 = vshll.u32 %v7875_v25, 16  ;;  %v3912_v52 = vshrl.u32 %v7875_v25, 16  ;;  %v3857_v22 = vor.u32 %v3856_v8, %v3853_v31 }
  0xed   : > { %6215 = vmatmul.mubr.msk.bf16.gmra.mrb[28].mxu0 %vm709_vm3, %v6610_v61  ;;  %v7858_v61 = vrot.slane %v3812_v6, 5  ;;  %v3842_v6 = vrot.slane %v3840_v34, 4  ;;  %v3890_v34 = vrot.slane %v3888_v23, 4  ;;  %v3870_v33 = vshll.u32 %v7878_v2, 16 }
  0xee   : > { %6063 = vmatmul.mubr.msk.bf16.gmra.mrb[12].mxu1 %vm709_vm3, %v8574_v7  ;;  %6220 = vmatprep.mubr.msk.bf16.mxu0 %vm709_vm3, %v7600_v20  ;;  %v3832_v7 = vrot.slane %v3830_v49, 5  ;;  %v7870_v20 = vrot.slane %v3836_v46, 5  ;;  %v3822_v49 = vshll.u32 %v7850_v45, 16  ;;  %v7882_v46 = vrot.slane %v3884_v63, 5 }
  0xef   : > { %6066 = vmatprep.mubr.msk.bf16.mxu1 %vm709_vm3, %v8575_v62  ;;  %v3899_v62 = vshrl.u32 %v5551_v48, 16  ;;  %v3819_v4 = vor.u32 %v3818_v59, %v7858_v61  ;;  %v3867_v23 = vor.u32 %v3866_v51, %v7872_v10  ;;  %v3881_v59 = vor.u32 %v3880_v57, %v3877_v17  ;;  %v7920_v57 = vld [vmem:[%s6773_s27 + $0xa4] sm:$0x1] }
  0xf0   : > { %v3833_v53 = vor.u32 %v3832_v7, %v3829_v60  ;;  %v3843_v48 = vor.u32 %v3842_v6, %v7870_v20  ;;  %v3904_v18 = vrot.slane %v3902_v9, 5  ;;  %v8577_v44 = vcombine.low %v7547_v11, %v7551_v40 }
  0xf1   : > { %v3901_v63 = vrot.slane %v3899_v62, 4  ;;  %v8578_v31 = vrot.slane %v7809_v54, 5  ;;  %v3824_v51 = vrot.slane %v3822_v49, 5  ;;  %v3891_v60 = vor.u32 %v3890_v34, %v7882_v46  ;;  %v7923_v34 = vld [vmem:[%s6773_s27 + $0xac] sm:$0xf] }
  0xf2   : > { %v3894_v9 = vshll.u32 %v7887_v3, 16  ;;  %v8579_v11 = vcombine.low %v7619_v39, %v7623_v55  ;;  %v3810_v40 = vrot.slane %v3809_v26, 4  ;;  %v7916_v54 = vrot.slane %v3908_v50, 5 }
  0xf3   : > { %v3834_v7 = vrot.slane %v3833_v53, 4  ;;  %v3844_v6 = vrot.slane %v3843_v48, 4  ;;  %v3848_v8 = vrot.slane %v3846_v27, 5  ;;  %v3872_v17 = vrot.slane %v3870_v33, 5  ;;  %v7933_v48 = vld [vmem:[%s6773_s27 + $0xb0] sm:$0x1] }
  0xf4   : > { %v3858_v39 = vrot.slane %v3857_v22, 4  ;;  %v3868_v55 = vrot.slane %v3867_v23, 4  ;;  %v3882_v62 = vrot.slane %v3881_v59, 4  ;;  %v3905_v49 = vor.u32 %v3904_v18, %v3901_v63 }
  0xf5   : > { %6221 = vmatmul.mubr.msk.bf16.vlgmr.msra.gmra.mrb[0].mxu0 %vm709_vm3, %v7663_v16  ;;  %v7906_v16 = vsel %vm7025_vm7, %v7831_v28, %v8578_v31  ;;  %v3914_v28 = vrot.slane %v3912_v52, 4  ;;  %v3896_v26 = vrot.slane %v3894_v9, 5  ;;  %v3815_v52 = vsel %vm6799_vm4, %v3810_v40, %v7858_v61 }
  0xf6   : > { %6067 = vmatmul.mubr.msk.bf16.gmra.mrb[16].mxu1 %vm709_vm3, %v8577_v44  ;;  %6253 = vmatpush3.bf16.msra.mxu0 %v7604_v14  ;;  %v3820_v14 = vrot.slane %v3819_v4, 4  ;;  %v5554_v44 = vld [vmem:[%s6773_s27 + $0xa8] sm:$0xf]  ;;  %v3918_v22 = vshll.u32 %v7920_v57, 16  ;;  %v3839_v33 = vsel %vm6799_vm4, %v3834_v7, %v7870_v20  ;;  %v3849_v23 = vsel %vm6799_vm4, %v3844_v6, %v3848_v8 }
  0xf7   : > { %6070 = vmatprep.mubr.msk.bf16.mxu1 %vm709_vm3, %v8579_v11  ;;  %6224 = vmatprep.mubr.msk.bf16.mxu0 %vm709_vm3, %v7674_v29  ;;  %v3892_v29 = vrot.slane %v3891_v60, 4  ;;  %v3923_v4 = vshrl.u32 %v5554_v44, 16  ;;  %v3926_v50 = vshll.u32 %v5554_v44, 16  ;;  %v3915_v53 = vor.u32 %v3914_v28, %v7916_v54  ;;  %v5603_v11 = vld [vmem:[%s6773_s27 + $0x48] sm:$0xe] }
  0xf8   : > { %v3825_v27 = vsel %vm6799_vm4, %v3820_v14, %v3824_v51  ;;  %v3932_v59 = vshll.u32 %v7923_v34, 16  ;;  %v3936_v61 = vshrl.u32 %v7923_v34, 16  ;;  %v3863_v63 = vsel %vm6799_vm4, %v3858_v39, %v7872_v10  ;;  %v7998_v39 = vld [vmem:[%s6773_s27 + $0xb8] sm:$0xf] }
  0xf9   : > { %v3873_v18 = vsel %vm6799_vm4, %v3868_v55, %v3872_v17  ;;  %v3887_v20 = vsel %vm6799_vm4, %v3882_v62, %v7882_v46  ;;  %v3906_v31 = vrot.slane %v3905_v49, 4  ;;  %v8580_v51 = vcombine.low %v7636_v12, %v7651_v35 }
  0xfa   : > { %v3925_v10 = vrot.slane %v3923_v4, 4  ;;  %v3928_v60 = vrot.slane %v3926_v50, 5  ;;  %v3942_v9 = vshll.u32 %v7933_v48, 16  ;;  %v8581_v46 = vcombine.low %v7721_v21, %v7746_v56  ;;  %v5557_v21 = vld [vmem:[%s6773_s27 + $0xb4] sm:$0xf] }
  0xfb   : > { %v5224_v12 = vcombine.low %v7797_v42, %v7804_v47  ;;  %v8582_v35 = vsel %vm6799_vm4, %v7817_v5, %v7806_v41  ;;  %v3916_v14 = vrot.slane %v3915_v53, 4  ;;  %v3920_v28 = vrot.slane %v3918_v22, 5  ;;  %v5605_v4 = vld [vmem:[%s6773_s27 + $0x60] sm:$0xe]  ;;  %v5606_v53 = vld [vmem:[%s6773_s27 + $0x6c] sm:$0xe] }
  0xfc   : > { %v5225_v56 = vcombine.low %v7821_v43, %v7906_v16  ;;  %v7981_v44 = vcombine.low %v3815_v52, %v3825_v27  ;;  %v7983_v42 = vrot.slane %v3932_v59, 5  ;;  %v3938_v47 = vrot.slane %v3936_v61, 4  ;;  %v8591_v16 = vld [vmem:[#allocation4_spill] sm:$0xff] }
  0xfd   : > { %6225 = vmatmul.mubr.msk.bf16.gmra.mrb[4].mxu0 %vm709_vm3, %v7777_v37  ;;  %v3897_v37 = vsel %vm6799_vm4, %v3892_v29, %v3896_v26  ;;  %v7985_v41 = vcombine.low %v3839_v33, %v3849_v23  ;;  %v7987_v5 = vcombine.low %v3863_v63, %v3873_v18  ;;  %v3911_v6 = vsel %vm6799_vm4, %v3906_v31, %v7916_v54  ;;  %v8584_v23 = vld [vmem:[#allocation11_spill] sm:$0xff]  ;;  %v5560_v63 = vld [vmem:[%s6773_s27 + $0xc0] sm:$0xf]  ;;  %v8586_v18 = vld [vmem:[#allocation9_spill] sm:$0xff] }
  0xfe   : > { %6071 = vmatmul.mubr.msk.bf16.gmra.mrb[20].mxu1 %vm709_vm3, %v8580_v51  ;;  %6228 = vmatprep.mubr.msk.bf16.mxu0 %vm709_vm3, %v7791_v58  ;;  %v8583_v58 = vsel %vm6799_vm4, %v7779_v19, %v7734_v1  ;;  %v7989_v7 = vcombine.low %v3887_v20, %v3897_v37  ;;  %v5619_v1 = vrot.slane %v5603_v11, 9  ;;  %v5604_v19 = vld [vmem:[%s6773_s27 + $0x54] sm:$0xe]  ;;  %v3929_v8 = vor.u32 %v3928_v60, %v3925_v10  ;;  %v8587_v31 = vld [vmem:[#allocation10_spill] sm:$0xff] }
  0xff   : > { %6074 = vmatprep.mubr.msk.bf16.mxu1 %vm709_vm3, %v8581_v46  ;;  %v5573_v40 = vcombine.low %v8583_v58, %v8582_v35  ;;  %v7995_v17 = vrot.slane %v3942_v9, 5  ;;  %v3947_v55 = vshrl.u32 %v5557_v21, 16  ;;  %v3921_v62 = vsel %vm6799_vm4, %v3916_v14, %v3920_v28  ;;  %v8588_v9 = vld [vmem:[#allocation12_spill] sm:$0xff]  ;;  %v8047_v35 = vld [vmem:[%s6773_s27 + $0xbc] sm:$0x1] }
 0x100   : > { %v3950_v49 = vshll.u32 %v5557_v21, 16  ;;  %v4406_v29 = vrot.slane %v7629_v0, 5  ;;  %v4409_v26 = vrot.slane %v7683_v38, 5  ;;  %v3939_v50 = vor.u32 %v3938_v47, %v7983_v42  ;;  %v8050_v58 = vld [vmem:[%s6773_s27 + $0xc4] sm:$0xf] }
 0x101   : > { %v5620_v52 = vrot.slane %v5604_v19, 9  ;;  %v4413_v54 = vrot.slane %v7640_v24, 5  ;;  %v4416_v27 = vrot.slane %v7692_v15, 5  ;;  %v3956_v22 = vshll.u32 %v7998_v39, 16  ;;  %v5607_v19 = vld [vmem:[%s6773_s27 + $0x78] sm:$0xe] }
 0x102   : > { %v3960_v33 = vshrl.u32 %v7998_v39, 16  ;;  %v8015_v0 = vsel %vm7025_vm7, %v5619_v1, %v4406_v29  ;;  %v4408_v38 = vrot.slane %v4406_v29, 4  ;;  %v8585_v59 = vcombine.low %v7754_v36, %v8584_v23  ;;  %v8589_v23 = vld [vmem:[#allocation13_spill] sm:$0xff] }
 0x103   : > { %v8022_v24 = vcombine.low %v3911_v6, %v3921_v62  ;;  %v8026_v15 = vsel %vm7025_vm7, %v5620_v52, %v4413_v54  ;;  %v5621_v61 = vrot.slane %v5605_v4, 9  ;;  %v4420_v20 = vrot.slane %v8586_v18, 5  ;;  %v6611_v6 = vld [vmem:[%s6773_s27 + $0xc] sm:$0xff]  }
 0x104   : > { %v8032_v36 = vsel %vm7025_vm7, %v4408_v38, %v4409_v26  ;;  %v4423_v51 = vrot.slane %v8587_v31, 5  ;;  %v5622_v37 = vrot.slane %v5606_v53, 9  ;;  %v4427_v11 = vrot.slane %v8588_v9, 5 }
 0x105   : > { %6229 = vmatmul.mubr.msk.bf16.gmra.mrb[8].mxu0 %vm709_vm3, %v7800_v30  ;;  %v4415_v30 = vrot.slane %v4413_v54, 4  ;;  %v5636_v10 = vcombine.low %v8015_v0, %v8032_v36  ;;  %v4430_v46 = vrot.slane %v7850_v45, 5  ;;  %v8056_v14 = vsel %vm7025_vm7, %v5621_v61, %v4420_v20 }
 0x106   : > { %6075 = vmatmul.mubr.msk.bf16.gmra.mrb[24].mxu1 %vm709_vm3, %v8585_v59  ;;  %6232 = vmatprep.mubr.msk.bf16.mxu0 %vm709_vm3, %v5573_v40  ;;  %v4422_v28 = vrot.slane %v4420_v20, 4  ;;  %v8058_v21 = vrot.slane %v3947_v55, 4  ;;  %v3971_v47 = vshrl.u32 %v5560_v63, 16  ;;  %v8062_v45 = vsel %vm7025_vm7, %v5622_v37, %v4427_v11  ;;  %v5334_v55 = vld [vmem:[%s6773_s27 + $0x78] sm:$0xf]  ;;  %v8590_v59 = vld [vmem:[#allocation16_spill] sm:$0xff] }
 0x107   : > { %6078 = vmatprep.mubr.msk.bf16.mxu1 %vm709_vm3, %v5224_v12  ;;  %v8040_v60 = vsel %vm7025_vm7, %v4415_v30, %v4416_v27  ;;  %v8044_v12 = vrot.slane %v3929_v8, 4  ;;  %v4429_v1 = vrot.slane %v4427_v11, 4  ;;  %v8066_v8 = vrot.slane %v3939_v50, 4 }
 0x108   : > { %v5637_v40 = vcombine.low %v8026_v15, %v8040_v60  ;;  %v8068_v62 = vrot.slane %v3950_v49, 5  ;;  %v3974_v29 = vshll.u32 %v5560_v63, 16  ;;  %v8072_v26 = vsel %vm7025_vm7, %v4422_v28, %v4423_v51  ;;  %v8593_v28 = vld [vmem:[#allocation14_spill] sm:$0xff] }
 0x109   : > { %v8075_v4 = vrot.slane %v3956_v22, 5  ;;  %v8077_v52 = vrot.slane %v3960_v33, 4  ;;  %v5638_v54 = vcombine.low %v8056_v14, %v8072_v26  ;;  %v8083_v27 = vsel %vm7025_vm7, %v4429_v1, %v4430_v46  ;;  %v5608_v33 = vld [vmem:[%s6773_s27 + $0x84] sm:$0xe]  ;;  %v6612_v1 = vld [vmem:[%s6773_s27 + $0x18] sm:$0xff]  }
 0x10a   : > { %v3966_v49 = vshll.u32 %v8047_v35, 16  ;;  %v3980_v50 = vshll.u32 %v8050_v58, 16  ;;  %v5639_v53 = vcombine.low %v8062_v45, %v8083_v27  ;;  %v5623_v22 = vrot.slane %v5607_v19, 9  ;;  %v6674_v60 = vld [vmem:[%s6773_s27 + $0xa0] sm:$0xf] }
 0x10b   : > { %v3973_v38 = vrot.slane %v3971_v47, 4  ;;  %v4437_v30 = vrot.slane %v8590_v59, 5  ;;  %v2296_v61 = vshrl.u32 %v5334_v55, 16  ;;  %v3976_v63 = vrot.slane %v3974_v29, 5  ;;  %v5563_v29 = vld [vmem:[%s6773_s27 + $0xcc] sm:$0xf] }
 0x10c   : > { %v3984_v18 = vshrl.u32 %v8050_v58, 16  ;;  %v2299_v43 = vshll.u32 %v5334_v55, 16  ;;  %v5624_v37 = vrot.slane %v5608_v33, 9  ;;  %v3935_v9 = vsel %vm6799_vm4, %v8044_v12, %v7983_v42  ;;  %v8126_v55 = vld [vmem:[%s6773_s27 + $0xd0] sm:$0xf] }
 0x10d   : > { %6233 = vmatmul.mubr.msk.bf16.gmra.mrb[12].mxu0 %vm709_vm3, %v7981_v44  ;;  %v4434_v44 = vrot.slane %v8589_v23, 5  ;;  %v2298_v51 = vrot.slane %v2296_v61, 4  ;;  %v3953_v11 = vor.u32 %v8068_v62, %v8058_v21  ;;  %v4441_v47 = vrot.slane %v8593_v28, 5  ;;  %v6613_v21 = vld [vmem:[%s6773_s27 + $0x24] sm:$0xff]   ;;  %v6678_v27 = vld [vmem:[%s6773_s27 + $0xac] sm:$0xf] }
 0x10e   : > { %6079 = vmatmul.mubr.msk.bf16.gmra.mrb[28].mxu1 %vm709_vm3, %v5225_v56  ;;  %6236 = vmatprep.mubr.msk.bf16.mxu0 %vm709_vm3, %v7985_v41  ;;  %v8592_v56 = vld [vmem:[#allocation5_spill] sm:$0xff]  ;;  %v2301_v46 = vrot.slane %v2299_v43, 5  ;;  %v3945_v19 = vsel %vm6799_vm4, %v8066_v8, %v7995_v17  ;;  %v4444_v12 = vrot.slane %v7878_v2, 5  ;;  %v8134_v62 = vrot.slane %v3980_v50, 5  ;;  %v5609_v8 = vld [vmem:[%s6773_s27 + $0x90] sm:$0xe] }
 0x10f   : > { %6084 = vmatprep.mubr.msk.bf16.mxu1 %vm709_vm3, %v6611_v6  ;;  %v2318_v41 = vsel %vm6799_vm4, %v8592_v56, %v8591_v16  ;;  %v8108_v20 = vsel %vm7025_vm7, %v5623_v22, %v4434_v44  ;;  %v4436_v31 = vrot.slane %v4434_v44, 4  ;;  %v3963_v6 = vor.u32 %v8077_v52, %v8075_v4  ;;  %v8140_v52 = vld [vmem:[%s6773_s27 + $0xc8] sm:$0x1]  ;;  %v8595_v16 = vld [vmem:[#allocation2_spill] sm:$0xff] }
 0x110   : > { %v3986_v22 = vrot.slane %v3984_v18, 4  ;;  %v2302_v17 = vor.u32 %v2301_v46, %v2298_v51  ;;  %v3968_v23 = vrot.slane %v3966_v49, 5  ;;  %v3977_v44 = vor.u32 %v3976_v63, %v3973_v38  ;;  %v8596_v51 = vld [vmem:[#allocation3_spill] sm:$0xff] }
 0x111   : > { %v8130_v42 = vsel %vm7025_vm7, %v4436_v31, %v4437_v30  ;;  %v8144_v59 = vsel %vm7025_vm7, %v5624_v37, %v4441_v47  ;;  %v4443_v30 = vrot.slane %v4441_v47, 4  ;;  %v3995_v2 = vshrl.u32 %v5563_v29, 16 }
 0x112   : > { %v5640_v33 = vcombine.low %v8108_v20, %v8130_v42  ;;  %v3998_v50 = vshll.u32 %v5563_v29, 16  ;;  %v4004_v61 = vshll.u32 %v8126_v55, 16  ;;  %v2303_v18 = vrot.slane %v2302_v17, 4  ;;  %v6614_v29 = vld [vmem:[%s6773_s27 + $0x30] sm:$0xff]  }
 0x113   : > { %v4008_v49 = vshrl.u32 %v8126_v55, 16  ;;  %v8155_v38 = vsel %vm7025_vm7, %v4443_v30, %v4444_v12  ;;  %v5625_v63 = vrot.slane %v5609_v8, 9  ;;  %v3987_v56 = vor.u32 %v3986_v22, %v8134_v62 }
 0x114   : > { %v3990_v31 = vshll.u32 %v8140_v52, 16  ;;  %v5641_v37 = vcombine.low %v8144_v59, %v8155_v38  ;;  %v5579_v46 = vcombine.low %v3935_v9, %v3945_v19  ;;  %v3954_v28 = vrot.slane %v3953_v11, 4  ;;  %v5610_v11 = vld [vmem:[%s6773_s27 + $0x9c] sm:$0xe] }
 0x115   : > { %6237 = vmatmul.mubr.msk.bf16.gmra.mrb[16].mxu0 %vm709_vm3, %v7987_v5  ;;  %v8594_v5 = vld [vmem:[#allocation15_spill] sm:$0xff]  ;;  %v3964_v47 = vrot.slane %v3963_v6, 4  ;;  %v3978_v12 = vrot.slane %v3977_v44, 4  ;;  %v4451_v8 = vrot.slane %v7887_v3, 5  ;;  %v3997_v30 = vrot.slane %v3995_v2, 4  ;;  %v6615_v19 = vld [vmem:[%s6773_s27 + $0x3c] sm:$0xff]  }
 0x116   : > { %6085 = vmatmul.mubr.msk.bf16.vlgmr.msra.gmra.mrb[0].mxu1 %vm709_vm3, %v6612_v1  ;;  %6240 = vmatprep.mubr.msk.bf16.mxu0 %vm709_vm3, %v7989_v7  ;;  %v4448_v43 = vrot.slane %v8594_v5, 5  ;;  %v2308_v7 = vsel %vm6799_vm4, %v2303_v18, %v8596_v51  ;;  %v4000_v18 = vrot.slane %v3998_v50, 5  ;;  %v8178_v5 = vrot.slane %v4004_v61, 5 }
 0x117   : > { %6287 = vmatpush3.bf16.msra.mxu1 %v8595_v16  ;;  %6088 = vmatprep.mubr.msk.bf16.mxu1 %vm709_vm3, %v6613_v21  ;;  %v8167_v1 = vcombine.low %v2308_v7, %v2318_v41  ;;  %v8171_v21 = vld [vmem:[%s6773_s27 + $0xd4] sm:$0x1]  ;;  %v4010_v9 = vrot.slane %v4008_v49, 4  ;;  %v3988_v41 = vrot.slane %v3987_v56, 4  ;;  %v3992_v6 = vrot.slane %v3990_v31, 5 }
 0x118   : > { %v8175_v22 = vsel %vm7025_vm7, %v5625_v63, %v4448_v43  ;;  %v4450_v17 = vrot.slane %v4448_v43, 4  ;;  %v3959_v63 = vsel %vm6799_vm4, %v3954_v28, %v8075_v4  ;;  %v3969_v2 = vsel %vm6799_vm4, %v3964_v47, %v3968_v23  ;;  %v6665_v16 = vld [vmem:[%s6773_s27 + $0x1c] sm:$0xf]  ;;  %v5611_v28 = vld [vmem:[%s6773_s27 + $0xa8] sm:$0xe] }
 0x119   : > { %v4014_v50 = vshll.u32 %v8171_v21, 16  ;;  %v5626_v61 = vrot.slane %v5610_v11, 9  ;;  %v4455_v49 = vrot.slane %v7875_v25, 5  ;;  %v3983_v4 = vsel %vm6799_vm4, %v3978_v12, %v8134_v62  ;;  %v5599_v62 = vld [vmem:[%s6773_s27 + $0x18] sm:$0xe]  ;;  %v6616_v47 = vld [vmem:[%s6773_s27 + $0x48] sm:$0xff]  }
 0x11a   : > { %v8184_v44 = vsel %vm7025_vm7, %v4450_v17, %v4451_v8  ;;  %v4011_v43 = vor.u32 %v4010_v9, %v8178_v5  ;;  %v4458_v23 = vrot.slane %v7920_v57, 5  ;;  %v3993_v25 = vsel %vm6799_vm4, %v3988_v41, %v3992_v6  ;;  %v6666_v11 = vld [vmem:[%s6773_s27 + $0x20] sm:$0x1] }
 0x11b   : > { %v5642_v3 = vcombine.low %v8175_v22, %v8184_v44  ;;  %v4378_v56 = vrot.slane %v6665_v16, 5  ;;  %v8210_v31 = vsel %vm7025_vm7, %v5626_v61, %v4455_v49  ;;  %v4457_v51 = vrot.slane %v4455_v49, 4  ;;  %v5612_v49 = vld [vmem:[%s6773_s27 + $0xb4] sm:$0xe] }
 0x11c   : > { %v5580_v7 = vcombine.low %v3959_v63, %v3969_v2  ;;  %v4012_v17 = vrot.slane %v4011_v43, 4  ;;  %v5627_v41 = vrot.slane %v5611_v28, 9  ;;  %v4462_v6 = vrot.slane %v7923_v34, 5  ;;  %v5600_v2 = vld [vmem:[%s6773_s27 + $0x24] sm:$0xe] }
 0x11d   : > { %6241 = vmatmul.mubr.msk.bf16.gmra.mrb[20].mxu0 %vm709_vm3, %v8022_v24  ;;  %v4001_v24 = vor.u32 %v4000_v18, %v3997_v30  ;;  %v8215_v57 = vsel %vm7025_vm7, %v4457_v51, %v4458_v23  ;;  %v6617_v30 = vld [vmem:[%s6773_s27 + $0x54] sm:$0xff]   ;;  %v5615_v18 = vrot.slane %v5599_v62, 9  ;;  %v4380_v9 = vrot.slane %v4378_v56, 4  ;;  %v6669_v28 = vld [vmem:[%s6773_s27 + $0x2c] sm:$0x1] }
 0x11e   : > { %6089 = vmatmul.mubr.msk.bf16.gmra.mrb[4].mxu1 %vm709_vm3, %v6614_v29  ;;  %6244 = vmatprep.mubr.msk.bf16.mxu0 %vm709_vm3, %v5579_v46  ;;  %v4016_v46 = vrot.slane %v4014_v50, 5  ;;  %v5581_v29 = vcombine.low %v3983_v4, %v3993_v25  ;;  %v5643_v8 = vcombine.low %v8210_v31, %v8215_v57  ;;  %v4465_v63 = vrot.slane %v7933_v48, 5  ;;  %v6667_v50 = vld [vmem:[%s6773_s27 + $0x28] sm:$0xf]  ;;  %v5601_v25 = vld [vmem:[%s6773_s27 + $0x30] sm:$0xe] }
 0x11f   : > { %6092 = vmatprep.mubr.msk.bf16.mxu1 %vm709_vm3, %v6615_v19  ;;  %v4002_v12 = vrot.slane %v4001_v24, 4  ;;  %v4381_v19 = vrot.slane %v6666_v11, 5  ;;  %v4385_v61 = vrot.slane %v6667_v50, 5  ;;  %v8238_v48 = vsel %vm7025_vm7, %v5627_v41, %v4462_v6  ;;  %v6619_v11 = vld [vmem:[%s6773_s27 + $0x6c] sm:$0xff]   ;;  %v8597_v41 = vld [vmem:[#allocation6_spill] sm:$0xff] }
 0x120   : > { %v4017_v34 = vsel %vm6799_vm4, %v4012_v17, %v4016_v46  ;;  %v4464_v24 = vrot.slane %v4462_v6, 4  ;;  %v4379_v43 = vsel %vm7025_vm7, %v5615_v18, %v4378_v56  ;;  %v5616_v51 = vrot.slane %v5600_v2, 9  ;;  %v5613_v50 = vld [vmem:[%s6773_s27 + $0xc0] sm:$0xe]  ;;  %v6683_v31 = vld [vmem:[%s6773_s27 + $0xc8] sm:$0x1] }
 0x121   : > { %v4007_v4 = vsel %vm6799_vm4, %v4002_v12, %v8178_v5  ;;  %v4382_v23 = vsel %vm7025_vm7, %v4380_v9, %v4381_v19  ;;  %v6668_v5 = vld [vmem:[%s6773_s27 + $0x34] sm:$0xf]  ;;  %v6618_v12 = vld [vmem:[%s6773_s27 + $0x60] sm:$0xff]   ;;  %v5617_v18 = vrot.slane %v5601_v25, 9  ;;  %v4472_v9 = vrot.slane %v8047_v35, 5 }
 0x122   : > { %v4392_v16 = vrot.slane %v6668_v5, 5  ;;  %v8249_v62 = vsel %vm7025_vm7, %v4464_v24, %v4465_v63  ;;  %v5582_v46 = vcombine.low %v4007_v4, %v4017_v34  ;;  %v5632_v17 = vcombine.low %v4379_v43, %v4382_v23  ;;  %v5602_v24 = vld [vmem:[%s6773_s27 + $0x3c] sm:$0xe] }
 0x123   : > { %v5644_v56 = vcombine.low %v8238_v48, %v8249_v62  ;;  %v4395_v6 = vrot.slane %v8597_v41, 5  ;;  %v4386_v35 = vsel %vm7025_vm7, %v5616_v51, %v4385_v61  ;;  %v5629_v5 = vrot.slane %v5613_v50, 9 }
 0x124   : > { %v4394_v19 = vrot.slane %v4392_v16, 4  ;;  %v4393_v23 = vsel %vm7025_vm7, %v5617_v18, %v4392_v16  ;;  %v4479_v51 = vrot.slane %v8140_v52, 5  ;;  %v2459_v57 = vshll.u32 %v6683_v31, 16 }
 0x125   : > { %6245 = vmatmul.mubr.msk.bf16.gmra.mrb[24].mxu0 %vm709_vm3, %v5580_v7  ;;  %v5628_v7 = vrot.slane %v5612_v49, 9 }
 0x126   : > { %6093 = vmatmul.mubr.msk.bf16.gmra.mrb[8].mxu1 %vm709_vm3, %v6616_v47  ;;  %6248 = vmatprep.mubr.msk.bf16.mxu0 %vm709_vm3, %v5581_v29  ;;  %v4388_v47 = vrot.slane %v6669_v28, 5  ;;  %v4469_v29 = vrot.slane %v7998_v39, 5  ;;  %v8598_v39 = vld [vmem:[#allocation7_spill] sm:$0xff]  ;;  %v4396_v25 = vsel %vm7025_vm7, %v4394_v19, %v4395_v6  ;;  %v5618_v28 = vrot.slane %v5602_v24, 9 }
 0x127   : > { %6096 = vmatprep.mubr.msk.bf16.mxu1 %vm709_vm3, %v6617_v30  ;;  %v4387_v30 = vrot.slane %v4385_v61, 4  ;;  %v4399_v49 = vrot.slane %v8598_v39, 5  ;;  %v4476_v61 = vrot.slane %v8050_v58, 5  ;;  %v6670_v39 = vld [vmem:[%s6773_s27 + $0x70] sm:$0xf]  ;;  %v4483_v24 = vrot.slane %v8126_v55, 5 }
 0x128   : > { %v8261_v63 = vsel %vm7025_vm7, %v5628_v7, %v4469_v29  ;;  %v4471_v2 = vrot.slane %v4469_v29, 4  ;;  %v5331_v7 = vld [vmem:[%s6773_s27 + $0x6c] sm:$0xf]  ;;  %v8599_v29 = vld [vmem:[#allocation8_spill] sm:$0xff] }
 0x129   : > { %v4389_v34 = vsel %vm7025_vm7, %v4387_v30, %v4388_v47  ;;  %v4401_v47 = vrot.slane %v4399_v49, 4  ;;  %v6620_v30 = vld [vmem:[%s6773_s27 + $0x78] sm:$0xff]   ;;  %v8292_v16 = vsel %vm7025_vm7, %v5629_v5, %v4476_v61  ;;  %v4478_v18 = vrot.slane %v4476_v61, 4 }
 0x12a   : > { %v8268_v4 = vsel %vm7025_vm7, %v4471_v2, %v4472_v9  ;;  %v5634_v9 = vcombine.low %v4393_v23, %v4396_v25  ;;  %v2272_v19 = vshrl.u32 %v5331_v7, 16  ;;  %v2275_v41 = vshll.u32 %v5331_v7, 16 }
 0x12b   : > { %v5645_v43 = vcombine.low %v8261_v63, %v8268_v4  ;;  %v8297_v58 = vsel %vm7025_vm7, %v4478_v18, %v4479_v51  ;;  %v4400_v6 = vsel %vm7025_vm7, %v5618_v28, %v4399_v49  ;;  %v4486_v49 = vrot.slane %v8171_v21, 5  ;;  %v6622_v51 = vld [vmem:[%s6773_s27 + $0x90] sm:$0xff]   ;;  %v6623_v21 = vld [vmem:[%s6773_s27 + $0x9c] sm:$0xff]  }
 0x12c   : > { %v5646_v50 = vcombine.low %v8292_v16, %v8297_v58  ;;  %v2274_v23 = vrot.slane %v2272_v19, 4  ;;  %v2277_v25 = vrot.slane %v2275_v41, 5  ;;  %v4485_v7 = vrot.slane %v4483_v24, 4 }
 0x12d   : > { %6249 = vmatmul.mubr.msk.bf16.gmra.mrb[28].mxu0 %vm709_vm3, %v5582_v46  ;;  %v5633_v46 = vcombine.low %v4386_v35, %v4389_v34  ;;  %v2281_v35 = vshll.u32 %v6670_v39, 16  ;;  %v2285_v34 = vshrl.u32 %v6670_v39, 16 }
 0x12e   : > { %6097 = vmatmul.mubr.msk.bf16.gmra.mrb[12].mxu1 %vm709_vm3, %v6618_v12  ;;  %6254 = vmatprep.mubr.msk.bf16.mxu0 %vm709_vm3, %v5632_v17  ;;  %v4402_v12 = vrot.slane %v8599_v29, 5  ;;  %v5614_v17 = vld [vmem:[%s6773_s27 + $0xcc] sm:$0xe]  ;;  %v8319_v55 = vsel %vm7025_vm7, %v4485_v7, %v4486_v49 }
 0x12f   : > { %6100 = vmatprep.mubr.msk.bf16.mxu1 %vm709_vm3, %v6619_v11  ;;  %v6621_v11 = vld [vmem:[%s6773_s27 + $0x84] sm:$0xff]   ;;  %v5630_v52 = vrot.slane %v5614_v17, 9  ;;  %v2287_v28 = vrot.slane %v2285_v34, 4  ;;  %v6671_v17 = vld [vmem:[%s6773_s27 + $0x74] sm:$0x1] }
 0x130   : > { %v4403_v2 = vsel %vm7025_vm7, %v4401_v47, %v4402_v12  ;;  %v5337_v47 = vld [vmem:[%s6773_s27 + $0x84] sm:$0xf]  ;;  %v2278_v12 = vor.u32 %v2277_v25, %v2274_v23  ;;  %v6625_v34 = vld [vmem:[%s6773_s27 + $0xb4] sm:$0xff]  }
 0x131   : > { %v8314_v5 = vsel %vm7025_vm7, %v5630_v52, %v4483_v24  ;;  %v5635_v61 = vcombine.low %v4400_v6, %v4403_v2  ;;  %v2323_v18 = vshll.u32 %v5337_v47, 16  ;;  %v5340_v6 = vld [vmem:[%s6773_s27 + $0x90] sm:$0xf]  ;;  %v6624_v2 = vld [vmem:[%s6773_s27 + $0xa8] sm:$0xff]  }
 0x132   : > { %v5647_v29 = vcombine.low %v8314_v5, %v8319_v55  ;;  %v2279_v52 = vrot.slane %v2278_v12, 4  ;;  %v2344_v23 = vshrl.u32 %v5340_v6, 16  ;;  %v2347_v25 = vshll.u32 %v5340_v6, 16 }
 0x133   : > { %v2377_v12 = vshll.u32 %v6674_v60, 16 }
 0x134   : > { %v2349_v14 = vrot.slane %v2347_v25, 5  ;;  %v6677_v25 = vld [vmem:[%s6773_s27 + $0xa4] sm:$0x1] }
 0x135   : > { %6255 = vmatmul.mubr.msk.bf16.vlgmr.msra.gmra.mrb[0].mxu0 %vm709_vm3, %v5633_v46  ;;  %v2283_v46 = vrot.slane %v2281_v35, 5  ;;  %v5343_v35 = vld [vmem:[%s6773_s27 + $0x9c] sm:$0xf]  ;;  %v8361_v6 = vrot.slane %v2377_v12, 5 }
 0x136   : > { %6101 = vmatmul.mubr.msk.bf16.gmra.mrb[16].mxu1 %vm709_vm3, %v6620_v30  ;;  %6258 = vmatprep.mubr.msk.bf16.mxu0 %vm709_vm3, %v5634_v9  ;;  %v2291_v30 = vshll.u32 %v6671_v17, 16  ;;  %v2320_v9 = vshrl.u32 %v5337_v47, 16  ;;  %v2371_v47 = vshll.u32 %v5343_v35, 16  ;;  %v6675_v17 = vld [vmem:[%s6773_s27 + $0x8c] sm:$0x1] }
 0x137   : > { %6104 = vmatprep.mubr.msk.bf16.mxu1 %vm709_vm3, %v6621_v11  ;;  %v2288_v13 = vor.u32 %v2287_v28, %v2283_v46  ;;  %v6672_v11 = vld [vmem:[%s6773_s27 + $0x88] sm:$0xf]  ;;  %v2284_v7 = vsel %vm6799_vm4, %v2279_v52, %v2283_v46 }
 0x138   : > { %v2329_v19 = vshll.u32 %v6672_v11, 16  ;;  %v2333_v41 = vshrl.u32 %v6672_v11, 16  ;;  %v2293_v0 = vrot.slane %v2291_v30, 5  ;;  %v2322_v36 = vrot.slane %v2320_v9, 4 }
 0x139   : > { %v2289_v39 = vrot.slane %v2288_v13, 4  ;;  %v2339_v30 = vshll.u32 %v6675_v17, 16  ;;  %v2346_v9 = vrot.slane %v2344_v23, 4  ;;  %v2373_v11 = vrot.slane %v2371_v47, 5 }
 0x13a   : > { %v8338_v24 = vrot.slane %v2329_v19, 5  ;;  %v2335_v49 = vrot.slane %v2333_v41, 4  ;;  %v6626_v19 = vld [vmem:[%s6773_s27 + $0xc0] sm:$0xff]  }
 0x13b   : > { %v2294_v46 = vsel %vm6799_vm4, %v2289_v39, %v2293_v0  ;;  %v5346_v39 = vld [vmem:[%s6773_s27 + $0xa8] sm:$0xf] }
 0x13c   : > { %v2336_v13 = vor.u32 %v2335_v49, %v8338_v24  ;;  %v5364_v41 = vcombine.low %v2284_v7, %v2294_v46  ;;  %v2387_v7 = vshll.u32 %v6677_v25, 16  ;;  %v2395_v45 = vshll.u32 %v5346_v39, 16 }
 0x13d   : > { %6259 = vmatmul.mubr.msk.bf16.gmra.mrb[4].mxu0 %vm709_vm3, %v5635_v61  ;;  %v6673_v61 = vld [vmem:[%s6773_s27 + $0x94] sm:$0xf] }
 0x13e   : > { %6105 = vmatmul.mubr.msk.bf16.gmra.mrb[20].mxu1 %vm709_vm3, %v6622_v51  ;;  %6262 = vmatprep.mubr.msk.bf16.mxu0 %vm709_vm3, %v5636_v10  ;;  %v2325_v10 = vrot.slane %v2323_v18, 5  ;;  %v2353_v51 = vshll.u32 %v6673_v61, 16  ;;  %v2357_v28 = vshrl.u32 %v6673_v61, 16  ;;  %v2337_v0 = vrot.slane %v2336_v13, 4 }
 0x13f   : > { %6108 = vmatprep.mubr.msk.bf16.mxu1 %vm709_vm3, %v6623_v21  ;;  %v2368_v21 = vshrl.u32 %v5343_v35, 16  ;;  %v6676_v35 = vld [vmem:[%s6773_s27 + $0x98] sm:$0x1]  ;;  %v2392_v61 = vshrl.u32 %v5346_v39, 16  ;;  %v5352_v39 = vld [vmem:[%s6773_s27 + $0xc0] sm:$0xf] }
 0x140   : > { %v2326_v15 = vor.u32 %v2325_v10, %v2322_v36  ;;  %v8358_v26 = vrot.slane %v2353_v51, 5  ;;  %v2341_v36 = vrot.slane %v2339_v30, 5  ;;  %v2350_v10 = vor.u32 %v2349_v14, %v2346_v9  ;;  %v5349_v51 = vld [vmem:[%s6773_s27 + $0xb4] sm:$0xf] }
 0x141   : > { %v2370_v18 = vrot.slane %v2368_v21, 4  ;;  %v2405_v21 = vshrl.u32 %v6678_v27, 16  ;;  %v2416_v20 = vshrl.u32 %v5349_v51, 16  ;;  %v2419_v42 = vshll.u32 %v5349_v51, 16 }
 0x142   : > { %v2327_v52 = vrot.slane %v2326_v15, 4  ;;  %v2342_v46 = vsel %vm6799_vm4, %v2337_v0, %v2341_v36  ;;  %v2351_v15 = vrot.slane %v2350_v10, 4  ;;  %v2389_v30 = vrot.slane %v2387_v7, 5 }
 0x143   : > { %v2374_v23 = vor.u32 %v2373_v11, %v2370_v18  ;;  %v2394_v9 = vrot.slane %v2392_v61, 4  ;;  %v2407_v11 = vrot.slane %v2405_v21, 4  ;;  %v6682_v61 = vld [vmem:[%s6773_s27 + $0xbc] sm:$0x1] }
 0x144   : > { %v2332_v47 = vsel %vm6799_vm4, %v2327_v52, %v8338_v24  ;;  %v2356_v0 = vsel %vm6799_vm4, %v2351_v15, %v8358_v26  ;;  %v2435_v22 = vshll.u32 %v6682_v61, 16 }
 0x145   : > { %6263 = vmatmul.mubr.msk.bf16.gmra.mrb[8].mxu0 %vm709_vm3, %v5637_v40  ;;  %v2381_v40 = vshrl.u32 %v6674_v60, 16  ;;  %v2375_v17 = vrot.slane %v2374_v23, 4  ;;  %v5366_v24 = vcombine.low %v2332_v47, %v2342_v46 }
 0x146   : > { %6109 = vmatmul.mubr.msk.bf16.gmra.mrb[24].mxu1 %vm709_vm3, %v6624_v2  ;;  %6266 = vmatprep.mubr.msk.bf16.mxu0 %vm709_vm3, %v5638_v54  ;;  %v2359_v54 = vrot.slane %v2357_v28, 4 }
 0x147   : > { %6112 = vmatprep.mubr.msk.bf16.mxu1 %vm709_vm3, %v6625_v34  ;;  %v2383_v2 = vrot.slane %v2381_v40, 4  ;;  %v2363_v34 = vshll.u32 %v6676_v35, 16  ;;  %v2380_v10 = vsel %vm6799_vm4, %v2375_v17, %v8361_v6  ;;  %v2461_v17 = vrot.slane %v2459_v57, 5 }
 0x148   : > { %v2360_v49 = vor.u32 %v2359_v54, %v8358_v26  ;;  %v2397_v54 = vrot.slane %v2395_v45, 5  ;;  %v6680_v26 = vld [vmem:[%s6773_s27 + $0xb0] sm:$0x1] }
 0x149   : > { %v2384_v28 = vor.u32 %v2383_v2, %v8361_v6  ;;  %v2365_v60 = vrot.slane %v2363_v34, 5  ;;  %v2411_v35 = vshll.u32 %v6680_v26, 16  ;;  %v2440_v34 = vshrl.u32 %v5352_v39, 16 }
 0x14a   : > { %v2361_v13 = vrot.slane %v2360_v49, 4  ;;  %v2398_v38 = vor.u32 %v2397_v54, %v2394_v9  ;;  %v2443_v6 = vshll.u32 %v5352_v39, 16  ;;  %v6681_v49 = vld [vmem:[%s6773_s27 + $0xc4] sm:$0xf] }
 0x14b   : > { %v2385_v14 = vrot.slane %v2384_v28, 4  ;;  %v2449_v23 = vshll.u32 %v6681_v49, 16  ;;  %v2453_v25 = vshrl.u32 %v6681_v49, 16  ;;  %v2413_v45 = vrot.slane %v2411_v35, 5 }
 0x14c   : > { %v2366_v36 = vsel %vm6799_vm4, %v2361_v13, %v2365_v60  ;;  %v2399_v51 = vrot.slane %v2398_v38, 4  ;;  %v2437_v60 = vrot.slane %v2435_v22, 5 }
 0x14d   : > { %6267 = vmatmul.mubr.msk.bf16.gmra.mrb[12].mxu0 %vm709_vm3, %v5639_v53  ;;  %v2401_v53 = vshll.u32 %v6678_v27, 16  ;;  %v2390_v59 = vsel %vm6799_vm4, %v2385_v14, %v2389_v30  ;;  %v5367_v44 = vcombine.low %v2356_v0, %v2366_v36  ;;  %v2442_v27 = vrot.slane %v2440_v34, 4 }
 0x14e   : > { %6113 = vmatmul.mubr.msk.bf16.gmra.mrb[28].mxu1 %vm709_vm3, %v6626_v19  ;;  %6270 = vmatprep.mubr.msk.bf16.mxu0 %vm709_vm3, %v5640_v33  ;;  %v6679_v33 = vld [vmem:[%s6773_s27 + $0xb8] sm:$0xf]  ;;  %v2418_v19 = vrot.slane %v2416_v20, 4  ;;  %v2451_v21 = vrot.slane %v2449_v23, 5  ;;  %v2455_v47 = vrot.slane %v2453_v25, 4 }
 0x14f   : > { %6134 = vmatprep.mubr.msk.bf16.mxu1 %vm709_vm3, %v5364_v41  ;;  %v2425_v12 = vshll.u32 %v6679_v33, 16  ;;  %v2429_v40 = vshrl.u32 %v6679_v33, 16  ;;  %v2403_v18 = vrot.slane %v2401_v53, 5  ;;  %v2421_v41 = vrot.slane %v2419_v42, 5 }
 0x150   : > { %v2445_v53 = vrot.slane %v2443_v6, 5 }
 0x151   : > { %v2427_v52 = vrot.slane %v2425_v12, 5  ;;  %v2431_v2 = vrot.slane %v2429_v40, 4  ;;  %v2404_v20 = vsel %vm6799_vm4, %v2399_v51, %v2403_v18  ;;  %v2456_v12 = vor.u32 %v2455_v47, %v2451_v21 }
 0x152   : > { %v2446_v33 = vor.u32 %v2445_v53, %v2442_v27 }
 0x153   : > { %v2432_v7 = vor.u32 %v2431_v2, %v2427_v52  ;;  %v2457_v13 = vrot.slane %v2456_v12, 4  ;;  %v8460_v2 = vld [vmem:[%s8531_s2] ss:$0 sm:$0xff] }
 0x154   : > { %v2447_v40 = vrot.slane %v2446_v33, 4 }
 0x155   : > { %6271 = vmatmul.mubr.msk.bf16.gmra.mrb[16].mxu0 %vm709_vm3, %v5641_v37  ;;  %v2408_v37 = vor.u32 %v2407_v11, %v2403_v18  ;;  %v2433_v15 = vrot.slane %v2432_v7, 4  ;;  %v2462_v9 = vsel %vm6799_vm4, %v2457_v13, %v2461_v17 }
 0x156   : > { %6135 = vmatmul.mubr.msk.bf16.vlgmr.msra.gmra.mrb[16].mxu1 %vm709_vm3, %v8167_v1  ;;  %6274 = vmatprep.mubr.msk.bf16.mxu0 %vm709_vm3, %v5642_v3  ;;  %v2422_v1 = vor.u32 %v2421_v41, %v2418_v19  ;;  %v5368_v3 = vcombine.low %v2380_v10, %v2390_v59  ;;  %v2452_v30 = vsel %vm6799_vm4, %v2447_v40, %v2451_v21 }
 0x157   : > { %6138 = vmatprep.mubr.msk.bf16.mxu1 %vm709_vm3, %v5366_v24  ;;  %v2409_v28 = vrot.slane %v2408_v37, 4  ;;  %v2438_v48 = vsel %vm6799_vm4, %v2433_v15, %v2437_v60  ;;  %v5371_v14 = vcombine.low %v2452_v30, %v2462_v9 }
 0x158   : > { %v2423_v46 = vrot.slane %v2422_v1, 4 }
 0x159   : > { %v2414_v42 = vsel %vm6799_vm4, %v2409_v28, %v2413_v45 }
 0x15a   : > { %v5369_v62 = vcombine.low %v2404_v20, %v2414_v42 }
 0x15d   : > { %6275 = vmatmul.mubr.msk.bf16.gmra.mrb[20].mxu0 %vm709_vm3, %v5643_v8  ;;  %v2428_v8 = vsel %vm6799_vm4, %v2423_v46, %v2427_v52 }
 0x15e   : > { %6139 = vmatmul.mubr.msk.bf16.gmra.mrb[20].mxu1 %vm709_vm3, %v5367_v44  ;;  %6278 = vmatprep.mubr.msk.bf16.mxu0 %vm709_vm3, %v5644_v56  ;;  %v5370_v56 = vcombine.low %v2428_v8, %v2438_v48 }
 0x15f   : > { %6142 = vmatprep.mubr.msk.bf16.mxu1 %vm709_vm3, %v5368_v3 }
 0x165   : > { %6279 = vmatmul.mubr.msk.bf16.gmra.mrb[24].mxu0 %vm709_vm3, %v5645_v43 }
 0x166   : > { %6143 = vmatmul.mubr.msk.bf16.gmra.mrb[24].mxu1 %vm709_vm3, %v5369_v62  ;;  %6282 = vmatprep.mubr.msk.bf16.mxu0 %vm709_vm3, %v5646_v50 }
 0x167   : > { %6146 = vmatprep.mubr.msk.bf16.mxu1 %vm709_vm3, %v5370_v56 }
 0x16d   : > { %6283 = vmatmul.mubr.msk.bf16.gmra.mrb[28].mxu0 %vm709_vm3, %v5647_v29 }
 0x16e   : > { %6147 = vmatmul.mubr.msk.bf16.gmra.mrb[28].mxu1 %vm709_vm3, %v5371_v14 }
 0x1e9   : > { %v6086_v63 = vpop.f32.mrb[0].mxu1 }
 0x1ea   : > { %v1872_v4 = vpop.f32.mrb[1].mxu1 }
 0x1eb   : > { %v6087_v43 = vpop.f32.mrb[2].mxu1 }
 0x1ec   : > { %v1875_v16 = vpop.f32.mrb[3].mxu1 }
 0x1f1   : > { %v6090_v58 = vpop.f32.mrb[4].mxu1 }
 0x1f2   : > { %v1888_v50 = vpop.f32.mrb[5].mxu1 }
 0x1f3   : > { %v6091_v54 = vpop.f32.mrb[6].mxu1 }
 0x1f4   : > { %v1891_v18 = vpop.f32.mrb[7].mxu1 }
 0x1f9   : > { %v6094_v11 = vpop.f32.mrb[8].mxu1 }
 0x1fa   : > { %v1904_v24 = vpop.f32.mrb[9].mxu1 }
 0x1fb   : > { %v6095_v32 = vpop.f32.mrb[10].mxu1 }
 0x1fc   : > { %v1907_v19 = vpop.f32.mrb[11].mxu1 }
 0x201   : > { %v8449_v41 = vpop.f32.mrb[12].mxu1 }
 0x202   : > { %v8451_v5 = vpop.f32.mrb[13].mxu1 }
 0x203   : > { %v8453_v55 = vpop.f32.mrb[14].mxu1 }
 0x204   : > { %v8455_v29 = vpop.f32.mrb[15].mxu1 }
 0x208   : > { %v6256_v52 = vpop.f32.mrb[0].mxu0 }
 0x209   : > { %v6288_v39 = vadd.f32 %v6256_v52, %v6086_v63  ;;  %v4623_v0 = vpop.f32.mrb[1].mxu0 }
 0x20a   : > { %v6289_v36 = vadd.f32 %v4623_v0, %v1872_v4  ;;  %v6257_v10 = vpop.f32.mrb[2].mxu0 }
 0x20b   : > { %v4791_v59 = vadd.f32 %v6288_v39, %v8460_v2  ;;  %v6290_v38 = vadd.f32 %v6257_v10, %v6087_v43  ;;  %v4626_v37 = vpop.f32.mrb[3].mxu0 }
 0x20c   : > { %v4789_v26 = vadd.f32 %v6289_v36, %v8460_v2  ;;  %v6291_v35 = vadd.f32 %v4626_v37, %v1875_v16 }
 0x20d   : > { %v4792_v34 = vadd.f32 %v6290_v38, %v8460_v2  ;;  %v4823_v49 = vmax.f32 %v4791_v59, 0.0 }
 0x20e   : > { %v4790_v6 = vadd.f32 %v6291_v35, %v8460_v2  ;;  %v4821_v25 = vmax.f32 %v4789_v26, 0.0 }
 0x20f   : > { %v4824_v23 = vmax.f32 %v4792_v34, 0.0 }
 0x210   : > { %v4822_v1 = vmax.f32 %v4790_v6, 0.0  ;;  %v6260_v7 = vpop.f32.mrb[4].mxu0 }
 0x211   : > { %v5740_v61 = vpack.c.bf16 %v4824_v23, %v4823_v49  ;;  %v6292_v22 = vadd.f32 %v6260_v7, %v6090_v58  ;;  %v4639_v44 = vpop.f32.mrb[5].mxu0 }
 0x212   : > { %v5735_v3 = vpack.c.bf16 %v4822_v1, %v4821_v25  ;;  %v6293_v51 = vadd.f32 %v4639_v44, %v1888_v50  ;;  %v6261_v28 = vpop.f32.mrb[6].mxu0 }
 0x213   : > { %5812 = vst [vmem:[%s8470_s24 + $0x8] sm:$0xff] %v5740_v61   ;;  %v4795_v45 = vadd.f32 %v6292_v22, %v8460_v2  ;;  %v6294_v27 = vadd.f32 %v6261_v28, %v6091_v54  ;;  %v4642_v53 = vpop.f32.mrb[7].mxu0 }
 0x214   : > { %5736 = vst [vmem:[%s8470_s24] sm:$0xff] %v5735_v3   ;;  %v4793_v21 = vadd.f32 %v6293_v51, %v8460_v2  ;;  %v6295_v47 = vadd.f32 %v4642_v53, %v1891_v18 }
 0x215   : > { %v4796_v46 = vadd.f32 %v6294_v27, %v8460_v2  ;;  %v4827_v60 = vmax.f32 %v4795_v45, 0.0 }
 0x216   : > { %v4794_v15 = vadd.f32 %v6295_v47, %v8460_v2  ;;  %v4825_v42 = vmax.f32 %v4793_v21, 0.0 }
 0x217   : > { %v4828_v20 = vmax.f32 %v4796_v46, 0.0 }
 0x218   : > { %v4826_v33 = vmax.f32 %v4794_v15, 0.0  ;;  %v6264_v12 = vpop.f32.mrb[8].mxu0 }
 0x219   : > { %v5750_v31 = vpack.c.bf16 %v4828_v20, %v4827_v60  ;;  %v6296_v57 = vadd.f32 %v6264_v12, %v6094_v11  ;;  %v4655_v8 = vpop.f32.mrb[9].mxu0 }
 0x21a   : > { %v5745_v48 = vpack.c.bf16 %v4826_v33, %v4825_v42  ;;  %v6297_v62 = vadd.f32 %v4655_v8, %v1904_v24  ;;  %v6265_v56 = vpop.f32.mrb[10].mxu0 }
 0x21b   : > { %5814 = vst [vmem:[%s8470_s24 + $0x18] sm:$0xff] %v5750_v31   ;;  %v4799_v40 = vadd.f32 %v6296_v57, %v8460_v2  ;;  %v6298_v13 = vadd.f32 %v6265_v56, %v6095_v32  ;;  %v4658_v17 = vpop.f32.mrb[11].mxu0 }
 0x21c   : > { %5813 = vst [vmem:[%s8470_s24 + $0x10] sm:$0xff] %v5745_v48   ;;  %v4797_v30 = vadd.f32 %v6297_v62, %v8460_v2  ;;  %v6299_v9 = vadd.f32 %v4658_v17, %v1907_v19 }
 0x21d   : > { %v4800_v14 = vadd.f32 %v6298_v13, %v8460_v2  ;;  %v4831_v4 = vmax.f32 %v4799_v40, 0.0 }
 0x21e   : > { %v4798_v63 = vadd.f32 %v6299_v9, %v8460_v2  ;;  %v4829_v16 = vmax.f32 %v4797_v30, 0.0 }
 0x21f   : > { %v4832_v43 = vmax.f32 %v4800_v14, 0.0 }
 0x220   : > { %v4830_v58 = vmax.f32 %v4798_v63, 0.0  ;;  %v6268_v50 = vpop.f32.mrb[12].mxu0 }
 0x221   : > { %v5760_v54 = vpack.c.bf16 %v4832_v43, %v4831_v4  ;;  %v6300_v18 = vadd.f32 %v6268_v50, %v8449_v41  ;;  %v4671_v11 = vpop.f32.mrb[13].mxu0 }
 0x222   : > { %v5755_v24 = vpack.c.bf16 %v4830_v58, %v4829_v16  ;;  %v6301_v32 = vadd.f32 %v4671_v11, %v8451_v5  ;;  %v6269_v52 = vpop.f32.mrb[14].mxu0 }
 0x223   : > { %5816 = vst [vmem:[%s8470_s24 + $0x28] sm:$0xff] %v5760_v54   ;;  %v4803_v19 = vadd.f32 %v6300_v18, %v8460_v2  ;;  %v6302_v39 = vadd.f32 %v6269_v52, %v8453_v55  ;;  %v4674_v0 = vpop.f32.mrb[15].mxu0 }
 0x224   : > { %5815 = vst [vmem:[%s8470_s24 + $0x20] sm:$0xff] %v5755_v24   ;;  %v4801_v36 = vadd.f32 %v6301_v32, %v8460_v2  ;;  %v6303_v10 = vadd.f32 %v4674_v0, %v8455_v29 }
 0x225   : > { %v4804_v59 = vadd.f32 %v6302_v39, %v8460_v2  ;;  %v4835_v38 = vmax.f32 %v4803_v19, 0.0 }
 0x226   : > { %v4802_v41 = vadd.f32 %v6303_v10, %v8460_v2  ;;  %v4833_v37 = vmax.f32 %v4801_v36, 0.0 }
 0x227   : > { %v4836_v5 = vmax.f32 %v4804_v59, 0.0 }
 0x228   : > { %v4834_v26 = vmax.f32 %v4802_v41, 0.0  ;;  %v6272_v35 = vpop.f32.mrb[16].mxu0 }
 0x229   : > { %v5770_v34 = vpack.c.bf16 %v4836_v5, %v4835_v38  ;;  %v6136_v6 = vpop.f32.mrb[16].mxu1  ;;  %v4687_v55 = vpop.f32.mrb[17].mxu0 }
 0x22a   : > { %v5765_v49 = vpack.c.bf16 %v4834_v26, %v4833_v37  ;;  %v6304_v23 = vadd.f32 %v6272_v35, %v6136_v6  ;;  %v2662_v25 = vpop.f32.mrb[17].mxu1  ;;  %v6273_v1 = vpop.f32.mrb[18].mxu0 }
 0x22b   : > { %5818 = vst [vmem:[%s8470_s24 + $0x38] sm:$0xff] %v5770_v34   ;;  %v6305_v7 = vadd.f32 %v4687_v55, %v2662_v25  ;;  %v6137_v29 = vpop.f32.mrb[18].mxu1  ;;  %v4690_v61 = vpop.f32.mrb[19].mxu0 }
 0x22c   : > { %5817 = vst [vmem:[%s8470_s24 + $0x30] sm:$0xff] %v5765_v49   ;;  %v4807_v22 = vadd.f32 %v6304_v23, %v8460_v2  ;;  %v6306_v44 = vadd.f32 %v6273_v1, %v6137_v29  ;;  %v2665_v3 = vpop.f32.mrb[19].mxu1 }
 0x22d   : > { %v4805_v51 = vadd.f32 %v6305_v7, %v8460_v2  ;;  %v6307_v28 = vadd.f32 %v4690_v61, %v2665_v3 }
 0x22e   : > { %v4808_v45 = vadd.f32 %v6306_v44, %v8460_v2  ;;  %v4839_v53 = vmax.f32 %v4807_v22, 0.0 }
 0x22f   : > { %v4806_v27 = vadd.f32 %v6307_v28, %v8460_v2  ;;  %v4837_v46 = vmax.f32 %v4805_v51, 0.0 }
 0x230   : > { %v4840_v21 = vmax.f32 %v4808_v45, 0.0  ;;  %v6276_v47 = vpop.f32.mrb[20].mxu0 }
 0x231   : > { %v4838_v15 = vmax.f32 %v4806_v27, 0.0  ;;  %v6140_v60 = vpop.f32.mrb[20].mxu1  ;;  %v4703_v20 = vpop.f32.mrb[21].mxu0 }
 0x232   : > { %v5780_v42 = vpack.c.bf16 %v4840_v21, %v4839_v53  ;;  %v6308_v33 = vadd.f32 %v6276_v47, %v6140_v60  ;;  %v2678_v12 = vpop.f32.mrb[21].mxu1  ;;  %v6277_v31 = vpop.f32.mrb[22].mxu0 }
 0x233   : > { %v5775_v57 = vpack.c.bf16 %v4838_v15, %v4837_v46  ;;  %v6309_v8 = vadd.f32 %v4703_v20, %v2678_v12  ;;  %v6141_v48 = vpop.f32.mrb[22].mxu1  ;;  %v4706_v62 = vpop.f32.mrb[23].mxu0 }
 0x234   : > { %5820 = vst [vmem:[%s8470_s24 + $0x48] sm:$0xff] %v5780_v42   ;;  %v4811_v56 = vadd.f32 %v6308_v33, %v8460_v2  ;;  %v6310_v40 = vadd.f32 %v6277_v31, %v6141_v48  ;;  %v2681_v13 = vpop.f32.mrb[23].mxu1 }
 0x235   : > { %5819 = vst [vmem:[%s8470_s24 + $0x40] sm:$0xff] %v5775_v57   ;;  %v4809_v17 = vadd.f32 %v6309_v8, %v8460_v2  ;;  %v6311_v30 = vadd.f32 %v4706_v62, %v2681_v13 }
 0x236   : > { %v4812_v9 = vadd.f32 %v6310_v40, %v8460_v2  ;;  %v4843_v63 = vmax.f32 %v4811_v56, 0.0 }
 0x237   : > { %v4810_v14 = vadd.f32 %v6311_v30, %v8460_v2  ;;  %v4841_v16 = vmax.f32 %v4809_v17, 0.0 }
 0x238   : > { %v4844_v4 = vmax.f32 %v4812_v9, 0.0  ;;  %v6280_v43 = vpop.f32.mrb[24].mxu0 }
 0x239   : > { %v4842_v58 = vmax.f32 %v4810_v14, 0.0  ;;  %v6144_v50 = vpop.f32.mrb[24].mxu1  ;;  %v4719_v54 = vpop.f32.mrb[25].mxu0 }
 0x23a   : > { %v5790_v18 = vpack.c.bf16 %v4844_v4, %v4843_v63  ;;  %v6312_v11 = vadd.f32 %v6280_v43, %v6144_v50  ;;  %v2694_v24 = vpop.f32.mrb[25].mxu1  ;;  %v6281_v32 = vpop.f32.mrb[26].mxu0 }
 0x23b   : > { %v5785_v52 = vpack.c.bf16 %v4842_v58, %v4841_v16  ;;  %v6313_v19 = vadd.f32 %v4719_v54, %v2694_v24  ;;  %v6145_v39 = vpop.f32.mrb[26].mxu1  ;;  %v4722_v0 = vpop.f32.mrb[27].mxu0 }
 0x23c   : > { %5822 = vst [vmem:[%s8470_s24 + $0x58] sm:$0xff] %v5790_v18   ;;  %v4815_v36 = vadd.f32 %v6312_v11, %v8460_v2  ;;  %v6314_v10 = vadd.f32 %v6281_v32, %v6145_v39  ;;  %v2697_v59 = vpop.f32.mrb[27].mxu1 }
 0x23d   : > { %5821 = vst [vmem:[%s8470_s24 + $0x50] sm:$0xff] %v5785_v52   ;;  %v4813_v41 = vadd.f32 %v6313_v19, %v8460_v2  ;;  %v6315_v38 = vadd.f32 %v4722_v0, %v2697_v59 }
 0x23e   : > { %v4816_v5 = vadd.f32 %v6314_v10, %v8460_v2  ;;  %v4847_v26 = vmax.f32 %v4815_v36, 0.0 }
 0x23f   : > { %v4814_v37 = vadd.f32 %v6315_v38, %v8460_v2  ;;  %v4845_v6 = vmax.f32 %v4813_v41, 0.0 }
 0x240   : > { %v4848_v35 = vmax.f32 %v4816_v5, 0.0  ;;  %v6284_v34 = vpop.f32.mrb[28].mxu0 }
 0x241   : > { %v4846_v55 = vmax.f32 %v4814_v37, 0.0  ;;  %v6148_v49 = vpop.f32.mrb[28].mxu1  ;;  %v4735_v23 = vpop.f32.mrb[29].mxu0 }
 0x242   : > { %v5800_v25 = vpack.c.bf16 %v4848_v35, %v4847_v26  ;;  %v6316_v1 = vadd.f32 %v6284_v34, %v6148_v49  ;;  %v2710_v7 = vpop.f32.mrb[29].mxu1  ;;  %v6285_v29 = vpop.f32.mrb[30].mxu0 }
 0x243   : > { %v5795_v61 = vpack.c.bf16 %v4846_v55, %v4845_v6  ;;  %v6317_v22 = vadd.f32 %v4735_v23, %v2710_v7  ;;  %v6149_v44 = vpop.f32.mrb[30].mxu1  ;;  %v4738_v3 = vpop.f32.mrb[31].mxu0 }
 0x244   : > { %5824 = vst [vmem:[%s8470_s24 + $0x68] sm:$0xff] %v5800_v25   ;;  %v4819_v51 = vadd.f32 %v6316_v1, %v8460_v2  ;;  %v6318_v28 = vadd.f32 %v6285_v29, %v6149_v44  ;;  %v2713_v45 = vpop.f32.mrb[31].mxu1 }
 0x245   : > { %5823 = vst [vmem:[%s8470_s24 + $0x60] sm:$0xff] %v5795_v61   ;;  %v4817_v27 = vadd.f32 %v6317_v22, %v8460_v2  ;;  %v6319_v53 = vadd.f32 %v4738_v3, %v2713_v45 }
 0x246   : > { %v4820_v21 = vadd.f32 %v6318_v28, %v8460_v2  ;;  %v4851_v46 = vmax.f32 %v4819_v51, 0.0 }
 0x247   : > { %v4818_v47 = vadd.f32 %v6319_v53, %v8460_v2  ;;  %v4849_v60 = vmax.f32 %v4817_v27, 0.0 }
 0x248   : > { %v4852_v15 = vmax.f32 %v4820_v21, 0.0 }
 0x249   : > { %v4850_v20 = vmax.f32 %v4818_v47, 0.0 }
 0x24a   : > { %v5810_v42 = vpack.c.bf16 %v4852_v15, %v4851_v46 }
 0x24b   : > { %v5805_v33 = vpack.c.bf16 %v4850_v20, %v4849_v60 }
 0x24c   : > { %5826 = vst [vmem:[%s8470_s24 + $0x78] sm:$0xff] %v5810_v42  }
 0x24d   : > { %5825 = vst [vmem:[%s8470_s24 + $0x70] sm:$0xff] %v5805_v33  }
 0x24e PF: > { %s13_s14 = sadd.s32 1, %s6706_s14   ;;  %s8600_s12 = smov %s6702_s13 }
 0x24f   : > { %p10_p5 = scmp.ge.s32.totalorder %s13_s14, 6   ;;  %s8601_s13 = smov %s8603_s15 }
 0x251   :  { %12 = sbr.rel (!%p10_p5) target bundleno = 2 (0x2), region = 78 }

// kernel: resnet_pl_loss.10
= control target key start
LH: loop header
LB: loop body
LE: loop exit
PB: predicated region body
PF: predicated region fallthrough
CT: control target
= control target key end

     0   :  { %s7304_s12 = smov 0   ;;  %s7306_s13 = smov 0   ;;  %s9166_s0 = inlined_call_operand.vmem [shape: bf16[4,18,18,128], index: 0, kind: input, shape index: {}]   ;;  %s9167_s1 = inlined_call_operand.vmem [shape: bf16[3,3,128,128], index: 1, kind: input, shape index: {}]   ;;  %s9168_s2 = inlined_call_operand.vmem [shape: f32[1,128], index: 2, kind: input, shape index: {}]   ;;  %s9169_s3 = inlined_call_operand.vmem [shape: bf16[4,16,16,128], index: 3, kind: output, shape index: {}]  }
   0x1   :  { %s7308_s14 = smov 0  }
   0x2 LB: > { %s25_s15 = sadd.s32 1, %s7278_s13  ;;  %p5374_p0 = scmp.ge.s32.totalorder %s7282_s14, 1  ;;  %s7282_s14 = sphi %s7308_s14, %s13_s14   ;;  %s7278_s13 = sphi %s7306_s13, %s9237_s13   ;;  %s7274_s12 = sphi %s7304_s12, %s9236_s12  }
   0x3   : > { %p27_p1 = scmp.ge.s32.totalorder %s25_s15, 4  ;;  %p168_p2 = scmp.lt.s32.totalorder %s7282_s14, 5 }
   0x5   : > { %s9239_s15 = smov (%p27_p1, %s25_s15), 0  ;;  %p169_p3 = pnand %p5374_p0, %p168_p2 }
   0x7   : > { %172 = sbr.rel (%p169_p3) target bundleno = 590 (0x24e), region = 32 }
   0xe   : > { %v7070_v0 = vld [vmem:[%s9167_s1 + $0x40] sm:$0xff]   ;;  %p202_p4 = scmp.lt.s32.totalorder %s7274_s12, 3  ;;  %v7072_v2 = vld [vmem:[%s9167_s1 + $0x48] sm:$0xff]   ;;  %v7074_v4 = vld [vmem:[%s9167_s1 + $0x50] sm:$0xff]   ;;  %vm287_vm0 = vsmask.f32 3328 }
   0xf   : > { %v7071_v1 = vld [vmem:[%s9167_s1 + $0x100] sm:$0xff]   ;;  %6341 = vmatprep.subr.bf16.mxu1 %v7070_v0  ;;  %v7073_v3 = vld [vmem:[%s9167_s1 + $0x108] sm:$0xff]   ;;  %v7075_v5 = vld [vmem:[%s9167_s1 + $0x110] sm:$0xff]   ;;  %vm288_vm1 = vsmask.f32 7440  ;;  %vm1317_vm3 = vcmask 1042432  }
  0x10   : > { %6533 = vmatprep.subr.bf16.mxu0 %v7071_v1  ;;  %6342 = vmatpush3.bf16.msra.mxu1 %v7070_v0  ;;  %s9241_s12 = smov (!%p202_p4, %s7274_s12), 3  ;;  %v7076_v6 = vld [vmem:[%s9167_s1 + $0x58] sm:$0xff]   ;;  %v7078_v8 = vld [vmem:[%s9167_s1 + $0x60] sm:$0xff]   ;;  %v7080_v10 = vld [vmem:[%s9167_s1 + $0x68] sm:$0xff]   ;;  %vm1318_vm4 = vcmask 1046532  }
  0x11   : > { %6534 = vmatpush3.bf16.msra.mxu0 %v7071_v1  ;;  %6343 = vmatprep.subr.bf16.mxu1 %v7072_v2  ;;  %v7077_v7 = vld [vmem:[%s9167_s1 + $0x118] sm:$0xff]   ;;  %s7045_s5 = smul.u32 216, %s9241_s12  ;;  %v7079_v9 = vld [vmem:[%s9167_s1 + $0x120] sm:$0xff]   ;;  %v7081_v11 = vld [vmem:[%s9167_s1 + $0x128] sm:$0xff]   ;;  %s5997_s26 = sshll.u32 %s9241_s12, 7 }
  0x12   : > { %6535 = vmatprep.subr.bf16.mxu0 %v7073_v3  ;;  %v7082_v25 = vld [vmem:[%s9167_s1 + $0x70] sm:$0xff]   ;;  %v7084_v36 = vld [vmem:[%s9167_s1 + $0x78] sm:$0xff]   ;;  %vm7390_vm2 = vmor %vm287_vm0, %vm288_vm1  ;;  %s9107_s29 = scalar_lea.vmem %s9169_s3, %s5997_s26 }
  0x13   : > { %s7358_s16 = scalar_lea.vmem %s9166_s0, %s7045_s5  ;;  %v7083_v30 = vld [vmem:[%s9167_s1 + $0x130] sm:$0xff]   ;;  %v7085_v51 = vld [vmem:[%s9167_s1 + $0x138] sm:$0xff]   ;;  %vm7636_vm5 = vmor %vm1317_vm3, %vm1318_vm4 }
  0x14   : > { %6344 = vmatpush3.bf16.msra.mxu1 %v7072_v2  ;;  %v223_v12 = vld [vmem:[%s7358_s16] sm:$0xf]  ;;  %v224_v13 = vld [vmem:[%s7358_s16 + $0x4] sm:$0xf]  ;;  %v271_v14 = vld [vmem:[%s7358_s16 + $0x8] sm:$0x1] }
  0x15   : > { %6536 = vmatpush3.bf16.msra.mxu0 %v7073_v3  ;;  %6345 = vmatprep.subr.bf16.mxu1 %v7074_v4  ;;  %v291_v15 = vshrl.u32 %v223_v12, 16  ;;  %v294_v16 = vshll.u32 %v223_v12, 16  ;;  %v300_v17 = vshll.u32 %v224_v13, 16  ;;  %v304_v18 = vshrl.u32 %v224_v13, 16  ;;  %v5570_v20 = vld [vmem:[%s7358_s16 + $0xc] sm:$0xf] }
  0x16   : > { %6537 = vmatprep.subr.bf16.mxu0 %v7075_v5  ;;  %v310_v19 = vshll.u32 %v271_v14, 16  ;;  %v7371_v23 = vld [vmem:[%s7358_s16 + $0x10] sm:$0xf]  ;;  %v7374_v24 = vld [vmem:[%s7358_s16 + $0x14] sm:$0x1]  ;;  %v2190_v29 = vshrl.u32 %v5570_v20, 16 }
  0x17   : > { %v293_v21 = vrot.slane %v291_v15, 4  ;;  %v296_v22 = vrot.slane %v294_v16, 5  ;;  %v302_v26 = vrot.slane %v300_v17, 5  ;;  %v306_v27 = vrot.slane %v304_v18, 4  ;;  %v225_v35 = vld [vmem:[%s7358_s16 + $0xc] sm:$0xf] }
  0x18   : > { %6346 = vmatpush3.bf16.msra.mxu1 %v7074_v4  ;;  %v312_v28 = vrot.slane %v310_v19, 5  ;;  %v2193_v32 = vshll.u32 %v5570_v20, 16  ;;  %v2199_v33 = vshll.u32 %v7371_v23, 16  ;;  %v2203_v34 = vshrl.u32 %v7371_v23, 16  ;;  %v226_v42 = vld [vmem:[%s7358_s16 + $0x10] sm:$0xf] }
  0x19   : > { %6538 = vmatpush3.bf16.msra.mxu0 %v7075_v5  ;;  %6347 = vmatprep.subr.bf16.mxu1 %v7076_v6  ;;  %v297_v31 = vor.u32 %v296_v22, %v293_v21  ;;  %v307_v38 = vor.u32 %v306_v27, %v302_v26  ;;  %v2192_v39 = vrot.slane %v2190_v29, 4  ;;  %v2209_v40 = vshll.u32 %v7374_v24, 16  ;;  %v272_v55 = vld [vmem:[%s7358_s16 + $0x14] sm:$0x1]  ;;  %v5573_v57 = vld [vmem:[%s7358_s16 + $0x18] sm:$0xf] }
  0x1a   : > { %6539 = vmatprep.subr.bf16.mxu0 %v7077_v7  ;;  %v2964_v41 = vrot.slane %v7374_v24, 5  ;;  %v2195_v44 = vrot.slane %v2193_v32, 5  ;;  %v2201_v45 = vrot.slane %v2199_v33, 5  ;;  %v2205_v46 = vrot.slane %v2203_v34, 4  ;;  %v7407_v62 = vld [vmem:[%s7358_s16 + $0x1c] sm:$0xf] }
  0x1b   : > { %v298_v43 = vrot.slane %v297_v31, 4  ;;  %v308_v47 = vrot.slane %v307_v38, 4  ;;  %v2211_v48 = vrot.slane %v2209_v40, 5  ;;  %v315_v49 = vshrl.u32 %v225_v35, 16  ;;  %v7086_v3 = vld [vmem:[%s9167_s1] sm:$0xff]  }
  0x1c   : > { %6348 = vmatpush3.bf16.msra.mxu1 %v7076_v6  ;;  %v318_v50 = vshll.u32 %v225_v35, 16  ;;  %v2196_v53 = vor.u32 %v2195_v44, %v2192_v39  ;;  %v2206_v54 = vor.u32 %v2205_v46, %v2201_v45  ;;  %v324_v56 = vshll.u32 %v226_v42, 16  ;;  %v7415_v4 = vld [vmem:[%s9167_s1 + $0x140] sm:$0xff]   ;;  %v227_v21 = vld [vmem:[%s7358_s16 + $0x18] sm:$0xf]  ;;  %v7089_v46 = vld [vmem:[%s9167_s1 + $0x8] sm:$0xff]  }
  0x1d   : > { %6540 = vmatpush3.bf16.msra.mxu0 %v7077_v7  ;;  %6349 = vmatprep.subr.bf16.mxu1 %v7078_v8  ;;  %v303_v52 = vsel %vm7390_vm2, %v298_v43, %v302_v26  ;;  %v313_v58 = vsel %vm7390_vm2, %v308_v47, %v312_v28  ;;  %v317_v59 = vrot.slane %v315_v49, 4  ;;  %v328_v61 = vshrl.u32 %v226_v42, 16  ;;  %v228_v28 = vld [vmem:[%s7358_s16 + $0x1c] sm:$0xf]  ;;  %v273_v33 = vld [vmem:[%s7358_s16 + $0x20] sm:$0x1] }
  0x1e   : > { %6541 = vmatprep.subr.bf16.mxu0 %v7079_v9  ;;  %v320_v60 = vrot.slane %v318_v50, 5  ;;  %v5394_v63 = vcombine.low %v303_v52, %v313_v58  ;;  %v2197_v0 = vrot.slane %v2196_v53, 4  ;;  %v2207_v1 = vrot.slane %v2206_v54, 4  ;;  %v5576_v39 = vld [vmem:[%s7358_s16 + $0x24] sm:$0xf] }
  0x1f   : > { %v326_v2 = vrot.slane %v324_v56, 5  ;;  %v330_v6 = vrot.slane %v328_v61, 4  ;;  %v334_v7 = vshll.u32 %v272_v55, 16  ;;  %v2217_v12 = vshll.u32 %v5573_v57, 16  ;;  %v229_v52 = vld [vmem:[%s7358_s16 + $0x24] sm:$0xf] }
  0x20   : > { %6350 = vmatpush3.bf16.msra.mxu1 %v7078_v8  ;;  %v321_v5 = vor.u32 %v320_v60, %v317_v59  ;;  %v7418_v8 = vld [vmem:[%s7358_s16 + $0x20] sm:$0x1]  ;;  %6357 = vmatprep.mubr.bf16.mxu1 %v5394_v63  ;;  %v2223_v19 = vshll.u32 %v7407_v62, 16  ;;  %v2227_v20 = vshrl.u32 %v7407_v62, 16  ;;  %v2968_v27 = vrot.slane %v7407_v62, 5  ;;  %v7088_v63 = vld [vmem:[%s9167_s1 + $0x148] sm:$0xff]  }
  0x21   : > { %6542 = vmatpush3.bf16.msra.mxu0 %v7079_v9  ;;  %6351 = vmatprep.subr.bf16.mxu1 %v7080_v10  ;;  %v2202_v9 = vsel %vm7390_vm2, %v2197_v0, %v2201_v45  ;;  %v331_v15 = vor.u32 %v330_v6, %v326_v2  ;;  %v336_v16 = vrot.slane %v334_v7, 5  ;;  %v2219_v18 = vrot.slane %v2217_v12, 5  ;;  %v7443_v45 = vld [vmem:[%s7358_s16 + $0x28] sm:$0xf] }
  0x22   : > { %6543 = vmatprep.subr.bf16.mxu0 %v7081_v11  ;;  %v322_v14 = vrot.slane %v321_v5, 4  ;;  %v2233_v26 = vshll.u32 %v7418_v8, 16  ;;  %v2229_v31 = vrot.slane %v2227_v20, 4  ;;  %v2971_v32 = vrot.slane %v7418_v8, 5  ;;  %v230_v5 = vld [vmem:[%s7358_s16 + $0x28] sm:$0xf] }
  0x23   : > { %v339_v38 = vshrl.u32 %v227_v21, 16  ;;  %v342_v44 = vshll.u32 %v227_v21, 16  ;;  %v352_v49 = vshrl.u32 %v228_v28, 16  ;;  %v358_v50 = vshll.u32 %v273_v33, 16  ;;  %v7474_v33 = vld [vmem:[%s7358_s16 + $0x34] sm:$0xf] }
  0x24   : > { %6352 = vmatpush3.bf16.msra.mxu1 %v7080_v10  ;;  %v2212_v10 = vsel %vm7390_vm2, %v2207_v1, %v2211_v48  ;;  %v327_v22 = vsel %vm7390_vm2, %v322_v14, %v326_v2  ;;  %v2235_v35 = vrot.slane %v2233_v26, 5  ;;  %v348_v48 = vshll.u32 %v228_v28, 16 }
  0x25   : > { %6544 = vmatpush3.bf16.msra.mxu0 %v7081_v11  ;;  %6353 = vmatprep.subr.bf16.mxu1 %v7082_v25  ;;  %v2214_v11 = vshrl.u32 %v5573_v57, 16  ;;  %v5634_v13 = vcombine.low %v2202_v9, %v2212_v10  ;;  %v341_v47 = vrot.slane %v339_v38, 4  ;;  %v344_v55 = vrot.slane %v342_v44, 5 }
  0x26   : > { %6545 = vmatprep.subr.bf16.mxu0 %v7083_v30  ;;  %v2238_v56 = vshrl.u32 %v5576_v39, 16  ;;  %v350_v57 = vrot.slane %v348_v48, 5  ;;  %v354_v58 = vrot.slane %v352_v49, 4  ;;  %v360_v59 = vrot.slane %v358_v50, 5  ;;  %v7091_v48 = vld [vmem:[%s9167_s1 + $0x158] sm:$0xff]  }
  0x27   : > { %v2216_v17 = vrot.slane %v2214_v11, 4  ;;  %6549 = vmatprep.mubr.bf16.mxu0 %v5634_v13  ;;  %v2241_v60 = vshll.u32 %v5576_v39, 16  ;;  %v345_v0 = vor.u32 %v344_v55, %v341_v47  ;;  %v2247_v2 = vshll.u32 %v7443_v45, 16  ;;  %v274_v11 = vld [vmem:[%s7358_s16 + $0x2c] sm:$0x1] }
  0x28   : > { %6354 = vmatpush3.bf16.msra.mxu1 %v7082_v25  ;;  %v332_v25 = vrot.slane %v331_v15, 4  ;;  %v2240_v1 = vrot.slane %v2238_v56, 4  ;;  %v355_v7 = vor.u32 %v354_v58, %v350_v57  ;;  %v2251_v10 = vshrl.u32 %v7443_v45, 16 }
  0x29   : > { %6546 = vmatpush3.bf16.msra.mxu0 %v7083_v30  ;;  %6355 = vmatprep.subr.bf16.mxu1 %v7084_v36  ;;  %v2220_v29 = vor.u32 %v2219_v18, %v2216_v17  ;;  %v2225_v30 = vrot.slane %v2223_v19, 5  ;;  %v2243_v9 = vrot.slane %v2241_v60, 5  ;;  %v346_v12 = vrot.slane %v345_v0, 4  ;;  %v7098_v60 = vld [vmem:[%s9167_s1 + $0x20] sm:$0xff]  }
  0x2a   : > { %6547 = vmatprep.subr.bf16.mxu0 %v7085_v51  ;;  %v337_v34 = vsel %vm7390_vm2, %v332_v25, %v336_v16  ;;  %v2249_v13 = vrot.slane %v2247_v2, 5  ;;  %v363_v15 = vshrl.u32 %v229_v52, 16  ;;  %v5579_v16 = vld [vmem:[%s7358_s16 + $0x30] sm:$0xf]  ;;  %v356_v17 = vrot.slane %v355_v7, 4 }
  0x2b   : > { %v5395_v40 = vcombine.low %v327_v22, %v337_v34  ;;  %v2221_v42 = vrot.slane %v2220_v29, 4  ;;  %v2230_v43 = vor.u32 %v2229_v31, %v2225_v30  ;;  %v2244_v18 = vor.u32 %v2243_v9, %v2240_v1  ;;  %v7095_v34 = vld [vmem:[%s9167_s1 + $0x18] sm:$0xff]  }
  0x2c   : > { %6356 = vmatpush3.bf16.msra.mxu1 %v7084_v36  ;;  %v7439_v36 = vrot.slane %v2968_v27, 4  ;;  %v2253_v19 = vrot.slane %v2251_v10, 4  ;;  %v366_v20 = vshll.u32 %v229_v52, 16  ;;  %v351_v21 = vsel %vm7390_vm2, %v346_v12, %v350_v57  ;;  %v275_v2 = vld [vmem:[%s7358_s16 + $0x38] sm:$0x1] }
  0x2d   : > { %6548 = vmatpush3.bf16.msra.mxu0 %v7085_v51  ;;  %6389 = vmatprep.subr.bf16.mxu1 %v7086_v3  ;;  %v7449_v51 = vld [vmem:[%s7358_s16 + $0x2c] sm:$0x1]  ;;  %v2226_v53 = vsel %vm7390_vm2, %v2221_v42, %v2225_v30  ;;  %v2231_v54 = vrot.slane %v2230_v43, 4  ;;  %v365_v25 = vrot.slane %v363_v15, 4  ;;  %v372_v26 = vshll.u32 %v230_v5, 16 }
  0x2e   : > { %6581 = vmatprep.subr.bf16.mxu0 %v7415_v4  ;;  %v2257_v14 = vshll.u32 %v7449_v51, 16  ;;  %v361_v28 = vsel %vm7390_vm2, %v356_v17, %v360_v59  ;;  %v2245_v29 = vrot.slane %v2244_v18, 4  ;;  %v2254_v30 = vor.u32 %v2253_v19, %v2249_v13  ;;  %v232_v59 = vld [vmem:[%s7358_s16 + $0x34] sm:$0xf]  ;;  %v5582_v9 = vld [vmem:[%s7358_s16 + $0x3c] sm:$0xf] }
  0x2f   : > { %6358 = vmatmul.mubr.bf16.vlgmr.msra.gmra.mrb[0].mxu1 %v5395_v40  ;;  %v2236_v61 = vsel %vm7390_vm2, %v2231_v54, %v2235_v35  ;;  %v368_v31 = vrot.slane %v366_v20, 5  ;;  %v5396_v35 = vcombine.low %v351_v21, %v361_v28  ;;  %v374_v38 = vrot.slane %v372_v26, 5  ;;  %v231_v54 = vld [vmem:[%s7358_s16 + $0x30] sm:$0xf]  ;;  %v7508_v19 = vld [vmem:[%s7358_s16 + $0x40] sm:$0xf] }
  0x30   : > { %6390 = vmatpush3.bf16.msra.mxu1 %v7086_v3  ;;  %v7092_v3 = vld [vmem:[%s9167_s1 + $0x10] sm:$0xff]   ;;  %v5635_v6 = vcombine.low %v2226_v53, %v2236_v61  ;;  %v2259_v22 = vrot.slane %v2257_v14, 5  ;;  %v376_v39 = vshrl.u32 %v230_v5, 16  ;;  %v382_v40 = vshll.u32 %v274_v11, 16  ;;  %v7100_v14 = vld [vmem:[%s9167_s1 + $0x28] sm:$0xff]   ;;  %v7093_v20 = vld [vmem:[%s9167_s1 + $0x160] sm:$0xff]  }
  0x31   : > { %6391 = vmatprep.subr.bf16.mxu1 %v7089_v46  ;;  %v2250_v42 = vsel %vm7390_vm2, %v2245_v29, %v2249_v13  ;;  %v2255_v43 = vrot.slane %v2254_v30, 4  ;;  %v369_v44 = vor.u32 %v368_v31, %v365_v25  ;;  %v2262_v47 = vshrl.u32 %v5579_v16, 16  ;;  %6361 = vmatprep.mubr.bf16.mxu1 %v5396_v35  ;;  %v7516_v28 = vld [vmem:[%s7358_s16 + $0x44] sm:$0x1]  ;;  %v7102_v35 = vld [vmem:[%s9167_s1 + $0x30] sm:$0xff]  }
  0x32   : > { %6550 = vmatmul.mubr.bf16.vlgmr.msra.gmra.mrb[0].mxu0 %v5635_v6  ;;  %v378_v49 = vrot.slane %v376_v39, 4  ;;  %v384_v50 = vrot.slane %v382_v40, 5  ;;  %v2265_v52 = vshll.u32 %v5579_v16, 16  ;;  %v2271_v53 = vshll.u32 %v7474_v33, 16 }
  0x33   : > { %6582 = vmatpush3.bf16.msra.mxu0 %v7415_v4  ;;  %v7090_v4 = vld [vmem:[%s9167_s1 + $0x150] sm:$0xff]   ;;  %v2260_v55 = vsel %vm7390_vm2, %v2255_v43, %v2259_v22  ;;  %v370_v56 = vrot.slane %v369_v44, 4  ;;  %v2264_v57 = vrot.slane %v2262_v47, 4  ;;  %v2275_v58 = vshrl.u32 %v7474_v33, 16 }
  0x34   : > { %6392 = vmatpush3.bf16.msra.mxu1 %v7089_v46  ;;  %6583 = vmatprep.subr.bf16.mxu0 %v7088_v63  ;;  %v7485_v46 = vld [vmem:[%s7358_s16 + $0x38] sm:$0x1]  ;;  %v5636_v61 = vcombine.low %v2250_v42, %v2260_v55  ;;  %v2267_v0 = vrot.slane %v2265_v52, 5  ;;  %v2273_v1 = vrot.slane %v2271_v53, 5  ;;  %v387_v7 = vshrl.u32 %v231_v54, 16 }
  0x35   : > { %6393 = vmatprep.subr.bf16.mxu1 %v7092_v3  ;;  %v375_v5 = vsel %vm7390_vm2, %v370_v56, %v374_v38  ;;  %v2281_v6 = vshll.u32 %v7485_v46, 16  ;;  %v390_v12 = vshll.u32 %v231_v54, 16  ;;  %v396_v13 = vshll.u32 %v232_v59, 16  ;;  %v234_v55 = vld [vmem:[%s7358_s16 + $0x40] sm:$0xf] }
  0x36   : > { %6553 = vmatprep.mubr.bf16.mxu0 %v5636_v61  ;;  %v2268_v11 = vor.u32 %v2267_v0, %v2264_v57  ;;  %v389_v17 = vrot.slane %v387_v7, 4  ;;  %v400_v18 = vshrl.u32 %v232_v59, 16  ;;  %v2286_v40 = vshrl.u32 %v5582_v9, 16 }
  0x37   : > { %6584 = vmatpush3.bf16.msra.mxu0 %v7088_v63  ;;  %v379_v63 = vor.u32 %v378_v49, %v374_v38  ;;  %v2283_v16 = vrot.slane %v2281_v6, 5  ;;  %v392_v25 = vrot.slane %v390_v12, 5  ;;  %v398_v26 = vrot.slane %v396_v13, 5 }
  0x38   : > { %6394 = vmatpush3.bf16.msra.mxu1 %v7092_v3  ;;  %6585 = vmatprep.subr.bf16.mxu0 %v7090_v4  ;;  %v2277_v3 = vrot.slane %v2275_v58, 4  ;;  %v2269_v22 = vrot.slane %v2268_v11, 4  ;;  %v402_v31 = vrot.slane %v400_v18, 4  ;;  %v2289_v42 = vshll.u32 %v5582_v9, 16  ;;  %v5585_v9 = vld [vmem:[%s7358_s16 + $0x48] sm:$0xf] }
  0x39   : > { %6395 = vmatprep.subr.bf16.mxu1 %v7095_v34  ;;  %v380_v10 = vrot.slane %v379_v63, 4  ;;  %v393_v39 = vor.u32 %v392_v25, %v389_v17  ;;  %v2295_v49 = vshll.u32 %v7508_v19, 16  ;;  %v2288_v53 = vrot.slane %v2286_v40, 4  ;;  %v276_v63 = vld [vmem:[%s7358_s16 + $0x44] sm:$0x1] }
  0x3a   : > { %v2278_v15 = vor.u32 %v2277_v3, %v2273_v1  ;;  %v2274_v38 = vsel %vm7390_vm2, %v2269_v22, %v2273_v1  ;;  %v403_v44 = vor.u32 %v402_v31, %v398_v26  ;;  %v2291_v54 = vrot.slane %v2289_v42, 5  ;;  %v7549_v22 = vld [vmem:[%s7358_s16 + $0x50] sm:$0x1]  ;;  %v7097_v31 = vld [vmem:[%s9167_s1 + $0x178] sm:$0xff]  }
  0x3b   : > { %6586 = vmatpush3.bf16.msra.mxu0 %v7090_v4  ;;  %v385_v21 = vsel %vm7390_vm2, %v380_v10, %v384_v50  ;;  %v406_v4 = vshll.u32 %v275_v2, 16  ;;  %v394_v52 = vrot.slane %v393_v39, 4  ;;  %v2297_v57 = vrot.slane %v2295_v49, 5  ;;  %v7104_v2 = vld [vmem:[%s9167_s1 + $0x38] sm:$0xff]  }
  0x3c   : > { %6396 = vmatpush3.bf16.msra.mxu1 %v7095_v34  ;;  %6587 = vmatprep.subr.bf16.mxu0 %v7091_v48  ;;  %v5397_v29 = vcombine.low %v375_v5, %v385_v21  ;;  %v2279_v30 = vrot.slane %v2278_v15, 4  ;;  %v233_v34 = vld [vmem:[%s7358_s16 + $0x3c] sm:$0xf]  ;;  %v404_v56 = vrot.slane %v403_v44, 4  ;;  %v2299_v58 = vshrl.u32 %v7508_v19, 16  ;;  %v7096_v15 = vld [vmem:[%s9167_s1 + $0x170] sm:$0xff]  }
  0x3d   : > { %6397 = vmatprep.subr.bf16.mxu1 %v7098_v60  ;;  %v408_v47 = vrot.slane %v406_v4, 5  ;;  %v2305_v59 = vshll.u32 %v7516_v28, 16  ;;  %v2292_v61 = vor.u32 %v2291_v54, %v2288_v53  ;;  %v411_v0 = vshrl.u32 %v233_v34, 16  ;;  %v7560_v4 = vld [vmem:[%s9167_s1 + $0x80] sm:$0xff]   ;;  %v236_v53 = vld [vmem:[%s7358_s16 + $0x4c] sm:$0xf] }
  0x3e   : > { %6362 = vmatmul.mubr.bf16.gmra.mrb[4].mxu1 %v5397_v29  ;;  %v2284_v43 = vsel %vm7390_vm2, %v2279_v30, %v2283_v16  ;;  %v414_v1 = vshll.u32 %v233_v34, 16  ;;  %v2301_v3 = vrot.slane %v2299_v58, 4  ;;  %v420_v7 = vshll.u32 %v234_v55, 16  ;;  %v235_v30 = vld [vmem:[%s7358_s16 + $0x48] sm:$0xf] }
  0x3f   : > { %6588 = vmatpush3.bf16.msra.mxu0 %v7091_v48  ;;  %v5637_v50 = vcombine.low %v2274_v38, %v2284_v43  ;;  %v7094_v48 = vld [vmem:[%s9167_s1 + $0x168] sm:$0xff]   ;;  %v409_v5 = vsel %vm7390_vm2, %v404_v56, %v408_v47  ;;  %v2307_v6 = vrot.slane %v2305_v59, 5  ;;  %v2293_v11 = vrot.slane %v2292_v61, 4  ;;  %v277_v54 = vld [vmem:[%s7358_s16 + $0x50] sm:$0x1] }
  0x40   : > { %6398 = vmatpush3.bf16.msra.mxu1 %v7098_v60  ;;  %6589 = vmatprep.subr.bf16.mxu0 %v7093_v20  ;;  %v399_v60 = vsel %vm7390_vm2, %v394_v52, %v398_v26  ;;  %v413_v12 = vrot.slane %v411_v0, 4  ;;  %v416_v13 = vrot.slane %v414_v1, 5  ;;  %v2302_v16 = vor.u32 %v2301_v3, %v2297_v57  ;;  %v5588_v58 = vld [vmem:[%s7358_s16 + $0x54] sm:$0xf]  ;;  %v7574_v0 = vld [vmem:[%s7358_s16 + $0x58] sm:$0xf] }
  0x41   : > { %6399 = vmatprep.subr.bf16.mxu1 %v7100_v14  ;;  %6554 = vmatmul.mubr.bf16.gmra.mrb[4].mxu0 %v5637_v50  ;;  %v5398_v10 = vcombine.low %v399_v60, %v409_v5  ;;  %v422_v17 = vrot.slane %v420_v7, 5  ;;  %v424_v18 = vshrl.u32 %v234_v55, 16  ;;  %v430_v21 = vshll.u32 %v276_v63, 16 }
  0x42   : > { %v417_v25 = vor.u32 %v416_v13, %v413_v12  ;;  %v2310_v26 = vshrl.u32 %v5585_v9, 16  ;;  %v2313_v29 = vshll.u32 %v5585_v9, 16  ;;  %v2303_v34 = vrot.slane %v2302_v16, 4 }
  0x43   : > { %6590 = vmatpush3.bf16.msra.mxu0 %v7093_v20  ;;  %6365 = vmatprep.mubr.bf16.mxu1 %v5398_v10  ;;  %v2298_v20 = vsel %vm7390_vm2, %v2293_v11, %v2297_v57  ;;  %v432_v38 = vrot.slane %v430_v21, 5  ;;  %v2329_v52 = vshll.u32 %v7549_v22, 16  ;;  %v435_v61 = vshrl.u32 %v235_v30, 16 }
  0x44   : > { %6400 = vmatpush3.bf16.msra.mxu1 %v7100_v14  ;;  %v7543_v14 = vld [vmem:[%s7358_s16 + $0x4c] sm:$0xf]  ;;  %6591 = vmatprep.subr.bf16.mxu0 %v7094_v48  ;;  %v418_v40 = vrot.slane %v417_v25, 4  ;;  %v2312_v42 = vrot.slane %v2310_v26, 4  ;;  %v2315_v43 = vrot.slane %v2313_v29, 5  ;;  %v2308_v47 = vsel %vm7390_vm2, %v2303_v34, %v2307_v6  ;;  %v7579_v6 = vld [vmem:[%s9167_s1 + $0x180] sm:$0xff]  }
  0x45   : > { %6401 = vmatprep.subr.bf16.mxu1 %v7102_v35  ;;  %v2319_v39 = vshll.u32 %v7543_v14, 16  ;;  %v2323_v44 = vshrl.u32 %v7543_v14, 16  ;;  %v5638_v55 = vcombine.low %v2298_v20, %v2308_v47  ;;  %v2331_v60 = vrot.slane %v2329_v52, 5  ;;  %v7586_v20 = vld [vmem:[%s7358_s16 + $0x5c] sm:$0x1] }
  0x46   : > { %v2316_v56 = vor.u32 %v2315_v43, %v2312_v42  ;;  %v438_v63 = vshll.u32 %v235_v30, 16  ;;  %v448_v3 = vshrl.u32 %v236_v53, 16  ;;  %v437_v9 = vrot.slane %v435_v61, 4  ;;  %v238_v43 = vld [vmem:[%s7358_s16 + $0x58] sm:$0xf] }
  0x47   : > { %6592 = vmatpush3.bf16.msra.mxu0 %v7094_v48  ;;  %v2321_v50 = vrot.slane %v2319_v39, 5  ;;  %v423_v48 = vsel %vm7390_vm2, %v418_v40, %v422_v17  ;;  %v2325_v57 = vrot.slane %v2323_v44, 4  ;;  %6557 = vmatprep.mubr.bf16.mxu0 %v5638_v55  ;;  %v454_v11 = vshll.u32 %v277_v54, 16  ;;  %v5591_v52 = vld [vmem:[%s7358_s16 + $0x60] sm:$0xf] }
  0x48   : > { %6402 = vmatpush3.bf16.msra.mxu1 %v7102_v35  ;;  %v426_v35 = vrot.slane %v424_v18, 4  ;;  %6593 = vmatprep.subr.bf16.mxu0 %v7096_v15  ;;  %v2317_v1 = vrot.slane %v2316_v56, 4  ;;  %v440_v10 = vrot.slane %v438_v63, 5  ;;  %v450_v18 = vrot.slane %v448_v3, 4 }
  0x49   : > { %6403 = vmatprep.subr.bf16.mxu1 %v7104_v2  ;;  %v2326_v5 = vor.u32 %v2325_v57, %v2321_v50  ;;  %v456_v21 = vrot.slane %v454_v11, 5  ;;  %v2334_v25 = vshrl.u32 %v5588_v58, 16  ;;  %v2337_v29 = vshll.u32 %v5588_v58, 16 }
  0x4a   : > { %v427_v49 = vor.u32 %v426_v35, %v422_v17  ;;  %v2322_v13 = vsel %vm7390_vm2, %v2317_v1, %v2321_v50  ;;  %v441_v17 = vor.u32 %v440_v10, %v437_v9  ;;  %v2343_v30 = vshll.u32 %v7574_v0, 16  ;;  %v237_v35 = vld [vmem:[%s7358_s16 + $0x54] sm:$0xf]  ;;  %v278_v50 = vld [vmem:[%s7358_s16 + $0x5c] sm:$0x1] }
  0x4b   : > { %6594 = vmatpush3.bf16.msra.mxu0 %v7096_v15  ;;  %v2327_v15 = vrot.slane %v2326_v5, 4  ;;  %v2347_v34 = vshrl.u32 %v7574_v0, 16  ;;  %v2336_v42 = vrot.slane %v2334_v25, 4  ;;  %v459_v55 = vshrl.u32 %v237_v35, 16  ;;  %v7614_v25 = vld [vmem:[%s7358_s16 + $0x60] sm:$0xf] }
  0x4c   : > { %6404 = vmatpush3.bf16.msra.mxu1 %v7104_v2  ;;  %v428_v59 = vrot.slane %v427_v49, 4  ;;  %v444_v2 = vshll.u32 %v236_v53, 16  ;;  %6595 = vmatprep.subr.bf16.mxu0 %v7097_v31  ;;  %v442_v39 = vrot.slane %v441_v17, 4  ;;  %v2345_v44 = vrot.slane %v2343_v30, 5  ;;  %v7610_v17 = vld [vmem:[%s7358_s16 + $0x68] sm:$0x1] }
  0x4d   : > { %6437 = vmatprep.subr.bf16.mxu1 %v7560_v4  ;;  %v2332_v26 = vsel %vm7390_vm2, %v2327_v15, %v2331_v60  ;;  %v2349_v47 = vrot.slane %v2347_v34, 4  ;;  %v2353_v49 = vshll.u32 %v7586_v20, 16  ;;  %v7601_v60 = vld [vmem:[%s7358_s16 + $0x64] sm:$0xf]  ;;  %v461_v63 = vrot.slane %v459_v55, 4 }
  0x4e   : > { %v433_v7 = vsel %vm7390_vm2, %v428_v59, %v432_v38  ;;  %v446_v16 = vrot.slane %v444_v2, 5  ;;  %v5639_v38 = vcombine.low %v2322_v13, %v2332_v26  ;;  %v468_v59 = vshll.u32 %v238_v43, 16 }
  0x4f   : > { %v5399_v12 = vcombine.low %v423_v48, %v433_v7  ;;  %6596 = vmatpush3.bf16.msra.mxu0 %v7097_v31  ;;  %v2339_v31 = vrot.slane %v2337_v29, 5  ;;  %v462_v48 = vshll.u32 %v237_v35, 16  ;;  %v2350_v57 = vor.u32 %v2349_v47, %v2345_v44  ;;  %v7617_v35 = vld [vmem:[%s7358_s16 + $0x64] sm:$0xf] }
  0x50   : > { %6629 = vmatprep.subr.bf16.mxu0 %v7579_v6  ;;  %v451_v40 = vor.u32 %v450_v18, %v446_v16  ;;  %6558 = vmatmul.mubr.bf16.gmra.mrb[8].mxu0 %v5639_v38  ;;  %v447_v53 = vsel %vm7390_vm2, %v442_v39, %v446_v16  ;;  %v2355_v58 = vrot.slane %v2353_v49, 5  ;;  %v472_v5 = vshrl.u32 %v238_v43, 16  ;;  %v279_v43 = vld [vmem:[%s7358_s16 + $0x68] sm:$0x1] }
  0x51   : > { %6366 = vmatmul.mubr.bf16.gmra.mrb[8].mxu1 %v5399_v12  ;;  %v2340_v56 = vor.u32 %v2339_v31, %v2336_v42  ;;  %v464_v1 = vrot.slane %v462_v48, 5  ;;  %v2351_v7 = vrot.slane %v2350_v57, 4  ;;  %v470_v9 = vrot.slane %v468_v59, 5 }
  0x52   : > { %v452_v54 = vrot.slane %v451_v40, 4  ;;  %v474_v11 = vrot.slane %v472_v5, 4  ;;  %v478_v12 = vshll.u32 %v278_v50, 16  ;;  %v2358_v13 = vshrl.u32 %v5591_v52, 16  ;;  %v5658_v50 = vld [vmem:[%s7358_s16 + $0xc] sm:$0xe] }
  0x53   : > { %v2341_v3 = vrot.slane %v2340_v56, 4  ;;  %v465_v10 = vor.u32 %v464_v1, %v461_v63  ;;  %v2356_v16 = vsel %vm7390_vm2, %v2351_v7, %v2355_v58  ;;  %v2361_v18 = vshll.u32 %v5591_v52, 16  ;;  %v7632_v5 = vld [vmem:[%s7358_s16 + $0x6c] sm:$0xf] }
  0x54   : > { %v457_v61 = vsel %vm7390_vm2, %v452_v54, %v456_v21  ;;  %v2367_v21 = vshll.u32 %v7601_v60, 16  ;;  %v475_v30 = vor.u32 %v474_v11, %v470_v9  ;;  %v480_v34 = vrot.slane %v478_v12, 5 }
  0x55   : > { %v5400_v2 = vcombine.low %v447_v53, %v457_v61  ;;  %v2346_v15 = vsel %vm7390_vm2, %v2341_v3, %v2345_v44  ;;  %v466_v29 = vrot.slane %v465_v10, 4  ;;  %v2360_v38 = vrot.slane %v2358_v13, 4 }
  0x56   : > { %v5640_v26 = vcombine.low %v2346_v15, %v2356_v16  ;;  %v2363_v39 = vrot.slane %v2361_v18, 5  ;;  %v2369_v40 = vrot.slane %v2367_v21, 5  ;;  %v2371_v42 = vshrl.u32 %v7601_v60, 16  ;;  %v7644_v21 = vld [vmem:[%s7358_s16 + $0x70] sm:$0xf] }
  0x57   : > { %6369 = vmatprep.mubr.bf16.mxu1 %v5400_v2  ;;  %v471_v31 = vsel %vm7390_vm2, %v466_v29, %v470_v9  ;;  %v476_v44 = vrot.slane %v475_v30, 4  ;;  %v2377_v47 = vshll.u32 %v7610_v17, 16  ;;  %v483_v49 = vshrl.u32 %v7614_v25, 16  ;;  %v7188_v9 = vld [vmem:[%s7358_s16 + $0xb4] sm:$0xff]  }
  0x58   : > { %6561 = vmatprep.mubr.bf16.mxu0 %v5640_v26  ;;  %v2364_v52 = vor.u32 %v2363_v39, %v2360_v38  ;;  %v2373_v53 = vrot.slane %v2371_v42, 4  ;;  %v486_v54 = vshll.u32 %v7614_v25, 16  ;;  %v492_v55 = vshll.u32 %v7617_v35, 16 }
  0x59   : > { %v481_v48 = vsel %vm7390_vm2, %v476_v44, %v480_v34  ;;  %v2379_v56 = vrot.slane %v2377_v47, 5  ;;  %v485_v57 = vrot.slane %v483_v49, 4  ;;  %v496_v58 = vshrl.u32 %v7617_v35, 16  ;;  %v7655_v47 = vld [vmem:[%s7358_s16 + $0x78] sm:$0xf] }
  0x5a   : > { %v5401_v59 = vcombine.low %v471_v31, %v481_v48  ;;  %v2365_v61 = vrot.slane %v2364_v52, 4  ;;  %v2374_v63 = vor.u32 %v2373_v53, %v2369_v40  ;;  %v488_v1 = vrot.slane %v486_v54, 5  ;;  %v7666_v54 = vld [vmem:[%s7358_s16 + $0x7c] sm:$0xf] }
  0x5b   : > { %v494_v2 = vrot.slane %v492_v55, 5  ;;  %v498_v3 = vrot.slane %v496_v58, 4  ;;  %v502_v7 = vshll.u32 %v279_v43, 16  ;;  %v5674_v10 = vrot.slane %v5658_v50, 9  ;;  %v281_v58 = vld [vmem:[%s7358_s16 + $0x80] sm:$0x1] }
  0x5c   : > { %6370 = vmatmul.mubr.bf16.gmra.mrb[12].mxu1 %v5401_v59  ;;  %v2370_v11 = vsel %vm7390_vm2, %v2365_v61, %v2369_v40  ;;  %v2375_v12 = vrot.slane %v2374_v63, 4  ;;  %v489_v13 = vor.u32 %v488_v1, %v485_v57  ;;  %v2961_v15 = vrot.slane %v7371_v23, 5  ;;  %v280_v40 = vld [vmem:[%s7358_s16 + $0x74] sm:$0x1]  ;;  %v5659_v23 = vld [vmem:[%s7358_s16 + $0x18] sm:$0xe] }
  0x5d   : > { %v499_v16 = vor.u32 %v498_v3, %v494_v2  ;;  %v504_v18 = vrot.slane %v502_v7, 5  ;;  %v507_v26 = vshrl.u32 %v7632_v5, 16  ;;  %v510_v29 = vshll.u32 %v7632_v5, 16 }
  0x5e   : > { %v2380_v30 = vsel %vm7390_vm2, %v2375_v12, %v2379_v56  ;;  %v490_v34 = vrot.slane %v489_v13, 4  ;;  %v2962_v38 = vsel %vm7636_vm5, %v5674_v10, %v2961_v15  ;;  %v2963_v39 = vrot.slane %v2961_v15, 4  ;;  %v5660_v13 = vld [vmem:[%s7358_s16 + $0x24] sm:$0xe] }
  0x5f   : > { %v5641_v42 = vcombine.low %v2370_v11, %v2380_v30  ;;  %v500_v43 = vrot.slane %v499_v16, 4  ;;  %v509_v31 = vrot.slane %v507_v26, 4  ;;  %v512_v44 = vrot.slane %v510_v29, 5  ;;  %v7688_v16 = vld [vmem:[%s7358_s16 + $0x84] sm:$0xf]  ;;  %v7101_v29 = vld [vmem:[%s9167_s1 + $0x188] sm:$0xff]  }
  0x60   : > { %v495_v49 = vsel %vm7390_vm2, %v490_v34, %v494_v2  ;;  %v2965_v50 = vsel %vm7636_vm5, %v2963_v39, %v2964_v41  ;;  %v516_v52 = vshll.u32 %v7644_v21, 16  ;;  %v520_v53 = vshrl.u32 %v7644_v21, 16 }
  0x61   : > { %6562 = vmatmul.mubr.bf16.gmra.mrb[12].mxu0 %v5641_v42  ;;  %v505_v55 = vsel %vm7390_vm2, %v500_v43, %v504_v18  ;;  %v5706_v48 = vcombine.low %v2962_v38, %v2965_v50  ;;  %v513_v56 = vor.u32 %v512_v44, %v509_v31  ;;  %v526_v57 = vshll.u32 %v280_v40, 16  ;;  %v7696_v40 = vld [vmem:[%s7358_s16 + $0x88] sm:$0xf]  ;;  %v282_v31 = vld [vmem:[%s7358_s16 + $0x8c] sm:$0x1] }
  0x62   : > { %v5402_v59 = vcombine.low %v495_v49, %v505_v55  ;;  %v518_v24 = vrot.slane %v516_v52, 5  ;;  %v522_v61 = vrot.slane %v520_v53, 4  ;;  %v5675_v63 = vrot.slane %v5659_v23, 9 }
  0x63   : > { %6597 = vmatprep.mubr.bf16.mxu0 %v5706_v48  ;;  %v514_v41 = vrot.slane %v513_v56, 4  ;;  %v528_v1 = vrot.slane %v526_v57, 5  ;;  %v2972_v2 = vsel %vm7636_vm5, %v7439_v36, %v2971_v32  ;;  %v531_v3 = vshrl.u32 %v7655_v47, 16 }
  0x64   : > { %6373 = vmatprep.mubr.bf16.mxu1 %v5402_v59  ;;  %v523_v7 = vor.u32 %v522_v61, %v518_v24  ;;  %v2969_v10 = vsel %vm7636_vm5, %v5675_v63, %v2968_v27  ;;  %v534_v11 = vshll.u32 %v7655_v47, 16  ;;  %v540_v12 = vshll.u32 %v7666_v54, 16 }
  0x65   : > { %v519_v8 = vsel %vm7390_vm2, %v514_v41, %v518_v24  ;;  %v5707_v15 = vcombine.low %v2969_v10, %v2972_v2  ;;  %v533_v32 = vrot.slane %v531_v3, 4  ;;  %v544_v36 = vshrl.u32 %v7666_v54, 16  ;;  %v7717_v2 = vld [vmem:[%s7358_s16 + $0x90] sm:$0xf]  ;;  %v7720_v3 = vld [vmem:[%s7358_s16 + $0x94] sm:$0xf] }
  0x66   : > { %v524_v62 = vrot.slane %v523_v7, 4  ;;  %v536_v18 = vrot.slane %v534_v11, 5  ;;  %v542_v26 = vrot.slane %v540_v12, 5  ;;  %v550_v27 = vshll.u32 %v281_v58, 16 }
  0x67   : > { %v546_v30 = vrot.slane %v544_v36, 4  ;;  %v5676_v34 = vrot.slane %v5660_v13, 9  ;;  %v2975_v38 = vrot.slane %v7443_v45, 5  ;;  %v2978_v39 = vrot.slane %v7449_v51, 5  ;;  %v5661_v45 = vld [vmem:[%s7358_s16 + $0x30] sm:$0xe] }
  0x68   : > { %v529_v23 = vsel %vm7390_vm2, %v524_v62, %v528_v1  ;;  %v537_v42 = vor.u32 %v536_v18, %v533_v32  ;;  %v552_v43 = vrot.slane %v550_v27, 5  ;;  %v555_v44 = vshrl.u32 %v7688_v16, 16  ;;  %v283_v62 = vld [vmem:[%s7358_s16 + $0x98] sm:$0x1] }
  0x69   : > { %v5403_v49 = vcombine.low %v519_v8, %v529_v23  ;;  %6598 = vmatmul.mubr.bf16.vlgmr.msra.gmra.mrb[0].mxu0 %v5707_v15  ;;  %v547_v50 = vor.u32 %v546_v30, %v542_v26  ;;  %v2976_v52 = vsel %vm7636_vm5, %v5676_v34, %v2975_v38  ;;  %v2977_v53 = vrot.slane %v2975_v38, 4  ;;  %v7105_v30 = vld [vmem:[%s9167_s1 + $0x198] sm:$0xff]  }
  0x6a   : > { %6630 = vmatpush3.bf16.msra.mxu0 %v7579_v6  ;;  %v538_v51 = vrot.slane %v537_v42, 4  ;;  %v557_v55 = vrot.slane %v555_v44, 4  ;;  %v558_v48 = vshll.u32 %v7688_v16, 16  ;;  %v564_v56 = vshll.u32 %v7696_v40, 16  ;;  %v7103_v6 = vld [vmem:[%s9167_s1 + $0x190] sm:$0xff]  }
  0x6b   : > { %6374 = vmatmul.mubr.bf16.gmra.mrb[16].mxu1 %v5403_v49  ;;  %v548_v57 = vrot.slane %v547_v50, 4  ;;  %v2979_v58 = vsel %vm7636_vm5, %v2977_v53, %v2978_v39  ;;  %v568_v59 = vshrl.u32 %v7696_v40, 16  ;;  %v574_v24 = vshll.u32 %v282_v31, 16  ;;  %6631 = vmatprep.subr.bf16.mxu0 %v7101_v29  ;;  %v5662_v38 = vld [vmem:[%s7358_s16 + $0x3c] sm:$0xe] }
  0x6c   : > { %v543_v61 = vsel %vm7390_vm2, %v538_v51, %v542_v26  ;;  %v5708_v63 = vcombine.low %v2976_v52, %v2979_v58  ;;  %v560_v41 = vrot.slane %v558_v48, 5  ;;  %v566_v1 = vrot.slane %v564_v56, 5  ;;  %v7738_v31 = vld [vmem:[%s7358_s16 + $0x9c] sm:$0xf]  ;;  %v7747_v48 = vld [vmem:[%s7358_s16 + $0xa0] sm:$0xf] }
  0x6d   : > { %v553_v7 = vsel %vm7390_vm2, %v548_v57, %v552_v43  ;;  %v570_v10 = vrot.slane %v568_v59, 4  ;;  %v576_v11 = vrot.slane %v574_v24, 5  ;;  %v5677_v12 = vrot.slane %v5661_v45, 9  ;;  %v7109_v56 = vld [vmem:[%s9167_s1 + $0x1a0] sm:$0xff]  }
  0x6e   : > { %v5404_v13 = vcombine.low %v543_v61, %v553_v7  ;;  %6601 = vmatprep.mubr.bf16.mxu0 %v5708_v63  ;;  %v561_v8 = vor.u32 %v560_v41, %v557_v55  ;;  %v2982_v15 = vrot.slane %v7474_v33, 5  ;;  %v2985_v32 = vrot.slane %v7485_v46, 5  ;;  %6632 = vmatpush3.bf16.msra.mxu0 %v7101_v29  ;;  %v284_v61 = vld [vmem:[%s7358_s16 + $0xa4] sm:$0x1] }
  0x6f   : > { %v571_v36 = vor.u32 %v570_v10, %v566_v1  ;;  %v579_v18 = vshrl.u32 %v7717_v2, 16  ;;  %v582_v26 = vshll.u32 %v7717_v2, 16  ;;  %v588_v27 = vshll.u32 %v7720_v3, 16  ;;  %6633 = vmatprep.subr.bf16.mxu0 %v7103_v6 }
  0x70   : > { %6377 = vmatprep.mubr.bf16.mxu1 %v5404_v13  ;;  %v562_v34 = vrot.slane %v561_v8, 4  ;;  %v2983_v33 = vsel %vm7636_vm5, %v5677_v12, %v2982_v15  ;;  %v2984_v46 = vrot.slane %v2982_v15, 4  ;;  %v592_v29 = vshrl.u32 %v7720_v3, 16  ;;  %v5663_v15 = vld [vmem:[%s7358_s16 + $0x48] sm:$0xe] }
  0x71   : > { %v572_v39 = vrot.slane %v571_v36, 4  ;;  %v581_v23 = vrot.slane %v579_v18, 4  ;;  %v584_v42 = vrot.slane %v582_v26, 5  ;;  %v590_v43 = vrot.slane %v588_v27, 5  ;;  %v7772_v27 = vld [vmem:[%s7358_s16 + $0xa8] sm:$0xf] }
  0x72   : > { %v567_v44 = vsel %vm7390_vm2, %v562_v34, %v566_v1  ;;  %v2986_v49 = vsel %vm7636_vm5, %v2984_v46, %v2985_v32  ;;  %v594_v50 = vrot.slane %v592_v29, 4  ;;  %v598_v52 = vshll.u32 %v283_v62, 16  ;;  %6634 = vmatpush3.bf16.msra.mxu0 %v7103_v6  ;;  %v7113_v32 = vld [vmem:[%s9167_s1 + $0x1a8] sm:$0xff]  }
  0x73   : > { %v577_v53 = vsel %vm7390_vm2, %v572_v39, %v576_v11  ;;  %v5709_v45 = vcombine.low %v2983_v33, %v2986_v49  ;;  %v585_v51 = vor.u32 %v584_v42, %v581_v23  ;;  %v5678_v55 = vrot.slane %v5662_v38, 9  ;;  %6635 = vmatprep.subr.bf16.mxu0 %v7105_v30  ;;  %v7775_v29 = vld [vmem:[%s7358_s16 + $0xac] sm:$0xf] }
  0x74   : > { %v5405_v57 = vcombine.low %v567_v44, %v577_v53  ;;  %v595_v58 = vor.u32 %v594_v50, %v590_v43  ;;  %v600_v59 = vrot.slane %v598_v52, 5  ;;  %v2989_v24 = vrot.slane %v7508_v19, 5  ;;  %v5664_v53 = vld [vmem:[%s7358_s16 + $0x54] sm:$0xe] }
  0x75   : > { %6602 = vmatmul.mubr.bf16.gmra.mrb[4].mxu0 %v5709_v45  ;;  %v586_v6 = vrot.slane %v585_v51, 4  ;;  %v2992_v63 = vrot.slane %v7516_v28, 5  ;;  %v603_v41 = vshrl.u32 %v7738_v31, 16  ;;  %v606_v1 = vshll.u32 %v7738_v31, 16  ;;  %v7117_v45 = vld [vmem:[%s9167_s1 + $0x1b0] sm:$0xff]  }
  0x76   : > { %6378 = vmatmul.mubr.bf16.gmra.mrb[20].mxu1 %v5405_v57  ;;  %v596_v7 = vrot.slane %v595_v58, 4  ;;  %v2990_v10 = vsel %vm7636_vm5, %v5678_v55, %v2989_v24  ;;  %v2991_v11 = vrot.slane %v2989_v24, 4  ;;  %v612_v12 = vshll.u32 %v7747_v48, 16  ;;  %6636 = vmatpush3.bf16.msra.mxu0 %v7105_v30 }
  0x77   : > { %v591_v19 = vsel %vm7390_vm2, %v586_v6, %v590_v43  ;;  %v605_v13 = vrot.slane %v603_v41, 4  ;;  %v608_v28 = vrot.slane %v606_v1, 5  ;;  %v616_v8 = vshrl.u32 %v7747_v48, 16  ;;  %6637 = vmatprep.subr.bf16.mxu0 %v7109_v56  ;;  %v285_v43 = vld [vmem:[%s7358_s16 + $0xb0] sm:$0x1] }
  0x78   : > { %v601_v36 = vsel %vm7390_vm2, %v596_v7, %v600_v59  ;;  %v2993_v62 = vsel %vm7636_vm5, %v2991_v11, %v2992_v63  ;;  %v614_v18 = vrot.slane %v612_v12, 5  ;;  %v622_v26 = vshll.u32 %v284_v61, 16  ;;  %v7795_v41 = vld [vmem:[%s7358_s16 + $0xb4] sm:$0xf]  ;;  %v7800_v12 = vld [vmem:[%s7358_s16 + $0xb8] sm:$0xf] }
  0x79   : > { %v5406_v30 = vcombine.low %v591_v19, %v601_v36  ;;  %v5710_v34 = vcombine.low %v2990_v10, %v2993_v62  ;;  %v609_v33 = vor.u32 %v608_v28, %v605_v13  ;;  %v618_v46 = vrot.slane %v616_v8, 4  ;;  %v286_v19 = vld [vmem:[%s7358_s16 + $0xbc] sm:$0x1] }
  0x7a   : > { %v624_v38 = vrot.slane %v622_v26, 5  ;;  %v5679_v39 = vrot.slane %v5663_v15, 9  ;;  %v2996_v23 = vrot.slane %v7543_v14, 5  ;;  %v2999_v42 = vrot.slane %v7549_v22, 5  ;;  %6638 = vmatpush3.bf16.msra.mxu0 %v7109_v56  ;;  %v7121_v13 = vld [vmem:[%s9167_s1 + $0x1b8] sm:$0xff]  }
  0x7b   : > { %6381 = vmatprep.mubr.bf16.mxu1 %v5406_v30  ;;  %6605 = vmatprep.mubr.bf16.mxu0 %v5710_v34  ;;  %v610_v44 = vrot.slane %v609_v33, 4  ;;  %v619_v49 = vor.u32 %v618_v46, %v614_v18  ;;  %v627_v50 = vshrl.u32 %v7772_v27, 16  ;;  %v630_v52 = vshll.u32 %v7772_v27, 16  ;;  %v5665_v30 = vld [vmem:[%s7358_s16 + $0x60] sm:$0xe] }
  0x7c   : > { %v2997_v14 = vsel %vm7636_vm5, %v5679_v39, %v2996_v23  ;;  %v2998_v22 = vrot.slane %v2996_v23, 4  ;;  %v636_v51 = vshll.u32 %v7775_v29, 16  ;;  %v640_v55 = vshrl.u32 %v7775_v29, 16  ;;  %6639 = vmatprep.subr.bf16.mxu0 %v7113_v32  ;;  %v5595_v39 = vld [vmem:[%s7358_s16 + $0x70] sm:$0xf] }
  0x7d   : > { %v615_v56 = vsel %vm7390_vm2, %v610_v44, %v614_v18  ;;  %v620_v57 = vrot.slane %v619_v49, 4  ;;  %v629_v58 = vrot.slane %v627_v50, 4  ;;  %v632_v59 = vrot.slane %v630_v52, 5  ;;  %v7822_v44 = vld [vmem:[%s9167_s1 + $0x1c0] sm:$0xff]  }
  0x7e   : > { %v3000_v24 = vsel %vm7636_vm5, %v2998_v22, %v2999_v42  ;;  %v638_v61 = vrot.slane %v636_v51, 5  ;;  %v642_v6 = vrot.slane %v640_v55, 4  ;;  %v646_v63 = vshll.u32 %v285_v43, 16  ;;  %6640 = vmatpush3.bf16.msra.mxu0 %v7113_v32  ;;  %v5666_v43 = vld [vmem:[%s7358_s16 + $0x6c] sm:$0xe] }
  0x7f   : > { %v625_v1 = vsel %vm7390_vm2, %v620_v57, %v624_v38  ;;  %v5711_v7 = vcombine.low %v2997_v14, %v3000_v24  ;;  %v633_v10 = vor.u32 %v632_v59, %v629_v58  ;;  %v5680_v11 = vrot.slane %v5664_v53, 9  ;;  %6641 = vmatprep.subr.bf16.mxu0 %v7117_v45  ;;  %v5596_v55 = vld [vmem:[%s7358_s16 + $0x74] sm:$0x1]  ;;  %v5667_v24 = vld [vmem:[%s7358_s16 + $0x78] sm:$0xe] }
  0x80   : > { %v5407_v28 = vcombine.low %v615_v56, %v625_v1  ;;  %v643_v8 = vor.u32 %v642_v6, %v638_v61  ;;  %v648_v15 = vrot.slane %v646_v63, 5  ;;  %v3003_v32 = vrot.slane %v7574_v0, 5 }
  0x81   : > { %6606 = vmatmul.mubr.bf16.gmra.mrb[8].mxu0 %v5711_v7  ;;  %v634_v36 = vrot.slane %v633_v10, 4  ;;  %v3006_v62 = vrot.slane %v7586_v20, 5  ;;  %v651_v18 = vshrl.u32 %v7795_v41, 16  ;;  %v654_v26 = vshll.u32 %v7795_v41, 16 }
  0x82   : > { %6382 = vmatmul.mubr.bf16.gmra.mrb[24].mxu1 %v5407_v28  ;;  %v644_v34 = vrot.slane %v643_v8, 4  ;;  %v3004_v33 = vsel %vm7636_vm5, %v5680_v11, %v3003_v32  ;;  %v3005_v46 = vrot.slane %v3003_v32, 4  ;;  %v660_v38 = vshll.u32 %v7800_v12, 16  ;;  %6642 = vmatpush3.bf16.msra.mxu0 %v7117_v45  ;;  %v7835_v11 = vld [vmem:[%s7358_s16 + $0x7c] sm:$0xf] }
  0x83   : > { %v639_v0 = vsel %vm7390_vm2, %v634_v36, %v638_v61  ;;  %v653_v20 = vrot.slane %v651_v18, 4  ;;  %v656_v23 = vrot.slane %v654_v26, 5  ;;  %v664_v42 = vshrl.u32 %v7800_v12, 16  ;;  %6643 = vmatprep.subr.bf16.mxu0 %v7121_v13  ;;  %v7190_v36 = vld [vmem:[%s7358_s16] sm:$0xf] }
  0x84   : > { %v649_v49 = vsel %vm7390_vm2, %v644_v34, %v648_v15  ;;  %v3007_v50 = vsel %vm7636_vm5, %v3005_v46, %v3006_v62  ;;  %v662_v52 = vrot.slane %v660_v38, 5  ;;  %v670_v53 = vshll.u32 %v286_v19, 16  ;;  %v5601_v15 = vld [vmem:[%s7358_s16 + $0x88] sm:$0xf]  ;;  %v7850_v62 = vld [vmem:[%s7358_s16 + $0x4] sm:$0xf] }
  0x85   : > { %v5408_v45 = vcombine.low %v639_v0, %v649_v49  ;;  %v5712_v14 = vcombine.low %v3004_v33, %v3007_v50  ;;  %v657_v22 = vor.u32 %v656_v23, %v653_v20  ;;  %v666_v51 = vrot.slane %v664_v42, 4  ;;  %v5602_v26 = vld [vmem:[%s7358_s16 + $0x8c] sm:$0x1]  ;;  %v5605_v23 = vld [vmem:[%s7358_s16 + $0x98] sm:$0x1] }
  0x86   : > { %v672_v56 = vrot.slane %v670_v53, 5  ;;  %v5681_v57 = vrot.slane %v5665_v30, 9  ;;  %v3010_v58 = vrot.slane %v7601_v60, 5  ;;  %v3013_v59 = vrot.slane %v7610_v17, 5  ;;  %6644 = vmatpush3.bf16.msra.mxu0 %v7121_v13  ;;  %v7838_v17 = vld [vmem:[%s7358_s16 + $0x80] sm:$0x1] }
  0x87   : > { %6385 = vmatprep.mubr.bf16.mxu1 %v5408_v45  ;;  %6609 = vmatprep.mubr.bf16.mxu0 %v5712_v14  ;;  %v658_v61 = vrot.slane %v657_v22, 4  ;;  %v667_v6 = vor.u32 %v666_v51, %v662_v52  ;;  %v5682_v63 = vrot.slane %v5666_v43, 9  ;;  %v3017_v1 = vrot.slane %v5595_v39, 5  ;;  %v5668_v30 = vld [vmem:[%s7358_s16 + $0x84] sm:$0xe] }
  0x88   : > { %v3011_v7 = vsel %vm7636_vm5, %v5681_v57, %v3010_v58  ;;  %v3012_v10 = vrot.slane %v3010_v58, 4  ;;  %v3020_v60 = vrot.slane %v5596_v55, 5  ;;  %6677 = vmatprep.subr.bf16.mxu0 %v7822_v44  ;;  %v5418_v18 = vcombine.low %v7190_v36, %v7850_v62  ;;  %v5604_v39 = vld [vmem:[%s7358_s16 + $0x94] sm:$0xf]  ;;  %v5669_v42 = vld [vmem:[%s7358_s16 + $0x90] sm:$0xe] }
  0x89   : > { %v663_v19 = vsel %vm7390_vm2, %v658_v61, %v662_v52  ;;  %v668_v13 = vrot.slane %v667_v6, 4  ;;  %v3018_v28 = vsel %vm7636_vm5, %v5682_v63, %v3017_v1  ;;  %v3019_v8 = vrot.slane %v3017_v1, 4  ;;  %v5670_v50 = vld [vmem:[%s7358_s16 + $0x9c] sm:$0xe]  ;;  %v5607_v14 = vld [vmem:[%s7358_s16 + $0xa0] sm:$0xf] }
  0x8a   : > { %v3014_v32 = vsel %vm7636_vm5, %v3012_v10, %v3013_v59  ;;  %v5683_v38 = vrot.slane %v5667_v24, 9  ;;  %v3024_v43 = vrot.slane %v7835_v11, 5  ;;  %v3027_v49 = vrot.slane %v7838_v17, 5  ;;  %v5608_v22 = vld [vmem:[%s7358_s16 + $0xa4] sm:$0x1] }
  0x8b   : > { %v673_v34 = vsel %vm7390_vm2, %v668_v13, %v672_v56  ;;  %v5713_v33 = vcombine.low %v3011_v7, %v3014_v32  ;;  %v3021_v46 = vsel %vm7636_vm5, %v3019_v8, %v3020_v60  ;;  %v5684_v52 = vrot.slane %v5668_v30, 9  ;;  %v5610_v59 = vld [vmem:[%s7358_s16 + $0xac] sm:$0xf]  ;;  %v7874_v61 = vld [vmem:[%s7358_s16 + $0x10] sm:$0xf] }
  0x8c   : > { %v5409_v0 = vcombine.low %v663_v19, %v673_v34  ;;  %v5714_v20 = vcombine.low %v3018_v28, %v3021_v46  ;;  %v3031_v53 = vrot.slane %v5601_v15, 5  ;;  %v3034_v45 = vrot.slane %v5602_v26, 5  ;;  %v7192_v24 = vld [vmem:[%s7358_s16 + $0xc] sm:$0xf]  ;;  %v7194_v8 = vld [vmem:[%s7358_s16 + $0x18] sm:$0xf] }
  0x8d   : > { %6610 = vmatmul.mubr.bf16.gmra.mrb[12].mxu0 %v5713_v33  ;;  %v3025_v51 = vsel %vm7636_vm5, %v5683_v38, %v3024_v43  ;;  %v3026_v55 = vrot.slane %v3024_v43, 4  ;;  %v3038_v58 = vrot.slane %v5604_v39, 5  ;;  %v5419_v6 = vcombine.low %v7192_v24, %v7874_v61  ;;  %v7112_v19 = vld [vmem:[%s9167_s1 + $0x88] sm:$0xff]   ;;  %v7886_v15 = vld [vmem:[%s7358_s16 + $0x1c] sm:$0xf] }
  0x8e   : > { %6386 = vmatmul.mubr.bf16.gmra.mrb[28].mxu1 %v5409_v0  ;;  %6613 = vmatprep.mubr.bf16.mxu0 %v5714_v20  ;;  %v3032_v56 = vsel %vm7636_vm5, %v5684_v52, %v3031_v53  ;;  %v3033_v57 = vrot.slane %v3031_v53, 4  ;;  %v5685_v1 = vrot.slane %v5669_v42, 9  ;;  %v3041_v7 = vrot.slane %v5605_v23, 5  ;;  %v5611_v30 = vld [vmem:[%s7358_s16 + $0xb0] sm:$0x1] }
  0x8f   : > { %6405 = vmatprep.mubr.bf16.mxu1 %v5418_v18  ;;  %v3028_v63 = vsel %vm7636_vm5, %v3026_v55, %v3027_v49  ;;  %v3040_v13 = vrot.slane %v3038_v58, 4  ;;  %v5686_v28 = vrot.slane %v5670_v50, 9  ;;  %v5420_v32 = vcombine.low %v7194_v8, %v7886_v15  ;;  %v5671_v34 = vld [vmem:[%s7358_s16 + $0xa8] sm:$0xe]  ;;  %v5613_v33 = vld [vmem:[%s7358_s16 + $0xb8] sm:$0xf] }
  0x90   : > { %v5715_v10 = vcombine.low %v3025_v51, %v3028_v63  ;;  %v3035_v60 = vsel %vm7636_vm5, %v3033_v57, %v3034_v45  ;;  %v3045_v18 = vrot.slane %v5607_v14, 5  ;;  %v3048_v26 = vrot.slane %v5608_v22, 5  ;;  %v5614_v20 = vld [vmem:[%s7358_s16 + $0xbc] sm:$0x1]  ;;  %v5672_v23 = vld [vmem:[%s7358_s16 + $0xb4] sm:$0xe] }
  0x91   : > { %v5716_v36 = vcombine.low %v3032_v56, %v3035_v60  ;;  %v3052_v38 = vrot.slane %v5610_v59, 5  ;;  %v3039_v39 = vsel %vm7636_vm5, %v5685_v1, %v3038_v58  ;;  %v3042_v0 = vsel %vm7636_vm5, %v3040_v13, %v3041_v7  ;;  %v7116_v50 = vld [vmem:[%s9167_s1 + $0x90] sm:$0xff]   ;;  %v5616_v53 = vld [vmem:[%s7358_s16 + $0xc4] sm:$0xf]  ;;  %v7909_v51 = vld [vmem:[%s7358_s16 + $0x28] sm:$0xf] }
  0x92   : > { %v3047_v46 = vrot.slane %v3045_v18, 4  ;;  %v3046_v42 = vsel %vm7636_vm5, %v5686_v28, %v3045_v18  ;;  %v3059_v49 = vrot.slane %v5613_v33, 5  ;;  %v5687_v52 = vrot.slane %v5671_v34, 9  ;;  %v7196_v22 = vld [vmem:[%s7358_s16 + $0x24] sm:$0xf]  ;;  %v7120_v1 = vld [vmem:[%s9167_s1 + $0x98] sm:$0xff]  }
  0x93   : > { %v5717_v45 = vcombine.low %v3039_v39, %v3042_v0  ;;  %v3054_v14 = vrot.slane %v3052_v38, 4  ;;  %v5421_v55 = vcombine.low %v7196_v22, %v7909_v51  ;;  %v7198_v57 = vld [vmem:[%s7358_s16 + $0x30] sm:$0xf]  ;;  %v7914_v58 = vld [vmem:[%s7358_s16 + $0x34] sm:$0xf]  ;;  %v5688_v24 = vrot.slane %v5672_v23, 9 }
  0x94   : > { %v3049_v43 = vsel %vm7636_vm5, %v3047_v46, %v3048_v26  ;;  %v5422_v59 = vcombine.low %v7198_v57, %v7914_v58  ;;  %v3062_v63 = vrot.slane %v5614_v20, 5  ;;  %v5673_v7 = vld [vmem:[%s7358_s16 + $0xc0] sm:$0xe]  ;;  %v3053_v60 = vsel %vm7636_vm5, %v5687_v52, %v3052_v38  ;;  %v5617_v8 = vld [vmem:[%s7358_s16 + $0xc8] sm:$0x1]  ;;  %v7123_v22 = vld [vmem:[%s7358_s16 + $0x18] sm:$0xff]  }
  0x95   : > { %6614 = vmatmul.mubr.bf16.gmra.mrb[16].mxu0 %v5715_v10  ;;  %v5718_v56 = vcombine.low %v3046_v42, %v3049_v43  ;;  %v3066_v10 = vrot.slane %v5616_v53, 5  ;;  %v3060_v13 = vsel %vm7636_vm5, %v5688_v24, %v3059_v49  ;;  %v5689_v18 = vrot.slane %v5673_v7, 9  ;;  %v7200_v26 = vld [vmem:[%s7358_s16 + $0x3c] sm:$0xf]  ;;  %v7202_v39 = vld [vmem:[%s7358_s16 + $0x48] sm:$0xf] }
  0x96   : > { %6406 = vmatmul.mubr.bf16.vlgmr.msra.gmra.mrb[0].mxu1 %v5419_v6  ;;  %6617 = vmatprep.mubr.bf16.mxu0 %v5716_v36  ;;  %v3061_v6 = vrot.slane %v3059_v49, 4  ;;  %v3069_v38 = vrot.slane %v5617_v8, 5  ;;  %v7940_v0 = vld [vmem:[%s7358_s16 + $0x4c] sm:$0xf]  ;;  %v7137_v49 = vld [vmem:[%s9167_s1 + $0xb0] sm:$0xff]   ;;  %v2419_v52 = vshrl.u32 %v7835_v11, 16 }
  0x97   : > { %6438 = vmatpush3.bf16.msra.mxu1 %v7560_v4  ;;  %6409 = vmatprep.mubr.bf16.mxu1 %v5420_v32  ;;  %v3055_v4 = vrot.slane %v5611_v30, 5  ;;  %v7125_v32 = vld [vmem:[%s9167_s1 + $0xa0] sm:$0xff]   ;;  %v3068_v46 = vrot.slane %v3066_v10, 4  ;;  %v5424_v20 = vcombine.low %v7202_v39, %v7940_v0  ;;  %v7131_v23 = vld [vmem:[%s9167_s1 + $0xa8] sm:$0xff]   ;;  %v3067_v42 = vsel %vm7636_vm5, %v5689_v18, %v3066_v10  ;;  %v7129_v18 = vld [vmem:[%s7358_s16 + $0x30] sm:$0xff]  }
  0x98   : > { %6439 = vmatprep.subr.bf16.mxu1 %v7112_v19  ;;  %v3063_v28 = vsel %vm7636_vm5, %v3061_v6, %v3062_v63  ;;  %v7935_v30 = vld [vmem:[%s7358_s16 + $0x40] sm:$0xf]  ;;  %v7968_v57 = vrot.slane %v2419_v52, 4  ;;  %v7126_v6 = vld [vmem:[%s7358_s16 + $0x24] sm:$0xff]   ;;  %v1329_v7 = vrot.slane %v7874_v61, 5  ;;  %v2425_v8 = vshll.u32 %v7838_v17, 16 }
  0x99   : > { %v5423_v34 = vcombine.low %v7200_v26, %v7935_v30  ;;  %v5720_v33 = vcombine.low %v3060_v13, %v3063_v28  ;;  %v3070_v43 = vsel %vm7636_vm5, %v3068_v46, %v3069_v38  ;;  %v1269_v63 = vld [vmem:[%s7358_s16] sm:$0xe]  ;;  %v1270_v10 = vld [vmem:[%s7358_s16 + $0xc] sm:$0xe]  ;;  %v1336_v13 = vrot.slane %v7886_v15, 5 }
  0x9a   : > { %v5721_v53 = vcombine.low %v3067_v42, %v3070_v43  ;;  %v1272_v61 = vld [vmem:[%s7358_s16 + $0x24] sm:$0xe]  ;;  %v5429_v15 = vcombine.low %v7688_v16, %v7696_v40  ;;  %v5430_v26 = vcombine.low %v7717_v2, %v7720_v3  ;;  %v5442_v17 = vrot.slane %v1269_v63, 9  ;;  %v7208_v38 = vld [vmem:[%s7358_s16 + $0x20] sm:$0x1]  ;;  %v7138_v2 = vld [vmem:[%s7358_s16 + $0x54] sm:$0xff]  }
  0x9b   : > { %6440 = vmatpush3.bf16.msra.mxu1 %v7112_v19  ;;  %v3056_v19 = vsel %vm7636_vm5, %v3054_v14, %v3055_v4  ;;  %v7957_v14 = vld [vmem:[%s7358_s16 + $0x58] sm:$0xf]  ;;  %v1338_v46 = vrot.slane %v1336_v13, 4  ;;  %v1339_v39 = vrot.slane %v7208_v38, 5  ;;  %v7209_v43 = vld [vmem:[%s7358_s16 + $0x2c] sm:$0x1] }
  0x9c   : > { %6441 = vmatprep.subr.bf16.mxu1 %v7116_v50  ;;  %v5719_v36 = vcombine.low %v3053_v60, %v3056_v19  ;;  %v7983_v60 = vld [vmem:[%s9167_s1 + $0xc0] sm:$0xff]   ;;  %v1271_v19 = vld [vmem:[%s7358_s16 + $0x18] sm:$0xe]  ;;  %v7212_v38 = vld [vmem:[%s7358_s16 + $0x50] sm:$0x1]  ;;  %v1371_v16 = vrot.slane %v7957_v14, 5 }
  0x9d   : > { %6618 = vmatmul.mubr.bf16.gmra.mrb[20].mxu0 %v5717_v45  ;;  %v7204_v45 = vld [vmem:[%s7358_s16 + $0x54] sm:$0xf]  ;;  %v8106_v40 = vld [vmem:[%s7358_s16 + $0x64] sm:$0xf] }
  0x9e   : > { %6410 = vmatmul.mubr.bf16.gmra.mrb[4].mxu1 %v5421_v55  ;;  %6621 = vmatprep.mubr.bf16.mxu0 %v5718_v56  ;;  %v5425_v4 = vcombine.low %v7204_v45, %v7957_v14  ;;  %v5426_v55 = vcombine.low %v7614_v25, %v7617_v35  ;;  %v7143_v56 = vld [vmem:[%s9167_s1 + $0xb8] sm:$0xff]   ;;  %v7207_v25 = vld [vmem:[%s7358_s16 + $0x14] sm:$0x1]  ;;  %v7141_v3 = vld [vmem:[%s7358_s16 + $0x60] sm:$0xff]  }
  0x9f   : > { %6413 = vmatprep.mubr.bf16.mxu1 %v5422_v59  ;;  %6442 = vmatpush3.bf16.msra.mxu1 %v7116_v50  ;;  %v2415_v50 = vshll.u32 %v7835_v11, 16  ;;  %v7971_v59 = vld [vmem:[%s7358_s16 + $0x8] sm:$0x1]  ;;  %v1332_v35 = vrot.slane %v7207_v25, 5 }
  0xa0   : > { %6443 = vmatprep.subr.bf16.mxu1 %v7120_v1  ;;  %v1325_v24 = vrot.slane %v7971_v59, 5 }
  0xa1   : > { %v7966_v11 = vrot.slane %v2415_v50, 5 }
  0xa3   : > { %6444 = vmatpush3.bf16.msra.mxu1 %v7120_v1  ;;  %v1322_v1 = vrot.slane %v7850_v62, 5  ;;  %v5427_v62 = vcombine.low %v7632_v5, %v7644_v21  ;;  %v5443_v21 = vrot.slane %v1270_v10, 9  ;;  %v5802_v10 = vld [vmem:[%s7358_s16 + $0x18] sm:$0xf] }
  0xa4   : > { %6445 = vmatprep.subr.bf16.mxu1 %v7125_v32 }
  0xa5   : > { %6622 = vmatmul.mubr.bf16.gmra.mrb[24].mxu0 %v5719_v36  ;;  %v5428_v36 = vcombine.low %v7655_v47, %v7666_v54  ;;  %v1324_v5 = vrot.slane %v1322_v1, 4  ;;  %v7133_v47 = vld [vmem:[%s9167_s1 + $0x1c8] sm:$0xff]   ;;  %v5444_v54 = vrot.slane %v1271_v19, 9  ;;  %v8026_v59 = vsel %vm7636_vm5, %v5442_v17, %v1322_v1  ;;  %v5803_v19 = vld [vmem:[%s7358_s16 + $0x1c] sm:$0xf] }
  0xa6   : > { %6414 = vmatmul.mubr.bf16.gmra.mrb[8].mxu1 %v5423_v34  ;;  %6625 = vmatprep.mubr.bf16.mxu0 %v5720_v33  ;;  %v1350_v34 = vrot.slane %v7914_v58, 5  ;;  %v1331_v33 = vrot.slane %v1329_v7, 4  ;;  %v5445_v58 = vrot.slane %v1272_v61, 9  ;;  %v1364_v1 = vrot.slane %v7940_v0, 5  ;;  %v7135_v0 = vld [vmem:[%s7358_s16 + $0x48] sm:$0xff]  }
  0xa7   : > { %6417 = vmatprep.mubr.bf16.mxu1 %v5424_v20  ;;  %6446 = vmatpush3.bf16.msra.mxu1 %v7125_v32  ;;  %v1343_v32 = vrot.slane %v7909_v51, 5  ;;  %v1273_v51 = vld [vmem:[%s7358_s16 + $0x30] sm:$0xe]  ;;  %v5431_v20 = vcombine.low %v7738_v31, %v7747_v48  ;;  %v8034_v25 = vsel %vm7636_vm5, %v1324_v5, %v1325_v24  ;;  %v8042_v63 = vsel %vm7636_vm5, %v5444_v54, %v1336_v13  ;;  %v1275_v13 = vld [vmem:[%s7358_s16 + $0x48] sm:$0xe] }
  0xa8   : > { %6447 = vmatprep.subr.bf16.mxu1 %v7131_v23  ;;  %v5446_v50 = vrot.slane %v1273_v51, 9  ;;  %v1352_v52 = vrot.slane %v1350_v34, 4  ;;  %v3829_v5 = vshrl.u32 %v5802_v10, 16  ;;  %v3842_v51 = vshrl.u32 %v5803_v19, 16  ;;  %v7144_v48 = vld [vmem:[%s7358_s16 + $0x6c] sm:$0xff]  }
  0xa9   : > { %v1345_v42 = vrot.slane %v1343_v32, 4  ;;  %v8054_v24 = vsel %vm7636_vm5, %v5445_v58, %v1343_v32  ;;  %v7211_v32 = vld [vmem:[%s7358_s16 + $0x44] sm:$0x1]  ;;  %v5448_v54 = vrot.slane %v1275_v13, 9  ;;  %v5806_v13 = vld [vmem:[%s7358_s16 + $0x28] sm:$0xf] }
  0xaa   : > { %v8064_v61 = vsel %vm7636_vm5, %v5446_v50, %v1350_v34  ;;  %v1360_v17 = vrot.slane %v7211_v32, 5  ;;  %v5804_v50 = vld [vmem:[%s7358_s16 + $0x20] sm:$0x1]  ;;  %v1277_v32 = vld [vmem:[%s7358_s16 + $0x60] sm:$0xe] }
  0xab   : > { %6448 = vmatpush3.bf16.msra.mxu1 %v7131_v23  ;;  %v5432_v23 = vcombine.low %v7772_v27, %v7775_v29 }
  0xac   : > { %6449 = vmatprep.subr.bf16.mxu1 %v7137_v49 }
  0xad   : > { %6626 = vmatmul.mubr.bf16.gmra.mrb[28].mxu0 %v5721_v53  ;;  %v7210_v53 = vld [vmem:[%s7358_s16 + $0x38] sm:$0x1] }
  0xae   : > { %6418 = vmatmul.mubr.bf16.gmra.mrb[12].mxu1 %v5425_v4  ;;  %6645 = vmatprep.mubr.bf16.mxu0 %v7123_v22  ;;  %v1353_v45 = vrot.slane %v7210_v53, 5  ;;  %v1274_v4 = vld [vmem:[%s7358_s16 + $0x3c] sm:$0xe]  ;;  %v1357_v22 = vrot.slane %v7935_v30, 5  ;;  %v8030_v30 = vsel %vm7636_vm5, %v5443_v21, %v1329_v7  ;;  %v3832_v21 = vshll.u32 %v5802_v10, 16  ;;  %v7149_v53 = vld [vmem:[%s9167_s1 + $0x1e0] sm:$0xff]  }
  0xaf   : > { %6421 = vmatprep.mubr.bf16.mxu1 %v5426_v55  ;;  %6450 = vmatpush3.bf16.msra.mxu1 %v7137_v49  ;;  %v1346_v49 = vrot.slane %v7209_v43, 5  ;;  %v8017_v55 = vrot.slane %v2425_v8, 5  ;;  %v7132_v7 = vld [vmem:[%s7358_s16 + $0x3c] sm:$0xff]   ;;  %v8050_v8 = vsel %vm7636_vm5, %v1338_v46, %v1339_v39  ;;  %v1366_v46 = vrot.slane %v1364_v1, 4  ;;  %v5808_v43 = vld [vmem:[%s7358_s16 + $0x30] sm:$0xf] }
  0xb0   : > { %6451 = vmatprep.subr.bf16.mxu1 %v7143_v56  ;;  %v1367_v39 = vrot.slane %v7212_v38, 5  ;;  %v3831_v10 = vrot.slane %v3829_v5, 4 }
  0xb1   : > { %9188 = vst [vmem:[#allocation2_spill] sm:$0xff] %v8017_v55 }
  0xb3   : > { %6452 = vmatpush3.bf16.msra.mxu1 %v7143_v56  ;;  %v7139_v56 = vld [vmem:[%s9167_s1 + $0x1d0] sm:$0xff]  }
  0xb4   : > { %6485 = vmatprep.subr.bf16.mxu1 %v7983_v60 }
  0xb5   : > { %6646 = vmatmul.mubr.bf16.vlgmr.msra.gmra.mrb[0].mxu0 %v7126_v6  ;;  %v8038_v6 = vsel %vm7636_vm5, %v1331_v33, %v1332_v35  ;;  %v8058_v35 = vsel %vm7636_vm5, %v1345_v42, %v1346_v49  ;;  %v3838_v33 = vshll.u32 %v5803_v19, 16  ;;  %v3834_v19 = vrot.slane %v3832_v21, 5  ;;  %v1278_v21 = vld [vmem:[%s7358_s16 + $0x6c] sm:$0xe] }
  0xb6   : > { %6422 = vmatmul.mubr.bf16.gmra.mrb[16].mxu1 %v5427_v62  ;;  %6678 = vmatpush3.bf16.msra.mxu0 %v7822_v44  ;;  %v5447_v62 = vrot.slane %v1274_v4, 9  ;;  %v5451_v58 = vrot.slane %v1278_v21, 9 }
  0xb7   : > { %6425 = vmatprep.mubr.bf16.mxu1 %v5428_v36  ;;  %6649 = vmatprep.mubr.bf16.mxu0 %v7129_v18  ;;  %v8068_v36 = vsel %vm7636_vm5, %v1352_v52, %v1353_v45  ;;  %v1359_v18 = vrot.slane %v1357_v22, 4  ;;  %v5805_v52 = vld [vmem:[%s7358_s16 + $0x24] sm:$0xf]  ;;  %v3866_v45 = vshrl.u32 %v5806_v13, 16 }
  0xb8   : > { %6679 = vmatprep.subr.bf16.mxu0 %v7133_v47  ;;  %v8085_v49 = vsel %vm7636_vm5, %v5447_v62, %v1357_v22  ;;  %v8102_v22 = vld [vmem:[%s7358_s16 + $0x54] sm:$0xe]  ;;  %v3844_v62 = vrot.slane %v3842_v51, 4  ;;  %v3853_v38 = vshrl.u32 %v5805_v52, 16  ;;  %v3856_v28 = vshll.u32 %v5805_v52, 16 }
  0xb9   : > { %v8099_v4 = vsel %vm7636_vm5, %v1359_v18, %v1360_v17  ;;  %v3848_v17 = vshll.u32 %v5804_v50, 16  ;;  %v5449_v5 = vrot.slane %v8102_v22, 9  ;;  %v7153_v50 = vld [vmem:[%s9167_s1 + $0x1e8] sm:$0xff]   ;;  %v1373_v52 = vrot.slane %v1371_v16, 4 }
  0xba   : > { %6680 = vmatpush3.bf16.msra.mxu0 %v7133_v47  ;;  %v7145_v47 = vld [vmem:[%s9167_s1 + $0x1d8] sm:$0xff]   ;;  %v3835_v22 = vor.u32 %v3834_v19, %v3831_v10  ;;  %v3855_v34 = vrot.slane %v3853_v38, 4  ;;  %v3858_v44 = vrot.slane %v3856_v28, 5  ;;  %v7217_v10 = vld [vmem:[%s7358_s16 + $0x74] sm:$0x1]  ;;  %v3868_v28 = vrot.slane %v3866_v45, 4 }
  0xbb   : > { %6681 = vmatprep.subr.bf16.mxu0 %v7139_v56  ;;  %v8140_v42 = vrot.slane %v3848_v17, 5  ;;  %v1388_v19 = vrot.slane %v7217_v10, 5  ;;  %v3877_v38 = vshrl.u32 %v5808_v43, 16  ;;  %v8165_v27 = vsel %vm7636_vm5, %v5449_v5, %v1371_v16 }
  0xbc   : > { %v3836_v21 = vrot.slane %v3835_v22, 4 }
  0xbd   : > { %6650 = vmatmul.mubr.bf16.gmra.mrb[4].mxu0 %v7132_v7  ;;  %v8112_v7 = vrot.slane %v3838_v33, 5  ;;  %v7215_v33 = vld [vmem:[%s7358_s16 + $0x70] sm:$0xf] }
  0xbe   : > { %6426 = vmatmul.mubr.bf16.gmra.mrb[20].mxu1 %v5429_v15  ;;  %6653 = vmatprep.mubr.bf16.mxu0 %v7135_v0  ;;  %v1378_v15 = vrot.slane %v8106_v40, 5  ;;  %v7214_v0 = vld [vmem:[%s7358_s16 + $0x5c] sm:$0x1]  ;;  %v1385_v51 = vrot.slane %v7215_v33, 5 }
  0xbf   : > { %6429 = vmatprep.mubr.bf16.mxu1 %v5430_v26  ;;  %6682 = vmatpush3.bf16.msra.mxu0 %v7139_v56  ;;  %v1374_v18 = vrot.slane %v7214_v0, 5  ;;  %v8121_v26 = vsel %vm7636_vm5, %v5448_v54, %v1364_v1  ;;  %v8125_v56 = vsel %vm7636_vm5, %v1366_v46, %v1367_v39  ;;  %v7216_v1 = vld [vmem:[%s7358_s16 + $0x68] sm:$0x1]  ;;  %v3862_v0 = vshll.u32 %v5806_v13, 16  ;;  %v7161_v40 = vld [vmem:[%s9167_s1 + $0x1f8] sm:$0xff]  }
  0xc0   : > { %6683 = vmatprep.subr.bf16.mxu0 %v7145_v47  ;;  %v1381_v54 = vrot.slane %v7216_v1, 5  ;;  %v5450_v46 = vrot.slane %v1277_v32, 9  ;;  %v1380_v39 = vrot.slane %v1378_v15, 4  ;;  %v3845_v33 = vor.u32 %v3844_v62, %v8112_v7  ;;  %v5809_v1 = vld [vmem:[%s7358_s16 + $0x34] sm:$0xf] }
  0xc1   : > { %v1387_v32 = vrot.slane %v1385_v51, 4  ;;  %v5807_v62 = vld [vmem:[%s7358_s16 + $0x2c] sm:$0x1]  ;;  %v8152_v17 = vrot.slane %v3862_v0, 5  ;;  %v3886_v13 = vshll.u32 %v5809_v1, 16  ;;  %v3890_v31 = vshrl.u32 %v5809_v1, 16 }
  0xc2   : > { %v3846_v10 = vrot.slane %v3845_v33, 4  ;;  %v8169_v29 = vsel %vm7636_vm5, %v1373_v52, %v1374_v18  ;;  %v8176_v45 = vsel %vm7636_vm5, %v5450_v46, %v1378_v15  ;;  %v8180_v14 = vsel %vm7636_vm5, %v1380_v39, %v1381_v54  ;;  %v1279_v18 = vld [vmem:[%s7358_s16 + $0x78] sm:$0xe] }
  0xc3   : > { %6684 = vmatpush3.bf16.msra.mxu0 %v7145_v47  ;;  %v8184_v16 = vsel %vm7636_vm5, %v5451_v58, %v1385_v51  ;;  %v8194_v15 = vsel %vm7636_vm5, %v1387_v32, %v1388_v19  ;;  %v3869_v5 = vor.u32 %v3868_v28, %v8152_v17  ;;  %v3879_v52 = vrot.slane %v3877_v38, 4  ;;  %v5811_v58 = vld [vmem:[%s7358_s16 + $0x3c] sm:$0xf]  ;;  %v5812_v51 = vld [vmem:[%s7358_s16 + $0x40] sm:$0xf] }
  0xc4   : > { %6685 = vmatprep.subr.bf16.mxu0 %v7149_v53  ;;  %v3841_v0 = vsel %vm7390_vm2, %v3836_v21, %v8112_v7  ;;  %v3851_v46 = vsel %vm7390_vm2, %v3846_v10, %v8140_v42  ;;  %v8205_v39 = vrot.slane %v3886_v13, 5  ;;  %v3892_v22 = vrot.slane %v3890_v31, 4  ;;  %v7219_v19 = vld [vmem:[%s7358_s16 + $0x80] sm:$0x1]  ;;  %v8364_v47 = vld [vmem:[%s7358_s16 + $0x68] sm:$0x1] }
  0xc5   : > { %6654 = vmatmul.mubr.bf16.gmra.mrb[8].mxu0 %v7138_v2  ;;  %v3880_v2 = vshll.u32 %v5808_v43, 16  ;;  %v3872_v43 = vshll.u32 %v5807_v62, 16  ;;  %v5452_v32 = vrot.slane %v1279_v18, 9  ;;  %v1280_v62 = vld [vmem:[%s7358_s16 + $0x84] sm:$0xe]  ;;  %v3901_v28 = vshrl.u32 %v5811_v58, 16 }
  0xc6   : > { %6430 = vmatmul.mubr.bf16.gmra.mrb[24].mxu1 %v5431_v20  ;;  %6657 = vmatprep.mubr.bf16.mxu0 %v7141_v3  ;;  %v7157_v20 = vld [vmem:[%s9167_s1 + $0x1f0] sm:$0xff]   ;;  %v7218_v3 = vld [vmem:[%s7358_s16 + $0x7c] sm:$0xf]  ;;  %v3904_v7 = vshll.u32 %v5811_v58, 16  ;;  %v3910_v38 = vshll.u32 %v5812_v51, 16  ;;  %v9189_v42 = vcombine.low %v7795_v41, %v7800_v12  ;;  %v8216_v13 = vrot.slane %v3869_v5, 4 }
  0xc7   : > { %6433 = vmatprep.mubr.bf16.mxu1 %v5432_v23  ;;  %6686 = vmatpush3.bf16.msra.mxu0 %v7149_v53  ;;  %v3859_v23 = vor.u32 %v3858_v44, %v3855_v34  ;;  %v7146_v53 = vld [vmem:[%s7358_s16 + $0x78] sm:$0xff]   ;;  %v1392_v44 = vrot.slane %v7218_v3, 5  ;;  %v3882_v54 = vrot.slane %v3880_v2, 5  ;;  %v8209_v1 = vrot.slane %v3872_v43, 5  ;;  %v8221_v21 = vld [vmem:[%s9167_s1 + $0x200] sm:$0xff]   ;;  %9197 = vst [vmem:[#allocation5_spill] sm:$0xff] %v8364_v47 }
  0xc8   : > { %6687 = vmatprep.subr.bf16.mxu0 %v7153_v50  ;;  %v5810_v34 = vld [vmem:[%s7358_s16 + $0x38] sm:$0x1]  ;;  %v3914_v2 = vshrl.u32 %v5812_v51, 16  ;;  %v7148_v43 = vld [vmem:[%s7358_s16 + $0x84] sm:$0xff]   ;;  %v3893_v12 = vor.u32 %v3892_v22, %v8205_v39  ;;  %v3906_v58 = vrot.slane %v3904_v7, 5  ;;  %v8243_v51 = vrot.slane %v3910_v38, 5 }
  0xc9   : > { %v8207_v33 = vrot.slane %v3859_v23, 4  ;;  %v1394_v10 = vrot.slane %v1392_v44, 4  ;;  %v3883_v31 = vor.u32 %v3882_v54, %v3879_v52  ;;  %v9190_v23 = vcombine.low %v8026_v59, %v8034_v25  ;;  %v7220_v18 = vld [vmem:[%s7358_s16 + $0x88] sm:$0xf]  ;;  %v5813_v5 = vld [vmem:[%s7358_s16 + $0x44] sm:$0x1] }
  0xca   : > { %v1399_v3 = vrot.slane %v7220_v18, 5  ;;  %v8234_v59 = vcombine.low %v3841_v0, %v3851_v46  ;;  %v5814_v52 = vld [vmem:[%s7358_s16 + $0x48] sm:$0xf]  ;;  %v3903_v54 = vrot.slane %v3901_v28, 4  ;;  %v3916_v22 = vrot.slane %v3914_v2, 4 }
  0xcb   : > { %6688 = vmatpush3.bf16.msra.mxu0 %v7153_v50  ;;  %v1395_v50 = vrot.slane %v7219_v19, 5  ;;  %v7150_v19 = vld [vmem:[%s7358_s16 + $0x90] sm:$0xff]   ;;  %v3865_v0 = vsel %vm7390_vm2, %v8207_v33, %v8152_v17  ;;  %v3884_v46 = vrot.slane %v3883_v31, 4  ;;  %v3875_v28 = vsel %vm7390_vm2, %v8216_v13, %v8209_v1  ;;  %v8265_v33 = vld [vmem:[%s7358_s16 + $0x58] sm:$0xf]  ;;  %v7151_v31 = vld [vmem:[%s9167_s1 + $0xc8] sm:$0xff]  }
  0xcc   : > { %6689 = vmatprep.subr.bf16.mxu0 %v7157_v20  ;;  %v3894_v38 = vrot.slane %v3893_v12, 4  ;;  %v1401_v2 = vrot.slane %v1399_v3, 4  ;;  %v5817_v17 = vld [vmem:[%s7358_s16 + $0x54] sm:$0xf]  ;;  %v3920_v1 = vshll.u32 %v5813_v5, 16  ;;  %v3925_v13 = vshrl.u32 %v5814_v52, 16 }
  0xcd   : > { %6658 = vmatmul.mubr.bf16.gmra.mrb[12].mxu0 %v7144_v48  ;;  %v3896_v48 = vshll.u32 %v5810_v34, 16  ;;  %v8261_v7 = vsel %vm7636_vm5, %v1394_v10, %v1395_v50  ;;  %v3928_v50 = vshll.u32 %v5814_v52, 16  ;;  %v3907_v10 = vor.u32 %v3906_v58, %v3903_v54  ;;  %v7152_v54 = vld [vmem:[%s7358_s16 + $0x9c] sm:$0xff]   ;;  %v7226_v41 = vld [vmem:[%s7358_s16 + $0xac] sm:$0xf] }
  0xce   : > { %6434 = vmatmul.mubr.bf16.gmra.mrb[28].mxu1 %v9189_v42  ;;  %6661 = vmatprep.mubr.bf16.mxu0 %v7146_v53  ;;  %v5453_v53 = vrot.slane %v1280_v62, 9  ;;  %v7221_v42 = vld [vmem:[%s7358_s16 + $0x8c] sm:$0x1]  ;;  %v3958_v5 = vshll.u32 %v8265_v33, 16  ;;  %v9192_v52 = vcombine.low %v8042_v63, %v8050_v8  ;;  %v8301_v63 = vld [vmem:[%s7358_s16 + $0x50] sm:$0x1] }
  0xcf   : > { %6453 = vmatprep.mubr.bf16.mxu1 %v9190_v23  ;;  %6690 = vmatpush3.bf16.msra.mxu0 %v7157_v20  ;;  %v8240_v20 = vsel %vm7636_vm5, %v5452_v32, %v1392_v44  ;;  %v3898_v62 = vrot.slane %v3896_v48, 5  ;;  %v1402_v23 = vrot.slane %v7221_v42, 5  ;;  %v1281_v44 = vld [vmem:[%s7358_s16 + $0x90] sm:$0xe]  ;;  %v8253_v32 = vld [vmem:[%s7358_s16 + $0x4c] sm:$0xf]  ;;  %v3917_v48 = vor.u32 %v3916_v22, %v8243_v51 }
  0xd0   : > { %6691 = vmatprep.subr.bf16.mxu0 %v7161_v40  ;;  %v3934_v12 = vshll.u32 %v8253_v32, 16  ;;  %v3938_v18 = vshrl.u32 %v8253_v32, 16  ;;  %v9191_v42 = vcombine.low %v8030_v30, %v8038_v6  ;;  %v7155_v30 = vld [vmem:[%s9167_s1 + $0xd0] sm:$0xff]   ;;  %v3889_v6 = vsel %vm7390_vm2, %v3884_v46, %v8205_v39  ;;  %v7154_v8 = vld [vmem:[%s7358_s16 + $0xa8] sm:$0xff]   ;;  %v8308_v39 = vld [vmem:[%s7358_s16 + $0x5c] sm:$0x1] }
  0xd1   : > { %v3899_v58 = vsel %vm7390_vm2, %v3894_v38, %v3898_v62  ;;  %v5454_v22 = vrot.slane %v1281_v44, 9  ;;  %v3930_v25 = vrot.slane %v3928_v50, 5  ;;  %9193 = vst [vmem:[#allocation3_spill] sm:$0xff] %v8308_v39  ;;  %v3908_v46 = vrot.slane %v3907_v10, 4 }
  0xd2   : > { %v3918_v62 = vrot.slane %v3917_v48, 4  ;;  %v8310_v38 = vrot.slane %v3934_v12, 5  ;;  %v8312_v34 = vrot.slane %v3958_v5, 5  ;;  %v8317_v50 = vcombine.low %v3865_v0, %v3875_v28  ;;  %v5820_v28 = vld [vmem:[%s7358_s16 + $0x60] sm:$0xf] }
  0xd3   : > { %6692 = vmatpush3.bf16.msra.mxu0 %v7161_v40  ;;  %v8273_v40 = vsel %vm7636_vm5, %v5453_v53, %v1399_v3  ;;  %v3949_v53 = vshrl.u32 %v5817_v17, 16  ;;  %v3952_v3 = vshll.u32 %v5817_v17, 16  ;;  %v7222_v17 = vld [vmem:[%s7358_s16 + $0x94] sm:$0xf]  ;;  %v8321_v48 = vcombine.low %v3889_v6, %v3899_v58 }
  0xd4   : > { %6725 = vmatprep.subr.bf16.mxu0 %v8221_v21  ;;  %v3944_v0 = vshll.u32 %v8301_v63, 16  ;;  %v3913_v6 = vsel %vm7390_vm2, %v3908_v46, %v8243_v51  ;;  %v9196_v46 = vcombine.low %v8064_v61, %v8068_v36 }
  0xd5   : > { %6662 = vmatmul.mubr.bf16.gmra.mrb[16].mxu0 %v7148_v43  ;;  %v3962_v43 = vshrl.u32 %v8265_v33, 16  ;;  %v3951_v44 = vrot.slane %v3949_v53, 4  ;;  %v7223_v53 = vld [vmem:[%s7358_s16 + $0x98] sm:$0x1] }
  0xd6   : > { %6454 = vmatmul.mubr.bf16.vlgmr.msra.gmra.mrb[0].mxu1 %v9191_v42  ;;  %6665 = vmatprep.mubr.bf16.mxu0 %v7150_v19  ;;  %v8304_v19 = vrot.slane %v3920_v1, 5  ;;  %v1406_v42 = vrot.slane %v7222_v17, 5  ;;  %v7224_v17 = vld [vmem:[%s7358_s16 + $0xa0] sm:$0xf]  ;;  %v3946_v36 = vrot.slane %v3944_v0, 5 }
  0xd7   : > { %6486 = vmatpush3.bf16.msra.mxu1 %v7983_v60  ;;  %6457 = vmatprep.mubr.bf16.mxu1 %v9192_v52  ;;  %v8298_v60 = vsel %vm7636_vm5, %v1401_v2, %v1402_v23  ;;  %v3927_v52 = vrot.slane %v3925_v13, 4  ;;  %v3940_v23 = vrot.slane %v3938_v18, 4  ;;  %v3954_v2 = vrot.slane %v3952_v3, 5  ;;  %v7159_v13 = vld [vmem:[%s9167_s1 + $0xd8] sm:$0xff]  }
  0xd8   : > { %6487 = vmatprep.subr.bf16.mxu1 %v7151_v31  ;;  %v3964_v1 = vrot.slane %v3962_v43, 4  ;;  %v1282_v18 = vld [vmem:[%s7358_s16 + $0x9c] sm:$0xe]  ;;  %v1409_v3 = vrot.slane %v7223_v53, 5  ;;  %v8334_v43 = vld [vmem:[%s7358_s16 + $0x64] sm:$0xf] }
  0xd9   : > { %v3931_v5 = vor.u32 %v3930_v25, %v3927_v52  ;;  %9194 = vst [vmem:[#allocation4_spill] sm:$0xff] %v8334_v43  ;;  %v3941_v58 = vor.u32 %v3940_v23, %v8310_v38  ;;  %v1413_v12 = vrot.slane %v7224_v17, 5  ;;  %v9195_v25 = vcombine.low %v8054_v24, %v8058_v35  ;;  %v7156_v23 = vld [vmem:[%s7358_s16 + $0xb4] sm:$0xff]   ;;  %v7162_v24 = vld [vmem:[%s9167_s1 + $0xe0] sm:$0xff]   ;;  %v5823_v17 = vld [vmem:[%s7358_s16 + $0x6c] sm:$0xf] }
  0xda   : > { %v1408_v52 = vrot.slane %v1406_v42, 4  ;;  %v3955_v53 = vor.u32 %v3954_v2, %v3951_v44  ;;  %v3965_v51 = vor.u32 %v3964_v1, %v8312_v34  ;;  %v3973_v35 = vshrl.u32 %v5820_v28, 16  ;;  %v7225_v2 = vld [vmem:[%s7358_s16 + $0xa4] sm:$0x1] }
  0xdb   : > { %6488 = vmatpush3.bf16.msra.mxu1 %v7151_v31  ;;  %v8328_v31 = vsel %vm7636_vm5, %v5454_v22, %v1406_v42  ;;  %v3968_v22 = vshll.u32 %v8308_v39, 16  ;;  %v3986_v42 = vshrl.u32 %v8334_v43, 16  ;;  %v3932_v61 = vrot.slane %v3931_v5, 4  ;;  %v8503_v39 = vld [vmem:[%s7358_s16 + $0x98] sm:$0x1] }
  0xdc   : > { %6489 = vmatprep.subr.bf16.mxu1 %v7155_v30  ;;  %v5455_v44 = vrot.slane %v1282_v18, 9  ;;  %v1416_v1 = vrot.slane %v7225_v2, 5  ;;  %v3956_v5 = vrot.slane %v3955_v53, 4  ;;  %v3966_v18 = vrot.slane %v3965_v51, 4  ;;  %9210 = vst [vmem:[#allocation14_spill] sm:$0xff] %v8503_v39 }
  0xdd   : > { %6666 = vmatmul.mubr.bf16.gmra.mrb[20].mxu0 %v7152_v54  ;;  %v3923_v54 = vsel %vm7390_vm2, %v3918_v62, %v8304_v19  ;;  %v3982_v19 = vshll.u32 %v8334_v43, 16  ;;  %v7158_v62 = vld [vmem:[%s7358_s16 + $0xc0] sm:$0xff]   ;;  %v3970_v10 = vrot.slane %v3968_v22, 5  ;;  %v8370_v43 = vsel %vm7636_vm5, %v1408_v52, %v1409_v3 }
  0xde   : > { %6458 = vmatmul.mubr.bf16.gmra.mrb[4].mxu1 %v9195_v25  ;;  %6669 = vmatprep.mubr.bf16.mxu0 %v7154_v8  ;;  %v3976_v8 = vshll.u32 %v5820_v28, 16  ;;  %v3942_v25 = vrot.slane %v3941_v58, 4  ;;  %v1420_v28 = vrot.slane %v7226_v41, 5  ;;  %v8366_v55 = vcombine.low %v3913_v6, %v3923_v54  ;;  %v7164_v41 = vld [vmem:[%s9167_s1 + $0xe8] sm:$0xff]  }
  0xdf   : > { %6461 = vmatprep.mubr.bf16.mxu1 %v9196_v46  ;;  %6490 = vmatpush3.bf16.msra.mxu1 %v7155_v30  ;;  %v1283_v30 = vld [vmem:[%s7358_s16 + $0xa8] sm:$0xe]  ;;  %v1415_v46 = vrot.slane %v1413_v12, 4  ;;  %v3975_v0 = vrot.slane %v3973_v35, 4  ;;  %v8372_v58 = vrot.slane %v3982_v19, 5  ;;  %v3988_v22 = vrot.slane %v3986_v42, 4 }
  0xe0   : > { %6491 = vmatprep.subr.bf16.mxu1 %v7159_v13  ;;  %v3978_v2 = vrot.slane %v3976_v8, 5  ;;  %v3937_v3 = vsel %vm7390_vm2, %v3932_v61, %v8310_v38  ;;  %v8382_v6 = vsel %vm7636_vm5, %v5455_v44, %v1413_v12  ;;  %v3997_v54 = vshrl.u32 %v5823_v17, 16  ;;  %v7227_v38 = vld [vmem:[%s7358_s16 + $0xb0] sm:$0x1]  ;;  %v1284_v19 = vld [vmem:[%s7358_s16 + $0xb4] sm:$0xe] }
  0xe1   : > { %v4000_v52 = vshll.u32 %v5823_v17, 16  ;;  %v3947_v53 = vsel %vm7390_vm2, %v3942_v25, %v3946_v36  ;;  %v8391_v51 = vsel %vm7636_vm5, %v1415_v46, %v1416_v1  ;;  %v5456_v35 = vrot.slane %v1283_v30, 9  ;;  %v8413_v30 = vld [vmem:[%s7358_s16 + $0x74] sm:$0x1]  ;;  %v7228_v25 = vld [vmem:[%s7358_s16 + $0xb8] sm:$0xf] }
  0xe2   : > { %v1423_v8 = vrot.slane %v7227_v38, 5  ;;  %v9199_v12 = vcombine.low %v8085_v49, %v8099_v4  ;;  %v3961_v42 = vsel %vm7390_vm2, %v3956_v5, %v8312_v34  ;;  %v3971_v61 = vsel %vm7390_vm2, %v3966_v18, %v3970_v10  ;;  %v7160_v4 = vld [vmem:[%s7358_s16 + $0xcc] sm:$0xff]   ;;  %9201 = vst [vmem:[#allocation7_spill] sm:$0xff] %v8413_v30  ;;  %v5829_v38 = vld [vmem:[%s7358_s16 + $0x84] sm:$0xf] }
  0xe3   : > { %6492 = vmatpush3.bf16.msra.mxu1 %v7159_v13  ;;  %v8385_v13 = vld [vmem:[%s7358_s16 + $0x70] sm:$0xf]  ;;  %v1422_v36 = vrot.slane %v1420_v28, 4  ;;  %v3992_v44 = vshll.u32 %v8364_v47, 16  ;;  %v9200_v49 = vcombine.low %v8121_v26, %v8125_v56  ;;  %v3989_v1 = vor.u32 %v3988_v22, %v8372_v58  ;;  %v8430_v22 = vld [vmem:[%s7358_s16 + $0x7c] sm:$0xf] }
  0xe4   : > { %6493 = vmatprep.subr.bf16.mxu1 %v7162_v24  ;;  %9198 = vst [vmem:[#allocation6_spill] sm:$0xff] %v8385_v13  ;;  %v4006_v34 = vshll.u32 %v8385_v13, 16  ;;  %v4010_v10 = vshrl.u32 %v8385_v13, 16  ;;  %v5457_v17 = vrot.slane %v1284_v19, 9  ;;  %v1427_v46 = vrot.slane %v7228_v25, 5  ;;  %9202 = vst [vmem:[#allocation8_spill] sm:$0xff] %v8430_v22 }
  0xe5   : > { %6670 = vmatmul.mubr.bf16.gmra.mrb[24].mxu0 %v7156_v23  ;;  %v7166_v23 = vld [vmem:[%s9167_s1 + $0xf0] sm:$0xff]   ;;  %v3999_v26 = vrot.slane %v3997_v54, 4  ;;  %v4002_v56 = vrot.slane %v4000_v52, 5  ;;  %v8421_v18 = vcombine.low %v3937_v3, %v3947_v53  ;;  %v8433_v19 = vcombine.low %v3961_v42, %v3971_v61  ;;  %v7229_v3 = vld [vmem:[%s7358_s16 + $0xbc] sm:$0x1] }
  0xe6   : > { %6462 = vmatmul.mubr.bf16.gmra.mrb[8].mxu1 %v9199_v12  ;;  %6673 = vmatprep.mubr.bf16.mxu0 %v7158_v62  ;;  %v3979_v62 = vor.u32 %v3978_v2, %v3975_v0  ;;  %v8427_v2 = vsel %vm7636_vm5, %v5456_v35, %v1420_v28  ;;  %v8437_v54 = vsel %vm7636_vm5, %v1422_v36, %v1423_v8  ;;  %v8439_v52 = vrot.slane %v3992_v44, 5  ;;  %v7168_v12 = vld [vmem:[%s9167_s1 + $0xf8] sm:$0xff]   ;;  %v8446_v28 = vld [vmem:[%s7358_s16 + $0x88] sm:$0xf] }
  0xe7   : > { %6465 = vmatprep.mubr.bf16.mxu1 %v9200_v49  ;;  %6494 = vmatpush3.bf16.msra.mxu1 %v7162_v24  ;;  %v5826_v24 = vld [vmem:[%s7358_s16 + $0x78] sm:$0xf]  ;;  %v1430_v53 = vrot.slane %v7229_v3, 5  ;;  %9203 = vst [vmem:[#allocation9_spill] sm:$0xff] %v8446_v28  ;;  %v8450_v42 = vrot.slane %v3989_v1, 4  ;;  %v8452_v61 = vrot.slane %v4006_v34, 5  ;;  %v8456_v36 = vsel %vm7636_vm5, %v5457_v17, %v1427_v46 }
  0xe8   : > { %6495 = vmatprep.subr.bf16.mxu1 %v7164_v41  ;;  %v8448_v35 = vrot.slane %v3979_v62, 4  ;;  %v4012_v8 = vrot.slane %v4010_v10, 4  ;;  %v1429_v44 = vrot.slane %v1427_v46, 4  ;;  %v4003_v49 = vor.u32 %v4002_v56, %v3999_v26  ;;  %v5832_v3 = vld [vmem:[%s7358_s16 + $0x90] sm:$0xf] }
  0xe9   : > { %v4016_v25 = vshll.u32 %v8413_v30, 16  ;;  %v4024_v0 = vshll.u32 %v5826_v24, 16  ;;  %v4030_v62 = vshll.u32 %v8430_v22, 16  ;;  %v4034_v1 = vshrl.u32 %v8430_v22, 16  ;;  %v8463_v34 = vld [vmem:[%s7358_s16 + $0x94] sm:$0xf] }
  0xea   : > { %9204 = vst [vmem:[#allocation10_spill] sm:$0xff] %v8463_v34  ;;  %v9205_v10 = vcombine.low %v8165_v27, %v8169_v29  ;;  %v4045_v17 = vshrl.u32 %v5829_v38, 16  ;;  %v4048_v46 = vshll.u32 %v5829_v38, 16  ;;  %v4058_v26 = vshrl.u32 %v8446_v28, 16  ;;  %v5835_v38 = vld [vmem:[%s7358_s16 + $0x9c] sm:$0xf] }
  0xeb   : > { %6496 = vmatpush3.bf16.msra.mxu1 %v7164_v41  ;;  %v4021_v41 = vshrl.u32 %v5826_v24, 16  ;;  %v9206_v56 = vcombine.low %v8176_v45, %v8180_v14  ;;  %v4013_v29 = vor.u32 %v4012_v8, %v8452_v61  ;;  %v4072_v24 = vshll.u32 %v5832_v3, 16  ;;  %v8485_v45 = vld [vmem:[%s7358_s16 + $0x80] sm:$0x1] }
  0xec   : > { %6497 = vmatprep.subr.bf16.mxu1 %v7166_v23  ;;  %v8482_v5 = vrot.slane %v4016_v25, 5  ;;  %9207 = vst [vmem:[#allocation11_spill] sm:$0xff] %v8485_v45  ;;  %v4078_v14 = vshll.u32 %v8463_v34, 16  ;;  %v4026_v27 = vrot.slane %v4024_v0, 5  ;;  %v4036_v8 = vrot.slane %v4034_v1, 4 }
  0xed   : > { %6674 = vmatmul.mubr.bf16.gmra.mrb[28].mxu0 %v7160_v4  ;;  %v4054_v4 = vshll.u32 %v8446_v28, 16  ;;  %v8489_v28 = vrot.slane %v4030_v62, 5  ;;  %v8495_v22 = vld [vmem:[%s7358_s16 + $0xa0] sm:$0xf]  ;;  %v4047_v25 = vrot.slane %v4045_v17, 4  ;;  %v4050_v30 = vrot.slane %v4048_v46, 5 }
  0xee   : > { %6466 = vmatmul.mubr.bf16.gmra.mrb[12].mxu1 %v9205_v10  ;;  %6693 = vmatprep.mubr.bf16.mxu0 %v8234_v59  ;;  %v4069_v59 = vshrl.u32 %v5832_v3, 16  ;;  %v8480_v10 = vrot.slane %v4003_v49, 4  ;;  %v8492_v3 = vld [vmem:[%s7358_s16 + $0x8c] sm:$0x1]  ;;  %9209 = vst [vmem:[#allocation13_spill] sm:$0xff] %v8495_v22  ;;  %v4060_v47 = vrot.slane %v4058_v26, 4  ;;  %v8512_v62 = vsel %vm7636_vm5, %v1429_v44, %v1430_v53 }
  0xef   : > { %6469 = vmatprep.mubr.bf16.mxu1 %v9206_v56  ;;  %6498 = vmatpush3.bf16.msra.mxu1 %v7166_v23  ;;  %v4082_v23 = vshrl.u32 %v8463_v34, 16  ;;  %v4023_v56 = vrot.slane %v4021_v41, 4  ;;  %9208 = vst [vmem:[#allocation12_spill] sm:$0xff] %v8492_v3  ;;  %v7165_v49 = vld [vmem:[%s9167_s1 + $0x208] sm:$0xff]   ;;  %v8500_v13 = vrot.slane %v4054_v4, 5  ;;  %v4074_v34 = vrot.slane %v4072_v24, 5 }
  0xf0   : > { %6499 = vmatprep.subr.bf16.mxu1 %v7168_v12  ;;  %v5838_v41 = vld [vmem:[%s7358_s16 + $0xa8] sm:$0xf]  ;;  %v4071_v1 = vrot.slane %v4069_v59, 4  ;;  %v8517_v17 = vld [vmem:[%s9167_s1 + $0x100] sm:$0xff]   ;;  %v8520_v46 = vrot.slane %v4078_v14, 5  ;;  %v4093_v26 = vshrl.u32 %v5835_v38, 16  ;;  %v9212_v24 = vcombine.low %v8184_v16, %v8194_v15 }
  0xf1   : > { %9211 = vst [vmem:[#allocation15_spill] sm:$0xff] %v8517_v17  ;;  %v4084_v4 = vrot.slane %v4082_v23, 4  ;;  %v4096_v0 = vshll.u32 %v5835_v38, 16  ;;  %v8523_v53 = vrot.slane %v4013_v29, 4  ;;  %v4102_v44 = vshll.u32 %v8495_v22, 16  ;;  %v7167_v16 = vld [vmem:[%s9167_s1 + $0x210] sm:$0xff]  }
  0xf2   : > { %v4106_v59 = vshrl.u32 %v8495_v22, 16  ;;  %v4027_v14 = vor.u32 %v4026_v27, %v4023_v56  ;;  %v4037_v38 = vor.u32 %v4036_v8, %v8489_v28  ;;  %v4051_v23 = vor.u32 %v4050_v30, %v4047_v25  ;;  %v8535_v29 = vld [vmem:[%s7358_s16 + $0xac] sm:$0xf]  ;;  %v8548_v25 = vld [vmem:[%s7358_s16 + $0xa4] sm:$0x1] }
  0xf3   : > { %6500 = vmatpush3.bf16.msra.mxu1 %v7168_v12  ;;  %v4040_v12 = vshll.u32 %v8485_v45, 16  ;;  %9213 = vst [vmem:[#allocation16_spill] sm:$0xff] %v8535_v29  ;;  %v4061_v15 = vor.u32 %v4060_v47, %v8500_v13  ;;  %v4117_v27 = vshrl.u32 %v5838_v41, 16  ;;  %v4120_v30 = vshll.u32 %v5838_v41, 16 }
  0xf4   : > { %6773 = vmatprep.subr.bf16.mxu1 %v8517_v17  ;;  %v9214_v17 = vcombine.low %v8240_v20, %v8261_v7  ;;  %v4075_v56 = vor.u32 %v4074_v34, %v4071_v1  ;;  %v4085_v8 = vor.u32 %v4084_v4, %v8520_v46  ;;  %v4095_v20 = vrot.slane %v4093_v26, 4 }
  0xf5   : > { %6694 = vmatmul.mubr.bf16.vlgmr.msra.gmra.mrb[0].mxu0 %v8317_v50  ;;  %v4064_v50 = vshll.u32 %v8492_v3, 16  ;;  %v4098_v7 = vrot.slane %v4096_v0, 5  ;;  %v4130_v22 = vshrl.u32 %v8535_v29, 16  ;;  %v4028_v47 = vrot.slane %v4027_v14, 4  ;;  %v7169_v0 = vld [vmem:[%s9167_s1 + $0x218] sm:$0xff]  }
  0xf6   : > { %6470 = vmatmul.mubr.bf16.gmra.mrb[16].mxu1 %v9212_v24  ;;  %6726 = vmatpush3.bf16.msra.mxu0 %v8221_v21  ;;  %v4088_v21 = vshll.u32 %v8503_v39, 16  ;;  %v4126_v24 = vshll.u32 %v8535_v29, 16  ;;  %v4038_v39 = vrot.slane %v4037_v38, 4  ;;  %v4042_v3 = vrot.slane %v4040_v12, 5 }
  0xf7   : > { %6473 = vmatprep.mubr.bf16.mxu1 %v9214_v17  ;;  %6697 = vmatprep.mubr.bf16.mxu0 %v8321_v48  ;;  %v8550_v17 = vrot.slane %v4102_v44, 5  ;;  %v4108_v48 = vrot.slane %v4106_v59, 4  ;;  %v4066_v41 = vrot.slane %v4064_v50, 5  ;;  %v4052_v34 = vrot.slane %v4051_v23, 4 }
  0xf8   : > { %6727 = vmatprep.subr.bf16.mxu0 %v7165_v49  ;;  %v4062_v1 = vrot.slane %v4061_v15, 4  ;;  %v4119_v4 = vrot.slane %v4117_v27, 4  ;;  %v4122_v45 = vrot.slane %v4120_v30, 5  ;;  %v4076_v26 = vrot.slane %v4075_v56, 4  ;;  %v8616_v27 = vld [vmem:[%s7358_s16 + $0xbc] sm:$0x1] }
  0xf9   : > { %v4090_v44 = vrot.slane %v4088_v21, 5  ;;  %v4099_v59 = vor.u32 %v4098_v7, %v4095_v20  ;;  %v4112_v29 = vshll.u32 %v8548_v25, 16  ;;  %v4109_v12 = vor.u32 %v4108_v48, %v8550_v17  ;;  %v8583_v21 = vld [vmem:[%s7358_s16 + $0xb0] sm:$0x1] }
  0xfa   : > { %6728 = vmatpush3.bf16.msra.mxu0 %v7165_v49  ;;  %v4086_v49 = vrot.slane %v4085_v8, 4  ;;  %v8560_v14 = vrot.slane %v4126_v24, 5  ;;  %v4132_v38 = vrot.slane %v4130_v22, 4  ;;  %v9215_v23 = vor.u32 %v7968_v57, %v7966_v11 }
  0xfb   : > { %6729 = vmatprep.subr.bf16.mxu0 %v7167_v16  ;;  %v9216_v15 = vcombine.low %v8273_v40, %v8298_v60  ;;  %v4019_v22 = vsel %vm7390_vm2, %v8523_v53, %v8482_v5  ;;  %v4033_v57 = vsel %vm7390_vm2, %v4028_v47, %v8489_v28  ;;  %v9217_v40 = vcombine.low %v8328_v31, %v8370_v43  ;;  %v7172_v31 = vld [vmem:[%s9167_s1 + $0x220] sm:$0xff]  }
  0xfc   : > { %v8565_v50 = vrot.slane %v9215_v23, 4  ;;  %v4043_v60 = vsel %vm7390_vm2, %v4038_v39, %v4042_v3  ;;  %v4123_v5 = vor.u32 %v4122_v45, %v4119_v4  ;;  %v4067_v28 = vsel %vm7390_vm2, %v4062_v1, %v4066_v41  ;;  %v5894_v41 = vld [vmem:[%s7358_s16 + $0x48] sm:$0xe] }
  0xfd   : > { %6698 = vmatmul.mubr.bf16.gmra.mrb[4].mxu0 %v8366_v55  ;;  %v4009_v55 = vsel %vm7390_vm2, %v8480_v10, %v8452_v61  ;;  %v5841_v61 = vld [vmem:[%s7358_s16 + $0xb4] sm:$0xf]  ;;  %v8595_v10 = vld [vmem:[%s7358_s16 + $0xb8] sm:$0xf]  ;;  %v4081_v39 = vsel %vm7390_vm2, %v4076_v26, %v8520_v46  ;;  %v8605_v43 = vrot.slane %v4099_v59, 4  ;;  %v8607_v3 = vrot.slane %v4112_v29, 5 }
  0xfe   : > { %6474 = vmatmul.mubr.bf16.gmra.mrb[20].mxu1 %v9216_v15  ;;  %6701 = vmatprep.mubr.bf16.mxu0 %v8421_v18  ;;  %v4057_v18 = vsel %vm7390_vm2, %v4052_v34, %v8500_v13  ;;  %v4091_v13 = vsel %vm7390_vm2, %v4086_v49, %v4090_v44  ;;  %v8611_v45 = vrot.slane %v4109_v12, 4  ;;  %v4133_v53 = vor.u32 %v4132_v38, %v8560_v14  ;;  %v5895_v26 = vld [vmem:[%s7358_s16 + $0x54] sm:$0xe] }
  0xff   : > { %6477 = vmatprep.mubr.bf16.mxu1 %v9217_v40  ;;  %6730 = vmatpush3.bf16.msra.mxu0 %v7167_v16  ;;  %v4136_v16 = vshll.u32 %v8583_v21, 16  ;;  %v9218_v46 = vsel %vm7390_vm2, %v8450_v42, %v8439_v52  ;;  %v9219_v29 = vsel %vm7390_vm2, %v8448_v35, %v8372_v58  ;;  %v4141_v56 = vshrl.u32 %v5841_v61, 16 }
 0x100   : > { %6731 = vmatprep.subr.bf16.mxu0 %v7169_v0  ;;  %v5872_v30 = vcombine.low %v9219_v29, %v9218_v46  ;;  %v4144_v8 = vshll.u32 %v5841_v61, 16  ;;  %v4150_v20 = vshll.u32 %v8595_v10, 16  ;;  %v5488_v7 = vcombine.low %v8427_v2, %v8437_v54  ;;  %v7175_v2 = vld [vmem:[%s9167_s1 + $0x228] sm:$0xff]   ;;  %v5844_v54 = vld [vmem:[%s7358_s16 + $0xc0] sm:$0xf]  ;;  %v9223_v29 = vld [vmem:[#allocation5_spill] sm:$0xff] }
 0x101   : > { %v5489_v48 = vcombine.low %v8456_v36, %v8512_v62  ;;  %v5873_v24 = vcombine.low %v4009_v55, %v4019_v22  ;;  %v8633_v52 = vrot.slane %v4123_v5, 4  ;;  %v5874_v42 = vcombine.low %v4033_v57, %v4043_v60 }
 0x102   : > { %v8635_v58 = vcombine.low %v4057_v18, %v4067_v28  ;;  %v8637_v35 = vcombine.low %v4081_v39, %v4091_v13  ;;  %v4105_v47 = vsel %vm7390_vm2, %v8605_v43, %v8550_v17  ;;  %v4115_v34 = vsel %vm7390_vm2, %v8611_v45, %v8607_v3  ;;  %v5897_v28 = vld [vmem:[%s7358_s16 + $0x6c] sm:$0xe] }
 0x103   : > { %6732 = vmatpush3.bf16.msra.mxu0 %v7169_v0  ;;  %v8653_v1 = vrot.slane %v4133_v53, 4  ;;  %v8655_v4 = vrot.slane %v4136_v16, 5  ;;  %v4154_v0 = vshrl.u32 %v8595_v10, 16  ;;  %v9220_v44 = vcombine.low %v8382_v6, %v8391_v51  ;;  %v7178_v6 = vld [vmem:[%s9167_s1 + $0x230] sm:$0xff]   ;;  %v8677_v51 = vld [vmem:[%s7358_s16 + $0xc4] sm:$0xf] }
 0x104   : > { %6733 = vmatprep.subr.bf16.mxu0 %v7172_v31  ;;  %v8662_v59 = vrot.slane %v4141_v56, 4  ;;  %v8666_v49 = vrot.slane %v4150_v20, 5  ;;  %v4160_v12 = vshll.u32 %v8616_v27, 16  ;;  %v4129_v38 = vsel %vm7390_vm2, %v8633_v52, %v8560_v14  ;;  %v5896_v14 = vld [vmem:[%s7358_s16 + $0x60] sm:$0xe]  ;;  %v9221_v39 = vld [vmem:[#allocation3_spill] sm:$0xff] }
 0x105   : > { %6702 = vmatmul.mubr.bf16.gmra.mrb[8].mxu0 %v8433_v19  ;;  %v8664_v19 = vrot.slane %v4144_v8, 5  ;;  %v4165_v23 = vshrl.u32 %v5844_v54, 16  ;;  %v5910_v15 = vrot.slane %v5894_v41, 9  ;;  %v4628_v55 = vrot.slane %v8253_v32, 5  ;;  %v7170_v13 = vld [vmem:[%s7358_s16 + $0xc] sm:$0xff]   ;;  %v7181_v56 = vld [vmem:[%s9167_s1 + $0x238] sm:$0xff]  }
 0x106   : > { %6478 = vmatmul.mubr.bf16.gmra.mrb[24].mxu1 %v9220_v44  ;;  %6705 = vmatprep.mubr.bf16.mxu0 %v5872_v30  ;;  %v4168_v22 = vshll.u32 %v5844_v54, 16  ;;  %v4631_v57 = vrot.slane %v8301_v63, 5  ;;  %v5911_v40 = vrot.slane %v5895_v26, 9  ;;  %v4635_v60 = vrot.slane %v8265_v33, 5  ;;  %v9222_v16 = vld [vmem:[#allocation4_spill] sm:$0xff]  ;;  %v9224_v52 = vld [vmem:[#allocation6_spill] sm:$0xff] }
 0x107   : > { %6481 = vmatprep.mubr.bf16.mxu1 %v5488_v7  ;;  %6734 = vmatpush3.bf16.msra.mxu0 %v7172_v31  ;;  %v4139_v18 = vsel %vm7390_vm2, %v8653_v1, %v8655_v4  ;;  %v8687_v5 = vrot.slane %v4154_v0, 4  ;;  %v8691_v61 = vsel %vm7636_vm5, %v5910_v15, %v4628_v55  ;;  %v4630_v32 = vrot.slane %v4628_v55, 4  ;;  %v9225_v4 = vld [vmem:[#allocation7_spill] sm:$0xff] }
 0x108   : > { %6735 = vmatprep.subr.bf16.mxu0 %v7175_v2  ;;  %v4174_v31 = vshll.u32 %v8677_v51, 16  ;;  %v8697_v63 = vsel %vm7636_vm5, %v5911_v40, %v4635_v60  ;;  %v4637_v33 = vrot.slane %v4635_v60, 4  ;;  %v4638_v3 = vrot.slane %v9221_v39, 5  ;;  %v8728_v26 = vld [vmem:[%s7358_s16 + $0xc8] sm:$0x1]  ;;  %v7171_v40 = vld [vmem:[%s7358_s16 + $0x18] sm:$0xff]  }
 0x109   : > { %v8703_v45 = vsel %vm7636_vm5, %v4630_v32, %v4631_v57  ;;  %v5912_v53 = vrot.slane %v5896_v14, 9  ;;  %v4642_v46 = vrot.slane %v9222_v16, 5  ;;  %v4645_v30 = vrot.slane %v9223_v29, 5  ;;  %v7173_v39 = vld [vmem:[%s7358_s16 + $0x24] sm:$0xff]  }
 0x10a   : > { %v5942_v8 = vcombine.low %v8691_v61, %v8703_v45  ;;  %v8714_v20 = vsel %vm7636_vm5, %v4637_v33, %v4638_v3  ;;  %v5913_v7 = vrot.slane %v5897_v28, 9  ;;  %v4652_v0 = vrot.slane %v9225_v4, 5  ;;  %v9227_v28 = vld [vmem:[#allocation11_spill] sm:$0xff]  ;;  %v5603_v61 = vld [vmem:[%s7358_s16 + $0x90] sm:$0xf] }
 0x10b   : > { %6736 = vmatpush3.bf16.msra.mxu0 %v7175_v2  ;;  %v4649_v2 = vrot.slane %v9224_v52, 5  ;;  %v5943_v54 = vcombine.low %v8697_v63, %v8714_v20  ;;  %v8721_v41 = vsel %vm7636_vm5, %v5912_v53, %v4642_v46  ;;  %v4644_v1 = vrot.slane %v4642_v46, 4  ;;  %v9228_v53 = vld [vmem:[#allocation2_spill] sm:$0xff]  ;;  %v7187_v45 = vld [vmem:[%s7358_s16 + $0xa8] sm:$0xff]  }
 0x10c   : > { %6737 = vmatprep.subr.bf16.mxu0 %v7178_v6  ;;  %v8730_v44 = vrot.slane %v4165_v23, 4  ;;  %v8743_v36 = vcombine.low %v4105_v47, %v4115_v34  ;;  %v4147_v62 = vor.u32 %v8664_v19, %v8662_v59  ;;  %v5898_v23 = vld [vmem:[%s7358_s16 + $0x78] sm:$0xe]  ;;  %v8755_v57 = vrot.slane %v4160_v12, 5  ;;  %v5847_v12 = vld [vmem:[%s7358_s16 + $0xcc] sm:$0xf] }
 0x10d   : > { %6706 = vmatmul.mubr.bf16.gmra.mrb[12].mxu0 %v5873_v24  ;;  %v8732_v24 = vrot.slane %v4168_v22, 5  ;;  %v8736_v15 = vsel %vm7636_vm5, %v5913_v7, %v4649_v2  ;;  %v4651_v55 = vrot.slane %v4649_v2, 4  ;;  %v8753_v22 = vcombine.low %v4129_v38, %v4139_v18  ;;  %v5597_v47 = vld [vmem:[%s7358_s16 + $0x78] sm:$0xf]  ;;  %v9226_v18 = vld [vmem:[#allocation8_spill] sm:$0xff] }
 0x10e   : > { %6482 = vmatmul.mubr.bf16.gmra.mrb[28].mxu1 %v5489_v48  ;;  %6709 = vmatprep.mubr.bf16.mxu0 %v5874_v42  ;;  %v4178_v48 = vshrl.u32 %v8677_v51, 16  ;;  %v8750_v42 = vsel %vm7636_vm5, %v4644_v1, %v4645_v30  ;;  %v4157_v34 = vor.u32 %v8687_v5, %v8666_v49  ;;  %v8766_v59 = vrot.slane %v4174_v31, 5  ;;  %v8780_v31 = vld [vmem:[%s7358_s16 + $0xd0] sm:$0xf]  ;;  %v9229_v1 = vld [vmem:[#allocation9_spill] sm:$0xff] }
 0x10f   : > { %6501 = vmatprep.mubr.bf16.mxu1 %v7170_v13  ;;  %6738 = vmatpush3.bf16.msra.mxu0 %v7178_v6  ;;  %v5944_v17 = vcombine.low %v8721_v41, %v8750_v42  ;;  %v8761_v43 = vsel %vm7636_vm5, %v4651_v55, %v4652_v0  ;;  %v4184_v19 = vshll.u32 %v8728_v26, 16  ;;  %v5899_v6 = vld [vmem:[%s7358_s16 + $0x84] sm:$0xe]  ;;  %v4171_v60 = vor.u32 %v8732_v24, %v8730_v44  ;;  %v9230_v24 = vld [vmem:[#allocation12_spill] sm:$0xff]  ;;  %v7251_v63 = vld [vmem:[%s7358_s16 + $0x8c] sm:$0x1] }
 0x110   : > { %6739 = vmatprep.subr.bf16.mxu0 %v7181_v56  ;;  %v5945_v38 = vcombine.low %v8736_v15, %v8761_v43  ;;  %v5914_v14 = vrot.slane %v5898_v23, 9  ;;  %v4656_v32 = vrot.slane %v9226_v18, 5  ;;  %v4659_v33 = vrot.slane %v9227_v28, 5 }
 0x111   : > { %v4180_v5 = vrot.slane %v4178_v48, 4  ;;  %v2406_v3 = vshrl.u32 %v5597_v47, 16  ;;  %v2409_v13 = vshll.u32 %v5597_v47, 16  ;;  %v2428_v16 = vsel %vm7390_vm2, %v8565_v50, %v9228_v53 }
 0x112   : > { %v4189_v46 = vshrl.u32 %v5847_v12, 16  ;;  %v8788_v29 = vsel %vm7636_vm5, %v5914_v14, %v4656_v32  ;;  %v4658_v30 = vrot.slane %v4656_v32, 4  ;;  %v5915_v7 = vrot.slane %v5899_v6, 9  ;;  %v7231_v6 = vld [vmem:[%s9167_s1 + $0x108] sm:$0xff]  }
 0x113   : > { %6740 = vmatpush3.bf16.msra.mxu0 %v7181_v56  ;;  %v4192_v52 = vshll.u32 %v5847_v12, 16  ;;  %v2408_v2 = vrot.slane %v2406_v3, 4  ;;  %v2411_v56 = vrot.slane %v2409_v13, 5  ;;  %v4663_v4 = vrot.slane %v9229_v1, 5  ;;  %v5900_v12 = vld [vmem:[%s7358_s16 + $0x90] sm:$0xe] }
 0x114   : > { %v4198_v50 = vshll.u32 %v8780_v31, 16  ;;  %v4202_v0 = vshrl.u32 %v8780_v31, 16  ;;  %v8797_v44 = vsel %vm7636_vm5, %v4658_v30, %v4659_v33  ;;  %v4666_v55 = vrot.slane %v9230_v24, 5  ;;  %v7174_v3 = vld [vmem:[%s7358_s16 + $0x30] sm:$0xff]  }
 0x115   : > { %6710 = vmatmul.mubr.bf16.gmra.mrb[16].mxu0 %v8635_v58  ;;  %v9231_v58 = vld [vmem:[#allocation15_spill] sm:$0xff]  ;;  %v4181_v48 = vor.u32 %v4180_v5, %v8766_v59  ;;  %v2412_v23 = vor.u32 %v2411_v56, %v2408_v2  ;;  %v4665_v47 = vrot.slane %v4663_v4, 4  ;;  %v4158_v14 = vrot.slane %v4157_v34, 4  ;;  %v8818_v13 = vld [vmem:[%s7358_s16 + $0xd4] sm:$0x1]  ;;  %v9232_v2 = vld [vmem:[#allocation10_spill] sm:$0xff] }
 0x116   : > { %6502 = vmatmul.mubr.bf16.vlgmr.msra.gmra.mrb[0].mxu1 %v7171_v40  ;;  %6713 = vmatprep.mubr.bf16.mxu0 %v8637_v35  ;;  %v5946_v35 = vcombine.low %v8788_v29, %v8797_v44  ;;  %v4148_v40 = vrot.slane %v4147_v62, 4  ;;  %v4186_v18 = vrot.slane %v4184_v19, 5  ;;  %v8810_v32 = vsel %vm7636_vm5, %v5915_v7, %v4663_v4  ;;  %v7176_v19 = vld [vmem:[%s7358_s16 + $0x3c] sm:$0xff]   ;;  %v7232_v1 = vld [vmem:[%s9167_s1 + $0x110] sm:$0xff]  }
 0x117   : > { %6781 = vmatpush3.bf16.msra.mxu1 %v9231_v58  ;;  %6505 = vmatprep.mubr.bf16.mxu1 %v7173_v39  ;;  %v4191_v28 = vrot.slane %v4189_v46, 4  ;;  %v4194_v33 = vrot.slane %v4192_v52, 5  ;;  %v2413_v39 = vrot.slane %v2412_v23, 4  ;;  %v8814_v5 = vsel %vm7636_vm5, %v4665_v47, %v4666_v55  ;;  %v7233_v47 = vld [vmem:[%s7358_s16 + $0x1c] sm:$0xf] }
 0x118   : > { %6774 = vmatprep.subr.bf16.mxu1 %v7231_v6  ;;  %v8820_v53 = vrot.slane %v4198_v50, 5  ;;  %v4204_v30 = vrot.slane %v4202_v0, 4  ;;  %v5947_v62 = vcombine.low %v8810_v32, %v8814_v5  ;;  %v5916_v34 = vrot.slane %v5900_v12, 9 }
 0x119   : > { %v4172_v7 = vrot.slane %v4171_v60, 4  ;;  %v4182_v46 = vrot.slane %v4181_v48, 4  ;;  %v2418_v52 = vsel %vm7390_vm2, %v2413_v39, %v7966_v11  ;;  %v4670_v56 = vrot.slane %v9232_v2, 5  ;;  %v9233_v11 = vld [vmem:[#allocation14_spill] sm:$0xff]  ;;  %v7177_v39 = vld [vmem:[%s7358_s16 + $0x48] sm:$0xff]  }
 0x11a   : > { %v4153_v4 = vsel %vm7390_vm2, %v4148_v40, %v8666_v49  ;;  %v4163_v60 = vsel %vm7390_vm2, %v4158_v14, %v8755_v57  ;;  %v8838_v50 = vcombine.low %v2418_v52, %v2428_v16  ;;  %v4673_v0 = vrot.slane %v9233_v11, 5  ;;  %v5890_v57 = vld [vmem:[%s7358_s16 + $0x18] sm:$0xe]  ;;  %v5901_v16 = vld [vmem:[%s7358_s16 + $0x9c] sm:$0xe] }
 0x11b   : > { %6782 = vmatpush3.bf16.msra.mxu1 %v7231_v6  ;;  %v4195_v24 = vor.u32 %v4194_v33, %v4191_v28  ;;  %v4208_v55 = vshll.u32 %v8818_v13, 16  ;;  %v8845_v58 = vsel %vm7636_vm5, %v5916_v34, %v4670_v56  ;;  %v4672_v48 = vrot.slane %v4670_v56, 4  ;;  %v7234_v40 = vld [vmem:[%s9167_s1 + $0x118] sm:$0xff]   ;;  %v7235_v2 = vld [vmem:[%s7358_s16 + $0x20] sm:$0x1] }
 0x11c   : > { %6775 = vmatprep.subr.bf16.mxu1 %v7232_v1  ;;  %v4205_v49 = vor.u32 %v4204_v30, %v8820_v53  ;;  %v4187_v23 = vsel %vm7390_vm2, %v4182_v46, %v4186_v18  ;;  %v4600_v12 = vrot.slane %v7233_v47, 5  ;;  %v5879_v6 = vcombine.low %v4153_v4, %v4163_v60  ;;  %v9234_v34 = vld [vmem:[#allocation13_spill] sm:$0xff]  ;;  %v5902_v11 = vld [vmem:[%s7358_s16 + $0xa8] sm:$0xe] }
 0x11d   : > { %6714 = vmatmul.mubr.bf16.gmra.mrb[20].mxu0 %v8743_v36  ;;  %v4177_v36 = vsel %vm7390_vm2, %v4172_v7, %v8766_v59  ;;  %v4196_v14 = vrot.slane %v4195_v24, 4  ;;  %v4210_v28 = vrot.slane %v4208_v55, 5  ;;  %v5906_v18 = vrot.slane %v5890_v57, 9  ;;  %v7179_v46 = vld [vmem:[%s7358_s16 + $0x54] sm:$0xff]   ;;  %v5891_v55 = vld [vmem:[%s7358_s16 + $0x24] sm:$0xe] }
 0x11e   : > { %6506 = vmatmul.mubr.bf16.gmra.mrb[4].mxu1 %v7174_v3  ;;  %6717 = vmatprep.mubr.bf16.mxu0 %v8753_v22  ;;  %v8859_v22 = vsel %vm7636_vm5, %v4672_v48, %v4673_v0  ;;  %v5917_v33 = vrot.slane %v5901_v16, 9  ;;  %v5880_v3 = vcombine.low %v4177_v36, %v4187_v23  ;;  %v4206_v30 = vrot.slane %v4205_v49, 4  ;;  %v7237_v48 = vld [vmem:[%s7358_s16 + $0x28] sm:$0xf]  ;;  %v7238_v36 = vld [vmem:[%s7358_s16 + $0x34] sm:$0xf] }
 0x11f   : > { %6509 = vmatprep.mubr.bf16.mxu1 %v7176_v19  ;;  %6783 = vmatpush3.bf16.msra.mxu1 %v7232_v1  ;;  %v5948_v59 = vcombine.low %v8845_v58, %v8859_v22  ;;  %v4677_v19 = vrot.slane %v9234_v34, 5  ;;  %v4680_v7 = vrot.slane %v8548_v25, 5  ;;  %v4602_v52 = vrot.slane %v4600_v12, 4  ;;  %v7236_v1 = vld [vmem:[%s9167_s1 + $0x120] sm:$0xff]  }
 0x120   : > { %6776 = vmatprep.subr.bf16.mxu1 %v7234_v40  ;;  %v4603_v56 = vrot.slane %v7235_v2, 5  ;;  %v4601_v25 = vsel %vm7636_vm5, %v5906_v18, %v4600_v12  ;;  %v4201_v0 = vsel %vm7390_vm2, %v4196_v14, %v8820_v53  ;;  %v4211_v24 = vsel %vm7390_vm2, %v4206_v30, %v4210_v28  ;;  %v5892_v12 = vld [vmem:[%s7358_s16 + $0x30] sm:$0xe]  ;;  %v7180_v30 = vld [vmem:[%s7358_s16 + $0x60] sm:$0xff]  }
 0x121   : > { %v8876_v4 = vsel %vm7636_vm5, %v5917_v33, %v4677_v19  ;;  %v4679_v60 = vrot.slane %v4677_v19, 4  ;;  %v4607_v49 = vrot.slane %v7237_v48, 5  ;;  %v4614_v23 = vrot.slane %v7238_v36, 5  ;;  %v7240_v33 = vld [vmem:[%s7358_s16 + $0x2c] sm:$0x1] }
 0x122   : > { %v4604_v16 = vsel %vm7636_vm5, %v4602_v52, %v4603_v56  ;;  %v5918_v47 = vrot.slane %v5902_v11, 9  ;;  %v5881_v28 = vcombine.low %v4201_v0, %v4211_v24  ;;  %v5907_v18 = vrot.slane %v5891_v55, 9  ;;  %v7182_v52 = vld [vmem:[%s7358_s16 + $0x6c] sm:$0xff]   ;;  %v5903_v11 = vld [vmem:[%s7358_s16 + $0xb4] sm:$0xe] }
 0x123   : > { %6784 = vmatpush3.bf16.msra.mxu1 %v7234_v40  ;;  %v8890_v57 = vsel %vm7636_vm5, %v4679_v60, %v4680_v7  ;;  %v9235_v40 = vld [vmem:[#allocation16_spill] sm:$0xff]  ;;  %v5938_v34 = vcombine.low %v4601_v25, %v4604_v16  ;;  %v4609_v19 = vrot.slane %v4607_v49, 4  ;;  %v5908_v2 = vrot.slane %v5892_v12, 9  ;;  %v5893_v0 = vld [vmem:[%s7358_s16 + $0x3c] sm:$0xe] }
 0x124   : > { %6777 = vmatprep.subr.bf16.mxu1 %v7236_v1  ;;  %v5949_v53 = vcombine.low %v8876_v4, %v8890_v57  ;;  %v4684_v14 = vrot.slane %v9235_v40, 5  ;;  %v4616_v56 = vrot.slane %v4614_v23, 4  ;;  %v7242_v24 = vld [vmem:[%s7358_s16 + $0x40] sm:$0xf]  ;;  %v4608_v48 = vsel %vm7636_vm5, %v5907_v18, %v4607_v49  ;;  %v7244_v18 = vld [vmem:[%s7358_s16 + $0x44] sm:$0x1] }
 0x125   : > { %6718 = vmatmul.mubr.bf16.gmra.mrb[24].mxu0 %v5879_v6  ;;  %v7239_v6 = vld [vmem:[%s9167_s1 + $0x128] sm:$0xff]   ;;  %v4621_v55 = vrot.slane %v7242_v24, 5  ;;  %v4691_v12 = vrot.slane %v8595_v10, 5  ;;  %v4615_v49 = vsel %vm7636_vm5, %v5908_v2, %v4614_v23  ;;  %v7245_v10 = vld [vmem:[%s9167_s1 + $0x138] sm:$0xff]   ;;  %v5904_v23 = vld [vmem:[%s7358_s16 + $0xc0] sm:$0xe] }
 0x126   : > { %6510 = vmatmul.mubr.bf16.gmra.mrb[8].mxu1 %v7177_v39  ;;  %6721 = vmatprep.mubr.bf16.mxu0 %v5880_v3  ;;  %v4610_v39 = vrot.slane %v7240_v33, 5  ;;  %v4687_v3 = vrot.slane %v8583_v21, 5  ;;  %v8907_v7 = vsel %vm7636_vm5, %v5918_v47, %v4684_v14  ;;  %v7243_v21 = vld [vmem:[%s9167_s1 + $0x130] sm:$0xff]   ;;  %v5919_v47 = vrot.slane %v5903_v11, 9 }
 0x127   : > { %6513 = vmatprep.mubr.bf16.mxu1 %v7179_v46  ;;  %6785 = vmatpush3.bf16.msra.mxu1 %v7236_v1  ;;  %v4686_v46 = vrot.slane %v4684_v14, 4  ;;  %v7241_v1 = vld [vmem:[%s7358_s16 + $0x38] sm:$0x1]  ;;  %v5909_v14 = vrot.slane %v5893_v0, 9  ;;  %v4624_v33 = vrot.slane %v7244_v18, 5  ;;  %v4698_v11 = vrot.slane %v8677_v51, 5 }
 0x128   : > { %6778 = vmatprep.subr.bf16.mxu1 %v7239_v6  ;;  %v4617_v60 = vrot.slane %v7241_v1, 5  ;;  %v4611_v36 = vsel %vm7636_vm5, %v4609_v19, %v4610_v39  ;;  %v4693_v39 = vrot.slane %v4691_v12, 4  ;;  %v5594_v19 = vld [vmem:[%s7358_s16 + $0x6c] sm:$0xf]  ;;  %v7185_v18 = vld [vmem:[%s7358_s16 + $0x90] sm:$0xff]   ;;  %v2449_v20 = vshll.u32 %v7251_v63, 16 }
 0x129   : > { %v8919_v25 = vsel %vm7636_vm5, %v4686_v46, %v4687_v3  ;;  %v5939_v3 = vcombine.low %v4608_v48, %v4611_v36  ;;  %v4622_v1 = vsel %vm7636_vm5, %v5909_v14, %v4621_v55  ;;  %v2382_v0 = vshrl.u32 %v5594_v19, 16  ;;  %v5905_v51 = vld [vmem:[%s7358_s16 + $0xcc] sm:$0xe] }
 0x12a   : > { %v5950_v16 = vcombine.low %v8907_v7, %v8919_v25  ;;  %v4618_v40 = vsel %vm7636_vm5, %v4616_v56, %v4617_v60  ;;  %v5920_v56 = vrot.slane %v5904_v23, 9  ;;  %v2385_v24 = vshll.u32 %v5594_v19, 16 }
 0x12b   : > { %6786 = vmatpush3.bf16.msra.mxu1 %v7239_v6  ;;  %v4694_v6 = vrot.slane %v8616_v27, 5  ;;  %v8939_v27 = vsel %vm7636_vm5, %v5919_v47, %v4691_v12  ;;  %v4701_v36 = vrot.slane %v8728_v26, 5  ;;  %v4700_v12 = vrot.slane %v4698_v11, 4 }
 0x12c   : > { %6779 = vmatprep.subr.bf16.mxu1 %v7243_v21  ;;  %v2387_v26 = vrot.slane %v2385_v24, 5  ;;  %v4708_v23 = vrot.slane %v8818_v13, 5 }
 0x12d   : > { %6722 = vmatmul.mubr.bf16.gmra.mrb[28].mxu0 %v5881_v28  ;;  %v4623_v28 = vrot.slane %v4621_v55, 4  ;;  %v8946_v46 = vsel %vm7636_vm5, %v4693_v39, %v4694_v6  ;;  %v8960_v55 = vsel %vm7636_vm5, %v5920_v56, %v4698_v11  ;;  %v4705_v39 = vrot.slane %v8780_v31, 5  ;;  %v7247_v56 = vld [vmem:[%s7358_s16 + $0x74] sm:$0x1] }
 0x12e   : > { %6514 = vmatmul.mubr.bf16.gmra.mrb[12].mxu1 %v7180_v30  ;;  %6741 = vmatprep.mubr.bf16.mxu0 %v5938_v34  ;;  %v7183_v30 = vld [vmem:[%s7358_s16 + $0x78] sm:$0xff]   ;;  %v5940_v34 = vcombine.low %v4615_v49, %v4618_v40  ;;  %v5951_v2 = vcombine.low %v8939_v27, %v8946_v46  ;;  %v8965_v49 = vsel %vm7636_vm5, %v4700_v12, %v4701_v36  ;;  %v2384_v40 = vrot.slane %v2382_v0, 4  ;;  %v7248_v0 = vld [vmem:[%s7358_s16 + $0x88] sm:$0xf] }
 0x12f   : > { %6517 = vmatprep.mubr.bf16.mxu1 %v7182_v52  ;;  %6787 = vmatpush3.bf16.msra.mxu1 %v7243_v21  ;;  %v7184_v52 = vld [vmem:[%s7358_s16 + $0x84] sm:$0xff]   ;;  %v4625_v60 = vsel %vm7636_vm5, %v4623_v28, %v4624_v33  ;;  %v7246_v21 = vld [vmem:[%s7358_s16 + $0x70] sm:$0xf]  ;;  %v5952_v28 = vcombine.low %v8960_v55, %v8965_v49  ;;  %v4707_v19 = vrot.slane %v4705_v39, 4  ;;  %v2439_v24 = vshll.u32 %v7248_v0, 16 }
 0x130   : > { %6780 = vmatprep.subr.bf16.mxu1 %v7245_v10  ;;  %v2391_v48 = vshll.u32 %v7246_v21, 16  ;;  %v2395_v47 = vshrl.u32 %v7246_v21, 16  ;;  %v5941_v6 = vcombine.low %v4622_v1, %v4625_v60  ;;  %v2401_v1 = vshll.u32 %v7247_v56, 16 }
 0x131   : > { %v8987_v11 = vsel %vm7636_vm5, %v4707_v19, %v4708_v23  ;;  %v2443_v21 = vshrl.u32 %v7248_v0, 16  ;;  %v7250_v19 = vld [vmem:[%s7358_s16 + $0xa0] sm:$0xf] }
 0x132   : > { %v8967_v14 = vrot.slane %v2391_v48, 5  ;;  %v2397_v33 = vrot.slane %v2395_v47, 4  ;;  %v2491_v56 = vshrl.u32 %v7250_v19, 16 }
 0x133   : > { %6788 = vmatpush3.bf16.msra.mxu1 %v7245_v10  ;;  %v5921_v10 = vrot.slane %v5905_v51, 9 }
 0x134   : > { %v2398_v31 = vor.u32 %v2397_v33, %v8967_v14  ;;  %v2457_v33 = vshll.u32 %v5603_v61, 16 }
 0x135   : > { %6742 = vmatmul.mubr.bf16.vlgmr.msra.gmra.mrb[0].mxu0 %v5939_v3  ;;  %v7186_v3 = vld [vmem:[%s7358_s16 + $0x9c] sm:$0xff]  }
 0x136   : > { %6518 = vmatmul.mubr.bf16.gmra.mrb[16].mxu1 %v7183_v30  ;;  %6745 = vmatprep.mubr.bf16.mxu0 %v5940_v34  ;;  %v5600_v30 = vld [vmem:[%s7358_s16 + $0x84] sm:$0xf]  ;;  %v8978_v34 = vsel %vm7636_vm5, %v5921_v10, %v4705_v39  ;;  %v2399_v47 = vrot.slane %v2398_v31, 4  ;;  %v7249_v10 = vld [vmem:[%s7358_s16 + $0x94] sm:$0xf]  ;;  %v2459_v0 = vrot.slane %v2457_v33, 5 }
 0x137   : > { %6521 = vmatprep.mubr.bf16.mxu1 %v7184_v52  ;;  %v2388_v52 = vor.u32 %v2387_v26, %v2384_v40  ;;  %v2430_v13 = vshrl.u32 %v5600_v30, 16  ;;  %v2433_v60 = vshll.u32 %v5600_v30, 16  ;;  %v5953_v48 = vcombine.low %v8978_v34, %v8987_v11 }
 0x138   : > { %v8996_v40 = vrot.slane %v2439_v24, 5  ;;  %v2445_v26 = vrot.slane %v2443_v21, 4  ;;  %v2463_v39 = vshll.u32 %v7249_v10, 16  ;;  %v2467_v23 = vshrl.u32 %v7249_v10, 16  ;;  %v7253_v10 = vld [vmem:[%s7358_s16 + $0xa4] sm:$0x1] }
 0x139   : > { %v2389_v36 = vrot.slane %v2388_v52, 4  ;;  %v2432_v12 = vrot.slane %v2430_v13, 4  ;;  %v2435_v51 = vrot.slane %v2433_v60, 5  ;;  %v2487_v52 = vshll.u32 %v7250_v19, 16  ;;  %v7254_v19 = vld [vmem:[%s7358_s16 + $0xac] sm:$0xf] }
 0x13a   : > { %v2446_v13 = vor.u32 %v2445_v26, %v8996_v40  ;;  %v9013_v41 = vrot.slane %v2463_v39, 5  ;;  %v2469_v42 = vrot.slane %v2467_v23, 4  ;;  %v2493_v21 = vrot.slane %v2491_v56, 4  ;;  %v5612_v23 = vld [vmem:[%s7358_s16 + $0xb4] sm:$0xf] }
 0x13b   : > { %v2497_v39 = vshll.u32 %v7253_v10, 16  ;;  %v2515_v15 = vshrl.u32 %v7254_v19, 16  ;;  %v2529_v63 = vshll.u32 %v5612_v23, 16 }
 0x13c   : > { %v2470_v26 = vor.u32 %v2469_v42, %v9013_v41 }
 0x13d   : > { %6746 = vmatmul.mubr.bf16.gmra.mrb[4].mxu0 %v5941_v6  ;;  %v5606_v6 = vld [vmem:[%s7358_s16 + $0x9c] sm:$0xf] }
 0x13e   : > { %6522 = vmatmul.mubr.bf16.gmra.mrb[20].mxu1 %v7185_v18  ;;  %6749 = vmatprep.mubr.bf16.mxu0 %v5942_v8  ;;  %v2403_v8 = vrot.slane %v2401_v1, 5  ;;  %v2454_v18 = vshrl.u32 %v5603_v61, 16  ;;  %v2481_v30 = vshll.u32 %v5606_v6, 16  ;;  %v2394_v1 = vsel %vm7390_vm2, %v2389_v36, %v8967_v14  ;;  %v7189_v61 = vld [vmem:[%s7358_s16 + $0xc0] sm:$0xff]  }
 0x13f   : > { %6525 = vmatprep.mubr.bf16.mxu1 %v7186_v3  ;;  %v2478_v3 = vshrl.u32 %v5606_v6, 16  ;;  %v9015_v14 = vrot.slane %v2487_v52, 5  ;;  %v2511_v52 = vshll.u32 %v7254_v19, 16 }
 0x140   : > { %v2404_v31 = vsel %vm7390_vm2, %v2399_v47, %v2403_v8  ;;  %v2456_v60 = vrot.slane %v2454_v18, 4  ;;  %v2483_v24 = vrot.slane %v2481_v30, 5  ;;  %v2451_v8 = vrot.slane %v2449_v20, 5  ;;  %v7255_v20 = vld [vmem:[%s7358_s16 + $0xb8] sm:$0xf] }
 0x141   : > { %v2447_v47 = vrot.slane %v2446_v13, 4  ;;  %v2494_v33 = vor.u32 %v2493_v21, %v9015_v14  ;;  %v2535_v29 = vshll.u32 %v7255_v20, 16  ;;  %v2539_v44 = vshrl.u32 %v7255_v20, 16 }
 0x143   : > { %v2495_v13 = vrot.slane %v2494_v33, 4 }
 0x145   : > { %6750 = vmatmul.mubr.bf16.gmra.mrb[8].mxu0 %v5943_v54  ;;  %v2436_v54 = vor.u32 %v2435_v51, %v2432_v12  ;;  %v2460_v12 = vor.u32 %v2459_v0, %v2456_v60  ;;  %v7252_v51 = vld [vmem:[%s7358_s16 + $0x98] sm:$0x1]  ;;  %v2499_v60 = vrot.slane %v2497_v39, 5 }
 0x146   : > { %6526 = vmatmul.mubr.bf16.gmra.mrb[24].mxu1 %v7187_v45  ;;  %6753 = vmatprep.mubr.bf16.mxu0 %v5944_v17  ;;  %v2480_v17 = vrot.slane %v2478_v3, 4  ;;  %v5642_v45 = vcombine.low %v2394_v1, %v2404_v31  ;;  %v2473_v6 = vshll.u32 %v7252_v51, 16  ;;  %v2526_v31 = vshrl.u32 %v5612_v23, 16 }
 0x147   : > { %6529 = vmatprep.mubr.bf16.mxu1 %v7188_v9  ;;  %v2437_v36 = vrot.slane %v2436_v54, 4  ;;  %v5609_v9 = vld [vmem:[%s7358_s16 + $0xa8] sm:$0xf]  ;;  %v2461_v56 = vrot.slane %v2460_v12, 4  ;;  %v2500_v32 = vsel %vm7390_vm2, %v2495_v13, %v2499_v60 }
 0x148   : > { %v2484_v18 = vor.u32 %v2483_v24, %v2480_v17  ;;  %v2502_v3 = vshrl.u32 %v5609_v9, 16  ;;  %v2505_v30 = vshll.u32 %v5609_v9, 16  ;;  %v2475_v1 = vrot.slane %v2473_v6, 5 }
 0x149   : > { %v2442_v43 = vsel %vm7390_vm2, %v2437_v36, %v8996_v40  ;;  %v2513_v17 = vrot.slane %v2511_v52, 5  ;;  %v2517_v24 = vrot.slane %v2515_v15, 4  ;;  %v2528_v21 = vrot.slane %v2526_v31, 4  ;;  %v5615_v36 = vld [vmem:[%s7358_s16 + $0xc0] sm:$0xf] }
 0x14a   : > { %v2485_v54 = vrot.slane %v2484_v18, 4  ;;  %v2504_v0 = vrot.slane %v2502_v3, 4  ;;  %v2507_v42 = vrot.slane %v2505_v30, 5  ;;  %v2550_v9 = vshrl.u32 %v5615_v36, 16  ;;  %v7257_v18 = vld [vmem:[%s7358_s16 + $0xc4] sm:$0xf] }
 0x14b   : > { %v2559_v33 = vshll.u32 %v7257_v18, 16 }
 0x14c   : > { %v2490_v51 = vsel %vm7390_vm2, %v2485_v54, %v9015_v14  ;;  %v2508_v5 = vor.u32 %v2507_v42, %v2504_v0  ;;  %v2563_v14 = vshrl.u32 %v7257_v18, 16  ;;  %v2552_v19 = vrot.slane %v2550_v9, 4 }
 0x14d   : > { %6754 = vmatmul.mubr.bf16.gmra.mrb[12].mxu0 %v5945_v38  ;;  %v2452_v38 = vsel %vm7390_vm2, %v2447_v47, %v2451_v8  ;;  %v2541_v8 = vrot.slane %v2539_v44, 4  ;;  %v2466_v47 = vsel %vm7390_vm2, %v2461_v56, %v9013_v41  ;;  %v7256_v41 = vld [vmem:[%s7358_s16 + $0xb0] sm:$0x1]  ;;  %v5646_v58 = vcombine.low %v2490_v51, %v2500_v32  ;;  %v7259_v44 = vld [vmem:[%s7358_s16 + $0xc8] sm:$0x1] }
 0x14e   : > { %6530 = vmatmul.mubr.bf16.gmra.mrb[28].mxu1 %v7189_v61  ;;  %6757 = vmatprep.mubr.bf16.mxu0 %v5946_v35  ;;  %v2471_v35 = vrot.slane %v2470_v26, 4  ;;  %v5644_v40 = vcombine.low %v2442_v43, %v2452_v38  ;;  %v2531_v61 = vrot.slane %v2529_v63, 5  ;;  %v2521_v6 = vshll.u32 %v7256_v41, 16 }
 0x14f   : > { %6565 = vmatprep.mubr.bf16.mxu1 %v5642_v45  ;;  %v2537_v45 = vrot.slane %v2535_v29, 5  ;;  %v2553_v26 = vshll.u32 %v5615_v36, 16  ;;  %v2509_v22 = vrot.slane %v2508_v5, 4  ;;  %v2561_v15 = vrot.slane %v2559_v33, 5 }
 0x150   : > { %v2476_v12 = vsel %vm7390_vm2, %v2471_v35, %v2475_v1  ;;  %v2532_v10 = vor.u32 %v2531_v61, %v2528_v21  ;;  %v2523_v30 = vrot.slane %v2521_v6, 5  ;;  %v2565_v43 = vrot.slane %v2563_v14, 4 }
 0x151   : > { %v2542_v39 = vor.u32 %v2541_v8, %v2537_v45  ;;  %v5645_v3 = vcombine.low %v2466_v47, %v2476_v12  ;;  %v2555_v52 = vrot.slane %v2553_v26, 5  ;;  %v2514_v31 = vsel %vm7390_vm2, %v2509_v22, %v2513_v17  ;;  %v9097_v8 = vld [vmem:[%s9168_s2] ss:$0 sm:$0xff] }
 0x152   : > { %v2533_v38 = vrot.slane %v2532_v10, 4  ;;  %v2566_v29 = vor.u32 %v2565_v43, %v2561_v15  ;;  %v2569_v35 = vshll.u32 %v7259_v44, 16 }
 0x153   : > { %v2543_v56 = vrot.slane %v2542_v39, 4  ;;  %v2556_v20 = vor.u32 %v2555_v52, %v2552_v19 }
 0x154   : > { %v2538_v4 = vsel %vm7390_vm2, %v2533_v38, %v2537_v45  ;;  %v2571_v54 = vrot.slane %v2569_v35, 5 }
 0x155   : > { %6758 = vmatmul.mubr.bf16.gmra.mrb[16].mxu0 %v5947_v62  ;;  %v2518_v62 = vor.u32 %v2517_v24, %v2513_v17  ;;  %v2557_v25 = vrot.slane %v2556_v20, 4 }
 0x156   : > { %6566 = vmatmul.mubr.bf16.vlgmr.msra.gmra.mrb[16].mxu1 %v8838_v50  ;;  %6761 = vmatprep.mubr.bf16.mxu0 %v5948_v59  ;;  %v7258_v50 = vld [vmem:[%s7358_s16 + $0xbc] sm:$0x1] }
 0x157   : > { %6569 = vmatprep.mubr.bf16.mxu1 %v5644_v40  ;;  %v2545_v23 = vshll.u32 %v7258_v50, 16  ;;  %v2519_v59 = vrot.slane %v2518_v62, 4  ;;  %v2562_v13 = vsel %vm7390_vm2, %v2557_v25, %v2561_v15 }
 0x159   : > { %v2547_v1 = vrot.slane %v2545_v23, 5  ;;  %v2524_v63 = vsel %vm7390_vm2, %v2519_v59, %v2523_v30 }
 0x15b   : > { %v2548_v57 = vsel %vm7390_vm2, %v2543_v56, %v2547_v1 }
 0x15c   : > { %v5648_v7 = vcombine.low %v2538_v4, %v2548_v57 }
 0x15d   : > { %6762 = vmatmul.mubr.bf16.gmra.mrb[20].mxu0 %v5949_v53  ;;  %v5647_v53 = vcombine.low %v2514_v31, %v2524_v63 }
 0x15e   : > { %6570 = vmatmul.mubr.bf16.gmra.mrb[20].mxu1 %v5645_v3  ;;  %6765 = vmatprep.mubr.bf16.mxu0 %v5950_v16  ;;  %v2567_v16 = vrot.slane %v2566_v29, 4 }
 0x15f   : > { %6573 = vmatprep.mubr.bf16.mxu1 %v5646_v58 }
 0x160   : > { %v2572_v60 = vsel %vm7390_vm2, %v2567_v16, %v2571_v54 }
 0x161   : > { %v5649_v0 = vcombine.low %v2562_v13, %v2572_v60 }
 0x165   : > { %6766 = vmatmul.mubr.bf16.gmra.mrb[24].mxu0 %v5951_v2 }
 0x166   : > { %6574 = vmatmul.mubr.bf16.gmra.mrb[24].mxu1 %v5647_v53  ;;  %6769 = vmatprep.mubr.bf16.mxu0 %v5952_v28 }
 0x167   : > { %6577 = vmatprep.mubr.bf16.mxu1 %v5648_v7 }
 0x16d   : > { %6770 = vmatmul.mubr.bf16.gmra.mrb[28].mxu0 %v5953_v48 }
 0x16e   : > { %6578 = vmatmul.mubr.bf16.gmra.mrb[28].mxu1 %v5649_v0 }
 0x1e9   : > { %v6503_v27 = vpop.f32.mrb[0].mxu1 }
 0x1ea   : > { %v1982_v46 = vpop.f32.mrb[1].mxu1 }
 0x1eb   : > { %v6504_v2 = vpop.f32.mrb[2].mxu1 }
 0x1ec   : > { %v1985_v42 = vpop.f32.mrb[3].mxu1 }
 0x1f1   : > { %v6507_v17 = vpop.f32.mrb[4].mxu1 }
 0x1f2   : > { %v1998_v55 = vpop.f32.mrb[5].mxu1 }
 0x1f3   : > { %v6508_v49 = vpop.f32.mrb[6].mxu1 }
 0x1f4   : > { %v2001_v28 = vpop.f32.mrb[7].mxu1 }
 0x1f9   : > { %v6511_v24 = vpop.f32.mrb[8].mxu1 }
 0x1fa   : > { %v2014_v40 = vpop.f32.mrb[9].mxu1 }
 0x1fb   : > { %v6512_v21 = vpop.f32.mrb[10].mxu1 }
 0x1fc   : > { %v2017_v61 = vpop.f32.mrb[11].mxu1 }
 0x201   : > { %v9086_v37 = vpop.f32.mrb[12].mxu1 }
 0x202   : > { %v9088_v45 = vpop.f32.mrb[13].mxu1 }
 0x203   : > { %v9090_v34 = vpop.f32.mrb[14].mxu1 }
 0x204   : > { %v9092_v11 = vpop.f32.mrb[15].mxu1 }
 0x208   : > { %v6743_v48 = vpop.f32.mrb[0].mxu0 }
 0x209   : > { %v6789_v36 = vadd.f32 %v6743_v48, %v6503_v27  ;;  %v4873_v47 = vpop.f32.mrb[1].mxu0 }
 0x20a   : > { %v6790_v12 = vadd.f32 %v4873_v47, %v1982_v46  ;;  %v6744_v51 = vpop.f32.mrb[2].mxu0 }
 0x20b   : > { %v5041_v32 = vadd.f32 %v6789_v36, %v9097_v8  ;;  %v6791_v5 = vadd.f32 %v6744_v51, %v6504_v2  ;;  %v4876_v62 = vpop.f32.mrb[3].mxu0 }
 0x20c   : > { %v5039_v41 = vadd.f32 %v6790_v12, %v9097_v8  ;;  %v6792_v6 = vadd.f32 %v4876_v62, %v1985_v42 }
 0x20d   : > { %v5042_v9 = vadd.f32 %v6791_v5, %v9097_v8  ;;  %v5073_v18 = vmax.f32 %v5041_v32, 0.0 }
 0x20e   : > { %v5040_v26 = vadd.f32 %v6792_v6, %v9097_v8  ;;  %v5071_v14 = vmax.f32 %v5039_v41, 0.0 }
 0x20f   : > { %v5074_v33 = vmax.f32 %v5042_v9, 0.0 }
 0x210   : > { %v5072_v10 = vmax.f32 %v5040_v26, 0.0  ;;  %v6747_v39 = vpop.f32.mrb[4].mxu0 }
 0x211   : > { %v6038_v50 = vpack.c.bf16 %v5074_v33, %v5073_v18  ;;  %v6793_v23 = vadd.f32 %v6747_v39, %v6507_v17  ;;  %v4889_v3 = vpop.f32.mrb[5].mxu0 }
 0x212   : > { %v6033_v58 = vpack.c.bf16 %v5072_v10, %v5071_v14  ;;  %v6794_v22 = vadd.f32 %v4889_v3, %v1998_v55  ;;  %v6748_v59 = vpop.f32.mrb[6].mxu0 }
 0x213   : > { %6110 = vst [vmem:[%s9107_s29 + $0x8] sm:$0xff] %v6038_v50   ;;  %v5045_v30 = vadd.f32 %v6793_v23, %v9097_v8  ;;  %v6795_v19 = vadd.f32 %v6748_v59, %v6508_v49  ;;  %v4892_v52 = vpop.f32.mrb[7].mxu0 }
 0x214   : > { %6034 = vst [vmem:[%s9107_s29] sm:$0xff] %v6033_v58   ;;  %v5043_v15 = vadd.f32 %v6794_v22, %v9097_v8  ;;  %v6796_v43 = vadd.f32 %v4892_v52, %v2001_v28 }
 0x215   : > { %v5046_v38 = vadd.f32 %v6795_v19, %v9097_v8  ;;  %v5077_v1 = vmax.f32 %v5045_v30, 0.0 }
 0x216   : > { %v5044_v56 = vadd.f32 %v6796_v43, %v9097_v8  ;;  %v5075_v63 = vmax.f32 %v5043_v15, 0.0 }
 0x217   : > { %v5078_v31 = vmax.f32 %v5046_v38, 0.0 }
 0x218   : > { %v5076_v20 = vmax.f32 %v5044_v56, 0.0  ;;  %v6751_v29 = vpop.f32.mrb[8].mxu0 }
 0x219   : > { %v6048_v44 = vpack.c.bf16 %v5078_v31, %v5077_v1  ;;  %v6797_v35 = vadd.f32 %v6751_v29, %v6511_v24  ;;  %v4905_v4 = vpop.f32.mrb[9].mxu0 }
 0x21a   : > { %v6043_v57 = vpack.c.bf16 %v5076_v20, %v5075_v63  ;;  %v6798_v53 = vadd.f32 %v4905_v4, %v2014_v40  ;;  %v6752_v7 = vpop.f32.mrb[10].mxu0 }
 0x21b   : > { %6112 = vst [vmem:[%s9107_s29 + $0x18] sm:$0xff] %v6048_v44   ;;  %v5049_v25 = vadd.f32 %v6797_v35, %v9097_v8  ;;  %v6799_v16 = vadd.f32 %v6752_v7, %v6512_v21  ;;  %v4908_v54 = vpop.f32.mrb[11].mxu0 }
 0x21c   : > { %6111 = vst [vmem:[%s9107_s29 + $0x10] sm:$0xff] %v6043_v57   ;;  %v5047_v13 = vadd.f32 %v6798_v53, %v9097_v8  ;;  %v6800_v60 = vadd.f32 %v4908_v54, %v2017_v61 }
 0x21d   : > { %v5050_v0 = vadd.f32 %v6799_v16, %v9097_v8  ;;  %v5081_v46 = vmax.f32 %v5049_v25, 0.0 }
 0x21e   : > { %v5048_v27 = vadd.f32 %v6800_v60, %v9097_v8  ;;  %v5079_v42 = vmax.f32 %v5047_v13, 0.0 }
 0x21f   : > { %v5082_v2 = vmax.f32 %v5050_v0, 0.0 }
 0x220   : > { %v5080_v17 = vmax.f32 %v5048_v27, 0.0  ;;  %v6755_v55 = vpop.f32.mrb[12].mxu0 }
 0x221   : > { %v6058_v49 = vpack.c.bf16 %v5082_v2, %v5081_v46  ;;  %v6801_v28 = vadd.f32 %v6755_v55, %v9086_v37  ;;  %v4921_v24 = vpop.f32.mrb[13].mxu0 }
 0x222   : > { %v6053_v40 = vpack.c.bf16 %v5080_v17, %v5079_v42  ;;  %v6802_v21 = vadd.f32 %v4921_v24, %v9088_v45  ;;  %v6756_v48 = vpop.f32.mrb[14].mxu0 }
 0x223   : > { %6114 = vst [vmem:[%s9107_s29 + $0x28] sm:$0xff] %v6058_v49   ;;  %v5053_v61 = vadd.f32 %v6801_v28, %v9097_v8  ;;  %v6803_v36 = vadd.f32 %v6756_v48, %v9090_v34  ;;  %v4924_v47 = vpop.f32.mrb[15].mxu0 }
 0x224   : > { %6113 = vst [vmem:[%s9107_s29 + $0x20] sm:$0xff] %v6053_v40   ;;  %v5051_v12 = vadd.f32 %v6802_v21, %v9097_v8  ;;  %v6804_v51 = vadd.f32 %v4924_v47, %v9092_v11 }
 0x225   : > { %v5054_v32 = vadd.f32 %v6803_v36, %v9097_v8  ;;  %v5085_v5 = vmax.f32 %v5053_v61, 0.0 }
 0x226   : > { %v5052_v37 = vadd.f32 %v6804_v51, %v9097_v8  ;;  %v5083_v62 = vmax.f32 %v5051_v12, 0.0 }
 0x227   : > { %v5086_v45 = vmax.f32 %v5054_v32, 0.0 }
 0x228   : > { %v5084_v41 = vmax.f32 %v5052_v37, 0.0  ;;  %v6759_v6 = vpop.f32.mrb[16].mxu0 }
 0x229   : > { %v6068_v9 = vpack.c.bf16 %v5086_v45, %v5085_v5  ;;  %v6567_v26 = vpop.f32.mrb[16].mxu1  ;;  %v4937_v34 = vpop.f32.mrb[17].mxu0 }
 0x22a   : > { %v6063_v18 = vpack.c.bf16 %v5084_v41, %v5083_v62  ;;  %v6805_v33 = vadd.f32 %v6759_v6, %v6567_v26  ;;  %v2800_v14 = vpop.f32.mrb[17].mxu1  ;;  %v6760_v10 = vpop.f32.mrb[18].mxu0 }
 0x22b   : > { %6116 = vst [vmem:[%s9107_s29 + $0x38] sm:$0xff] %v6068_v9   ;;  %v6806_v39 = vadd.f32 %v4937_v34, %v2800_v14  ;;  %v6568_v11 = vpop.f32.mrb[18].mxu1  ;;  %v4940_v50 = vpop.f32.mrb[19].mxu0 }
 0x22c   : > { %6115 = vst [vmem:[%s9107_s29 + $0x30] sm:$0xff] %v6063_v18   ;;  %v5057_v23 = vadd.f32 %v6805_v33, %v9097_v8  ;;  %v6807_v3 = vadd.f32 %v6760_v10, %v6568_v11  ;;  %v2803_v58 = vpop.f32.mrb[19].mxu1 }
 0x22d   : > { %v5055_v22 = vadd.f32 %v6806_v39, %v9097_v8  ;;  %v6808_v59 = vadd.f32 %v4940_v50, %v2803_v58 }
 0x22e   : > { %v5058_v30 = vadd.f32 %v6807_v3, %v9097_v8  ;;  %v5089_v52 = vmax.f32 %v5057_v23, 0.0 }
 0x22f   : > { %v5056_v19 = vadd.f32 %v6808_v59, %v9097_v8  ;;  %v5087_v38 = vmax.f32 %v5055_v22, 0.0 }
 0x230   : > { %v5090_v15 = vmax.f32 %v5058_v30, 0.0  ;;  %v6763_v43 = vpop.f32.mrb[20].mxu0 }
 0x231   : > { %v5088_v56 = vmax.f32 %v5056_v19, 0.0  ;;  %v6571_v1 = vpop.f32.mrb[20].mxu1  ;;  %v4953_v31 = vpop.f32.mrb[21].mxu0 }
 0x232   : > { %v6078_v63 = vpack.c.bf16 %v5090_v15, %v5089_v52  ;;  %v6809_v20 = vadd.f32 %v6763_v43, %v6571_v1  ;;  %v2816_v29 = vpop.f32.mrb[21].mxu1  ;;  %v6764_v44 = vpop.f32.mrb[22].mxu0 }
 0x233   : > { %v6073_v35 = vpack.c.bf16 %v5088_v56, %v5087_v38  ;;  %v6810_v4 = vadd.f32 %v4953_v31, %v2816_v29  ;;  %v6572_v57 = vpop.f32.mrb[22].mxu1  ;;  %v4956_v53 = vpop.f32.mrb[23].mxu0 }
 0x234   : > { %6118 = vst [vmem:[%s9107_s29 + $0x48] sm:$0xff] %v6078_v63   ;;  %v5061_v7 = vadd.f32 %v6809_v20, %v9097_v8  ;;  %v6811_v25 = vadd.f32 %v6764_v44, %v6572_v57  ;;  %v2819_v16 = vpop.f32.mrb[23].mxu1 }
 0x235   : > { %6117 = vst [vmem:[%s9107_s29 + $0x40] sm:$0xff] %v6073_v35   ;;  %v5059_v54 = vadd.f32 %v6810_v4, %v9097_v8  ;;  %v6812_v13 = vadd.f32 %v4956_v53, %v2819_v16 }
 0x236   : > { %v5062_v60 = vadd.f32 %v6811_v25, %v9097_v8  ;;  %v5093_v27 = vmax.f32 %v5061_v7, 0.0 }
 0x237   : > { %v5060_v0 = vadd.f32 %v6812_v13, %v9097_v8  ;;  %v5091_v42 = vmax.f32 %v5059_v54, 0.0 }
 0x238   : > { %v5094_v46 = vmax.f32 %v5062_v60, 0.0  ;;  %v6767_v2 = vpop.f32.mrb[24].mxu0 }
 0x239   : > { %v5092_v17 = vmax.f32 %v5060_v0, 0.0  ;;  %v6575_v55 = vpop.f32.mrb[24].mxu1  ;;  %v4969_v49 = vpop.f32.mrb[25].mxu0 }
 0x23a   : > { %v6088_v28 = vpack.c.bf16 %v5094_v46, %v5093_v27  ;;  %v6813_v24 = vadd.f32 %v6767_v2, %v6575_v55  ;;  %v2832_v40 = vpop.f32.mrb[25].mxu1  ;;  %v6768_v21 = vpop.f32.mrb[26].mxu0 }
 0x23b   : > { %v6083_v48 = vpack.c.bf16 %v5092_v17, %v5091_v42  ;;  %v6814_v61 = vadd.f32 %v4969_v49, %v2832_v40  ;;  %v6576_v36 = vpop.f32.mrb[26].mxu1  ;;  %v4972_v47 = vpop.f32.mrb[27].mxu0 }
 0x23c   : > { %6120 = vst [vmem:[%s9107_s29 + $0x58] sm:$0xff] %v6088_v28   ;;  %v5065_v12 = vadd.f32 %v6813_v24, %v9097_v8  ;;  %v6815_v51 = vadd.f32 %v6768_v21, %v6576_v36  ;;  %v2835_v32 = vpop.f32.mrb[27].mxu1 }
 0x23d   : > { %6119 = vst [vmem:[%s9107_s29 + $0x50] sm:$0xff] %v6083_v48   ;;  %v5063_v37 = vadd.f32 %v6814_v61, %v9097_v8  ;;  %v6816_v5 = vadd.f32 %v4972_v47, %v2835_v32 }
 0x23e   : > { %v5066_v45 = vadd.f32 %v6815_v51, %v9097_v8  ;;  %v5097_v41 = vmax.f32 %v5065_v12, 0.0 }
 0x23f   : > { %v5064_v62 = vadd.f32 %v6816_v5, %v9097_v8  ;;  %v5095_v26 = vmax.f32 %v5063_v37, 0.0 }
 0x240   : > { %v5098_v6 = vmax.f32 %v5066_v45, 0.0  ;;  %v6771_v9 = vpop.f32.mrb[28].mxu0 }
 0x241   : > { %v5096_v34 = vmax.f32 %v5064_v62, 0.0  ;;  %v6579_v18 = vpop.f32.mrb[28].mxu1  ;;  %v4985_v33 = vpop.f32.mrb[29].mxu0 }
 0x242   : > { %v6098_v14 = vpack.c.bf16 %v5098_v6, %v5097_v41  ;;  %v6817_v10 = vadd.f32 %v6771_v9, %v6579_v18  ;;  %v2848_v39 = vpop.f32.mrb[29].mxu1  ;;  %v6772_v11 = vpop.f32.mrb[30].mxu0 }
 0x243   : > { %v6093_v50 = vpack.c.bf16 %v5096_v34, %v5095_v26  ;;  %v6818_v23 = vadd.f32 %v4985_v33, %v2848_v39  ;;  %v6580_v3 = vpop.f32.mrb[30].mxu1  ;;  %v4988_v58 = vpop.f32.mrb[31].mxu0 }
 0x244   : > { %6122 = vst [vmem:[%s9107_s29 + $0x68] sm:$0xff] %v6098_v14   ;;  %v5069_v22 = vadd.f32 %v6817_v10, %v9097_v8  ;;  %v6819_v59 = vadd.f32 %v6772_v11, %v6580_v3  ;;  %v2851_v30 = vpop.f32.mrb[31].mxu1 }
 0x245   : > { %6121 = vst [vmem:[%s9107_s29 + $0x60] sm:$0xff] %v6093_v50   ;;  %v5067_v19 = vadd.f32 %v6818_v23, %v9097_v8  ;;  %v6820_v52 = vadd.f32 %v4988_v58, %v2851_v30 }
 0x246   : > { %v5070_v15 = vadd.f32 %v6819_v59, %v9097_v8  ;;  %v5101_v38 = vmax.f32 %v5069_v22, 0.0 }
 0x247   : > { %v5068_v43 = vadd.f32 %v6820_v52, %v9097_v8  ;;  %v5099_v1 = vmax.f32 %v5067_v19, 0.0 }
 0x248   : > { %v5102_v56 = vmax.f32 %v5070_v15, 0.0 }
 0x249   : > { %v5100_v31 = vmax.f32 %v5068_v43, 0.0 }
 0x24a   : > { %v6108_v63 = vpack.c.bf16 %v5102_v56, %v5101_v38 }
 0x24b   : > { %v6103_v20 = vpack.c.bf16 %v5100_v31, %v5099_v1 }
 0x24c   : > { %6124 = vst [vmem:[%s9107_s29 + $0x78] sm:$0xff] %v6108_v63  }
 0x24d   : > { %6123 = vst [vmem:[%s9107_s29 + $0x70] sm:$0xff] %v6103_v20  }
 0x24e PF: > { %s13_s14 = sadd.s32 1, %s7282_s14   ;;  %s9236_s12 = smov %s7278_s13 }
 0x24f   : > { %p10_p5 = scmp.ge.s32.totalorder %s13_s14, 6   ;;  %s9237_s13 = smov %s9239_s15 }
 0x251   :  { %12 = sbr.rel (!%p10_p5) target bundleno = 2 (0x2), region = 78 }

// kernel: resnet_pl_loss.12
= control target key start
LH: loop header
LB: loop body
LE: loop exit
PB: predicated region body
PF: predicated region fallthrough
CT: control target
= control target key end

     0   :  { %s6690_s12 = smov 0   ;;  %s6692_s13 = smov 0   ;;  %s7998_s0 = inlined_call_operand.vmem [shape: bf16[4,20,20,128], index: 0, kind: input, shape index: {}]   ;;  %s7999_s1 = inlined_call_operand.vmem [shape: bf16[3,3,128,128], index: 1, kind: input, shape index: {}]   ;;  %s8000_s2 = inlined_call_operand.vmem [shape: f32[1,128], index: 2, kind: input, shape index: {}]   ;;  %s8001_s3 = inlined_call_operand.vmem [shape: bf16[4,16,16,128], index: 3, kind: output, shape index: {}]  }
   0x1   :  { %s6694_s14 = smov 0  }
   0x2 LB: > { %s25_s15 = sadd.s32 1, %s6664_s13  ;;  %p4718_p0 = scmp.ge.s32.totalorder %s6668_s14, 1  ;;  %s6668_s14 = sphi %s6694_s14, %s13_s14   ;;  %s6664_s13 = sphi %s6692_s13, %s8007_s13   ;;  %s6660_s12 = sphi %s6690_s12, %s8006_s12  }
   0x3   : > { %p27_p1 = scmp.ge.s32.totalorder %s25_s15, 4  ;;  %p168_p2 = scmp.lt.s32.totalorder %s6668_s14, 5 }
   0x5   : > { %s8009_s15 = smov (%p27_p1, %s25_s15), 0  ;;  %p169_p3 = pnand %p4718_p0, %p168_p2 }
   0x6   : > { %v6494_v0 = vld [vmem:[%s7999_s1 + $0x40] sm:$0xff] (!%p169_p3)   ;;  %p202_p4 = scmp.lt.s32.totalorder (!%p169_p3), %s6660_s12, 3  ;;  %v6496_v2 = vld [vmem:[%s7999_s1 + $0x48] sm:$0xff] (!%p169_p3)   ;;  %v6498_v4 = vld [vmem:[%s7999_s1 + $0x50] sm:$0xff] (!%p169_p3)   ;;  %vm351_vm0 = vcmask (!%p169_p3), 1042432   ;;  %vm352_vm1 = vcmask (!%p169_p3), 1046532  }
   0x7   : > { %172 = sbr.rel (%p169_p3) target bundleno = 544 (0x220), region = 32  ;;  %v6495_v1 = vld [vmem:[%s7999_s1 + $0x100] sm:$0xff] (!%p169_p3)   ;;  %5765 = vmatprep.subr.bf16.mxu1 (!%p169_p3), %v6494_v0  ;;  %v6497_v3 = vld [vmem:[%s7999_s1 + $0x108] sm:$0xff] (!%p169_p3)   ;;  %v6499_v5 = vld [vmem:[%s7999_s1 + $0x110] sm:$0xff] (!%p169_p3)   ;;  %vm1109_vm3 = vcmask (!%p169_p3), 1041408   ;;  %vm1110_vm4 = vcmask (!%p169_p3), 1045508  }
   0x8   : > { %5957 = vmatprep.subr.bf16.mxu0 (!%p169_p3), %v6495_v1  ;;  %5766 = vmatpush3.bf16.msra.mxu1 (!%p169_p3), %v6494_v0  ;;  %v6500_v6 = vld [vmem:[%s7999_s1 + $0x58] sm:$0xff] (!%p169_p3)   ;;  %v6502_v8 = vld [vmem:[%s7999_s1 + $0x60] sm:$0xff] (!%p169_p3)   ;;  %v6504_v10 = vld [vmem:[%s7999_s1 + $0x68] sm:$0xff] (!%p169_p3)  }
   0x9   : > { %5958 = vmatpush3.bf16.msra.mxu0 (!%p169_p3), %v6495_v1  ;;  %5767 = vmatprep.subr.bf16.mxu1 (!%p169_p3), %v6496_v2  ;;  %v6501_v7 = vld [vmem:[%s7999_s1 + $0x118] sm:$0xff] (!%p169_p3)   ;;  %v6503_v9 = vld [vmem:[%s7999_s1 + $0x120] sm:$0xff] (!%p169_p3)   ;;  %v6505_v14 = vld [vmem:[%s7999_s1 + $0x128] sm:$0xff] (!%p169_p3)  }
   0xa   : > { %5959 = vmatprep.subr.bf16.mxu0 (!%p169_p3), %v6497_v3  ;;  %vm6757_vm2 = vmor (!%p169_p3), %vm351_vm0, %vm352_vm1  ;;  %v6506_v28 = vld [vmem:[%s7999_s1 + $0x70] sm:$0xff] (!%p169_p3)   ;;  %v6508_v45 = vld [vmem:[%s7999_s1 + $0x78] sm:$0xff] (!%p169_p3)  }
   0xb   : > { %v6507_v32 = vld [vmem:[%s7999_s1 + $0x130] sm:$0xff] (!%p169_p3)   ;;  %v6509_v48 = vld [vmem:[%s7999_s1 + $0x138] sm:$0xff] (!%p169_p3)   ;;  %v6510_v55 = vld [vmem:[%s7999_s1] sm:$0xff] (!%p169_p3)  }
   0xc   : > { %5768 = vmatpush3.bf16.msra.mxu1 (!%p169_p3), %v6496_v2  ;;  %v6511_v57 = vld [vmem:[%s7999_s1 + $0x140] sm:$0xff] (!%p169_p3)   ;;  %vm6994_vm5 = vmor (!%p169_p3), %vm1109_vm3, %vm1110_vm4 }
   0xd   : > { %5960 = vmatpush3.bf16.msra.mxu0 (!%p169_p3), %v6497_v3  ;;  %5769 = vmatprep.subr.bf16.mxu1 (!%p169_p3), %v6498_v4 }
   0xe   : > { %s8011_s12 = smov (!%p202_p4, %s6660_s12), 3  ;;  %5961 = vmatprep.subr.bf16.mxu0 %v6499_v5 }
   0xf   : > { %s6469_s5 = smul.u32 240, %s8011_s12  ;;  %s5421_s26 = sshll.u32 %s8011_s12, 7 }
  0x10   : > { %5770 = vmatpush3.bf16.msra.mxu1 %v6498_v4  ;;  %s7939_s29 = scalar_lea.vmem %s8001_s3, %s5421_s26 }
  0x11   : > { %5962 = vmatpush3.bf16.msra.mxu0 %v6499_v5  ;;  %5771 = vmatprep.subr.bf16.mxu1 %v6500_v6  ;;  %s6744_s16 = scalar_lea.vmem %s7998_s0, %s6469_s5 }
  0x12   : > { %5963 = vmatprep.subr.bf16.mxu0 %v6501_v7  ;;  %v6750_v11 = vld [vmem:[%s6744_s16 + $0x4] sm:$0xf]  ;;  %v271_v12 = vld [vmem:[%s6744_s16] sm:$0xe]  ;;  %v272_v13 = vld [vmem:[%s6744_s16 + $0x8] sm:$0x1] }
  0x13   : > { %v4722_v16 = vrot.slane %v271_v12, 9  ;;  %v356_v17 = vrot.slane %v6750_v11, 5  ;;  %v359_v18 = vrot.slane %v272_v13, 5  ;;  %v4930_v19 = vld [vmem:[%s6744_s16 + $0x18] sm:$0xe] }
  0x14   : > { %5772 = vmatpush3.bf16.msra.mxu1 %v6500_v6  ;;  %v6764_v20 = vld [vmem:[%s6744_s16 + $0x1c] sm:$0xf]  ;;  %v4932_v21 = vld [vmem:[%s6744_s16 + $0x20] sm:$0x1]  ;;  %v4978_v22 = vrot.slane %v4930_v19, 9 }
  0x15   : > { %5964 = vmatpush3.bf16.msra.mxu0 %v6501_v7  ;;  %5773 = vmatprep.subr.bf16.mxu1 %v6502_v8  ;;  %v357_v23 = vsel %vm6757_vm2, %v4722_v16, %v356_v17  ;;  %v358_v24 = vrot.slane %v356_v17, 4  ;;  %v2031_v25 = vrot.slane %v6764_v20, 5  ;;  %v2034_v26 = vrot.slane %v4932_v21, 5  ;;  %v6771_v27 = vld [vmem:[%s6744_s16 + $0x10] sm:$0xf] }
  0x16   : > { %5965 = vmatprep.subr.bf16.mxu0 %v6503_v9  ;;  %v273_v29 = vld [vmem:[%s6744_s16 + $0xc] sm:$0xe]  ;;  %v274_v30 = vld [vmem:[%s6744_s16 + $0x14] sm:$0x1]  ;;  %v363_v31 = vrot.slane %v6771_v27, 5  ;;  %v2529_v61 = vrot.slane %v6764_v20, 6 }
  0x17   : > { %v360_v33 = vsel %vm6757_vm2, %v358_v24, %v359_v18  ;;  %v2032_v34 = vsel %vm6757_vm2, %v4978_v22, %v2031_v25  ;;  %v2033_v35 = vrot.slane %v2031_v25, 4  ;;  %v4723_v37 = vrot.slane %v273_v29, 9  ;;  %v4933_v39 = vld [vmem:[%s6744_s16 + $0x24] sm:$0xe]  ;;  %v6790_v42 = vld [vmem:[%s6744_s16 + $0x28] sm:$0xf] }
  0x18   : > { %5774 = vmatpush3.bf16.msra.mxu1 %v6502_v8  ;;  %v4754_v36 = vcombine.low %v357_v23, %v360_v33  ;;  %v365_v38 = vrot.slane %v363_v31, 4  ;;  %v366_v41 = vrot.slane %v274_v30, 5  ;;  %v4935_v43 = vld [vmem:[%s6744_s16 + $0x2c] sm:$0x1]  ;;  %v4979_v44 = vrot.slane %v4933_v39, 9  ;;  %v6514_v39 = vld [vmem:[%s7999_s1 + $0x150] sm:$0xff]  }
  0x19   : > { %5966 = vmatpush3.bf16.msra.mxu0 %v6503_v9  ;;  %5775 = vmatprep.subr.bf16.mxu1 %v6504_v10  ;;  %v2035_v40 = vsel %vm6757_vm2, %v2033_v35, %v2034_v26  ;;  %v2038_v47 = vrot.slane %v6790_v42, 5  ;;  %v2041_v49 = vrot.slane %v4935_v43, 5  ;;  %v364_v50 = vsel %vm6757_vm2, %v4723_v37, %v363_v31  ;;  %v6803_v52 = vld [vmem:[%s6744_s16 + $0x1c] sm:$0xf]  ;;  %v275_v53 = vld [vmem:[%s6744_s16 + $0x18] sm:$0xe] }
  0x1a   : > { %5967 = vmatprep.subr.bf16.mxu0 %v6505_v14  ;;  %v5010_v46 = vcombine.low %v2032_v34, %v2035_v40  ;;  %5781 = vmatprep.mubr.bf16.mxu1 %v4754_v36  ;;  %v367_v54 = vsel %vm6757_vm2, %v365_v38, %v366_v41  ;;  %v276_v58 = vld [vmem:[%s6744_s16 + $0x20] sm:$0x1]  ;;  %v4724_v59 = vrot.slane %v275_v53, 9  ;;  %v370_v60 = vrot.slane %v6803_v52, 5  ;;  %v4936_v0 = vld [vmem:[%s6744_s16 + $0x30] sm:$0xe] }
  0x1b   : > { %v2040_v51 = vrot.slane %v2038_v47, 4  ;;  %v2039_v56 = vsel %vm6757_vm2, %v4979_v44, %v2038_v47  ;;  %v373_v63 = vrot.slane %v276_v58, 5  ;;  %v6823_v1 = vld [vmem:[%s6744_s16 + $0x34] sm:$0xf]  ;;  %v4938_v4 = vld [vmem:[%s6744_s16 + $0x38] sm:$0x1]  ;;  %v4755_v7 = vcombine.low %v364_v50, %v367_v54 }
  0x1c   : > { %5776 = vmatpush3.bf16.msra.mxu1 %v6504_v10  ;;  %5973 = vmatprep.mubr.bf16.mxu0 %v5010_v46  ;;  %v371_v2 = vsel %vm6757_vm2, %v4724_v59, %v370_v60  ;;  %v372_v3 = vrot.slane %v370_v60, 4  ;;  %v4980_v5 = vrot.slane %v4936_v0, 9  ;;  %v6829_v6 = vld [vmem:[%s6744_s16 + $0x28] sm:$0xf]  ;;  %v2045_v9 = vrot.slane %v6823_v1, 5  ;;  %v6516_v36 = vld [vmem:[%s7999_s1 + $0x10] sm:$0xff]  }
  0x1d   : > { %5968 = vmatpush3.bf16.msra.mxu0 %v6505_v14  ;;  %5777 = vmatprep.subr.bf16.mxu1 %v6506_v28  ;;  %v2042_v62 = vsel %vm6757_vm2, %v2040_v51, %v2041_v49  ;;  %v2048_v10 = vrot.slane %v4938_v4, 5  ;;  %v277_v12 = vld [vmem:[%s6744_s16 + $0x24] sm:$0xe]  ;;  %v278_v13 = vld [vmem:[%s6744_s16 + $0x2c] sm:$0x1]  ;;  %v377_v18 = vrot.slane %v6829_v6, 5 }
  0x1e   : > { %5969 = vmatprep.subr.bf16.mxu0 %v6507_v32  ;;  %v5011_v8 = vcombine.low %v2039_v56, %v2042_v62  ;;  %v6512_v14 = vld [vmem:[%s7999_s1 + $0x148] sm:$0xff]   ;;  %v374_v16 = vsel %vm6757_vm2, %v372_v3, %v373_v63  ;;  %v4725_v17 = vrot.slane %v277_v12, 9  ;;  %v380_v19 = vrot.slane %v278_v13, 5  ;;  %v4939_v26 = vld [vmem:[%s6744_s16 + $0x3c] sm:$0xe] }
  0x1f   : > { %v2536_v21 = vrot.slane %v6790_v42, 6  ;;  %v4756_v22 = vcombine.low %v371_v2, %v374_v16  ;;  %v2046_v23 = vsel %vm6757_vm2, %v4980_v5, %v2045_v9  ;;  %v2047_v24 = vrot.slane %v2045_v9, 4  ;;  %v6513_v25 = vld [vmem:[%s7999_s1 + $0x8] sm:$0xff]   ;;  %v6848_v29 = vld [vmem:[%s6744_s16 + $0x40] sm:$0xf]  ;;  %v6515_v60 = vld [vmem:[%s7999_s1 + $0x158] sm:$0xff]  }
  0x20   : > { %5778 = vmatpush3.bf16.msra.mxu1 %v6506_v28  ;;  %v379_v28 = vrot.slane %v377_v18, 4  ;;  %v4941_v30 = vld [vmem:[%s6744_s16 + $0x44] sm:$0x1]  ;;  %v4981_v31 = vrot.slane %v4939_v26, 9  ;;  %v378_v33 = vsel %vm6757_vm2, %v4725_v17, %v377_v18  ;;  %v2052_v34 = vrot.slane %v6848_v29, 5 }
  0x21   : > { %5970 = vmatpush3.bf16.msra.mxu0 %v6507_v32  ;;  %5779 = vmatprep.subr.bf16.mxu1 %v6508_v45  ;;  %v2049_v32 = vsel %vm6757_vm2, %v2047_v24, %v2048_v10  ;;  %v2055_v35 = vrot.slane %v4941_v30, 5  ;;  %v6865_v40 = vld [vmem:[%s6744_s16 + $0x34] sm:$0xf]  ;;  %v279_v44 = vld [vmem:[%s6744_s16 + $0x30] sm:$0xe]  ;;  %v6882_v58 = vrot.slane %v2536_v21, 4 }
  0x22   : > { %5971 = vmatprep.subr.bf16.mxu0 %v6509_v48  ;;  %v5012_v37 = vcombine.low %v2046_v23, %v2049_v32  ;;  %v381_v38 = vsel %vm6757_vm2, %v379_v28, %v380_v19  ;;  %v2053_v41 = vsel %vm6757_vm2, %v4981_v31, %v2052_v34  ;;  %v2054_v43 = vrot.slane %v2052_v34, 4  ;;  %v4942_v50 = vld [vmem:[%s6744_s16 + $0x48] sm:$0xe]  ;;  %v6874_v51 = vld [vmem:[%s6744_s16 + $0x4c] sm:$0xf]  ;;  %v6519_v19 = vld [vmem:[%s7999_s1 + $0x18] sm:$0xff]  }
  0x23   : > { %v384_v46 = vrot.slane %v6865_v40, 5  ;;  %v4757_v47 = vcombine.low %v378_v33, %v381_v38  ;;  %v4982_v56 = vrot.slane %v4942_v50, 9  ;;  %v6890_v0 = vld [vmem:[%s6744_s16 + $0x40] sm:$0xf]  ;;  %v281_v2 = vld [vmem:[%s6744_s16 + $0x3c] sm:$0xe] }
  0x24   : > { %5780 = vmatpush3.bf16.msra.mxu1 %v6508_v45  ;;  %v280_v45 = vld [vmem:[%s6744_s16 + $0x38] sm:$0x1]  ;;  %v2056_v53 = vsel %vm6757_vm2, %v2054_v43, %v2055_v35  ;;  %v391_v10 = vrot.slane %v6890_v0, 5  ;;  %v4945_v13 = vld [vmem:[%s6744_s16 + $0x54] sm:$0xe]  ;;  %v6517_v28 = vld [vmem:[%s7999_s1 + $0x160] sm:$0xff]  }
  0x25   : > { %5972 = vmatpush3.bf16.msra.mxu0 %v6509_v48  ;;  %5813 = vmatprep.subr.bf16.mxu1 %v6510_v55  ;;  %v4726_v48 = vrot.slane %v279_v44, 9  ;;  %v387_v49 = vrot.slane %v280_v45, 5  ;;  %v386_v54 = vrot.slane %v384_v46, 4  ;;  %v5013_v59 = vcombine.low %v2053_v41, %v2056_v53  ;;  %v6903_v16 = vld [vmem:[%s6744_s16 + $0x58] sm:$0xf]  ;;  %v6522_v35 = vld [vmem:[%s7999_s1 + $0x20] sm:$0xff]  }
  0x26   : > { %6005 = vmatprep.subr.bf16.mxu0 %v6511_v57  ;;  %v4947_v17 = vld [vmem:[%s6744_s16 + $0x5c] sm:$0x1]  ;;  %v4983_v18 = vrot.slane %v4945_v13, 9  ;;  %v393_v24 = vrot.slane %v391_v10, 4  ;;  %v6920_v33 = vld [vmem:[%s6744_s16 + $0x4c] sm:$0xf] }
  0x27   : > { %5782 = vmatmul.mubr.bf16.vlgmr.msra.gmra.mrb[0].mxu1 %v4755_v7  ;;  %v385_v62 = vsel %vm6757_vm2, %v4726_v48, %v384_v46  ;;  %v388_v3 = vsel %vm6757_vm2, %v386_v54, %v387_v49  ;;  %v282_v7 = vld [vmem:[%s6744_s16 + $0x44] sm:$0x1]  ;;  %v2069_v26 = vrot.slane %v4947_v17, 5  ;;  %v283_v34 = vld [vmem:[%s6744_s16 + $0x48] sm:$0xe]  ;;  %v6520_v13 = vld [vmem:[%s7999_s1 + $0x170] sm:$0xff]  }
  0x28   : > { %5974 = vmatmul.mubr.bf16.vlgmr.msra.gmra.mrb[0].mxu0 %v5011_v8  ;;  %5814 = vmatpush3.bf16.msra.mxu1 %v6510_v55  ;;  %v4944_v55 = vld [vmem:[%s6744_s16 + $0x50] sm:$0x1]  ;;  %v4727_v8 = vrot.slane %v281_v2, 9  ;;  %v4758_v9 = vcombine.low %v385_v62, %v388_v3  ;;  %v394_v12 = vrot.slane %v282_v7, 5  ;;  %v4728_v38 = vrot.slane %v283_v34, 9  ;;  %v6518_v44 = vld [vmem:[%s7999_s1 + $0x168] sm:$0xff]  }
  0x29   : > { %6006 = vmatpush3.bf16.msra.mxu0 %v6511_v57  ;;  %5785 = vmatprep.mubr.bf16.mxu1 %v4756_v22  ;;  %v2059_v57 = vrot.slane %v6874_v51, 5  ;;  %v2062_v63 = vrot.slane %v4944_v55, 5  ;;  %v4948_v41 = vld [vmem:[%s6744_s16 + $0x60] sm:$0xe]  ;;  %v6935_v46 = vld [vmem:[%s6744_s16 + $0x64] sm:$0xf] }
  0x2a   : > { %6007 = vmatprep.subr.bf16.mxu0 %v6512_v14  ;;  %5977 = vmatprep.mubr.bf16.mxu0 %v5012_v37  ;;  %v392_v23 = vsel %vm6757_vm2, %v4727_v8, %v391_v10  ;;  %v395_v30 = vsel %vm6757_vm2, %v393_v24, %v394_v12  ;;  %v284_v37 = vld [vmem:[%s6744_s16 + $0x50] sm:$0x1]  ;;  %v4984_v48 = vrot.slane %v4948_v41, 9  ;;  %v2073_v54 = vrot.slane %v6935_v46, 5  ;;  %v6942_v55 = vld [vmem:[%s6744_s16 + $0x58] sm:$0xf] }
  0x2b   : > { %5815 = vmatprep.subr.bf16.mxu1 %v6513_v25  ;;  %v2060_v4 = vsel %vm6757_vm2, %v4982_v56, %v2059_v57  ;;  %v2061_v5 = vrot.slane %v2059_v57, 4  ;;  %v401_v45 = vrot.slane %v284_v37, 5  ;;  %v285_v56 = vld [vmem:[%s6744_s16 + $0x54] sm:$0xe]  ;;  %v4951_v10 = vld [vmem:[%s6744_s16 + $0x6c] sm:$0xe] }
  0x2c   : > { %5816 = vmatpush3.bf16.msra.mxu1 %v6513_v25  ;;  %v2066_v25 = vrot.slane %v6903_v16, 5  ;;  %v4729_v62 = vrot.slane %v285_v56, 9  ;;  %v2074_v3 = vsel %vm6757_vm2, %v4984_v48, %v2073_v54  ;;  %v6959_v12 = vld [vmem:[%s6744_s16 + $0x70] sm:$0xf]  ;;  %v2550_v34 = vrot.slane %v6848_v29, 6 }
  0x2d   : > { %6008 = vmatpush3.bf16.msra.mxu0 %v6512_v14  ;;  %5817 = vmatprep.subr.bf16.mxu1 %v6516_v36  ;;  %v2063_v14 = vsel %vm6757_vm2, %v2061_v5, %v2062_v63  ;;  %v405_v63 = vrot.slane %v6942_v55, 5  ;;  %v288_v37 = vld [vmem:[%s6744_s16 + $0x68] sm:$0x1]  ;;  %v5034_v48 = vld [vmem:[%s6744_s16 + $0x18] sm:$0xc] }
  0x2e   : > { %6009 = vmatprep.subr.bf16.mxu0 %v6514_v39  ;;  %v5014_v22 = vcombine.low %v2060_v4, %v2063_v14  ;;  %v2067_v31 = vsel %vm6757_vm2, %v4983_v18, %v2066_v25  ;;  %v2068_v32 = vrot.slane %v2066_v25, 4  ;;  %v2075_v4 = vrot.slane %v2073_v54, 4  ;;  %v4953_v18 = vld [vmem:[%s6744_s16 + $0x74] sm:$0x1]  ;;  %v7001_v56 = vld [vmem:[%s6744_s16 + $0x70] sm:$0xf] }
  0x2f   : > { %5786 = vmatmul.mubr.bf16.gmra.mrb[4].mxu1 %v4757_v47  ;;  %v4950_v47 = vld [vmem:[%s6744_s16 + $0x68] sm:$0x1]  ;;  %v406_v8 = vsel %vm6757_vm2, %v4729_v62, %v405_v63  ;;  %v2543_v14 = vrot.slane %v6823_v1, 6  ;;  %v2083_v25 = vrot.slane %v4953_v18, 5  ;;  %v289_v62 = vld [vmem:[%s6744_s16 + $0x6c] sm:$0xe] }
  0x30   : > { %5978 = vmatmul.mubr.bf16.gmra.mrb[4].mxu0 %v5013_v59  ;;  %5789 = vmatprep.mubr.bf16.mxu1 %v4758_v9  ;;  %v2070_v43 = vsel %vm6757_vm2, %v2068_v32, %v2069_v26  ;;  %v2076_v57 = vrot.slane %v4950_v47, 5  ;;  %v286_v59 = vld [vmem:[%s6744_s16 + $0x5c] sm:$0x1]  ;;  %v407_v9 = vrot.slane %v405_v63, 4  ;;  %v6524_v26 = vld [vmem:[%s7999_s1 + $0x28] sm:$0xff]  }
  0x31   : > { %6010 = vmatpush3.bf16.msra.mxu0 %v6514_v39  ;;  %5818 = vmatpush3.bf16.msra.mxu1 %v6516_v36  ;;  %v4759_v36 = vcombine.low %v392_v23, %v395_v30  ;;  %v398_v39 = vrot.slane %v6920_v33, 5  ;;  %v5015_v49 = vcombine.low %v2067_v31, %v2070_v43  ;;  %v408_v5 = vrot.slane %v286_v59, 5  ;;  %v6977_v32 = vld [vmem:[%s6744_s16 + $0x64] sm:$0xf]  ;;  %v290_v63 = vld [vmem:[%s6744_s16 + $0x74] sm:$0x1] }
  0x32   : > { %6011 = vmatprep.subr.bf16.mxu0 %v6515_v60  ;;  %5981 = vmatprep.mubr.bf16.mxu0 %v5014_v22  ;;  %v2077_v17 = vsel %vm6757_vm2, %v2075_v4, %v2076_v57  ;;  %v2080_v22 = vrot.slane %v6959_v12, 5  ;;  %v6526_v57 = vld [vmem:[%s7999_s1 + $0x30] sm:$0xff]   ;;  %v422_v18 = vrot.slane %v290_v63, 5 }
  0x33   : > { %5819 = vmatprep.subr.bf16.mxu1 %v6519_v19  ;;  %v399_v50 = vsel %vm6757_vm2, %v4728_v38, %v398_v39  ;;  %v400_v53 = vrot.slane %v398_v39, 4  ;;  %v5016_v23 = vcombine.low %v2074_v3, %v2077_v17  ;;  %v409_v24 = vsel %vm6757_vm2, %v407_v9, %v408_v5  ;;  %v6523_v9 = vld [vmem:[%s7999_s1 + $0x180] sm:$0xff]   ;;  %v5043_v29 = vld [vmem:[%s6744_s16 + $0x50] sm:$0x3] }
  0x34   : > { %v2082_v31 = vrot.slane %v2080_v22, 4  ;;  %v412_v38 = vrot.slane %v6977_v32, 5  ;;  %v6988_v39 = vrot.slane %v2543_v14, 4  ;;  %v7013_v3 = vrot.slane %v2550_v34, 4 }
  0x35   : > { %6012 = vmatpush3.bf16.msra.mxu0 %v6515_v60  ;;  %5820 = vmatpush3.bf16.msra.mxu1 %v6519_v19  ;;  %v6949_v60 = vrot.slane %v2529_v61, 4  ;;  %v402_v2 = vsel %vm6757_vm2, %v400_v53, %v401_v45  ;;  %v4985_v19 = vrot.slane %v4951_v10, 9  ;;  %v415_v45 = vrot.slane %v288_v37, 5  ;;  %v5038_v37 = vld [vmem:[%s6744_s16 + $0x30] sm:$0xc] }
  0x36   : > { %6013 = vmatprep.subr.bf16.mxu0 %v6517_v28  ;;  %5821 = vmatprep.subr.bf16.mxu1 %v6522_v35  ;;  %v4760_v7 = vcombine.low %v399_v50, %v402_v2  ;;  %v2084_v41 = vsel %vm6757_vm2, %v2082_v31, %v2083_v25  ;;  %v414_v53 = vrot.slane %v412_v38, 4  ;;  %v419_v2 = vrot.slane %v7001_v56, 5  ;;  %v291_v25 = vld [vmem:[%s6744_s16 + $0x78] sm:$0xe] }
  0x37   : > { %5790 = vmatmul.mubr.bf16.gmra.mrb[8].mxu1 %v4759_v36  ;;  %v2081_v30 = vsel %vm6757_vm2, %v4985_v19, %v2080_v22  ;;  %v287_v36 = vld [vmem:[%s6744_s16 + $0x60] sm:$0xe]  ;;  %v5036_v19 = vld [vmem:[%s6744_s16 + $0x24] sm:$0xc] }
  0x38   : > { %5982 = vmatmul.mubr.bf16.gmra.mrb[8].mxu0 %v5015_v49  ;;  %5793 = vmatprep.mubr.bf16.mxu1 %v4760_v7  ;;  %v4730_v43 = vrot.slane %v287_v36, 9  ;;  %v5035_v49 = vld [vmem:[%s6744_s16 + $0x20] sm:$0x3]  ;;  %v5017_v50 = vcombine.low %v2081_v30, %v2084_v41  ;;  %v416_v4 = vsel %vm6757_vm2, %v414_v53, %v415_v45  ;;  %v421_v20 = vrot.slane %v419_v2, 4  ;;  %v6528_v41 = vld [vmem:[%s7999_s1 + $0x38] sm:$0xff]  }
  0x39   : > { %6014 = vmatpush3.bf16.msra.mxu0 %v6517_v28  ;;  %5822 = vmatpush3.bf16.msra.mxu1 %v6522_v35  ;;  %v4761_v28 = vcombine.low %v406_v8, %v409_v24  ;;  %v6521_v35 = vld [vmem:[%s7999_s1 + $0x178] sm:$0xff]   ;;  %v2532_v54 = vrot.slane %v5035_v49, 6  ;;  %v4731_v8 = vrot.slane %v289_v62, 9  ;;  %v5067_v22 = vrot.slane %v5036_v19, 10  ;;  %v7052_v49 = vld [vmem:[%s6744_s16 + $0x88] sm:$0xf] }
  0x3a   : > { %6015 = vmatprep.subr.bf16.mxu0 %v6518_v44  ;;  %5985 = vmatprep.mubr.bf16.mxu0 %v5016_v23  ;;  %v413_v59 = vsel %vm6757_vm2, %v4730_v43, %v412_v38  ;;  %v7034_v24 = vld [vmem:[%s6744_s16 + $0x7c] sm:$0xf]  ;;  %v4732_v36 = vrot.slane %v291_v25, 9  ;;  %v5039_v38 = vld [vmem:[%s6744_s16 + $0x38] sm:$0x3] }
  0x3b   : > { %5823 = vmatprep.subr.bf16.mxu1 %v6524_v26  ;;  %v2533_v7 = vsel %vm6994_vm5, %v6949_v60, %v2532_v54  ;;  %v4762_v10 = vcombine.low %v413_v59, %v416_v4  ;;  %v420_v60 = vsel %vm6757_vm2, %v4731_v8, %v419_v2  ;;  %v2537_v30 = vsel %vm6994_vm5, %v5067_v22, %v2536_v21  ;;  %v6525_v21 = vld [vmem:[%s7999_s1 + $0x188] sm:$0xff]   ;;  %v5040_v4 = vld [vmem:[%s6744_s16 + $0x3c] sm:$0xc]  ;;  %v295_v19 = vld [vmem:[%s6744_s16 + $0x90] sm:$0xe] }
  0x3c   : > { %v426_v42 = vrot.slane %v7034_v24, 5  ;;  %v294_v53 = vld [vmem:[%s6744_s16 + $0x8c] sm:$0x1]  ;;  %v5069_v8 = vrot.slane %v5040_v4, 10 }
  0x3d   : > { %6016 = vmatpush3.bf16.msra.mxu0 %v6518_v44  ;;  %5824 = vmatpush3.bf16.msra.mxu1 %v6524_v26  ;;  %v5066_v44 = vrot.slane %v5034_v48, 10  ;;  %v292_v26 = vld [vmem:[%s6744_s16 + $0x80] sm:$0x1]  ;;  %v5068_v48 = vrot.slane %v5038_v37, 10  ;;  %v436_v2 = vrot.slane %v294_v53, 5 }
  0x3e   : > { %6017 = vmatprep.subr.bf16.mxu0 %v6520_v13  ;;  %5825 = vmatprep.subr.bf16.mxu1 %v6526_v57  ;;  %v429_v45 = vrot.slane %v292_v26, 5  ;;  %v428_v54 = vrot.slane %v426_v42, 4  ;;  %v2551_v22 = vsel %vm6994_vm5, %v5069_v8, %v2550_v34  ;;  %v5042_v26 = vld [vmem:[%s6744_s16 + $0x48] sm:$0xc] }
  0x3f   : > { %5794 = vmatmul.mubr.bf16.gmra.mrb[12].mxu1 %v4761_v28  ;;  %v2530_v5 = vsel %vm6994_vm5, %v5066_v44, %v2529_v61  ;;  %v5037_v61 = vld [vmem:[%s6744_s16 + $0x2c] sm:$0x3]  ;;  %v433_v44 = vrot.slane %v7052_v49, 5  ;;  %v299_v8 = vld [vmem:[%s6744_s16 + $0xa8] sm:$0xe] }
  0x40   : > { %5986 = vmatmul.mubr.bf16.gmra.mrb[12].mxu0 %v5017_v50  ;;  %v5098_v17 = vcombine.low %v2530_v5, %v2533_v7  ;;  %v2539_v23 = vrot.slane %v5037_v61, 6  ;;  %5797 = vmatprep.mubr.bf16.mxu1 %v4762_v10  ;;  %v293_v50 = vld [vmem:[%s6744_s16 + $0x84] sm:$0xe]  ;;  %v6527_v7 = vld [vmem:[%s7999_s1 + $0x190] sm:$0xff]   ;;  %v430_v1 = vsel %vm6757_vm2, %v428_v54, %v429_v45  ;;  %v2557_v61 = vrot.slane %v6874_v51, 6 }
  0x41   : > { %6018 = vmatpush3.bf16.msra.mxu0 %v6520_v13  ;;  %5826 = vmatpush3.bf16.msra.mxu1 %v6526_v57  ;;  %v423_v13 = vsel %vm6757_vm2, %v421_v20, %v422_v18  ;;  %v2544_v57 = vsel %vm6994_vm5, %v5068_v48, %v2543_v14  ;;  %v4733_v59 = vrot.slane %v293_v50, 9  ;;  %v435_v63 = vrot.slane %v433_v44, 4  ;;  %v5041_v5 = vld [vmem:[%s6744_s16 + $0x44] sm:$0x3]  ;;  %v7086_v18 = vld [vmem:[%s6744_s16 + $0x94] sm:$0xf] }
  0x42   : > { %6019 = vmatprep.subr.bf16.mxu0 %v6521_v35  ;;  %6021 = vmatprep.mubr.bf16.mxu0 %v5098_v17  ;;  %v4763_v28 = vcombine.low %v420_v60, %v423_v13  ;;  %v2540_v31 = vsel %vm6994_vm5, %v6882_v58, %v2539_v23  ;;  %v2546_v58 = vrot.slane %v5039_v38, 6  ;;  %v7081_v10 = vld [vmem:[%s7999_s1 + $0x80] sm:$0xff]   ;;  %v296_v23 = vld [vmem:[%s6744_s16 + $0x98] sm:$0x1]  ;;  %v4734_v13 = vrot.slane %v295_v19, 9 }
  0x43   : > { %v5099_v43 = vcombine.low %v2537_v30, %v2540_v31  ;;  %5827 = vmatprep.subr.bf16.mxu1 %v6528_v41  ;;  %v437_v20 = vsel %vm6757_vm2, %v435_v63, %v436_v2  ;;  %v440_v25 = vrot.slane %v7086_v18, 5  ;;  %v5070_v30 = vrot.slane %v5042_v26, 10  ;;  %v298_v45 = vld [vmem:[%s6744_s16 + $0xa4] sm:$0x1]  ;;  %v5045_v63 = vld [vmem:[%s6744_s16 + $0x5c] sm:$0x3] }
  0x44   : > { %v2547_v62 = vsel %vm6994_vm5, %v6988_v39, %v2546_v58  ;;  %v434_v39 = vsel %vm6757_vm2, %v4733_v59, %v433_v44  ;;  %v2559_v31 = vrot.slane %v2557_v61, 4  ;;  %v2560_v38 = vrot.slane %v5043_v29, 6  ;;  %v5044_v44 = vld [vmem:[%s6744_s16 + $0x54] sm:$0xc]  ;;  %v6533_v2 = vld [vmem:[%s7999_s1 + $0x1a0] sm:$0xff]   ;;  %v6537_v26 = vld [vmem:[%s7999_s1 + $0x1a8] sm:$0xff]  }
  0x45   : > { %6020 = vmatpush3.bf16.msra.mxu0 %v6521_v35  ;;  %v427_v35 = vsel %vm6757_vm2, %v4732_v36, %v426_v42  ;;  %5828 = vmatpush3.bf16.msra.mxu1 %v6528_v41  ;;  %v5100_v14 = vcombine.low %v2544_v57, %v2547_v62  ;;  %v4765_v60 = vcombine.low %v434_v39, %v437_v20  ;;  %v442_v37 = vrot.slane %v440_v25, 4  ;;  %v7105_v41 = vld [vmem:[%s6744_s16 + $0xa0] sm:$0xf]  ;;  %v6529_v42 = vld [vmem:[%s7999_s1 + $0x198] sm:$0xff]   ;;  %v7131_v39 = vld [vmem:[%s6744_s16 + $0xac] sm:$0xf] }
  0x46   : > { %6053 = vmatprep.subr.bf16.mxu0 %v6523_v9  ;;  %v4764_v17 = vcombine.low %v427_v35, %v430_v1  ;;  %5861 = vmatprep.subr.bf16.mxu1 %v7081_v10  ;;  %v441_v36 = vsel %vm6757_vm2, %v4734_v13, %v440_v25  ;;  %v2561_v50 = vsel %vm6994_vm5, %v2559_v31, %v2560_v38  ;;  %v450_v53 = vrot.slane %v298_v45, 5  ;;  %v5046_v19 = vld [vmem:[%s6744_s16 + $0x60] sm:$0xc]  ;;  %v7143_v25 = vld [vmem:[%s6744_s16 + $0xb8] sm:$0xf] }
  0x47   : > { %5798 = vmatmul.mubr.bf16.gmra.mrb[16].mxu1 %v4763_v28  ;;  %v443_v28 = vrot.slane %v296_v23, 5  ;;  %v2564_v35 = vrot.slane %v6903_v16, 6  ;;  %v5071_v4 = vrot.slane %v5044_v44, 10  ;;  %v2567_v16 = vrot.slane %v5045_v63, 6  ;;  %v301_v29 = vld [vmem:[%s6744_s16 + $0xb4] sm:$0xe] }
  0x48   : > { %6022 = vmatmul.mubr.bf16.vlgmr.msra.gmra.mrb[0].mxu0 %v5099_v43  ;;  %5801 = vmatprep.mubr.bf16.mxu1 %v4764_v17  ;;  %v297_v43 = vld [vmem:[%s6744_s16 + $0x9c] sm:$0xe]  ;;  %v2571_v1 = vrot.slane %v6935_v46, 6  ;;  %v300_v17 = vld [vmem:[%s6744_s16 + $0xb0] sm:$0x1]  ;;  %v4736_v46 = vrot.slane %v299_v8, 9 }
  0x49   : > { %6054 = vmatpush3.bf16.msra.mxu0 %v6523_v9  ;;  %v2553_v9 = vrot.slane %v5041_v5, 6  ;;  %6025 = vmatprep.mubr.bf16.mxu0 %v5100_v14  ;;  %v4735_v48 = vrot.slane %v297_v43, 9  ;;  %v444_v58 = vsel %vm6757_vm2, %v442_v37, %v443_v28  ;;  %v2566_v5 = vrot.slane %v2564_v35, 4  ;;  %v5048_v45 = vld [vmem:[%s6744_s16 + $0x6c] sm:$0xc] }
  0x4a   : > { %6055 = vmatprep.subr.bf16.mxu0 %v6525_v21  ;;  %v4766_v54 = vcombine.low %v441_v36, %v444_v58  ;;  %v457_v23 = vrot.slane %v300_v17, 5  ;;  %v5072_v13 = vrot.slane %v5046_v19, 10  ;;  %v4737_v37 = vrot.slane %v301_v29, 9 }
  0x4b   : > { %v2554_v51 = vsel %vm6994_vm5, %v7013_v3, %v2553_v9  ;;  %v2558_v3 = vsel %vm6994_vm5, %v5070_v30, %v2557_v61  ;;  %v2565_v9 = vsel %vm6994_vm5, %v5071_v4, %v2564_v35  ;;  %v5047_v61 = vld [vmem:[%s6744_s16 + $0x68] sm:$0x3]  ;;  %v302_v30 = vld [vmem:[%s6744_s16 + $0xbc] sm:$0x1]  ;;  %v461_v43 = vrot.slane %v7143_v25, 5 }
  0x4c   : > { %v5101_v34 = vcombine.low %v2551_v22, %v2554_v51  ;;  %v5102_v57 = vcombine.low %v2558_v3, %v2561_v50  ;;  %v454_v22 = vrot.slane %v7131_v39, 5  ;;  %v2573_v51 = vrot.slane %v2571_v1, 4  ;;  %v5050_v4 = vld [vmem:[%s6744_s16 + $0x78] sm:$0xc] }
  0x4d   : > { %6056 = vmatpush3.bf16.msra.mxu0 %v6525_v21  ;;  %v447_v21 = vrot.slane %v7105_v41, 5  ;;  %v2574_v28 = vrot.slane %v5047_v61, 6  ;;  %v2572_v36 = vsel %vm6994_vm5, %v5072_v13, %v2571_v1  ;;  %v464_v3 = vrot.slane %v302_v30, 5  ;;  %v5052_v61 = vld [vmem:[%s6744_s16 + $0x84] sm:$0xc] }
  0x4e   : > { %6057 = vmatprep.subr.bf16.mxu0 %v6527_v7  ;;  %v455_v31 = vsel %vm6757_vm2, %v4736_v46, %v454_v22  ;;  %v5073_v58 = vrot.slane %v5048_v45, 10  ;;  %v2578_v50 = vrot.slane %v6959_v12, 6  ;;  %v462_v44 = vsel %vm6757_vm2, %v4737_v37, %v461_v43  ;;  %v4961_v30 = vld [vmem:[%s6744_s16 + $0x94] sm:$0xf] }
  0x4f   : > { %5802 = vmatmul.mubr.bf16.gmra.mrb[20].mxu1 %v4765_v60  ;;  %v448_v59 = vsel %vm6757_vm2, %v4735_v48, %v447_v21  ;;  %v449_v62 = vrot.slane %v447_v21, 4  ;;  %v2575_v38 = vsel %vm6994_vm5, %v2573_v51, %v2574_v28  ;;  %v463_v35 = vrot.slane %v461_v43, 4  ;;  %v225_v28 = vld [vmem:[%s6744_s16 + $0xc] sm:$0xf] }
  0x50   : > { %6026 = vmatmul.mubr.bf16.gmra.mrb[4].mxu0 %v5101_v34  ;;  %5805 = vmatprep.mubr.bf16.mxu1 %v4766_v54  ;;  %v456_v34 = vrot.slane %v454_v22, 4  ;;  %v5104_v21 = vcombine.low %v2572_v36, %v2575_v38  ;;  %v2580_v63 = vrot.slane %v2578_v50, 4  ;;  %v5074_v1 = vrot.slane %v5050_v4, 10  ;;  %v227_v38 = vld [vmem:[%s6744_s16 + $0x18] sm:$0xf] }
  0x51   : > { %6058 = vmatpush3.bf16.msra.mxu0 %v6527_v7  ;;  %6029 = vmatprep.mubr.bf16.mxu0 %v5102_v57  ;;  %v451_v14 = vsel %vm6757_vm2, %v449_v62, %v450_v53  ;;  %v2568_v7 = vsel %vm6994_vm5, %v2566_v5, %v2567_v16  ;;  %v223_v57 = vld [vmem:[%s6744_s16] sm:$0xf]  ;;  %v2579_v62 = vsel %vm6994_vm5, %v5073_v58, %v2578_v50  ;;  %v5056_v50 = vld [vmem:[%s6744_s16 + $0x9c] sm:$0xc]  ;;  %v4967_v4 = vld [vmem:[%s6744_s16 + $0xac] sm:$0xf] }
  0x52   : > { %v4767_v20 = vcombine.low %v448_v59, %v451_v14  ;;  %6059 = vmatprep.subr.bf16.mxu0 %v6529_v42  ;;  %v5103_v60 = vcombine.low %v2565_v9, %v2568_v7  ;;  %v458_v48 = vsel %vm6757_vm2, %v456_v34, %v457_v23  ;;  %v4955_v59 = vld [vmem:[%s6744_s16 + $0x7c] sm:$0xf]  ;;  %v5051_v5 = vld [vmem:[%s6744_s16 + $0x80] sm:$0x3]  ;;  %v465_v16 = vsel %vm6757_vm2, %v463_v35, %v464_v3  ;;  %v4958_v9 = vld [vmem:[%s6744_s16 + $0x88] sm:$0xf] }
  0x53   : > { %v4768_v53 = vcombine.low %v455_v31, %v458_v48  ;;  %v2585_v12 = vrot.slane %v4955_v59, 6  ;;  %v2588_v14 = vrot.slane %v5051_v5, 6  ;;  %v4769_v8 = vcombine.low %v462_v44, %v465_v16  ;;  %v6541_v7 = vld [vmem:[%s7999_s1 + $0x1b0] sm:$0xff]   ;;  %v5055_v34 = vld [vmem:[%s6744_s16 + $0x98] sm:$0x3]  ;;  %v6536_v5 = vld [vmem:[%s7999_s1 + $0x88] sm:$0xff]  }
  0x54   : > { %v4778_v17 = vcombine.low %v223_v57, %v6750_v11  ;;  %v2592_v22 = vrot.slane %v4958_v9, 6  ;;  %v5075_v23 = vrot.slane %v5052_v61, 10  ;;  %v5054_v31 = vld [vmem:[%s6744_s16 + $0x90] sm:$0xc]  ;;  %v2602_v3 = vrot.slane %v5055_v34, 6  ;;  %v6545_v48 = vld [vmem:[%s7999_s1 + $0x1b8] sm:$0xff]  }
  0x55   : > { %6060 = vmatpush3.bf16.msra.mxu0 %v6529_v42  ;;  %v5049_v42 = vld [vmem:[%s6744_s16 + $0x74] sm:$0x3]  ;;  %v2586_v19 = vsel %vm6994_vm5, %v5074_v1, %v2585_v12  ;;  %v5076_v43 = vrot.slane %v5054_v31, 10  ;;  %v5059_v16 = vld [vmem:[%s6744_s16 + $0xb0] sm:$0x3]  ;;  %v2613_v1 = vrot.slane %v4967_v4, 6 }
  0x56   : > { %6061 = vmatprep.subr.bf16.mxu0 %v6533_v2  ;;  %v2581_v54 = vrot.slane %v5049_v42, 6  ;;  %v2594_v29 = vrot.slane %v2592_v22, 4  ;;  %v2593_v36 = vsel %vm6994_vm5, %v5075_v23, %v2592_v22  ;;  %v4964_v42 = vld [vmem:[%s6744_s16 + $0xa0] sm:$0xf]  ;;  %v5063_v31 = vld [vmem:[%s6744_s16 + $0xc8] sm:$0x3] }
  0x57   : > { %5806 = vmatmul.mubr.bf16.gmra.mrb[24].mxu1 %v4767_v20  ;;  %v2587_v20 = vrot.slane %v2585_v12, 4  ;;  %v2606_v44 = vrot.slane %v4964_v42, 6  ;;  %v5058_v12 = vld [vmem:[%s6744_s16 + $0xa8] sm:$0xc] }
  0x58   : > { %6030 = vmatmul.mubr.bf16.gmra.mrb[8].mxu0 %v5103_v60  ;;  %5809 = vmatprep.mubr.bf16.mxu1 %v4768_v53  ;;  %v5053_v60 = vld [vmem:[%s6744_s16 + $0x8c] sm:$0x3]  ;;  %v5057_v53 = vld [vmem:[%s6744_s16 + $0xa4] sm:$0x3]  ;;  %v235_v42 = vld [vmem:[%s6744_s16 + $0x48] sm:$0xf] }
  0x59   : > { %6062 = vmatpush3.bf16.msra.mxu0 %v6533_v2  ;;  %6033 = vmatprep.mubr.bf16.mxu0 %v5104_v21  ;;  %v2582_v2 = vsel %vm6994_vm5, %v2580_v63, %v2581_v54  ;;  %v2589_v11 = vsel %vm6994_vm5, %v2587_v20, %v2588_v14  ;;  %v2595_v13 = vrot.slane %v5053_v60, 6  ;;  %v4779_v21 = vcombine.low %v225_v28, %v6771_v27  ;;  %v7218_v20 = vld [vmem:[%s7999_s1 + $0x1c0] sm:$0xff]  }
  0x5a   : > { %6063 = vmatprep.subr.bf16.mxu0 %v6537_v26  ;;  %v5105_v46 = vcombine.low %v2579_v62, %v2582_v2  ;;  %v5106_v51 = vcombine.low %v2586_v19, %v2589_v11  ;;  %v4780_v54 = vcombine.low %v227_v38, %v6803_v52  ;;  %v5077_v62 = vrot.slane %v5056_v50, 10  ;;  %v229_v52 = vld [vmem:[%s6744_s16 + $0x24] sm:$0xf]  ;;  %v5060_v19 = vld [vmem:[%s6744_s16 + $0xb4] sm:$0xc] }
  0x5b   : > { %v2596_v37 = vsel %vm6994_vm5, %v2594_v29, %v2595_v13  ;;  %v2608_v27 = vrot.slane %v2606_v44, 4  ;;  %v2609_v63 = vrot.slane %v5057_v53, 6  ;;  %v5078_v14 = vrot.slane %v5058_v12, 10  ;;  %v5061_v11 = vld [vmem:[%s6744_s16 + $0xbc] sm:$0x3]  ;;  %v6549_v53 = vld [vmem:[%s7999_s1 + $0xa0] sm:$0xff]  }
  0x5c   : > { %v5107_v35 = vcombine.low %v2593_v36, %v2596_v37  ;;  %v2615_v2 = vrot.slane %v2613_v1, 4  ;;  %v2607_v9 = vsel %vm6994_vm5, %v5077_v62, %v2606_v44  ;;  %v4781_v23 = vcombine.low %v229_v52, %v6829_v6  ;;  %v4973_v13 = vld [vmem:[%s6744_s16 + $0xc4] sm:$0xf]  ;;  %v6544_v6 = vld [vmem:[%s7999_s1 + $0x98] sm:$0xff]   ;;  %v6561_v52 = vld [vmem:[%s7999_s1 + $0xb0] sm:$0xff]  }
  0x5d   : > { %6064 = vmatpush3.bf16.msra.mxu0 %v6537_v26  ;;  %v2599_v26 = vrot.slane %v4961_v30, 6  ;;  %v2614_v60 = vsel %vm6994_vm5, %v5078_v14, %v2613_v1  ;;  %v5079_v29 = vrot.slane %v5060_v19, 10  ;;  %v5062_v30 = vld [vmem:[%s6744_s16 + $0xc0] sm:$0xc]  ;;  %v2627_v34 = vrot.slane %v4973_v13, 6 }
  0x5e   : > { %6065 = vmatprep.subr.bf16.mxu0 %v6541_v7  ;;  %v2623_v37 = vrot.slane %v5061_v11, 6  ;;  %v5080_v38 = vrot.slane %v5062_v30, 10  ;;  %v4784_v62 = vcombine.low %v235_v42, %v6920_v33  ;;  %v239_v1 = vld [vmem:[%s6744_s16 + $0x60] sm:$0xf]  ;;  %v251_v30 = vld [vmem:[%s6744_s16 + $0xa8] sm:$0xf] }
  0x5f   : > { %5810 = vmatmul.mubr.bf16.gmra.mrb[28].mxu1 %v4769_v8  ;;  %v2601_v45 = vrot.slane %v2599_v26, 4  ;;  %v2600_v58 = vsel %vm6994_vm5, %v5076_v43, %v2599_v26  ;;  %v2616_v8 = vrot.slane %v5059_v16, 6  ;;  %v2629_v43 = vrot.slane %v2627_v34, 4  ;;  %v237_v16 = vld [vmem:[%s6744_s16 + $0x54] sm:$0xf] }
  0x60   : > { %6034 = vmatmul.mubr.bf16.gmra.mrb[12].mxu0 %v5105_v46  ;;  %5829 = vmatprep.mubr.bf16.mxu1 %v4778_v17  ;;  %v4970_v17 = vld [vmem:[%s6744_s16 + $0xb8] sm:$0xf]  ;;  %v231_v46 = vld [vmem:[%s6744_s16 + $0x30] sm:$0xf]  ;;  %v2628_v44 = vsel %vm6994_vm5, %v5080_v38, %v2627_v34  ;;  %v4785_v14 = vcombine.low %v237_v16, %v6942_v55  ;;  %v7284_v55 = vld [vmem:[%s7999_s1 + $0xc0] sm:$0xff]  }
  0x61   : > { %6037 = vmatprep.mubr.bf16.mxu0 %v5106_v51  ;;  %6066 = vmatpush3.bf16.msra.mxu0 %v6541_v7  ;;  %v2603_v57 = vsel %vm6994_vm5, %v2601_v45, %v2602_v3  ;;  %v2610_v7 = vsel %vm6994_vm5, %v2608_v27, %v2609_v63  ;;  %v2620_v61 = vrot.slane %v4970_v17, 6  ;;  %v2617_v22 = vsel %vm6994_vm5, %v2615_v2, %v2616_v8  ;;  %v4976_v45 = vld [vmem:[%s6744_s16 + $0xd0] sm:$0xf]  ;;  %v6555_v63 = vld [vmem:[%s7999_s1 + $0xa8] sm:$0xff]   ;;  %v6573_v34 = vld [vmem:[%s7999_s1 + $0x1e0] sm:$0xff]  }
  0x62   : > { %6067 = vmatprep.subr.bf16.mxu0 %v6545_v48  ;;  %v5108_v59 = vcombine.low %v2600_v58, %v2603_v57  ;;  %v5109_v51 = vcombine.low %v2607_v9, %v2610_v7  ;;  %v4782_v28 = vcombine.low %v231_v46, %v6865_v40  ;;  %v5110_v26 = vcombine.low %v2614_v60, %v2617_v22  ;;  %v233_v40 = vld [vmem:[%s6744_s16 + $0x3c] sm:$0xf]  ;;  %v5064_v58 = vld [vmem:[%s6744_s16 + $0xcc] sm:$0xc]  ;;  %v6547_v17 = vld [vmem:[%s6744_s16 + $0x30] sm:$0xff]  }
  0x63   : > { %v2622_v36 = vrot.slane %v2620_v61, 4  ;;  %v2630_v3 = vrot.slane %v5063_v31, 6  ;;  %v2634_v50 = vrot.slane %v4976_v45, 6  ;;  %v4783_v57 = vcombine.low %v233_v40, %v6890_v0  ;;  %v6567_v9 = vld [vmem:[%s7999_s1 + $0xb8] sm:$0xff]   ;;  %v241_v7 = vld [vmem:[%s6744_s16 + $0x6c] sm:$0xf] }
  0x64   : > { %v5081_v27 = vrot.slane %v5064_v58, 10  ;;  %v4786_v2 = vcombine.low %v239_v1, %v6977_v32  ;;  %v243_v46 = vld [vmem:[%s6744_s16 + $0x78] sm:$0xf]  ;;  %v4787_v32 = vcombine.low %v241_v7, %v7001_v56  ;;  %v6557_v60 = vld [vmem:[%s7999_s1 + $0x1c8] sm:$0xff]   ;;  %v245_v22 = vld [vmem:[%s6744_s16 + $0x84] sm:$0xf] }
  0x65   : > { %6068 = vmatpush3.bf16.msra.mxu0 %v6545_v48  ;;  %v2621_v48 = vsel %vm6994_vm5, %v5079_v29, %v2620_v61  ;;  %v4788_v19 = vcombine.low %v243_v46, %v7034_v24  ;;  %v6553_v61 = vld [vmem:[%s6744_s16 + $0x48] sm:$0xff]   ;;  %v247_v56 = vld [vmem:[%s6744_s16 + $0x90] sm:$0xf]  ;;  %v4789_v11 = vcombine.low %v245_v22, %v7052_v49  ;;  %v6614_v29 = vld [vmem:[%s6744_s16 + $0x4] sm:$0xf] }
  0x66   : > { %6101 = vmatprep.subr.bf16.mxu0 %v7218_v20  ;;  %v2635_v0 = vsel %vm6994_vm5, %v5081_v27, %v2634_v50  ;;  %v6563_v24 = vld [vmem:[%s7999_s1 + $0x1d0] sm:$0xff]   ;;  %v4790_v13 = vcombine.low %v247_v56, %v7086_v18  ;;  %v1114_v49 = vrot.slane %v6614_v29, 6  ;;  %v1045_v18 = vld [vmem:[%s6744_s16] sm:$0xc]  ;;  %v1046_v31 = vld [vmem:[%s6744_s16 + $0x8] sm:$0x3] }
  0x67   : > { %5830 = vmatmul.mubr.bf16.vlgmr.msra.gmra.mrb[0].mxu1 %v4779_v21  ;;  %v2624_v21 = vsel %vm6994_vm5, %v2622_v36, %v2623_v37  ;;  %v6562_v36 = vld [vmem:[%s6744_s16 + $0x6c] sm:$0xff]   ;;  %v4792_v37 = vcombine.low %v251_v30, %v7131_v39  ;;  %v6565_v38 = vld [vmem:[%s6744_s16 + $0x78] sm:$0xff]   ;;  %v253_v39 = vld [vmem:[%s6744_s16 + $0xb4] sm:$0xf] }
  0x68   : > { %6038 = vmatmul.mubr.bf16.gmra.mrb[16].mxu0 %v5107_v35  ;;  %5862 = vmatpush3.bf16.msra.mxu1 %v7081_v10  ;;  %v6540_v10 = vld [vmem:[%s7999_s1 + $0x90] sm:$0xff]   ;;  %v2631_v35 = vsel %vm6994_vm5, %v2629_v43, %v2630_v3  ;;  %v4802_v43 = vrot.slane %v1045_v18, 10  ;;  %v1117_v3 = vrot.slane %v1046_v31, 6  ;;  %v6577_v45 = vld [vmem:[%s7999_s1 + $0x1e8] sm:$0xff]   ;;  %v1055_v29 = vld [vmem:[%s6744_s16 + $0x3c] sm:$0xc] }
  0x69   : > { %5833 = vmatprep.mubr.bf16.mxu1 %v4780_v54  ;;  %6041 = vmatprep.mubr.bf16.mxu0 %v5108_v59  ;;  %v5065_v54 = vld [vmem:[%s6744_s16 + $0xd4] sm:$0x3]  ;;  %v5111_v59 = vcombine.low %v2621_v48, %v2624_v21  ;;  %v5112_v4 = vcombine.low %v2628_v44, %v2631_v35  ;;  %v6615_v40 = vld [vmem:[%s6744_s16 + $0x10] sm:$0xf]  ;;  %v1047_v21 = vld [vmem:[%s6744_s16 + $0xc] sm:$0xc] }
  0x6a   : > { %5863 = vmatprep.subr.bf16.mxu1 %v6536_v5  ;;  %v2637_v12 = vrot.slane %v5065_v54, 6  ;;  %v1115_v42 = vsel %vm6994_vm5, %v4802_v43, %v1114_v49  ;;  %v1048_v58 = vld [vmem:[%s6744_s16 + $0x14] sm:$0x3]  ;;  %v1049_v44 = vld [vmem:[%s6744_s16 + $0x18] sm:$0xc]  ;;  %v4793_v54 = vcombine.low %v253_v39, %v7143_v25 }
  0x6b   : > { %v6581_v35 = vld [vmem:[%s7999_s1 + $0x1f0] sm:$0xff]   ;;  %v6585_v25 = vld [vmem:[%s7999_s1 + $0x1f8] sm:$0xff]   ;;  %v1056_v18 = vld [vmem:[%s6744_s16 + $0x44] sm:$0x3] }
  0x6c   : > { %5864 = vmatpush3.bf16.msra.mxu1 %v6536_v5  ;;  %v2636_v5 = vrot.slane %v2634_v50, 4  ;;  %v6616_v50 = vld [vmem:[%s6744_s16 + $0x1c] sm:$0xf]  ;;  %v1057_v31 = vld [vmem:[%s6744_s16 + $0x48] sm:$0xc] }
  0x6d   : > { %5865 = vmatprep.subr.bf16.mxu1 %v6540_v10  ;;  %v4808_v39 = vrot.slane %v1057_v31, 10  ;;  %v7445_v31 = vld [vmem:[%s6744_s16 + $0x80] sm:$0x3] }
  0x6e   : > { %v2638_v33 = vsel %vm6994_vm5, %v2636_v5, %v2637_v12  ;;  %v6570_v5 = vld [vmem:[%s6744_s16 + $0x90] sm:$0xff]   ;;  %v4804_v12 = vrot.slane %v1049_v44, 10 }
  0x6f   : > { %5834 = vmatmul.mubr.bf16.gmra.mrb[4].mxu1 %v4781_v23  ;;  %v5113_v8 = vcombine.low %v2635_v0, %v2638_v33  ;;  %v6556_v23 = vld [vmem:[%s6744_s16 + $0x54] sm:$0xff]  }
  0x70   : > { %6042 = vmatmul.mubr.bf16.gmra.mrb[20].mxu0 %v5109_v51  ;;  %5837 = vmatprep.mubr.bf16.mxu1 %v4782_v28  ;;  %v6559_v51 = vld [vmem:[%s6744_s16 + $0x60] sm:$0xff]   ;;  %v249_v28 = vld [vmem:[%s6744_s16 + $0x9c] sm:$0xf]  ;;  %v1059_v44 = vld [vmem:[%s6744_s16 + $0x54] sm:$0xc] }
  0x71   : > { %6045 = vmatprep.mubr.bf16.mxu0 %v5110_v26  ;;  %5866 = vmatpush3.bf16.msra.mxu1 %v6540_v10  ;;  %v6550_v10 = vld [vmem:[%s6744_s16 + $0x3c] sm:$0xff]   ;;  %v4791_v26 = vcombine.low %v249_v28, %v7105_v41  ;;  %v1121_v41 = vrot.slane %v6615_v40, 6  ;;  %v6575_v28 = vld [vmem:[%s7999_s1 + $0xc8] sm:$0xff]  }
  0x72   : > { %5867 = vmatprep.subr.bf16.mxu1 %v6544_v6 }
  0x75   : > { %5868 = vmatpush3.bf16.msra.mxu1 %v6544_v6  ;;  %v1116_v6 = vrot.slane %v1114_v49, 4  ;;  %v6619_v49 = vld [vmem:[%s6744_s16 + $0x40] sm:$0xf] }
  0x76   : > { %5869 = vmatprep.subr.bf16.mxu1 %v6549_v53  ;;  %v1149_v30 = vrot.slane %v6619_v49, 6 }
  0x77   : > { %5838 = vmatmul.mubr.bf16.gmra.mrb[8].mxu1 %v4783_v57  ;;  %v1118_v48 = vsel %vm6994_vm5, %v1116_v6, %v1117_v3  ;;  %v1050_v57 = vld [vmem:[%s6744_s16 + $0x20] sm:$0x3]  ;;  %v4807_v3 = vrot.slane %v1055_v29, 10  ;;  %v5199_v29 = vld [vmem:[%s6744_s16 + $0x44] sm:$0x1] }
  0x78   : > { %6046 = vmatmul.mubr.bf16.gmra.mrb[24].mxu0 %v5111_v59  ;;  %5841 = vmatprep.mubr.bf16.mxu1 %v4784_v62  ;;  %v1123_v59 = vrot.slane %v1121_v41, 4  ;;  %v6568_v62 = vld [vmem:[%s6744_s16 + $0x84] sm:$0xff]   ;;  %v4834_v27 = vcombine.low %v1115_v42, %v1118_v48  ;;  %v1131_v0 = vrot.slane %v1050_v57, 6  ;;  %v1151_v40 = vrot.slane %v1149_v30, 4  ;;  %v6621_v42 = vld [vmem:[%s6744_s16 + $0x58] sm:$0xf] }
  0x79   : > { %6049 = vmatprep.mubr.bf16.mxu0 %v5112_v4  ;;  %5870 = vmatpush3.bf16.msra.mxu1 %v6549_v53  ;;  %v1128_v53 = vrot.slane %v6616_v50, 6  ;;  %v1124_v4 = vrot.slane %v1048_v58, 6  ;;  %v1163_v48 = vrot.slane %v6621_v42, 6  ;;  %v6578_v58 = vld [vmem:[%s6744_s16 + $0xc0] sm:$0xff]   ;;  %v6583_v57 = vld [vmem:[%s7999_s1 + $0xd8] sm:$0xff]  }
  0x7a   : > { %5871 = vmatprep.subr.bf16.mxu1 %v6555_v63 }
  0x7b   : > { %v1130_v16 = vrot.slane %v1128_v53, 4  ;;  %v1125_v1 = vsel %vm6994_vm5, %v1123_v59, %v1124_v4  ;;  %v1129_v7 = vsel %vm6994_vm5, %v4804_v12, %v1128_v53  ;;  %v6622_v59 = vld [vmem:[%s6744_s16 + $0x64] sm:$0xf]  ;;  %v1150_v4 = vsel %vm6994_vm5, %v4807_v3, %v1149_v30  ;;  %v7403_v12 = vld [vmem:[%s6744_s16 + $0x68] sm:$0x3] }
  0x7d   : > { %5872 = vmatpush3.bf16.msra.mxu1 %v6555_v63  ;;  %v4803_v63 = vrot.slane %v1047_v21, 10  ;;  %v1132_v46 = vsel %vm6994_vm5, %v1130_v16, %v1131_v0  ;;  %v7406_v16 = vld [vmem:[%s6744_s16 + $0x30] sm:$0xe]  ;;  %v7409_v0 = vld [vmem:[%s6744_s16 + $0x38] sm:$0x1] }
  0x7e   : > { %5873 = vmatprep.subr.bf16.mxu1 %v6561_v52 }
  0x7f   : > { %5842 = vmatmul.mubr.bf16.gmra.mrb[12].mxu1 %v4785_v14  ;;  %v1122_v33 = vsel %vm6994_vm5, %v4803_v63, %v1121_v41  ;;  %v1152_v41 = vrot.slane %v1056_v18, 6  ;;  %v1061_v63 = vld [vmem:[%s6744_s16 + $0x60] sm:$0xc]  ;;  %v7442_v18 = vld [vmem:[%s6744_s16 + $0x78] sm:$0xc] }
  0x80   : > { %6050 = vmatmul.mubr.bf16.gmra.mrb[28].mxu0 %v5113_v8  ;;  %5845 = vmatprep.mubr.bf16.mxu1 %v4786_v2  ;;  %v1051_v8 = vld [vmem:[%s6744_s16 + $0x24] sm:$0xc]  ;;  %v1052_v2 = vld [vmem:[%s6744_s16 + $0x2c] sm:$0x3] }
  0x81   : > { %6069 = vmatprep.mubr.bf16.mxu0 %v6547_v17  ;;  %5874 = vmatpush3.bf16.msra.mxu1 %v6561_v52  ;;  %v6617_v52 = vld [vmem:[%s6744_s16 + $0x28] sm:$0xf]  ;;  %v6618_v17 = vld [vmem:[%s6744_s16 + $0x34] sm:$0xf]  ;;  %v4805_v22 = vrot.slane %v1051_v8, 10 }
  0x82   : > { %5875 = vmatprep.subr.bf16.mxu1 %v6567_v9  ;;  %v1135_v14 = vrot.slane %v6617_v52, 6  ;;  %v7415_v52 = vld [vmem:[%s6744_s16 + $0x6c] sm:$0xc] }
  0x84   : > { %v1137_v56 = vrot.slane %v1135_v14, 4 }
  0x85   : > { %5876 = vmatpush3.bf16.msra.mxu1 %v6567_v9  ;;  %v1142_v9 = vrot.slane %v6618_v17, 6  ;;  %v1165_v17 = vrot.slane %v1163_v48, 4 }
  0x86   : > { %5909 = vmatprep.subr.bf16.mxu1 %v7284_v55 }
  0x87   : > { %5846 = vmatmul.mubr.bf16.gmra.mrb[16].mxu1 %v4787_v32  ;;  %v1053_v32 = vld [vmem:[%s6744_s16 + $0x30] sm:$0xc] }
  0x88   : > { %6070 = vmatmul.mubr.bf16.vlgmr.msra.gmra.mrb[0].mxu0 %v6550_v10  ;;  %5849 = vmatprep.mubr.bf16.mxu1 %v4788_v19  ;;  %v1054_v10 = vld [vmem:[%s6744_s16 + $0x38] sm:$0x3]  ;;  %v7359_v19 = vld [vmem:[%s7999_s1 + $0x200] sm:$0xff]  }
  0x89   : > { %6102 = vmatpush3.bf16.msra.mxu0 %v7218_v20  ;;  %6073 = vmatprep.mubr.bf16.mxu0 %v6553_v61  ;;  %v6569_v20 = vld [vmem:[%s7999_s1 + $0x1d8] sm:$0xff]   ;;  %v4835_v61 = vcombine.low %v1122_v33, %v1125_v1  ;;  %v4809_v33 = vrot.slane %v1059_v44, 10  ;;  %v4812_v44 = vrot.slane %v7442_v18, 10 }
  0x8a   : > { %6103 = vmatprep.subr.bf16.mxu0 %v6557_v60 }
  0x8d   : > { %6104 = vmatpush3.bf16.msra.mxu0 %v6557_v60  ;;  %v6572_v60 = vld [vmem:[%s6744_s16 + $0x9c] sm:$0xff]  }
  0x8e   : > { %6105 = vmatprep.subr.bf16.mxu0 %v6563_v24 }
  0x8f   : > { %5850 = vmatmul.mubr.bf16.gmra.mrb[20].mxu1 %v4789_v11  ;;  %v4836_v11 = vcombine.low %v1129_v7, %v1132_v46  ;;  %v4810_v7 = vrot.slane %v1061_v63, 10 }
  0x90   : > { %6074 = vmatmul.mubr.bf16.gmra.mrb[4].mxu0 %v6556_v23  ;;  %5853 = vmatprep.mubr.bf16.mxu1 %v4790_v13  ;;  %v6574_v23 = vld [vmem:[%s6744_s16 + $0xa8] sm:$0xff]   ;;  %v4806_v13 = vrot.slane %v1053_v32, 10  ;;  %v1173_v32 = vrot.slane %v7403_v12, 6  ;;  %v6590_v12 = vld [vmem:[%s7999_s1 + $0xf0] sm:$0xff]  }
  0x91   : > { %6077 = vmatprep.mubr.bf16.mxu0 %v6559_v51  ;;  %6106 = vmatpush3.bf16.msra.mxu0 %v6563_v24  ;;  %v1138_v24 = vrot.slane %v1052_v2, 6  ;;  %v1144_v51 = vrot.slane %v1142_v9, 4 }
  0x92   : > { %6107 = vmatprep.subr.bf16.mxu0 %v6569_v20  ;;  %v1143_v6 = vsel %vm6994_vm5, %v4806_v13, %v1142_v9  ;;  %v6582_v13 = vld [vmem:[%s6744_s16 + $0xd8] sm:$0xff]  }
  0x95   : > { %6108 = vmatpush3.bf16.msra.mxu0 %v6569_v20  ;;  %v1145_v20 = vrot.slane %v1054_v10, 6  ;;  %v5242_v10 = vrot.slane %v7406_v16, 9 }
  0x96   : > { %6109 = vmatprep.subr.bf16.mxu0 %v6573_v34 }
  0x97   : > { %5854 = vmatmul.mubr.bf16.gmra.mrb[24].mxu1 %v4791_v26  ;;  %v1146_v43 = vsel %vm6994_vm5, %v1144_v51, %v1145_v20 }
  0x98   : > { %6078 = vmatmul.mubr.bf16.gmra.mrb[8].mxu0 %v6562_v36  ;;  %5857 = vmatprep.mubr.bf16.mxu1 %v4792_v37  ;;  %v1136_v36 = vsel %vm6994_vm5, %v4805_v22, %v1135_v14  ;;  %v1139_v37 = vsel %vm6994_vm5, %v1137_v56, %v1138_v24  ;;  %v7418_v14 = vld [vmem:[%s6744_s16 + $0x70] sm:$0xf]  ;;  %v1064_v56 = vld [vmem:[%s6744_s16 + $0x74] sm:$0x3]  ;;  %v4811_v24 = vrot.slane %v7415_v52, 10 }
  0x99   : > { %6081 = vmatprep.mubr.bf16.mxu0 %v6565_v38  ;;  %6110 = vmatpush3.bf16.msra.mxu0 %v6573_v34  ;;  %v6620_v34 = vld [vmem:[%s6744_s16 + $0x4c] sm:$0xf]  ;;  %v1058_v38 = vld [vmem:[%s6744_s16 + $0x50] sm:$0x3]  ;;  %v4837_v21 = vcombine.low %v1136_v36, %v1139_v37  ;;  %v1177_v8 = vrot.slane %v7418_v14, 6  ;;  %v1164_v37 = vsel %vm6994_vm5, %v4809_v33, %v1163_v48  ;;  %v3456_v48 = vrot.slane %v5199_v29, 5 }
  0x9a   : > { %6111 = vmatprep.subr.bf16.mxu0 %v6577_v45  ;;  %v1156_v26 = vrot.slane %v6620_v34, 6  ;;  %v1159_v53 = vrot.slane %v1058_v38, 6  ;;  %v6580_v22 = vld [vmem:[%s6744_s16 + $0xcc] sm:$0xff]   ;;  %v7448_v34 = vld [vmem:[%s6744_s16 + $0x7c] sm:$0xf] }
  0x9b   : > { %v1179_v20 = vrot.slane %v1177_v8, 4  ;;  %v7452_v36 = vld [vmem:[%s6744_s16 + $0x4c] sm:$0xf]  ;;  %v7457_v38 = vld [vmem:[%s6744_s16 + $0x88] sm:$0xf] }
  0x9c   : > { %v1158_v50 = vrot.slane %v1156_v26, 4 }
  0x9d   : > { %6112 = vmatpush3.bf16.msra.mxu0 %v6577_v45  ;;  %v6576_v45 = vld [vmem:[%s6744_s16 + $0xb4] sm:$0xff]  }
  0x9e   : > { %6113 = vmatprep.subr.bf16.mxu0 %v6581_v35  ;;  %v1160_v2 = vsel %vm6994_vm5, %v1158_v50, %v1159_v53 }
  0x9f   : > { %5858 = vmatmul.mubr.bf16.gmra.mrb[28].mxu1 %v4793_v54  ;;  %v1060_v54 = vld [vmem:[%s6744_s16 + $0x5c] sm:$0x3] }
  0xa0   : > { %6082 = vmatmul.mubr.bf16.gmra.mrb[12].mxu0 %v6568_v62  ;;  %5877 = vmatprep.mubr.bf16.mxu1 %v4834_v27  ;;  %v1170_v62 = vrot.slane %v6622_v59, 6  ;;  %v7395_v27 = vld [vmem:[%s6744_s16 + $0x34] sm:$0xf]  ;;  %v1166_v9 = vrot.slane %v1060_v54, 6  ;;  %v1067_v54 = vld [vmem:[%s6744_s16 + $0x84] sm:$0xc] }
  0xa1   : > { %6085 = vmatprep.mubr.bf16.mxu0 %v6570_v5  ;;  %6114 = vmatpush3.bf16.msra.mxu0 %v6581_v35  ;;  %v4838_v35 = vcombine.low %v1143_v6, %v1146_v43  ;;  %v1153_v5 = vsel %vm6994_vm5, %v1151_v40, %v1152_v41  ;;  %v3446_v1 = vrot.slane %v7395_v27, 5  ;;  %v1191_v6 = vrot.slane %v7457_v38, 6  ;;  %v6588_v43 = vld [vmem:[%s7999_s1 + $0xe8] sm:$0xff]  }
  0xa2   : > { %6115 = vmatprep.subr.bf16.mxu0 %v6585_v25  ;;  %v1172_v46 = vrot.slane %v1170_v62, 4  ;;  %v1167_v3 = vsel %vm6994_vm5, %v1165_v17, %v1166_v9  ;;  %v5200_v41 = vld [vmem:[%s6744_s16 + $0x48] sm:$0xe]  ;;  %v7498_v9 = vld [vmem:[%s6744_s16 + $0x54] sm:$0xe] }
  0xa3   : > { %v3448_v51 = vrot.slane %v3446_v1, 4  ;;  %v3447_v53 = vsel %vm6757_vm2, %v5242_v10, %v3446_v1  ;;  %v4841_v16 = vcombine.low %v1164_v37, %v1167_v3  ;;  %v4813_v1 = vrot.slane %v1067_v54, 10  ;;  %v7533_v37 = vld [vmem:[%s6744_s16 + $0x9c] sm:$0xc] }
  0xa4   : > { %v1174_v50 = vsel %vm6994_vm5, %v1172_v46, %v1173_v32  ;;  %v7504_v46 = vld [vmem:[%s6744_s16 + $0x64] sm:$0xf]  ;;  %v5245_v29 = vrot.slane %v7498_v9, 9  ;;  %v4815_v38 = vrot.slane %v7533_v37, 10  ;;  %v7552_v54 = vld [vmem:[%s6744_s16 + $0x7c] sm:$0xf] }
  0xa5   : > { %6116 = vmatpush3.bf16.msra.mxu0 %v6585_v25  ;;  %v1157_v25 = vsel %vm6994_vm5, %v4808_v39, %v1156_v26  ;;  %v1184_v26 = vrot.slane %v7448_v34, 6  ;;  %v5202_v39 = vld [vmem:[%s6744_s16 + $0x50] sm:$0x1]  ;;  %v5212_v9 = vld [vmem:[%s6744_s16 + $0x78] sm:$0xe] }
  0xa6   : > { %6149 = vmatprep.subr.bf16.mxu0 %v7359_v19  ;;  %v4840_v49 = vcombine.low %v1157_v25, %v1160_v2  ;;  %v3463_v63 = vrot.slane %v5202_v39, 5  ;;  %v1178_v2 = vsel %vm6994_vm5, %v4811_v24, %v1177_v8  ;;  %v6592_v8 = vld [vmem:[%s7999_s1 + $0xf8] sm:$0xff]   ;;  %v6626_v24 = vld [vmem:[%s6744_s16 + $0x94] sm:$0xf]  ;;  %v6589_v39 = vld [vmem:[%s7999_s1 + $0x208] sm:$0xff]  }
  0xa7   : > { %5878 = vmatmul.mubr.bf16.vlgmr.msra.gmra.mrb[0].mxu1 %v4835_v61  ;;  %v3449_v61 = vrot.slane %v7409_v0, 5  ;;  %v7489_v0 = vld [vmem:[%s6744_s16 + $0x58] sm:$0xf]  ;;  %v1076_v37 = vld [vmem:[%s6744_s16 + $0xbc] sm:$0x3] }
  0xa8   : > { %6086 = vmatmul.mubr.bf16.gmra.mrb[16].mxu0 %v6572_v60  ;;  %5910 = vmatpush3.bf16.msra.mxu1 %v7284_v55  ;;  %v6579_v55 = vld [vmem:[%s7999_s1 + $0xd0] sm:$0xff]   ;;  %v7427_v60 = vld [vmem:[%s6744_s16 + $0x40] sm:$0xf]  ;;  %v3467_v10 = vrot.slane %v7489_v0, 5 }
  0xa9   : > { %5881 = vmatprep.mubr.bf16.mxu1 %v4836_v11  ;;  %6089 = vmatprep.mubr.bf16.mxu0 %v6574_v23  ;;  %v6586_v11 = vld [vmem:[%s7999_s1 + $0xe0] sm:$0xff]   ;;  %v4839_v23 = vcombine.low %v1150_v4, %v1153_v5  ;;  %v3453_v30 = vrot.slane %v7427_v60, 5  ;;  %v3450_v59 = vsel %vm6757_vm2, %v3448_v51, %v3449_v61  ;;  %v1068_v4 = vld [vmem:[%s6744_s16 + $0x8c] sm:$0x3]  ;;  %v1193_v5 = vrot.slane %v1191_v6, 4 }
  0xaa   : > { %5911 = vmatprep.subr.bf16.mxu1 %v6575_v28  ;;  %v5274_v52 = vcombine.low %v3447_v53, %v3450_v59  ;;  %v1194_v61 = vrot.slane %v1068_v4, 6  ;;  %v5206_v51 = vld [vmem:[%s6744_s16 + $0x60] sm:$0xe]  ;;  %v3469_v34 = vrot.slane %v3467_v10, 4 }
  0xab   : > { %v3455_v42 = vrot.slane %v3453_v30, 4 }
  0xac   : > { %5912 = vmatpush3.bf16.msra.mxu1 %v6575_v28  ;;  %v5197_v28 = vld [vmem:[%s6744_s16 + $0x3c] sm:$0xe]  ;;  %v1195_v53 = vsel %vm6994_vm5, %v1193_v5, %v1194_v61  ;;  %v3468_v5 = vsel %vm6757_vm2, %v5245_v29, %v3467_v10 }
  0xad   : > { %5913 = vmatprep.subr.bf16.mxu1 %v6579_v55  ;;  %v5243_v40 = vrot.slane %v5197_v28, 9  ;;  %v3457_v14 = vsel %vm6757_vm2, %v3455_v42, %v3456_v48  ;;  %v6627_v48 = vld [vmem:[%s6744_s16 + $0xa0] sm:$0xf] }
  0xaf   : > { %5882 = vmatmul.mubr.bf16.gmra.mrb[4].mxu1 %v4837_v21  ;;  %v1186_v21 = vrot.slane %v1184_v26, 4  ;;  %v3454_v32 = vsel %vm6757_vm2, %v5243_v40, %v3453_v30  ;;  %v3474_v30 = vrot.slane %v7504_v46, 5 }
  0xb0   : > { %6090 = vmatmul.mubr.bf16.gmra.mrb[20].mxu0 %v6576_v45  ;;  %5885 = vmatprep.mubr.bf16.mxu1 %v4838_v35  ;;  %v1180_v45 = vrot.slane %v1064_v56, 6  ;;  %v1187_v35 = vrot.slane %v7445_v31, 6  ;;  %v1070_v56 = vld [vmem:[%s6744_s16 + $0x98] sm:$0x3] }
  0xb1   : > { %6093 = vmatprep.mubr.bf16.mxu0 %v6578_v58  ;;  %5914 = vmatpush3.bf16.msra.mxu1 %v6579_v55  ;;  %v1171_v55 = vsel %vm6994_vm5, %v4810_v7, %v1170_v62  ;;  %v3460_v58 = vrot.slane %v7452_v36, 5  ;;  %v5244_v62 = vrot.slane %v5200_v41, 9  ;;  %v7501_v7 = vld [vmem:[%s6744_s16 + $0x5c] sm:$0x1]  ;;  %v1192_v41 = vsel %vm6994_vm5, %v4813_v1, %v1191_v6  ;;  %v5209_v6 = vld [vmem:[%s6744_s16 + $0x6c] sm:$0xe] }
  0xb2   : > { %5915 = vmatprep.subr.bf16.mxu1 %v6583_v57  ;;  %v4842_v25 = vcombine.low %v1171_v55, %v1174_v50  ;;  %v1181_v17 = vsel %vm6994_vm5, %v1179_v20, %v1180_v45  ;;  %v5275_v20 = vcombine.low %v3454_v32, %v3457_v14  ;;  %v1188_v28 = vsel %vm6994_vm5, %v1186_v21, %v1187_v35  ;;  %v1072_v35 = vld [vmem:[%s6744_s16 + $0xa4] sm:$0x3]  ;;  %v1074_v1 = vld [vmem:[%s6744_s16 + $0xb0] sm:$0x3] }
  0xb3   : > { %v3462_v33 = vrot.slane %v3460_v58, 4  ;;  %v3461_v18 = vsel %vm6757_vm2, %v5244_v62, %v3460_v58  ;;  %v1201_v55 = vrot.slane %v1070_v56, 6  ;;  %v5246_v45 = vrot.slane %v5206_v51, 9  ;;  %v7544_v58 = vld [vmem:[%s6744_s16 + $0x70] sm:$0xf] }
  0xb4   : > { %v1205_v21 = vrot.slane %v6627_v48, 6  ;;  %v3481_v59 = vrot.slane %v7544_v58, 5  ;;  %v6629_v62 = vld [vmem:[%s6744_s16 + $0xac] sm:$0xf]  ;;  %v4845_v4 = vcombine.low %v1192_v41, %v1195_v53  ;;  %v1208_v10 = vrot.slane %v1072_v35, 6 }
  0xb5   : > { %5916 = vmatpush3.bf16.msra.mxu1 %v6583_v57  ;;  %v6584_v57 = vld [vmem:[%s6744_s16 + $0xe4] sm:$0xff]   ;;  %v3464_v31 = vsel %vm6757_vm2, %v3462_v33, %v3463_v63  ;;  %v1212_v63 = vrot.slane %v6629_v62, 6  ;;  %v3475_v32 = vsel %vm6757_vm2, %v5246_v45, %v3474_v30  ;;  %v5248_v51 = vrot.slane %v5212_v9, 9  ;;  %v5218_v53 = vld [vmem:[%s6744_s16 + $0x90] sm:$0xe] }
  0xb6   : > { %5917 = vmatprep.subr.bf16.mxu1 %v6586_v11  ;;  %v5276_v50 = vcombine.low %v3461_v18, %v3464_v31  ;;  %v1073_v33 = vld [vmem:[%s6744_s16 + $0xa8] sm:$0xc]  ;;  %v3483_v61 = vrot.slane %v3481_v59, 4  ;;  %v6593_v18 = vld [vmem:[%s7999_s1 + $0x218] sm:$0xff]   ;;  %v1206_v31 = vsel %vm6994_vm5, %v4815_v38, %v1205_v21  ;;  %v6596_v38 = vld [vmem:[%s7999_s1 + $0x220] sm:$0xff]  }
  0xb7   : > { %5886 = vmatmul.mubr.bf16.gmra.mrb[8].mxu1 %v4839_v23  ;;  %v4843_v23 = vcombine.low %v1178_v2, %v1181_v17  ;;  %v1207_v17 = vrot.slane %v1205_v21, 4  ;;  %v4816_v56 = vrot.slane %v1073_v33, 10  ;;  %v6599_v9 = vld [vmem:[%s7999_s1 + $0x228] sm:$0xff]  }
  0xb8   : > { %6094 = vmatmul.mubr.bf16.gmra.mrb[24].mxu0 %v6580_v22  ;;  %5889 = vmatprep.mubr.bf16.mxu1 %v4840_v49  ;;  %v1069_v22 = vld [vmem:[%s6744_s16 + $0x90] sm:$0xc]  ;;  %v5208_v49 = vld [vmem:[%s6744_s16 + $0x68] sm:$0x1] }
  0xb9   : > { %6097 = vmatprep.mubr.bf16.mxu0 %v6582_v13  ;;  %5918 = vmatpush3.bf16.msra.mxu1 %v6586_v11  ;;  %v1198_v11 = vrot.slane %v6626_v24, 6  ;;  %v1185_v13 = vsel %vm6994_vm5, %v4812_v44, %v1184_v26  ;;  %v3470_v26 = vrot.slane %v7501_v7, 5  ;;  %v3477_v42 = vrot.slane %v5208_v49, 5  ;;  %v1075_v49 = vld [vmem:[%s6744_s16 + $0xb4] sm:$0xc] }
  0xba   : > { %5919 = vmatprep.subr.bf16.mxu1 %v6588_v43  ;;  %v4844_v40 = vcombine.low %v1185_v13, %v1188_v28  ;;  %v3476_v44 = vrot.slane %v3474_v30, 4  ;;  %v3488_v7 = vrot.slane %v7552_v54, 5  ;;  %v1214_v24 = vrot.slane %v1212_v63, 4  ;;  %v7586_v30 = vld [vmem:[%s6744_s16 + $0x88] sm:$0xf] }
  0xbb   : > { %v1200_v3 = vrot.slane %v1198_v11, 4  ;;  %v1215_v13 = vrot.slane %v1074_v1, 6  ;;  %v5250_v1 = vrot.slane %v5218_v53, 9  ;;  %v5229_v53 = vld [vmem:[%s6744_s16 + $0xbc] sm:$0x1] }
  0xbc   : > { %v3478_v14 = vsel %vm6757_vm2, %v3476_v44, %v3477_v42  ;;  %v3490_v28 = vrot.slane %v3488_v7, 4  ;;  %v5217_v42 = vld [vmem:[%s6744_s16 + $0x8c] sm:$0x1]  ;;  %v3489_v48 = vsel %vm6757_vm2, %v5248_v51, %v3488_v7  ;;  %v5220_v44 = vld [vmem:[%s6744_s16 + $0x98] sm:$0x1] }
  0xbd   : > { %5920 = vmatpush3.bf16.msra.mxu1 %v6588_v43  ;;  %v4814_v43 = vrot.slane %v1069_v22, 10  ;;  %v1202_v2 = vsel %vm6994_vm5, %v1200_v3, %v1201_v55  ;;  %v1213_v55 = vsel %vm6994_vm5, %v4816_v56, %v1212_v63  ;;  %v1216_v45 = vsel %vm6994_vm5, %v1214_v24, %v1215_v13  ;;  %v7628_v7 = vld [vmem:[%s6744_s16 + $0xac] sm:$0xf]  ;;  %v5223_v24 = vld [vmem:[%s6744_s16 + $0xa4] sm:$0x1] }
  0xbe   : > { %5921 = vmatprep.subr.bf16.mxu1 %v6590_v12  ;;  %v4848_v62 = vcombine.low %v1213_v55, %v1216_v45  ;;  %v4817_v63 = vrot.slane %v1075_v49, 10  ;;  %v3498_v33 = vrot.slane %v5217_v42, 5  ;;  %v5224_v51 = vld [vmem:[%s6744_s16 + $0xa8] sm:$0xe]  ;;  %v7653_v55 = vld [vmem:[%s6744_s16 + $0xb8] sm:$0xf] }
  0xbf   : > { %5890 = vmatmul.mubr.bf16.gmra.mrb[12].mxu1 %v4841_v16  ;;  %v5211_v16 = vld [vmem:[%s6744_s16 + $0x74] sm:$0x1]  ;;  %v6605_v45 = vld [vmem:[%s7999_s1 + $0x238] sm:$0xff]   ;;  %v3523_v42 = vrot.slane %v7653_v55, 5 }
  0xc0   : > { %6098 = vmatmul.mubr.bf16.gmra.mrb[28].mxu0 %v6584_v57  ;;  %5893 = vmatprep.mubr.bf16.mxu1 %v4842_v25  ;;  %v7557_v57 = vld [vmem:[%s7999_s1 + $0x100] sm:$0xff]   ;;  %v6591_v25 = vld [vmem:[%s7999_s1 + $0x210] sm:$0xff]   ;;  %v3484_v22 = vrot.slane %v5211_v16, 5 }
  0xc1   : > { %6117 = vmatprep.mubr.bf16.mxu0 %v5274_v52  ;;  %5922 = vmatpush3.bf16.msra.mxu1 %v6590_v12  ;;  %v3471_v12 = vsel %vm6757_vm2, %v3469_v34, %v3470_v26  ;;  %v1199_v52 = vsel %vm6994_vm5, %v4814_v43, %v1198_v11  ;;  %v1209_v34 = vsel %vm6994_vm5, %v1207_v17, %v1208_v10  ;;  %v7599_v43 = vld [vmem:[%s6744_s16 + $0x94] sm:$0xf]  ;;  %v7622_v17 = vld [vmem:[%s6744_s16 + $0xa0] sm:$0xf] }
  0xc2   : > { %5923 = vmatprep.subr.bf16.mxu1 %v6592_v8  ;;  %v5277_v11 = vcombine.low %v3468_v5, %v3471_v12  ;;  %v3485_v3 = vsel %vm6757_vm2, %v3483_v61, %v3484_v22  ;;  %v3502_v35 = vrot.slane %v7599_v43, 5  ;;  %v1222_v12 = vrot.slane %v1076_v37, 6 }
  0xc3   : > { %v3509_v61 = vrot.slane %v7622_v17, 5 }
  0xc4   : > { %v3503_v22 = vsel %vm6757_vm2, %v5250_v1, %v3502_v35  ;;  %v7678_v1 = vld [vmem:[%s6744_s16 + $0xd0] sm:$0xf] }
  0xc5   : > { %5924 = vmatpush3.bf16.msra.mxu1 %v6592_v8  ;;  %v5214_v8 = vld [vmem:[%s6744_s16 + $0x80] sm:$0x1] }
  0xc6   : > { %6197 = vmatprep.subr.bf16.mxu1 %v7557_v57  ;;  %v3491_v29 = vrot.slane %v5214_v8, 5  ;;  %v5221_v8 = vld [vmem:[%s6744_s16 + $0x9c] sm:$0xe] }
  0xc7   : > { %5894 = vmatmul.mubr.bf16.gmra.mrb[16].mxu1 %v4843_v23  ;;  %v4846_v23 = vcombine.low %v1199_v52, %v1202_v2  ;;  %v3505_v52 = vrot.slane %v5220_v44, 5  ;;  %v3504_v2 = vrot.slane %v3502_v35, 4  ;;  %v6595_v35 = vld [vmem:[%s6744_s16 + $0x24] sm:$0xff]  }
  0xc8   : > { %6118 = vmatmul.mubr.bf16.vlgmr.msra.gmra.mrb[0].mxu0 %v5275_v20  ;;  %5897 = vmatprep.mubr.bf16.mxu1 %v4844_v40  ;;  %v5278_v20 = vcombine.low %v3475_v32, %v3478_v14  ;;  %v6630_v40 = vld [vmem:[%s6744_s16 + $0xb8] sm:$0xf]  ;;  %v3492_v21 = vsel %vm6757_vm2, %v3490_v28, %v3491_v29 }
  0xc9   : > { %6150 = vmatpush3.bf16.msra.mxu0 %v7359_v19  ;;  %6121 = vmatprep.mubr.bf16.mxu0 %v5276_v50  ;;  %v5247_v19 = vrot.slane %v5209_v6, 9  ;;  %v1219_v41 = vrot.slane %v6630_v40, 6  ;;  %v3495_v50 = vrot.slane %v7586_v30, 5  ;;  %v4847_v6 = vcombine.low %v1206_v31, %v1209_v34  ;;  %v6594_v29 = vld [vmem:[%s6744_s16 + $0x18] sm:$0xff]   ;;  %v7659_v40 = vld [vmem:[%s6744_s16 + $0xc4] sm:$0xf] }
  0xca   : > { %6151 = vmatprep.subr.bf16.mxu0 %v6589_v39  ;;  %v3506_v56 = vsel %vm6757_vm2, %v3504_v2, %v3505_v52  ;;  %v3511_v31 = vrot.slane %v3509_v61, 4  ;;  %v3512_v34 = vrot.slane %v5223_v24, 5  ;;  %v3530_v44 = vrot.slane %v7659_v40, 5  ;;  %v7681_v52 = vld [vmem:[%s6744_s16 + $0xdc] sm:$0xf] }
  0xcb   : > { %v3482_v26 = vsel %vm6757_vm2, %v5247_v19, %v3481_v59  ;;  %v1221_v5 = vrot.slane %v1219_v41, 4  ;;  %v1220_v32 = vsel %vm6994_vm5, %v4817_v63, %v1219_v41  ;;  %v5282_v49 = vcombine.low %v3503_v22, %v3506_v56  ;;  %v6598_v22 = vld [vmem:[%s6744_s16 + $0x3c] sm:$0xff]   ;;  %v5236_v56 = vld [vmem:[%s6744_s16 + $0xd8] sm:$0xe] }
  0xcc   : > { %v5279_v59 = vcombine.low %v3482_v26, %v3485_v3  ;;  %v5252_v26 = vrot.slane %v5224_v51, 9  ;;  %v5238_v24 = vld [vmem:[%s6744_s16 + $0xe0] sm:$0x1]  ;;  %v6632_v51 = vld [vmem:[%s7999_s1 + $0x110] sm:$0xff]  }
  0xcd   : > { %6152 = vmatpush3.bf16.msra.mxu0 %v6589_v39  ;;  %v5215_v39 = vld [vmem:[%s6744_s16 + $0x84] sm:$0xe]  ;;  %v1223_v14 = vsel %vm6994_vm5, %v1221_v5, %v1222_v12  ;;  %v3525_v5 = vrot.slane %v3523_v42, 4  ;;  %v3526_v12 = vrot.slane %v5229_v53, 5  ;;  %v5298_v53 = vld [vmem:[%s6744_s16 + $0x30] sm:$0xc] }
  0xce   : > { %6153 = vmatprep.subr.bf16.mxu0 %v6591_v25  ;;  %v5249_v16 = vrot.slane %v5215_v39, 9  ;;  %v4849_v13 = vcombine.low %v1220_v32, %v1223_v14  ;;  %v3513_v39 = vsel %vm6757_vm2, %v3511_v31, %v3512_v34  ;;  %v3537_v32 = vrot.slane %v7678_v1, 5  ;;  %v6631_v14 = vld [vmem:[%s7999_s1 + $0x108] sm:$0xff]  }
  0xcf   : > { %5898 = vmatmul.mubr.bf16.gmra.mrb[20].mxu1 %v4845_v4  ;;  %v5280_v4 = vcombine.low %v3489_v48, %v3492_v21  ;;  %v3547_v31 = vrot.slane %v5238_v24, 5  ;;  %v7707_v34 = vld [vmem:[%s6744_s16 + $0xe8] sm:$0xf] }
  0xd0   : > { %6122 = vmatmul.mubr.bf16.gmra.mrb[4].mxu0 %v5277_v11  ;;  %5901 = vmatprep.mubr.bf16.mxu1 %v4846_v23  ;;  %v3496_v10 = vsel %vm6757_vm2, %v5249_v16, %v3495_v50  ;;  %v3516_v11 = vrot.slane %v7628_v7, 5  ;;  %v6602_v23 = vld [vmem:[%s7999_s1 + $0x230] sm:$0xff]  }
  0xd1   : > { %6125 = vmatprep.mubr.bf16.mxu0 %v5278_v20  ;;  %6154 = vmatpush3.bf16.msra.mxu0 %v6591_v25  ;;  %v3497_v25 = vrot.slane %v3495_v50, 4  ;;  %v5226_v20 = vld [vmem:[%s6744_s16 + $0xb0] sm:$0x1]  ;;  %v5227_v50 = vld [vmem:[%s6744_s16 + $0xb4] sm:$0xe] }
  0xd2   : > { %6155 = vmatprep.subr.bf16.mxu0 %v6593_v18  ;;  %v3518_v37 = vrot.slane %v3516_v11, 4  ;;  %v3519_v3 = vrot.slane %v5226_v20, 5  ;;  %v3517_v48 = vsel %vm6757_vm2, %v5252_v26, %v3516_v11 }
  0xd3   : > { %v3499_v19 = vsel %vm6757_vm2, %v3497_v25, %v3498_v33  ;;  %v3532_v25 = vrot.slane %v3530_v44, 4 }
  0xd4   : > { %v5281_v28 = vcombine.low %v3496_v10, %v3499_v19  ;;  %v3520_v21 = vsel %vm6757_vm2, %v3518_v37, %v3519_v3  ;;  %v5233_v19 = vld [vmem:[%s6744_s16 + $0xcc] sm:$0xe]  ;;  %v3551_v3 = vrot.slane %v7707_v34, 5 }
  0xd5   : > { %6156 = vmatpush3.bf16.msra.mxu0 %v6593_v18  ;;  %v5251_v18 = vrot.slane %v5221_v8, 9  ;;  %v5284_v63 = vcombine.low %v3517_v48, %v3520_v21  ;;  %v5235_v8 = vld [vmem:[%s6744_s16 + $0xd4] sm:$0x1]  ;;  %v5255_v20 = vrot.slane %v5233_v19, 9  ;;  %v5241_v48 = vld [vmem:[%s6744_s16 + $0xec] sm:$0x1] }
  0xd6   : > { %6157 = vmatprep.subr.bf16.mxu0 %v6596_v38  ;;  %v3944_v21 = vrot.slane %v7395_v27, 6  ;;  %v6604_v19 = vld [vmem:[%s6744_s16 + $0x6c] sm:$0xff]  }
  0xd7   : > { %5902 = vmatmul.mubr.bf16.gmra.mrb[24].mxu1 %v4847_v6  ;;  %v3510_v41 = vsel %vm6757_vm2, %v5251_v18, %v3509_v61  ;;  %v5232_v6 = vld [vmem:[%s6744_s16 + $0xc8] sm:$0x1]  ;;  %v3544_v61 = vrot.slane %v7681_v52, 5  ;;  %v3538_v26 = vsel %vm6757_vm2, %v5255_v20, %v3537_v32  ;;  %v6636_v20 = vld [vmem:[%s7999_s1 + $0x130] sm:$0xff]  }
  0xd8   : > { %6126 = vmatmul.mubr.bf16.gmra.mrb[8].mxu0 %v5279_v59  ;;  %5905 = vmatprep.mubr.bf16.mxu1 %v4848_v62  ;;  %v5283_v59 = vcombine.low %v3510_v41, %v3513_v39  ;;  %v6597_v62 = vld [vmem:[%s6744_s16 + $0x30] sm:$0xff]   ;;  %v3533_v33 = vrot.slane %v5232_v6, 5  ;;  %v6633_v39 = vld [vmem:[%s7999_s1 + $0x118] sm:$0xff]  }
  0xd9   : > { %6129 = vmatprep.mubr.bf16.mxu0 %v5280_v4  ;;  %6158 = vmatpush3.bf16.msra.mxu0 %v6596_v38  ;;  %v5230_v38 = vld [vmem:[%s6744_s16 + $0xc0] sm:$0xe]  ;;  %v5253_v4 = vrot.slane %v5227_v50, 9  ;;  %v3546_v18 = vrot.slane %v3544_v61, 4  ;;  %v6601_v50 = vld [vmem:[%s6744_s16 + $0x54] sm:$0xff]  }
  0xda   : > { %6159 = vmatprep.subr.bf16.mxu0 %v6599_v9  ;;  %v5254_v16 = vrot.slane %v5230_v38, 9  ;;  %v6603_v38 = vld [vmem:[%s6744_s16 + $0x60] sm:$0xff]  }
  0xdb   : > { %v3524_v2 = vsel %vm6757_vm2, %v5253_v4, %v3523_v42  ;;  %v3548_v41 = vsel %vm6757_vm2, %v3546_v18, %v3547_v31  ;;  %v5239_v42 = vld [vmem:[%s6744_s16 + $0xe4] sm:$0xe]  ;;  %v5330_v4 = vrot.slane %v5298_v53, 10 }
  0xdc   : > { %v3531_v10 = vsel %vm6757_vm2, %v5254_v16, %v3530_v44  ;;  %v5299_v44 = vld [vmem:[%s6744_s16 + $0x38] sm:$0x3]  ;;  %v6634_v16 = vld [vmem:[%s7999_s1 + $0x120] sm:$0xff]  }
  0xdd   : > { %6160 = vmatpush3.bf16.msra.mxu0 %v6599_v9  ;;  %v3527_v9 = vsel %vm6757_vm2, %v3525_v5, %v3526_v12  ;;  %v3946_v5 = vrot.slane %v3944_v21, 4  ;;  %v3947_v12 = vrot.slane %v5299_v44, 6 }
  0xde   : > { %6161 = vmatprep.subr.bf16.mxu0 %v6602_v23  ;;  %v5285_v11 = vcombine.low %v3524_v2, %v3527_v9  ;;  %v3945_v2 = vsel %vm6994_vm5, %v5330_v4, %v3944_v21  ;;  %v5309_v4 = vld [vmem:[%s6744_s16 + $0x74] sm:$0x3] }
  0xdf   : > { %5906 = vmatmul.mubr.bf16.gmra.mrb[28].mxu1 %v4849_v13  ;;  %v3948_v9 = vsel %vm6994_vm5, %v3946_v5, %v3947_v12 }
  0xe0   : > { %6130 = vmatmul.mubr.bf16.gmra.mrb[12].mxu0 %v5281_v28  ;;  %5925 = vmatprep.mubr.bf16.mxu1 %v6594_v29  ;;  %v3539_v28 = vrot.slane %v3537_v32, 4  ;;  %v3540_v29 = vrot.slane %v5235_v8, 5  ;;  %v5300_v32 = vld [vmem:[%s6744_s16 + $0x3c] sm:$0xc]  ;;  %v5302_v8 = vld [vmem:[%s6744_s16 + $0x48] sm:$0xc] }
  0xe1   : > { %6133 = vmatprep.mubr.bf16.mxu0 %v5282_v49  ;;  %6162 = vmatpush3.bf16.msra.mxu0 %v6602_v23  ;;  %v6600_v23 = vld [vmem:[%s6744_s16 + $0x48] sm:$0xff]   ;;  %v5256_v49 = vrot.slane %v5236_v56, 9  ;;  %v5362_v56 = vcombine.low %v3945_v2, %v3948_v9  ;;  %v5331_v24 = vrot.slane %v5300_v32, 10 }
  0xe2   : > { %6163 = vmatprep.subr.bf16.mxu0 %v6605_v45  ;;  %v3541_v37 = vsel %vm6757_vm2, %v3539_v28, %v3540_v29  ;;  %v6610_v2 = vld [vmem:[%s6744_s16 + $0xa8] sm:$0xff]  }
  0xe5   : > { %6164 = vmatpush3.bf16.msra.mxu0 %v6605_v45  ;;  %v3545_v45 = vsel %vm6757_vm2, %v5256_v49, %v3544_v61  ;;  %v5303_v61 = vld [vmem:[%s6744_s16 + $0x50] sm:$0x3]  ;;  %v3965_v49 = vrot.slane %v7489_v0, 6 }
  0xe6   : > { %v5288_v6 = vcombine.low %v3545_v45, %v3548_v41  ;;  %v6637_v45 = vld [vmem:[%s7999_s1 + $0x138] sm:$0xff]   ;;  %v6607_v41 = vld [vmem:[%s6744_s16 + $0x84] sm:$0xff]  }
  0xe7   : > { %5926 = vmatmul.mubr.bf16.vlgmr.msra.gmra.mrb[0].mxu1 %v6595_v35  ;;  %v5287_v35 = vcombine.low %v3538_v26, %v3541_v37  ;;  %v5304_v26 = vld [vmem:[%s6744_s16 + $0x54] sm:$0xc]  ;;  %v5305_v37 = vld [vmem:[%s6744_s16 + $0x5c] sm:$0x3]  ;;  %v3967_v53 = vrot.slane %v3965_v49, 4 }
  0xe8   : > { %6134 = vmatmul.mubr.bf16.gmra.mrb[16].mxu0 %v5283_v59  ;;  %6205 = vmatpush3.bf16.msra.mxu1 %v7557_v57  ;;  %v3534_v57 = vsel %vm6757_vm2, %v3532_v25, %v3533_v33  ;;  %v5257_v59 = vrot.slane %v5239_v42, 9  ;;  %v3951_v33 = vrot.slane %v7427_v60, 6  ;;  %v5307_v42 = vld [vmem:[%s6744_s16 + $0x68] sm:$0x3]  ;;  %v3968_v44 = vrot.slane %v5305_v37, 6 }
  0xe9   : > { %5929 = vmatprep.mubr.bf16.mxu1 %v6597_v62  ;;  %6137 = vmatprep.mubr.bf16.mxu0 %v5284_v63  ;;  %v5286_v13 = vcombine.low %v3531_v10, %v3534_v57  ;;  %v3553_v62 = vrot.slane %v3551_v3, 4  ;;  %v3554_v63 = vrot.slane %v5241_v48, 5  ;;  %v3958_v10 = vrot.slane %v7452_v36, 6  ;;  %v6635_v57 = vld [vmem:[%s7999_s1 + $0x128] sm:$0xff]   ;;  %v6608_v48 = vld [vmem:[%s6744_s16 + $0x90] sm:$0xff]  }
  0xea   : > { %6198 = vmatprep.subr.bf16.mxu1 %v6631_v14  ;;  %v3552_v27 = vsel %vm6757_vm2, %v5257_v59, %v3551_v3  ;;  %v3961_v36 = vrot.slane %v5303_v61, 6  ;;  %v3952_v28 = vsel %vm6994_vm5, %v5331_v24, %v3951_v33  ;;  %v3972_v3 = vrot.slane %v7504_v46, 6  ;;  %v4954_v24 = vld [vmem:[%s6744_s16 + $0x78] sm:$0xe] }
  0xeb   : > { %v3555_v25 = vsel %vm6757_vm2, %v3553_v62, %v3554_v63  ;;  %v3969_v62 = vsel %vm6994_vm5, %v3967_v53, %v3968_v44  ;;  %v5308_v63 = vld [vmem:[%s6744_s16 + $0x6c] sm:$0xc]  ;;  %v4959_v53 = vld [vmem:[%s6744_s16 + $0x8c] sm:$0x1]  ;;  %v5316_v44 = vld [vmem:[%s6744_s16 + $0x9c] sm:$0xc] }
  0xec   : > { %6206 = vmatpush3.bf16.msra.mxu1 %v6631_v14  ;;  %v5301_v14 = vld [vmem:[%s6744_s16 + $0x44] sm:$0x3]  ;;  %v5289_v60 = vcombine.low %v3552_v27, %v3555_v25  ;;  %v3974_v46 = vrot.slane %v3972_v3, 4  ;;  %v6609_v27 = vld [vmem:[%s6744_s16 + $0x9c] sm:$0xff]   ;;  %v5310_v25 = vld [vmem:[%s6744_s16 + $0x78] sm:$0xc] }
  0xed   : > { %6199 = vmatprep.subr.bf16.mxu1 %v6632_v51  ;;  %v5335_v9 = vrot.slane %v5308_v63, 10 }
  0xef   : > { %5930 = vmatmul.mubr.bf16.gmra.mrb[4].mxu1 %v6598_v22  ;;  %v6606_v22 = vld [vmem:[%s6744_s16 + $0x78] sm:$0xff]  }
  0xf0   : > { %6138 = vmatmul.mubr.bf16.gmra.mrb[20].mxu0 %v5285_v11  ;;  %5933 = vmatprep.mubr.bf16.mxu1 %v6600_v23  ;;  %v3953_v11 = vrot.slane %v3951_v33, 4  ;;  %v3954_v23 = vrot.slane %v5301_v14, 6  ;;  %v3982_v14 = vrot.slane %v5309_v4, 6 }
  0xf1   : > { %6141 = vmatprep.mubr.bf16.mxu0 %v5286_v13  ;;  %6207 = vmatpush3.bf16.msra.mxu1 %v6632_v51  ;;  %v5332_v13 = vrot.slane %v5302_v8, 10  ;;  %v3960_v51 = vrot.slane %v3958_v10, 4 }
  0xf2   : > { %6200 = vmatprep.subr.bf16.mxu1 %v6633_v39  ;;  %v3955_v29 = vsel %vm6994_vm5, %v3953_v11, %v3954_v23  ;;  %v6638_v11 = vld [vmem:[%s6744_s16 + $0x7c] sm:$0xf] }
  0xf3   : > { %v3959_v18 = vsel %vm6994_vm5, %v5332_v13, %v3958_v10  ;;  %v3962_v31 = vsel %vm6994_vm5, %v3960_v51, %v3961_v36  ;;  %v5363_v0 = vcombine.low %v3952_v28, %v3955_v29  ;;  %v2087_v23 = vrot.slane %v6638_v11, 5  ;;  %v4956_v36 = vld [vmem:[%s6744_s16 + $0x80] sm:$0x1]  ;;  %v6639_v29 = vld [vmem:[%s6744_s16 + $0x88] sm:$0xf] }
  0xf4   : > { %v5364_v21 = vcombine.low %v3959_v18, %v3962_v31  ;;  %v4000_v28 = vrot.slane %v7599_v43, 6  ;;  %v5315_v31 = vld [vmem:[%s6744_s16 + $0x98] sm:$0x3] }
  0xf5   : > { %6208 = vmatpush3.bf16.msra.mxu1 %v6633_v39  ;;  %v5306_v39 = vld [vmem:[%s6744_s16 + $0x60] sm:$0xc] }
  0xf6   : > { %6201 = vmatprep.subr.bf16.mxu1 %v6634_v16  ;;  %v4002_v43 = vrot.slane %v4000_v28, 4 }
  0xf7   : > { %5934 = vmatmul.mubr.bf16.gmra.mrb[8].mxu1 %v6601_v50  ;;  %v5333_v50 = vrot.slane %v5304_v26, 10  ;;  %v6612_v26 = vld [vmem:[%s6744_s16 + $0xc0] sm:$0xff]  }
  0xf8   : > { %6142 = vmatmul.mubr.bf16.gmra.mrb[24].mxu0 %v5287_v35  ;;  %5937 = vmatprep.mubr.bf16.mxu1 %v6603_v38  ;;  %v5334_v35 = vrot.slane %v5306_v39, 10  ;;  %v3975_v38 = vrot.slane %v5307_v42, 6  ;;  %v2089_v42 = vrot.slane %v2087_v23, 4 }
  0xf9   : > { %6145 = vmatprep.mubr.bf16.mxu0 %v5288_v6  ;;  %6209 = vmatpush3.bf16.msra.mxu1 %v6634_v16  ;;  %v3979_v6 = vrot.slane %v7544_v58, 6  ;;  %v3966_v59 = vsel %vm6994_vm5, %v5333_v50, %v3965_v49  ;;  %v3986_v16 = vrot.slane %v7552_v54, 6  ;;  %v5311_v58 = vld [vmem:[%s6744_s16 + $0x80] sm:$0x3]  ;;  %v2094_v49 = vrot.slane %v6639_v29, 5 }
  0xfa   : > { %6202 = vmatprep.subr.bf16.mxu1 %v6635_v57  ;;  %v3973_v5 = vsel %vm6994_vm5, %v5334_v35, %v3972_v3  ;;  %v3976_v12 = vsel %vm6994_vm5, %v3974_v46, %v3975_v38  ;;  %v5365_v33 = vcombine.low %v3966_v59, %v3969_v62  ;;  %v3989_v8 = vrot.slane %v5311_v58, 6  ;;  %v4957_v50 = vld [vmem:[%s6744_s16 + $0x84] sm:$0xe]  ;;  %v6640_v62 = vld [vmem:[%s6744_s16 + $0x94] sm:$0xf] }
  0xfb   : > { %v3981_v32 = vrot.slane %v3979_v6, 4  ;;  %v5366_v10 = vcombine.low %v3973_v5, %v3976_v12  ;;  %v3980_v54 = vsel %vm6994_vm5, %v5335_v9, %v3979_v6  ;;  %v4007_v35 = vrot.slane %v7622_v17, 6  ;;  %v5317_v59 = vld [vmem:[%s6744_s16 + $0xa4] sm:$0x3] }
  0xfc   : > { %v2096_v46 = vrot.slane %v2094_v49, 4  ;;  %v2101_v63 = vrot.slane %v6640_v62, 5  ;;  %v4987_v12 = vrot.slane %v4957_v50, 9  ;;  %v4014_v9 = vrot.slane %v7628_v7, 6  ;;  %v5322_v50 = vld [vmem:[%s6744_s16 + $0xc0] sm:$0xc] }
  0xfd   : > { %6210 = vmatpush3.bf16.msra.mxu1 %v6635_v57  ;;  %v5336_v57 = vrot.slane %v5310_v25, 10  ;;  %v3983_v61 = vsel %vm6994_vm5, %v3981_v32, %v3982_v14  ;;  %v6613_v25 = vld [vmem:[%s6744_s16 + $0xcc] sm:$0xff]   ;;  %v4009_v14 = vrot.slane %v4007_v35, 4 }
  0xfe   : > { %6203 = vmatprep.subr.bf16.mxu1 %v6636_v20  ;;  %v5367_v18 = vcombine.low %v3980_v54, %v3983_v61  ;;  %v2103_v61 = vrot.slane %v2101_v63, 4 }
  0xff   : > { %5938 = vmatmul.mubr.bf16.gmra.mrb[12].mxu1 %v6604_v19  ;;  %v3988_v19 = vrot.slane %v3986_v16, 4  ;;  %v3987_v13 = vsel %vm6994_vm5, %v5336_v57, %v3986_v16  ;;  %v4960_v16 = vld [vmem:[%s6744_s16 + $0x90] sm:$0xe]  ;;  %v5318_v57 = vld [vmem:[%s6744_s16 + $0xa8] sm:$0xc] }
 0x100   : > { %6146 = vmatmul.mubr.bf16.gmra.mrb[28].mxu0 %v5289_v60  ;;  %5941 = vmatprep.mubr.bf16.mxu1 %v6606_v22  ;;  %v5312_v60 = vld [vmem:[%s6744_s16 + $0x84] sm:$0xc]  ;;  %v3993_v22 = vrot.slane %v7586_v30, 6  ;;  %v6611_v30 = vld [vmem:[%s6744_s16 + $0xb4] sm:$0xff]   ;;  %v4988_v54 = vrot.slane %v4960_v16, 9  ;;  %v5340_v11 = vrot.slane %v5318_v57, 10 }
 0x101   : > { %6165 = vmatprep.mubr.bf16.mxu0 %v5362_v56  ;;  %6211 = vmatpush3.bf16.msra.mxu1 %v6636_v20  ;;  %v5313_v56 = vld [vmem:[%s6744_s16 + $0x8c] sm:$0x3]  ;;  %v3990_v51 = vsel %vm6994_vm5, %v3988_v19, %v3989_v8  ;;  %v5314_v20 = vld [vmem:[%s6744_s16 + $0x90] sm:$0xc]  ;;  %v5337_v37 = vrot.slane %v5312_v60, 10 }
 0x102   : > { %6204 = vmatprep.subr.bf16.mxu1 %v6637_v45  ;;  %v3995_v3 = vrot.slane %v3993_v22, 4  ;;  %v5368_v39 = vcombine.low %v3987_v13, %v3990_v51  ;;  %v5319_v19 = vld [vmem:[%s6744_s16 + $0xb0] sm:$0x3]  ;;  %v4965_v51 = vld [vmem:[%s6744_s16 + $0xa4] sm:$0x1] }
 0x103   : > { %v3994_v38 = vsel %vm6994_vm5, %v5337_v37, %v3993_v22  ;;  %v4017_v13 = vrot.slane %v5319_v19, 6  ;;  %v6642_v37 = vld [vmem:[%s6744_s16 + $0xac] sm:$0xf]  ;;  %v5325_v57 = vld [vmem:[%s6744_s16 + $0xd4] sm:$0x3]  ;;  %v4035_v19 = vrot.slane %v7678_v1, 6 }
 0x105   : > { %6212 = vmatpush3.bf16.msra.mxu1 %v6637_v45  ;;  %v3996_v45 = vrot.slane %v5313_v56, 6  ;;  %v2095_v56 = vsel %vm6757_vm2, %v4987_v12, %v2094_v49  ;;  %v2102_v49 = vsel %vm6757_vm2, %v4988_v54, %v2101_v63  ;;  %v6644_v54 = vld [vmem:[%s6744_s16 + $0xc4] sm:$0xf] }
 0x107   : > { %5942 = vmatmul.mubr.bf16.gmra.mrb[16].mxu1 %v6607_v41  ;;  %v4986_v41 = vrot.slane %v4954_v24, 9  ;;  %v3997_v6 = vsel %vm6994_vm5, %v3995_v3, %v3996_v45  ;;  %v4963_v24 = vld [vmem:[%s6744_s16 + $0x9c] sm:$0xe]  ;;  %v2115_v3 = vrot.slane %v6642_v37, 5 }
 0x108   : > { %6166 = vmatmul.mubr.bf16.vlgmr.msra.gmra.mrb[0].mxu0 %v5363_v0  ;;  %5945 = vmatprep.mubr.bf16.mxu1 %v6608_v48  ;;  %v2090_v0 = vrot.slane %v4956_v36, 5  ;;  %v5338_v48 = vrot.slane %v5314_v20, 10  ;;  %v5369_v32 = vcombine.low %v3994_v38, %v3997_v6  ;;  %v5323_v38 = vld [vmem:[%s6744_s16 + $0xc8] sm:$0x3] }
 0x109   : > { %6169 = vmatprep.mubr.bf16.mxu0 %v5364_v21  ;;  %v4003_v21 = vrot.slane %v5315_v31, 6  ;;  %v2088_v4 = vsel %vm6757_vm2, %v4986_v41, %v2087_v23  ;;  %v4016_v23 = vrot.slane %v4014_v9, 4  ;;  %v5321_v31 = vld [vmem:[%s6744_s16 + $0xbc] sm:$0x3]  ;;  %v4989_v41 = vrot.slane %v4963_v24, 9 }
 0x10a   : > { %v2091_v17 = vsel %vm6757_vm2, %v2089_v42, %v2090_v0  ;;  %v4001_v5 = vsel %vm6994_vm5, %v5338_v48, %v4000_v28  ;;  %v6641_v28 = vld [vmem:[%s6744_s16 + $0xa0] sm:$0xf]  ;;  %v4966_v42 = vld [vmem:[%s6744_s16 + $0xa8] sm:$0xe]  ;;  %v4968_v0 = vld [vmem:[%s6744_s16 + $0xb0] sm:$0x1] }
 0x10b   : > { %v4004_v58 = vsel %vm6994_vm5, %v4002_v43, %v4003_v21  ;;  %v5018_v8 = vcombine.low %v2088_v4, %v2091_v17  ;;  %v2108_v29 = vrot.slane %v6641_v28, 5  ;;  %v4015_v43 = vsel %vm6994_vm5, %v5340_v11, %v4014_v9  ;;  %v4971_v9 = vld [vmem:[%s6744_s16 + $0xbc] sm:$0x1]  ;;  %v4974_v24 = vld [vmem:[%s6744_s16 + $0xc8] sm:$0x1] }
 0x10c   : > { %v5370_v22 = vcombine.low %v4001_v5, %v4004_v58  ;;  %v4018_v21 = vsel %vm6994_vm5, %v4016_v23, %v4017_v13  ;;  %v2117_v62 = vrot.slane %v2115_v3, 4  ;;  %v2118_v63 = vrot.slane %v4968_v0, 5  ;;  %v6645_v0 = vld [vmem:[%s6744_s16 + $0xd0] sm:$0xf] }
 0x10d   : > { %v5372_v4 = vcombine.low %v4015_v43, %v4018_v21  ;;  %v5342_v17 = vrot.slane %v5322_v50, 10  ;;  %v4031_v12 = vrot.slane %v5323_v38, 6  ;;  %v5329_v38 = vld [vmem:[%s6744_s16 + $0xec] sm:$0x3] }
 0x10f   : > { %5946 = vmatmul.mubr.bf16.gmra.mrb[20].mxu1 %v6609_v27  ;;  %v4962_v27 = vld [vmem:[%s6744_s16 + $0x98] sm:$0x1] }
 0x110   : > { %6170 = vmatmul.mubr.bf16.gmra.mrb[4].mxu0 %v5365_v33  ;;  %5949 = vmatprep.mubr.bf16.mxu1 %v6610_v2  ;;  %v2097_v33 = vrot.slane %v4959_v53, 5  ;;  %v5339_v2 = vrot.slane %v5316_v44, 10  ;;  %v2104_v60 = vrot.slane %v4962_v27, 5  ;;  %v4028_v53 = vrot.slane %v7659_v40, 6 }
 0x111   : > { %6173 = vmatprep.mubr.bf16.mxu0 %v5366_v10  ;;  %v4010_v10 = vrot.slane %v5317_v59, 6  ;;  %v2110_v44 = vrot.slane %v2108_v29, 4  ;;  %v4990_v59 = vrot.slane %v4966_v42, 9  ;;  %v2109_v40 = vsel %vm6757_vm2, %v4989_v41, %v2108_v29  ;;  %v4975_v42 = vld [vmem:[%s6744_s16 + $0xcc] sm:$0xe] }
 0x112   : > { %v2098_v7 = vsel %vm6757_vm2, %v2096_v46, %v2097_v33  ;;  %v4008_v36 = vsel %vm6994_vm5, %v5339_v2, %v4007_v35  ;;  %v4024_v46 = vrot.slane %v5321_v31, 6  ;;  %v4030_v5 = vrot.slane %v4028_v53, 4 }
 0x113   : > { %v4011_v20 = vsel %vm6994_vm5, %v4009_v14, %v4010_v10  ;;  %v5019_v45 = vcombine.low %v2095_v56, %v2098_v7  ;;  %v2116_v33 = vsel %vm6757_vm2, %v4990_v59, %v2115_v3  ;;  %v2119_v2 = vsel %vm6757_vm2, %v2117_v62, %v2118_v63  ;;  %v5324_v10 = vld [vmem:[%s6744_s16 + $0xcc] sm:$0xc] }
 0x114   : > { %v5371_v48 = vcombine.low %v4008_v36, %v4011_v20  ;;  %v4032_v56 = vsel %vm6994_vm5, %v4030_v5, %v4031_v12  ;;  %v4042_v7 = vrot.slane %v7681_v52, 6  ;;  %v5022_v23 = vcombine.low %v2116_v33, %v2119_v2  ;;  %v5326_v36 = vld [vmem:[%s6744_s16 + $0xd8] sm:$0xc]  ;;  %v5327_v20 = vld [vmem:[%s6744_s16 + $0xe0] sm:$0x3] }
 0x115   : > { %v5343_v28 = vrot.slane %v5324_v10, 10  ;;  %v4038_v29 = vrot.slane %v5325_v57, 6  ;;  %v5344_v37 = vrot.slane %v5326_v36, 10  ;;  %v4045_v52 = vrot.slane %v5327_v20, 6 }
 0x116   : > { %v4044_v3 = vrot.slane %v4042_v7, 4  ;;  %v4993_v59 = vrot.slane %v4975_v42, 9 }
 0x117   : > { %5950 = vmatmul.mubr.bf16.gmra.mrb[24].mxu1 %v6611_v30  ;;  %v2105_v30 = vsel %vm6757_vm2, %v2103_v61, %v2104_v60  ;;  %v2129_v61 = vrot.slane %v6644_v54, 5 }
 0x118   : > { %6174 = vmatmul.mubr.bf16.gmra.mrb[8].mxu0 %v5367_v18  ;;  %5953 = vmatprep.mubr.bf16.mxu1 %v6612_v26  ;;  %v5320_v18 = vld [vmem:[%s6744_s16 + $0xb4] sm:$0xc]  ;;  %v4021_v26 = vrot.slane %v7653_v55, 6  ;;  %v5020_v55 = vcombine.low %v2102_v49, %v2105_v30 }
 0x119   : > { %6177 = vmatprep.mubr.bf16.mxu0 %v5368_v39  ;;  %v2111_v39 = vrot.slane %v4965_v51, 5  ;;  %v5341_v35 = vrot.slane %v5320_v18, 10  ;;  %v2125_v51 = vrot.slane %v4971_v9, 5  ;;  %v4037_v18 = vrot.slane %v4035_v19, 4 }
 0x11a   : > { %v4023_v6 = vrot.slane %v4021_v26, 4  ;;  %v2131_v31 = vrot.slane %v2129_v61, 4 }
 0x11b   : > { %v2112_v16 = vsel %vm6757_vm2, %v2110_v44, %v2111_v39  ;;  %v4022_v27 = vsel %vm6994_vm5, %v5341_v35, %v4021_v26  ;;  %v2132_v26 = vrot.slane %v4974_v24, 5  ;;  %v4036_v39 = vsel %vm6994_vm5, %v5343_v28, %v4035_v19 }
 0x11c   : > { %v4025_v58 = vsel %vm6994_vm5, %v4023_v6, %v4024_v46  ;;  %v5021_v60 = vcombine.low %v2109_v40, %v2112_v16  ;;  %v4039_v43 = vsel %vm6994_vm5, %v4037_v18, %v4038_v29  ;;  %v4043_v44 = vsel %vm6994_vm5, %v5344_v37, %v4042_v7  ;;  %v5328_v46 = vld [vmem:[%s6744_s16 + $0xe4] sm:$0xc] }
 0x11d   : > { %v5373_v11 = vcombine.low %v4022_v27, %v4025_v58  ;;  %v2133_v50 = vsel %vm6757_vm2, %v2131_v31, %v2132_v26  ;;  %v4046_v35 = vsel %vm6994_vm5, %v4044_v3, %v4045_v52  ;;  %v5375_v62 = vcombine.low %v4036_v39, %v4039_v43 }
 0x11e   : > { %v5376_v5 = vcombine.low %v4043_v44, %v4046_v35  ;;  %v5345_v12 = vrot.slane %v5328_v46, 10  ;;  %v4052_v16 = vrot.slane %v5329_v38, 6 }
 0x11f   : > { %5954 = vmatmul.mubr.bf16.gmra.mrb[28].mxu1 %v6613_v25  ;;  %v4969_v25 = vld [vmem:[%s6744_s16 + $0xb4] sm:$0xe] }
 0x120   : > { %6178 = vmatmul.mubr.bf16.gmra.mrb[12].mxu0 %v5369_v32  ;;  %5989 = vmatprep.mubr.bf16.mxu1 %v5018_v8  ;;  %v6643_v32 = vld [vmem:[%s6744_s16 + $0xb8] sm:$0xf]  ;;  %v4972_v8 = vld [vmem:[%s6744_s16 + $0xc0] sm:$0xe]  ;;  %v4991_v13 = vrot.slane %v4969_v25, 9 }
 0x121   : > { %6181 = vmatprep.mubr.bf16.mxu0 %v5370_v22  ;;  %v2122_v14 = vrot.slane %v6643_v32, 5  ;;  %v4029_v22 = vsel %vm6994_vm5, %v5342_v17, %v4028_v53  ;;  %v4992_v49 = vrot.slane %v4972_v8, 9  ;;  %v4977_v53 = vld [vmem:[%s6744_s16 + $0xd4] sm:$0x1] }
 0x122   : > { %v5374_v30 = vcombine.low %v4029_v22, %v4032_v56  ;;  %v2139_v17 = vrot.slane %v4977_v53, 5 }
 0x123   : > { %v2124_v1 = vrot.slane %v2122_v14, 4  ;;  %v2130_v21 = vsel %vm6757_vm2, %v4992_v49, %v2129_v61 }
 0x124   : > { %v5024_v63 = vcombine.low %v2130_v21, %v2133_v50 }
 0x125   : > { %v2126_v41 = vsel %vm6757_vm2, %v2124_v1, %v2125_v51 }
 0x127   : > { %5990 = vmatmul.mubr.bf16.vlgmr.msra.gmra.mrb[16].mxu1 %v5019_v45  ;;  %v2123_v45 = vsel %vm6757_vm2, %v4991_v13, %v2122_v14 }
 0x128   : > { %6182 = vmatmul.mubr.bf16.gmra.mrb[16].mxu0 %v5371_v48  ;;  %5993 = vmatprep.mubr.bf16.mxu1 %v5020_v55  ;;  %v2136_v48 = vrot.slane %v6645_v0, 5  ;;  %v4049_v55 = vrot.slane %v7707_v34, 6  ;;  %v5023_v6 = vcombine.low %v2123_v45, %v2126_v41 }
 0x129   : > { %6185 = vmatprep.mubr.bf16.mxu0 %v5372_v4 }
 0x12a   : > { %v2138_v4 = vrot.slane %v2136_v48, 4  ;;  %v4051_v40 = vrot.slane %v4049_v55, 4  ;;  %v2137_v34 = vsel %vm6757_vm2, %v4993_v59, %v2136_v48  ;;  %v4050_v25 = vsel %vm6994_vm5, %v5345_v12, %v4049_v55 }
 0x12c   : > { %v2140_v27 = vsel %vm6757_vm2, %v2138_v4, %v2139_v17  ;;  %v4053_v58 = vsel %vm6994_vm5, %v4051_v40, %v4052_v16 }
 0x12d   : > { %v5025_v33 = vcombine.low %v2137_v34, %v2140_v27  ;;  %v5377_v2 = vcombine.low %v4050_v25, %v4053_v58 }
 0x12f   : > { %5994 = vmatmul.mubr.bf16.gmra.mrb[20].mxu1 %v5021_v60 }
 0x130   : > { %6186 = vmatmul.mubr.bf16.gmra.mrb[20].mxu0 %v5373_v11  ;;  %5997 = vmatprep.mubr.bf16.mxu1 %v5022_v23  ;;  %v7929_v23 = vld [vmem:[%s8000_s2] ss:$0 sm:$0xff] }
 0x131   : > { %6189 = vmatprep.mubr.bf16.mxu0 %v5374_v30 }
 0x137   : > { %5998 = vmatmul.mubr.bf16.gmra.mrb[24].mxu1 %v5023_v6 }
 0x138   : > { %6190 = vmatmul.mubr.bf16.gmra.mrb[24].mxu0 %v5375_v62  ;;  %6001 = vmatprep.mubr.bf16.mxu1 %v5024_v63 }
 0x139   : > { %6193 = vmatprep.mubr.bf16.mxu0 %v5376_v5 }
 0x13f   : > { %6002 = vmatmul.mubr.bf16.gmra.mrb[28].mxu1 %v5025_v33 }
 0x140   : > { %6194 = vmatmul.mubr.bf16.gmra.mrb[28].mxu0 %v5377_v2 }
 0x1ba   : > { %v5927_v9 = vpop.f32.mrb[0].mxu1 }
 0x1bb   : > { %v1774_v32 = vpop.f32.mrb[1].mxu1 }
 0x1bc   : > { %v5928_v14 = vpop.f32.mrb[2].mxu1 }
 0x1bd   : > { %v1777_v10 = vpop.f32.mrb[3].mxu1 }
 0x1c2   : > { %v5931_v57 = vpop.f32.mrb[4].mxu1 }
 0x1c3   : > { %v1790_v19 = vpop.f32.mrb[5].mxu1 }
 0x1c4   : > { %v5932_v8 = vpop.f32.mrb[6].mxu1 }
 0x1c5   : > { %v1793_v15 = vpop.f32.mrb[7].mxu1 }
 0x1ca   : > { %v5935_v54 = vpop.f32.mrb[8].mxu1 }
 0x1cb   : > { %v1806_v61 = vpop.f32.mrb[9].mxu1 }
 0x1cc   : > { %v5936_v60 = vpop.f32.mrb[10].mxu1 }
 0x1cd   : > { %v1809_v22 = vpop.f32.mrb[11].mxu1 }
 0x1d2   : > { %v7918_v56 = vpop.f32.mrb[12].mxu1 }
 0x1d3   : > { %v7920_v47 = vpop.f32.mrb[13].mxu1 }
 0x1d4   : > { %v7922_v24 = vpop.f32.mrb[14].mxu1 }
 0x1d5   : > { %v7924_v7 = vpop.f32.mrb[15].mxu1 }
 0x1db   : > { %v6167_v11 = vpop.f32.mrb[0].mxu0 }
 0x1dc   : > { %v6213_v13 = vadd.f32 %v6167_v11, %v5927_v9  ;;  %v4217_v51 = vpop.f32.mrb[1].mxu0 }
 0x1dd   : > { %v6214_v36 = vadd.f32 %v4217_v51, %v1774_v32  ;;  %v6168_v20 = vpop.f32.mrb[2].mxu0 }
 0x1de   : > { %v4385_v1 = vadd.f32 %v6213_v13, %v7929_v23  ;;  %v6215_v28 = vadd.f32 %v6168_v20, %v5928_v14  ;;  %v4220_v29 = vpop.f32.mrb[3].mxu0 }
 0x1df   : > { %v4383_v49 = vadd.f32 %v6214_v36, %v7929_v23  ;;  %v6216_v30 = vadd.f32 %v4220_v29, %v1777_v10 }
 0x1e0   : > { %v4386_v18 = vadd.f32 %v6215_v28, %v7929_v23  ;;  %v4417_v26 = vmax.f32 %v4385_v1, 0.0 }
 0x1e1   : > { %v4384_v31 = vadd.f32 %v6216_v30, %v7929_v23  ;;  %v4415_v3 = vmax.f32 %v4383_v49, 0.0 }
 0x1e2   : > { %v4418_v37 = vmax.f32 %v4386_v18, 0.0 }
 0x1e3   : > { %v4416_v52 = vmax.f32 %v4384_v31, 0.0  ;;  %v6171_v45 = vpop.f32.mrb[4].mxu0 }
 0x1e4   : > { %v5462_v41 = vpack.c.bf16 %v4418_v37, %v4417_v26  ;;  %v6217_v39 = vadd.f32 %v6171_v45, %v5931_v57  ;;  %v4233_v42 = vpop.f32.mrb[5].mxu0 }
 0x1e5   : > { %v5457_v0 = vpack.c.bf16 %v4416_v52, %v4415_v3  ;;  %v6218_v48 = vadd.f32 %v4233_v42, %v1790_v19  ;;  %v6172_v43 = vpop.f32.mrb[6].mxu0 }
 0x1e6   : > { %5534 = vst [vmem:[%s7939_s29 + $0x8] sm:$0xff] %v5462_v41   ;;  %v4389_v21 = vadd.f32 %v6217_v39, %v7929_v23  ;;  %v6219_v50 = vadd.f32 %v6172_v43, %v5932_v8  ;;  %v4236_v53 = vpop.f32.mrb[7].mxu0 }
 0x1e7   : > { %5458 = vst [vmem:[%s7939_s29] sm:$0xff] %v5457_v0   ;;  %v4387_v55 = vadd.f32 %v6218_v48, %v7929_v23  ;;  %v6220_v44 = vadd.f32 %v4236_v53, %v1793_v15 }
 0x1e8   : > { %v4390_v35 = vadd.f32 %v6219_v50, %v7929_v23  ;;  %v4421_v38 = vmax.f32 %v4389_v21, 0.0 }
 0x1e9   : > { %v4388_v46 = vadd.f32 %v6220_v44, %v7929_v23  ;;  %v4419_v59 = vmax.f32 %v4387_v55, 0.0 }
 0x1ea   : > { %v4422_v6 = vmax.f32 %v4390_v35, 0.0 }
 0x1eb   : > { %v4420_v62 = vmax.f32 %v4388_v46, 0.0  ;;  %v6175_v63 = vpop.f32.mrb[8].mxu0 }
 0x1ec   : > { %v5472_v4 = vpack.c.bf16 %v4422_v6, %v4421_v38  ;;  %v6221_v17 = vadd.f32 %v6175_v63, %v5935_v54  ;;  %v4249_v5 = vpop.f32.mrb[9].mxu0 }
 0x1ed   : > { %v5467_v12 = vpack.c.bf16 %v4420_v62, %v4419_v59  ;;  %v6222_v40 = vadd.f32 %v4249_v5, %v1806_v61  ;;  %v6176_v16 = vpop.f32.mrb[10].mxu0 }
 0x1ee   : > { %5536 = vst [vmem:[%s7939_s29 + $0x18] sm:$0xff] %v5472_v4   ;;  %v4393_v34 = vadd.f32 %v6221_v17, %v7929_v23  ;;  %v6223_v27 = vadd.f32 %v6176_v16, %v5936_v60  ;;  %v4252_v25 = vpop.f32.mrb[11].mxu0 }
 0x1ef   : > { %5535 = vst [vmem:[%s7939_s29 + $0x10] sm:$0xff] %v5467_v12   ;;  %v4391_v58 = vadd.f32 %v6222_v40, %v7929_v23  ;;  %v6224_v33 = vadd.f32 %v4252_v25, %v1809_v22 }
 0x1f0   : > { %v4394_v2 = vadd.f32 %v6223_v27, %v7929_v23  ;;  %v4425_v32 = vmax.f32 %v4393_v34, 0.0 }
 0x1f1   : > { %v4392_v9 = vadd.f32 %v6224_v33, %v7929_v23  ;;  %v4423_v10 = vmax.f32 %v4391_v58, 0.0 }
 0x1f2   : > { %v4426_v14 = vmax.f32 %v4394_v2, 0.0 }
 0x1f3   : > { %v4424_v57 = vmax.f32 %v4392_v9, 0.0  ;;  %v6179_v19 = vpop.f32.mrb[12].mxu0 }
 0x1f4   : > { %v5482_v8 = vpack.c.bf16 %v4426_v14, %v4425_v32  ;;  %v6225_v15 = vadd.f32 %v6179_v19, %v7918_v56  ;;  %v4265_v54 = vpop.f32.mrb[13].mxu0 }
 0x1f5   : > { %v5477_v61 = vpack.c.bf16 %v4424_v57, %v4423_v10  ;;  %v6226_v60 = vadd.f32 %v4265_v54, %v7920_v47  ;;  %v6180_v11 = vpop.f32.mrb[14].mxu0 }
 0x1f6   : > { %5538 = vst [vmem:[%s7939_s29 + $0x28] sm:$0xff] %v5482_v8   ;;  %v4397_v22 = vadd.f32 %v6225_v15, %v7929_v23  ;;  %v6227_v13 = vadd.f32 %v6180_v11, %v7922_v24  ;;  %v4268_v51 = vpop.f32.mrb[15].mxu0 }
 0x1f7   : > { %5537 = vst [vmem:[%s7939_s29 + $0x20] sm:$0xff] %v5477_v61   ;;  %v4395_v36 = vadd.f32 %v6226_v60, %v7929_v23  ;;  %v6228_v20 = vadd.f32 %v4268_v51, %v7924_v7 }
 0x1f8   : > { %v4398_v1 = vadd.f32 %v6227_v13, %v7929_v23  ;;  %v4429_v28 = vmax.f32 %v4397_v22, 0.0 }
 0x1f9   : > { %v4396_v56 = vadd.f32 %v6228_v20, %v7929_v23  ;;  %v4427_v49 = vmax.f32 %v4395_v36, 0.0 }
 0x1fa   : > { %v4430_v29 = vmax.f32 %v4398_v1, 0.0  ;;  %v5991_v47 = vpop.f32.mrb[16].mxu1 }
 0x1fb   : > { %v4428_v30 = vmax.f32 %v4396_v56, 0.0  ;;  %v6183_v18 = vpop.f32.mrb[16].mxu0  ;;  %v2368_v31 = vpop.f32.mrb[17].mxu1 }
 0x1fc   : > { %v5492_v24 = vpack.c.bf16 %v4430_v29, %v4429_v28  ;;  %v6229_v26 = vadd.f32 %v6183_v18, %v5991_v47  ;;  %v4281_v37 = vpop.f32.mrb[17].mxu0  ;;  %v5992_v3 = vpop.f32.mrb[18].mxu1 }
 0x1fd   : > { %v5487_v52 = vpack.c.bf16 %v4428_v30, %v4427_v49  ;;  %v6230_v45 = vadd.f32 %v4281_v37, %v2368_v31  ;;  %v6184_v7 = vpop.f32.mrb[18].mxu0  ;;  %v2371_v41 = vpop.f32.mrb[19].mxu1 }
 0x1fe   : > { %5540 = vst [vmem:[%s7939_s29 + $0x38] sm:$0xff] %v5492_v24   ;;  %v4401_v39 = vadd.f32 %v6229_v26, %v7929_v23  ;;  %v6231_v42 = vadd.f32 %v6184_v7, %v5992_v3  ;;  %v4284_v0 = vpop.f32.mrb[19].mxu0 }
 0x1ff   : > { %5539 = vst [vmem:[%s7939_s29 + $0x30] sm:$0xff] %v5487_v52   ;;  %v4399_v48 = vadd.f32 %v6230_v45, %v7929_v23  ;;  %v6232_v43 = vadd.f32 %v4284_v0, %v2371_v41 }
 0x200   : > { %v4402_v21 = vadd.f32 %v6231_v42, %v7929_v23  ;;  %v4433_v53 = vmax.f32 %v4401_v39, 0.0 }
 0x201   : > { %v4400_v50 = vadd.f32 %v6232_v43, %v7929_v23  ;;  %v4431_v35 = vmax.f32 %v4399_v48, 0.0 }
 0x202   : > { %v4434_v55 = vmax.f32 %v4402_v21, 0.0  ;;  %v5995_v44 = vpop.f32.mrb[20].mxu1 }
 0x203   : > { %v4432_v46 = vmax.f32 %v4400_v50, 0.0  ;;  %v6187_v38 = vpop.f32.mrb[20].mxu0  ;;  %v2384_v6 = vpop.f32.mrb[21].mxu1 }
 0x204   : > { %v5502_v59 = vpack.c.bf16 %v4434_v55, %v4433_v53  ;;  %v6233_v62 = vadd.f32 %v6187_v38, %v5995_v44  ;;  %v4297_v63 = vpop.f32.mrb[21].mxu0  ;;  %v5996_v4 = vpop.f32.mrb[22].mxu1 }
 0x205   : > { %v5497_v17 = vpack.c.bf16 %v4432_v46, %v4431_v35  ;;  %v6234_v5 = vadd.f32 %v4297_v63, %v2384_v6  ;;  %v6188_v12 = vpop.f32.mrb[22].mxu0  ;;  %v2387_v40 = vpop.f32.mrb[23].mxu1 }
 0x206   : > { %5542 = vst [vmem:[%s7939_s29 + $0x48] sm:$0xff] %v5502_v59   ;;  %v4405_v16 = vadd.f32 %v6233_v62, %v7929_v23  ;;  %v6235_v34 = vadd.f32 %v6188_v12, %v5996_v4  ;;  %v4300_v27 = vpop.f32.mrb[23].mxu0 }
 0x207   : > { %5541 = vst [vmem:[%s7939_s29 + $0x40] sm:$0xff] %v5497_v17   ;;  %v4403_v25 = vadd.f32 %v6234_v5, %v7929_v23  ;;  %v6236_v58 = vadd.f32 %v4300_v27, %v2387_v40 }
 0x208   : > { %v4406_v33 = vadd.f32 %v6235_v34, %v7929_v23  ;;  %v4437_v9 = vmax.f32 %v4405_v16, 0.0 }
 0x209   : > { %v4404_v2 = vadd.f32 %v6236_v58, %v7929_v23  ;;  %v4435_v10 = vmax.f32 %v4403_v25, 0.0 }
 0x20a   : > { %v4438_v32 = vmax.f32 %v4406_v33, 0.0  ;;  %v5999_v14 = vpop.f32.mrb[24].mxu1 }
 0x20b   : > { %v4436_v57 = vmax.f32 %v4404_v2, 0.0  ;;  %v6191_v19 = vpop.f32.mrb[24].mxu0  ;;  %v2400_v8 = vpop.f32.mrb[25].mxu1 }
 0x20c   : > { %v5512_v15 = vpack.c.bf16 %v4438_v32, %v4437_v9  ;;  %v6237_v54 = vadd.f32 %v6191_v19, %v5999_v14  ;;  %v4313_v61 = vpop.f32.mrb[25].mxu0  ;;  %v6000_v60 = vpop.f32.mrb[26].mxu1 }
 0x20d   : > { %v5507_v11 = vpack.c.bf16 %v4436_v57, %v4435_v10  ;;  %v6238_v22 = vadd.f32 %v4313_v61, %v2400_v8  ;;  %v6192_v13 = vpop.f32.mrb[26].mxu0  ;;  %v2403_v51 = vpop.f32.mrb[27].mxu1 }
 0x20e   : > { %5544 = vst [vmem:[%s7939_s29 + $0x58] sm:$0xff] %v5512_v15   ;;  %v4409_v36 = vadd.f32 %v6237_v54, %v7929_v23  ;;  %v6239_v20 = vadd.f32 %v6192_v13, %v6000_v60  ;;  %v4316_v1 = vpop.f32.mrb[27].mxu0 }
 0x20f   : > { %5543 = vst [vmem:[%s7939_s29 + $0x50] sm:$0xff] %v5507_v11   ;;  %v4407_v56 = vadd.f32 %v6238_v22, %v7929_v23  ;;  %v6240_v28 = vadd.f32 %v4316_v1, %v2403_v51 }
 0x210   : > { %v4410_v29 = vadd.f32 %v6239_v20, %v7929_v23  ;;  %v4441_v49 = vmax.f32 %v4409_v36, 0.0 }
 0x211   : > { %v4408_v47 = vadd.f32 %v6240_v28, %v7929_v23  ;;  %v4439_v31 = vmax.f32 %v4407_v56, 0.0 }
 0x212   : > { %v4442_v30 = vmax.f32 %v4410_v29, 0.0  ;;  %v6003_v18 = vpop.f32.mrb[28].mxu1 }
 0x213   : > { %v4440_v24 = vmax.f32 %v4408_v47, 0.0  ;;  %v6195_v26 = vpop.f32.mrb[28].mxu0  ;;  %v2416_v37 = vpop.f32.mrb[29].mxu1 }
 0x214   : > { %v5522_v3 = vpack.c.bf16 %v4442_v30, %v4441_v49  ;;  %v6241_v52 = vadd.f32 %v6195_v26, %v6003_v18  ;;  %v4329_v45 = vpop.f32.mrb[29].mxu0  ;;  %v6004_v7 = vpop.f32.mrb[30].mxu1 }
 0x215   : > { %v5517_v41 = vpack.c.bf16 %v4440_v24, %v4439_v31  ;;  %v6242_v39 = vadd.f32 %v4329_v45, %v2416_v37  ;;  %v6196_v42 = vpop.f32.mrb[30].mxu0  ;;  %v2419_v0 = vpop.f32.mrb[31].mxu1 }
 0x216   : > { %5546 = vst [vmem:[%s7939_s29 + $0x68] sm:$0xff] %v5522_v3   ;;  %v4413_v48 = vadd.f32 %v6241_v52, %v7929_v23  ;;  %v6243_v43 = vadd.f32 %v6196_v42, %v6004_v7  ;;  %v4332_v21 = vpop.f32.mrb[31].mxu0 }
 0x217   : > { %5545 = vst [vmem:[%s7939_s29 + $0x60] sm:$0xff] %v5517_v41   ;;  %v4411_v50 = vadd.f32 %v6242_v39, %v7929_v23  ;;  %v6244_v53 = vadd.f32 %v4332_v21, %v2419_v0 }
 0x218   : > { %v4414_v55 = vadd.f32 %v6243_v43, %v7929_v23  ;;  %v4445_v35 = vmax.f32 %v4413_v48, 0.0 }
 0x219   : > { %v4412_v44 = vadd.f32 %v6244_v53, %v7929_v23  ;;  %v4443_v38 = vmax.f32 %v4411_v50, 0.0 }
 0x21a   : > { %v4446_v46 = vmax.f32 %v4414_v55, 0.0 }
 0x21b   : > { %v4444_v6 = vmax.f32 %v4412_v44, 0.0 }
 0x21c   : > { %v5532_v59 = vpack.c.bf16 %v4446_v46, %v4445_v35 }
 0x21d   : > { %v5527_v62 = vpack.c.bf16 %v4444_v6, %v4443_v38 }
 0x21e   : > { %5548 = vst [vmem:[%s7939_s29 + $0x78] sm:$0xff] %v5532_v59  }
 0x21f   : > { %5547 = vst [vmem:[%s7939_s29 + $0x70] sm:$0xff] %v5527_v62  }
 0x220 PF: > { %s13_s14 = sadd.s32 1, %s6668_s14   ;;  %s8006_s12 = smov %s6664_s13 }
 0x221   : > { %p10_p5 = scmp.ge.s32.totalorder %s13_s14, 6   ;;  %s8007_s13 = smov %s8009_s15 }
 0x223   :  { %12 = sbr.rel (!%p10_p5) target bundleno = 2 (0x2), region = 78 }

// kernel: resnet_pl_loss.13
= control target key start
LH: loop header
LB: loop body
LE: loop exit
PB: predicated region body
PF: predicated region fallthrough
CT: control target
= control target key end

     0   :  { %s6207_s12 = smov 0   ;;  %s6209_s13 = smov 0   ;;  %s7193_s0 = inlined_call_operand.vmem [shape: bf16[4,24,24,128], index: 0, kind: input, shape index: {}]   ;;  %s7194_s1 = inlined_call_operand.vmem [shape: bf16[3,3,128,128], index: 1, kind: input, shape index: {}]   ;;  %s7195_s2 = inlined_call_operand.vmem [shape: f32[1,128], index: 2, kind: input, shape index: {}]   ;;  %s7196_s3 = inlined_call_operand.vmem [shape: bf16[4,16,16,128], index: 3, kind: output, shape index: {}]  }
   0x1   :  { %s6211_s14 = smov 0  }
   0x2 LB: > { %s25_s15 = sadd.s32 1, %s6181_s13  ;;  %p4267_p0 = scmp.ge.s32.totalorder %s6185_s14, 1  ;;  %s6185_s14 = sphi %s6211_s14, %s13_s14   ;;  %s6181_s13 = sphi %s6209_s13, %s7200_s13   ;;  %s6177_s12 = sphi %s6207_s12, %s7199_s12  }
   0x3   : > { %p27_p1 = scmp.ge.s32.totalorder %s25_s15, 4  ;;  %p168_p2 = scmp.lt.s32.totalorder %s6185_s14, 5 }
   0x5   : > { %s7202_s15 = smov (%p27_p1, %s25_s15), 0  ;;  %p169_p3 = pnand %p4267_p0, %p168_p2 }
   0x6   : > { %v5963_v0 = vld [vmem:[%s7194_s1 + $0x40] sm:$0xff] (!%p169_p3)   ;;  %p202_p4 = scmp.lt.s32.totalorder (!%p169_p3), %s6177_s12, 3  ;;  %v5965_v2 = vld [vmem:[%s7194_s1 + $0x48] sm:$0xff] (!%p169_p3)   ;;  %v5967_v4 = vld [vmem:[%s7194_s1 + $0x50] sm:$0xff] (!%p169_p3)   ;;  %vm351_vm0 = vcmask (!%p169_p3), 1041408   ;;  %vm352_vm1 = vcmask (!%p169_p3), 1045508  }
   0x7   : > { %172 = sbr.rel (%p169_p3) target bundleno = 544 (0x220), region = 32  ;;  %v5964_v1 = vld [vmem:[%s7194_s1 + $0x100] sm:$0xff] (!%p169_p3)   ;;  %5234 = vmatprep.subr.bf16.mxu1 (!%p169_p3), %v5963_v0  ;;  %v5966_v3 = vld [vmem:[%s7194_s1 + $0x108] sm:$0xff] (!%p169_p3)   ;;  %v5968_v5 = vld [vmem:[%s7194_s1 + $0x110] sm:$0xff] (!%p169_p3)  }
   0x8   : > { %5426 = vmatprep.subr.bf16.mxu0 (!%p169_p3), %v5964_v1  ;;  %5235 = vmatpush3.bf16.msra.mxu1 (!%p169_p3), %v5963_v0  ;;  %v5969_v6 = vld [vmem:[%s7194_s1 + $0x58] sm:$0xff] (!%p169_p3)   ;;  %v5971_v8 = vld [vmem:[%s7194_s1 + $0x60] sm:$0xff] (!%p169_p3)   ;;  %v5973_v10 = vld [vmem:[%s7194_s1 + $0x68] sm:$0xff] (!%p169_p3)  }
   0x9   : > { %5427 = vmatpush3.bf16.msra.mxu0 (!%p169_p3), %v5964_v1  ;;  %5236 = vmatprep.subr.bf16.mxu1 (!%p169_p3), %v5965_v2  ;;  %v5970_v7 = vld [vmem:[%s7194_s1 + $0x118] sm:$0xff] (!%p169_p3)   ;;  %v5972_v9 = vld [vmem:[%s7194_s1 + $0x120] sm:$0xff] (!%p169_p3)   ;;  %v5974_v14 = vld [vmem:[%s7194_s1 + $0x128] sm:$0xff] (!%p169_p3)  }
   0xa   : > { %5428 = vmatprep.subr.bf16.mxu0 (!%p169_p3), %v5966_v3  ;;  %vm6274_vm2 = vmor (!%p169_p3), %vm351_vm0, %vm352_vm1  ;;  %v5975_v23 = vld [vmem:[%s7194_s1 + $0x70] sm:$0xff] (!%p169_p3)   ;;  %v5977_v46 = vld [vmem:[%s7194_s1 + $0x78] sm:$0xff] (!%p169_p3)  }
   0xb   : > { %v5976_v29 = vld [vmem:[%s7194_s1 + $0x130] sm:$0xff] (!%p169_p3)   ;;  %v5978_v49 = vld [vmem:[%s7194_s1 + $0x138] sm:$0xff] (!%p169_p3)   ;;  %v5979_v62 = vld [vmem:[%s7194_s1] sm:$0xff] (!%p169_p3)  }
   0xc   : > { %5237 = vmatpush3.bf16.msra.mxu1 (!%p169_p3), %v5965_v2  ;;  %v5981_v2 = vld [vmem:[%s7194_s1 + $0x140] sm:$0xff] (!%p169_p3)  }
   0xd   : > { %5429 = vmatpush3.bf16.msra.mxu0 (!%p169_p3), %v5966_v3  ;;  %5238 = vmatprep.subr.bf16.mxu1 (!%p169_p3), %v5967_v4 }
   0xe   : > { %s7204_s12 = smov (!%p202_p4, %s6177_s12), 3  ;;  %5430 = vmatprep.subr.bf16.mxu0 %v5968_v5 }
   0xf   : > { %s5938_s5 = smul.u32 288, %s7204_s12  ;;  %s4890_s26 = sshll.u32 %s7204_s12, 7 }
  0x10   : > { %5239 = vmatpush3.bf16.msra.mxu1 %v5967_v4  ;;  %s7134_s29 = scalar_lea.vmem %s7196_s3, %s4890_s26 }
  0x11   : > { %5431 = vmatpush3.bf16.msra.mxu0 %v5968_v5  ;;  %5240 = vmatprep.subr.bf16.mxu1 %v5969_v6  ;;  %s6261_s16 = scalar_lea.vmem %s7193_s0, %s5938_s5 }
  0x12   : > { %5432 = vmatprep.subr.bf16.mxu0 %v5970_v7  ;;  %v6267_v11 = vld [vmem:[%s6261_s16 + $0x4] sm:$0xf]  ;;  %v271_v12 = vld [vmem:[%s6261_s16] sm:$0xc]  ;;  %v272_v13 = vld [vmem:[%s6261_s16 + $0x8] sm:$0x3] }
  0x13   : > { %v4271_v16 = vrot.slane %v271_v12, 10  ;;  %v356_v17 = vrot.slane %v6267_v11, 6  ;;  %v359_v18 = vrot.slane %v272_v13, 6  ;;  %v4463_v19 = vld [vmem:[%s6261_s16 + $0x30] sm:$0xc] }
  0x14   : > { %5241 = vmatpush3.bf16.msra.mxu1 %v5969_v6  ;;  %v6281_v20 = vld [vmem:[%s6261_s16 + $0x34] sm:$0xf]  ;;  %v4465_v21 = vld [vmem:[%s6261_s16 + $0x38] sm:$0x3]  ;;  %v4511_v22 = vrot.slane %v4463_v19, 10 }
  0x15   : > { %5433 = vmatpush3.bf16.msra.mxu0 %v5970_v7  ;;  %5242 = vmatprep.subr.bf16.mxu1 %v5971_v8  ;;  %v357_v24 = vsel %vm6274_vm2, %v4271_v16, %v356_v17  ;;  %v358_v25 = vrot.slane %v356_v17, 4  ;;  %v1868_v26 = vrot.slane %v6281_v20, 6  ;;  %v1871_v27 = vrot.slane %v4465_v21, 6  ;;  %v6291_v28 = vld [vmem:[%s6261_s16 + $0x10] sm:$0xf] }
  0x16   : > { %5434 = vmatprep.subr.bf16.mxu0 %v5972_v9  ;;  %v273_v30 = vld [vmem:[%s6261_s16 + $0xc] sm:$0xc]  ;;  %v274_v31 = vld [vmem:[%s6261_s16 + $0x14] sm:$0x3]  ;;  %v363_v32 = vrot.slane %v6291_v28, 6 }
  0x17   : > { %v360_v33 = vsel %vm6274_vm2, %v358_v25, %v359_v18  ;;  %v1869_v34 = vsel %vm6274_vm2, %v4511_v22, %v1868_v26  ;;  %v1870_v35 = vrot.slane %v1868_v26, 4  ;;  %v4272_v36 = vrot.slane %v273_v30, 10  ;;  %v4466_v40 = vld [vmem:[%s6261_s16 + $0x3c] sm:$0xc]  ;;  %v6305_v41 = vld [vmem:[%s6261_s16 + $0x40] sm:$0xf] }
  0x18   : > { %5243 = vmatpush3.bf16.msra.mxu1 %v5971_v8  ;;  %v4303_v37 = vcombine.low %v357_v24, %v360_v33  ;;  %v365_v38 = vrot.slane %v363_v32, 4  ;;  %v366_v39 = vrot.slane %v274_v31, 6  ;;  %v4468_v43 = vld [vmem:[%s6261_s16 + $0x44] sm:$0x3]  ;;  %v4512_v44 = vrot.slane %v4466_v40, 10 }
  0x19   : > { %5435 = vmatpush3.bf16.msra.mxu0 %v5972_v9  ;;  %5244 = vmatprep.subr.bf16.mxu1 %v5973_v10  ;;  %v1872_v42 = vsel %vm6274_vm2, %v1870_v35, %v1871_v27  ;;  %v1875_v45 = vrot.slane %v6305_v41, 6  ;;  %v1878_v48 = vrot.slane %v4468_v43, 6  ;;  %v364_v51 = vsel %vm6274_vm2, %v4272_v36, %v363_v32  ;;  %v6324_v54 = vld [vmem:[%s6261_s16 + $0x1c] sm:$0xf]  ;;  %v275_v55 = vld [vmem:[%s6261_s16 + $0x18] sm:$0xc] }
  0x1a   : > { %5436 = vmatprep.subr.bf16.mxu0 %v5974_v14  ;;  %v4543_v47 = vcombine.low %v1869_v34, %v1872_v42  ;;  %5250 = vmatprep.mubr.bf16.mxu1 %v4303_v37  ;;  %v367_v52 = vsel %vm6274_vm2, %v365_v38, %v366_v39  ;;  %v276_v56 = vld [vmem:[%s6261_s16 + $0x20] sm:$0x3]  ;;  %v4273_v58 = vrot.slane %v275_v55, 10  ;;  %v370_v59 = vrot.slane %v6324_v54, 6  ;;  %v4469_v61 = vld [vmem:[%s6261_s16 + $0x48] sm:$0xc] }
  0x1b   : > { %v1877_v50 = vrot.slane %v1875_v45, 4  ;;  %v1876_v53 = vsel %vm6274_vm2, %v4512_v44, %v1875_v45  ;;  %v373_v60 = vrot.slane %v276_v56, 6  ;;  %v6336_v63 = vld [vmem:[%s6261_s16 + $0x4c] sm:$0xf]  ;;  %v4471_v0 = vld [vmem:[%s6261_s16 + $0x50] sm:$0x3]  ;;  %v4304_v8 = vcombine.low %v364_v51, %v367_v52 }
  0x1c   : > { %5245 = vmatpush3.bf16.msra.mxu1 %v5973_v10  ;;  %5442 = vmatprep.mubr.bf16.mxu0 %v4543_v47  ;;  %v4513_v1 = vrot.slane %v4469_v61, 10  ;;  %v371_v3 = vsel %vm6274_vm2, %v4273_v58, %v370_v59  ;;  %v372_v4 = vrot.slane %v370_v59, 4  ;;  %v1882_v5 = vrot.slane %v6336_v63, 6  ;;  %v6346_v7 = vld [vmem:[%s6261_s16 + $0x28] sm:$0xf]  ;;  %v5984_v37 = vld [vmem:[%s7194_s1 + $0x150] sm:$0xff]  }
  0x1d   : > { %5437 = vmatpush3.bf16.msra.mxu0 %v5974_v14  ;;  %5246 = vmatprep.subr.bf16.mxu1 %v5975_v23  ;;  %v1879_v57 = vsel %vm6274_vm2, %v1877_v50, %v1878_v48  ;;  %v1885_v6 = vrot.slane %v4471_v0, 6  ;;  %v277_v10 = vld [vmem:[%s6261_s16 + $0x24] sm:$0xc]  ;;  %v278_v12 = vld [vmem:[%s6261_s16 + $0x2c] sm:$0x3]  ;;  %v377_v13 = vrot.slane %v6346_v7, 6 }
  0x1e   : > { %5438 = vmatprep.subr.bf16.mxu0 %v5976_v29  ;;  %v4544_v9 = vcombine.low %v1876_v53, %v1879_v57  ;;  %v5982_v14 = vld [vmem:[%s7194_s1 + $0x148] sm:$0xff]   ;;  %v374_v16 = vsel %vm6274_vm2, %v372_v4, %v373_v60  ;;  %v1883_v17 = vsel %vm6274_vm2, %v4513_v1, %v1882_v5  ;;  %v1884_v18 = vrot.slane %v1882_v5, 4  ;;  %v4472_v24 = vld [vmem:[%s6261_s16 + $0x54] sm:$0xc]  ;;  %v6360_v25 = vld [vmem:[%s6261_s16 + $0x58] sm:$0xf] }
  0x1f   : > { %v4274_v19 = vrot.slane %v277_v10, 10  ;;  %v4305_v21 = vcombine.low %v371_v3, %v374_v16  ;;  %v379_v22 = vrot.slane %v377_v13, 4  ;;  %v4474_v27 = vld [vmem:[%s6261_s16 + $0x5c] sm:$0x3]  ;;  %v1889_v30 = vrot.slane %v6360_v25, 6  ;;  %v5983_v32 = vld [vmem:[%s7194_s1 + $0x8] sm:$0xff]  }
  0x20   : > { %5247 = vmatpush3.bf16.msra.mxu1 %v5975_v23  ;;  %v380_v23 = vrot.slane %v278_v12, 6  ;;  %v1886_v26 = vsel %vm6274_vm2, %v1884_v18, %v1885_v6  ;;  %v1892_v33 = vrot.slane %v4474_v27, 6  ;;  %v6377_v38 = vld [vmem:[%s6261_s16 + $0x34] sm:$0xf]  ;;  %v279_v40 = vld [vmem:[%s6261_s16 + $0x30] sm:$0xc] }
  0x21   : > { %5439 = vmatpush3.bf16.msra.mxu0 %v5976_v29  ;;  %5248 = vmatprep.subr.bf16.mxu1 %v5977_v46  ;;  %v4514_v29 = vrot.slane %v4472_v24, 10  ;;  %v4545_v31 = vcombine.low %v1883_v17, %v1886_v26  ;;  %v378_v34 = vsel %vm6274_vm2, %v4274_v19, %v377_v13  ;;  %v1891_v36 = vrot.slane %v1889_v30, 4  ;;  %v280_v42 = vld [vmem:[%s6261_s16 + $0x38] sm:$0x3]  ;;  %v5986_v44 = vld [vmem:[%s7194_s1 + $0x10] sm:$0xff]  }
  0x22   : > { %5440 = vmatprep.subr.bf16.mxu0 %v5978_v49  ;;  %v381_v35 = vsel %vm6274_vm2, %v379_v22, %v380_v23  ;;  %v384_v43 = vrot.slane %v6377_v38, 6  ;;  %v387_v47 = vrot.slane %v280_v42, 6  ;;  %v4475_v48 = vld [vmem:[%s6261_s16 + $0x60] sm:$0xc]  ;;  %v4477_v52 = vld [vmem:[%s6261_s16 + $0x68] sm:$0x3] }
  0x23   : > { %v1890_v39 = vsel %vm6274_vm2, %v4514_v29, %v1889_v30  ;;  %v1893_v45 = vsel %vm6274_vm2, %v1891_v36, %v1892_v33  ;;  %v4306_v50 = vcombine.low %v378_v34, %v381_v35  ;;  %v4515_v53 = vrot.slane %v4475_v48, 10  ;;  %v5985_v57 = vld [vmem:[%s7194_s1 + $0x158] sm:$0xff]   ;;  %v6401_v60 = vld [vmem:[%s6261_s16 + $0x40] sm:$0xf]  ;;  %v6414_v10 = vld [vmem:[%s6261_s16 + $0x70] sm:$0xf] }
  0x24   : > { %5249 = vmatpush3.bf16.msra.mxu1 %v5977_v46  ;;  %v4275_v46 = vrot.slane %v279_v40, 10  ;;  %v386_v51 = vrot.slane %v384_v43, 4  ;;  %v4546_v56 = vcombine.low %v1890_v39, %v1893_v45  ;;  %v1899_v59 = vrot.slane %v4477_v52, 6  ;;  %v281_v61 = vld [vmem:[%s6261_s16 + $0x3c] sm:$0xc]  ;;  %v5987_v22 = vld [vmem:[%s7194_s1 + $0x160] sm:$0xff]  }
  0x25   : > { %5441 = vmatpush3.bf16.msra.mxu0 %v5978_v49  ;;  %5282 = vmatprep.subr.bf16.mxu1 %v5979_v62  ;;  %v6391_v49 = vld [vmem:[%s6261_s16 + $0x64] sm:$0xf]  ;;  %v4276_v3 = vrot.slane %v281_v61, 10  ;;  %v391_v5 = vrot.slane %v6401_v60, 6  ;;  %v4480_v12 = vld [vmem:[%s6261_s16 + $0x74] sm:$0x3] }
  0x26   : > { %5474 = vmatprep.subr.bf16.mxu0 %v5981_v2  ;;  %v1896_v55 = vrot.slane %v6391_v49, 6  ;;  %v385_v58 = vsel %vm6274_vm2, %v4275_v46, %v384_v43  ;;  %v1903_v19 = vrot.slane %v6414_v10, 6  ;;  %v6431_v27 = vld [vmem:[%s6261_s16 + $0x4c] sm:$0xf]  ;;  %v283_v29 = vld [vmem:[%s6261_s16 + $0x48] sm:$0xc] }
  0x27   : > { %5251 = vmatmul.mubr.bf16.vlgmr.msra.gmra.mrb[0].mxu1 %v4304_v8  ;;  %v4478_v8 = vld [vmem:[%s6261_s16 + $0x6c] sm:$0xc]  ;;  %v392_v17 = vsel %vm6274_vm2, %v4276_v3, %v391_v5  ;;  %v393_v18 = vrot.slane %v391_v5, 4  ;;  %v5993_v30 = vld [vmem:[%s7194_s1 + $0x20] sm:$0xff]   ;;  %v4277_v33 = vrot.slane %v283_v29, 10  ;;  %v398_v34 = vrot.slane %v6431_v27, 6 }
  0x28   : > { %5443 = vmatmul.mubr.bf16.vlgmr.msra.gmra.mrb[0].mxu0 %v4544_v9  ;;  %5283 = vmatpush3.bf16.msra.mxu1 %v5979_v62  ;;  %v388_v62 = vsel %vm6274_vm2, %v386_v51, %v387_v47  ;;  %v1897_v0 = vsel %vm6274_vm2, %v4515_v53, %v1896_v55  ;;  %v1898_v1 = vrot.slane %v1896_v55, 4  ;;  %v4516_v13 = vrot.slane %v4478_v8, 10  ;;  %v4481_v35 = vld [vmem:[%s6261_s16 + $0x78] sm:$0xc]  ;;  %v6446_v40 = vld [vmem:[%s6261_s16 + $0x7c] sm:$0xf] }
  0x29   : > { %5475 = vmatpush3.bf16.msra.mxu0 %v5981_v2  ;;  %5254 = vmatprep.mubr.bf16.mxu1 %v4305_v21  ;;  %v282_v2 = vld [vmem:[%s6261_s16 + $0x44] sm:$0x3]  ;;  %v4307_v4 = vcombine.low %v385_v58, %v388_v62  ;;  %v1906_v21 = vrot.slane %v4480_v12, 6  ;;  %v1905_v26 = vrot.slane %v1903_v19, 4  ;;  %v4483_v42 = vld [vmem:[%s6261_s16 + $0x80] sm:$0x3]  ;;  %v399_v45 = vsel %vm6274_vm2, %v4277_v33, %v398_v34 }
  0x2a   : > { %5476 = vmatprep.subr.bf16.mxu0 %v5982_v14  ;;  %5446 = vmatprep.mubr.bf16.mxu0 %v4545_v31  ;;  %v394_v6 = vrot.slane %v282_v2, 6  ;;  %v1900_v9 = vsel %vm6274_vm2, %v1898_v1, %v1899_v59  ;;  %v1904_v24 = vsel %vm6274_vm2, %v4516_v13, %v1903_v19  ;;  %v4517_v43 = vrot.slane %v4481_v35, 10  ;;  %v6453_v48 = vld [vmem:[%s6261_s16 + $0x58] sm:$0xf]  ;;  %v286_v52 = vld [vmem:[%s6261_s16 + $0x5c] sm:$0x3] }
  0x2b   : > { %5284 = vmatprep.subr.bf16.mxu1 %v5983_v32  ;;  %v4547_v16 = vcombine.low %v1897_v0, %v1900_v9  ;;  %v1907_v36 = vsel %vm6274_vm2, %v1905_v26, %v1906_v21  ;;  %v400_v46 = vrot.slane %v398_v34, 4  ;;  %v1910_v47 = vrot.slane %v6446_v40, 6  ;;  %v4484_v2 = vld [vmem:[%s6261_s16 + $0x84] sm:$0xc]  ;;  %v6469_v3 = vld [vmem:[%s6261_s16 + $0x88] sm:$0xf] }
  0x2c   : > { %5285 = vmatpush3.bf16.msra.mxu1 %v5983_v32  ;;  %v395_v23 = vsel %vm6274_vm2, %v393_v18, %v394_v6  ;;  %v284_v32 = vld [vmem:[%s6261_s16 + $0x50] sm:$0x3]  ;;  %v1913_v51 = vrot.slane %v4483_v42, 6  ;;  %v405_v55 = vrot.slane %v6453_v48, 6  ;;  %v408_v61 = vrot.slane %v286_v52, 6  ;;  %v6004_v34 = vld [vmem:[%s7194_s1 + $0x38] sm:$0xff]  }
  0x2d   : > { %5477 = vmatpush3.bf16.msra.mxu0 %v5982_v14  ;;  %5286 = vmatprep.subr.bf16.mxu1 %v5986_v44  ;;  %v5989_v14 = vld [vmem:[%s7194_s1 + $0x18] sm:$0xff]   ;;  %v4308_v31 = vcombine.low %v392_v17, %v395_v23  ;;  %v401_v39 = vrot.slane %v284_v32, 6  ;;  %v1911_v58 = vsel %vm6274_vm2, %v4517_v43, %v1910_v47  ;;  %v1912_v59 = vrot.slane %v1910_v47, 4  ;;  %v4486_v6 = vld [vmem:[%s6261_s16 + $0x8c] sm:$0x3] }
  0x2e   : > { %5478 = vmatprep.subr.bf16.mxu0 %v5984_v37  ;;  %v407_v1 = vrot.slane %v405_v55, 4  ;;  %v4518_v8 = vrot.slane %v4484_v2, 10  ;;  %v1917_v9 = vrot.slane %v6469_v3, 6  ;;  %v6486_v21 = vld [vmem:[%s6261_s16 + $0x64] sm:$0xf] }
  0x2f   : > { %5255 = vmatmul.mubr.bf16.gmra.mrb[4].mxu1 %v4306_v50  ;;  %v285_v50 = vld [vmem:[%s6261_s16 + $0x54] sm:$0xc]  ;;  %v1914_v5 = vsel %vm6274_vm2, %v1912_v59, %v1913_v51  ;;  %v287_v23 = vld [vmem:[%s6261_s16 + $0x60] sm:$0xc]  ;;  %v412_v26 = vrot.slane %v6486_v21, 6 }
  0x30   : > { %5447 = vmatmul.mubr.bf16.gmra.mrb[4].mxu0 %v4546_v56  ;;  %5258 = vmatprep.mubr.bf16.mxu1 %v4307_v4  ;;  %v4278_v53 = vrot.slane %v285_v50, 10  ;;  %v5996_v56 = vld [vmem:[%s7194_s1 + $0x28] sm:$0xff]   ;;  %v5990_v4 = vld [vmem:[%s7194_s1 + $0x170] sm:$0xff]   ;;  %v4549_v12 = vcombine.low %v1911_v58, %v1914_v5  ;;  %v409_v13 = vsel %vm6274_vm2, %v407_v1, %v408_v61  ;;  %v1918_v18 = vsel %vm6274_vm2, %v4518_v8, %v1917_v9  ;;  %v4567_v32 = vld [vmem:[%s6261_s16 + $0x38] sm:$0xf] }
  0x31   : > { %5479 = vmatpush3.bf16.msra.mxu0 %v5984_v37  ;;  %5287 = vmatpush3.bf16.msra.mxu1 %v5986_v44  ;;  %v5988_v37 = vld [vmem:[%s7194_s1 + $0x168] sm:$0xff]   ;;  %v4548_v44 = vcombine.low %v1904_v24, %v1907_v36  ;;  %v1919_v19 = vrot.slane %v1917_v9, 4  ;;  %v6498_v33 = vld [vmem:[%s6261_s16 + $0x70] sm:$0xf]  ;;  %v4568_v35 = vld [vmem:[%s6261_s16 + $0x44] sm:$0xf]  ;;  %v4599_v42 = vcombine.low %v6281_v20, %v4567_v32 }
  0x32   : > { %5480 = vmatprep.subr.bf16.mxu0 %v5985_v57  ;;  %5450 = vmatprep.mubr.bf16.mxu0 %v4547_v16  ;;  %v406_v0 = vsel %vm6274_vm2, %v4278_v53, %v405_v55  ;;  %v6000_v16 = vld [vmem:[%s7194_s1 + $0x30] sm:$0xff]   ;;  %v288_v24 = vld [vmem:[%s6261_s16 + $0x68] sm:$0x3]  ;;  %v5994_v51 = vld [vmem:[%s7194_s1 + $0x180] sm:$0xff]   ;;  %v4600_v2 = vcombine.low %v6305_v41, %v4568_v35 }
  0x33   : > { %5288 = vmatprep.subr.bf16.mxu1 %v5989_v14  ;;  %v4310_v17 = vcombine.low %v406_v0, %v409_v13  ;;  %v290_v43 = vld [vmem:[%s6261_s16 + $0x74] sm:$0x3]  ;;  %v6518_v55 = vld [vmem:[%s6261_s16 + $0x7c] sm:$0xf]  ;;  %v4569_v0 = vld [vmem:[%s6261_s16 + $0x50] sm:$0xf] }
  0x34   : > { %v422_v47 = vrot.slane %v290_v43, 6  ;;  %v426_v61 = vrot.slane %v6518_v55, 6  ;;  %v6529_v1 = vld [vmem:[%s7194_s1 + $0x80] sm:$0xff]   ;;  %v6533_v5 = vld [vmem:[%s6261_s16 + $0x88] sm:$0xf]  ;;  %v6002_v35 = vld [vmem:[%s7194_s1 + $0x190] sm:$0xff]  }
  0x35   : > { %5481 = vmatpush3.bf16.msra.mxu0 %v5985_v57  ;;  %5289 = vmatpush3.bf16.msra.mxu1 %v5989_v14  ;;  %v402_v57 = vsel %vm6274_vm2, %v400_v46, %v401_v39  ;;  %v1920_v14 = vrot.slane %v4486_v6, 6  ;;  %v414_v39 = vrot.slane %v412_v26, 4  ;;  %v293_v6 = vld [vmem:[%s6261_s16 + $0x84] sm:$0xc]  ;;  %v294_v8 = vld [vmem:[%s6261_s16 + $0x8c] sm:$0x3] }
  0x36   : > { %5482 = vmatprep.subr.bf16.mxu0 %v5987_v22  ;;  %5290 = vmatprep.subr.bf16.mxu1 %v5993_v30  ;;  %v4309_v62 = vcombine.low %v399_v45, %v402_v57  ;;  %v292_v57 = vld [vmem:[%s6261_s16 + $0x80] sm:$0x3]  ;;  %v4282_v13 = vrot.slane %v293_v6, 10  ;;  %v4572_v6 = vld [vmem:[%s6261_s16 + $0x74] sm:$0xf] }
  0x37   : > { %5259 = vmatmul.mubr.bf16.gmra.mrb[8].mxu1 %v4308_v31  ;;  %v1921_v29 = vsel %vm6274_vm2, %v1919_v19, %v1920_v14  ;;  %v415_v31 = vrot.slane %v288_v24, 6  ;;  %v433_v14 = vrot.slane %v6533_v5, 6  ;;  %v5998_v19 = vld [vmem:[%s7194_s1 + $0x188] sm:$0xff]   ;;  %v6549_v24 = vld [vmem:[%s6261_s16 + $0x94] sm:$0xf] }
  0x38   : > { %5451 = vmatmul.mubr.bf16.gmra.mrb[8].mxu0 %v4548_v44  ;;  %5262 = vmatprep.mubr.bf16.mxu1 %v4309_v62  ;;  %v4550_v36 = vcombine.low %v1918_v18, %v1921_v29  ;;  %v419_v44 = vrot.slane %v6498_v33, 6  ;;  %v429_v62 = vrot.slane %v292_v57, 6  ;;  %v296_v29 = vld [vmem:[%s6261_s16 + $0x98] sm:$0x3]  ;;  %v440_v32 = vrot.slane %v6549_v24, 6 }
  0x39   : > { %5483 = vmatpush3.bf16.msra.mxu0 %v5987_v22  ;;  %5291 = vmatpush3.bf16.msra.mxu1 %v5993_v30  ;;  %v5991_v22 = vld [vmem:[%s7194_s1 + $0x178] sm:$0xff]   ;;  %v4279_v30 = vrot.slane %v287_v23, 10  ;;  %v416_v50 = vsel %vm6274_vm2, %v414_v39, %v415_v31  ;;  %v435_v18 = vrot.slane %v433_v14, 4  ;;  %v6575_v57 = vld [vmem:[%s6261_s16 + $0xac] sm:$0xf] }
  0x3a   : > { %5484 = vmatprep.subr.bf16.mxu0 %v5988_v37  ;;  %5292 = vmatprep.subr.bf16.mxu1 %v5996_v56  ;;  %v421_v20 = vrot.slane %v419_v44, 4  ;;  %v297_v39 = vld [vmem:[%s6261_s16 + $0x9c] sm:$0xc]  ;;  %v442_v43 = vrot.slane %v440_v32, 4 }
  0x3b   : > { %5454 = vmatprep.mubr.bf16.mxu0 %v4549_v12  ;;  %v413_v45 = vsel %vm6274_vm2, %v4279_v30, %v412_v26  ;;  %v428_v12 = vrot.slane %v426_v61, 4  ;;  %v295_v26 = vld [vmem:[%s6261_s16 + $0x90] sm:$0xc]  ;;  %v4570_v30 = vld [vmem:[%s6261_s16 + $0x5c] sm:$0xf] }
  0x3c   : > { %v4311_v52 = vcombine.low %v413_v45, %v416_v50  ;;  %v423_v58 = vsel %vm6274_vm2, %v421_v20, %v422_v47  ;;  %v4283_v31 = vrot.slane %v295_v26, 10  ;;  %v4284_v47 = vrot.slane %v297_v39, 10  ;;  %v4575_v39 = vld [vmem:[%s6261_s16 + $0x98] sm:$0xf] }
  0x3d   : > { %5485 = vmatpush3.bf16.msra.mxu0 %v5988_v37  ;;  %5293 = vmatpush3.bf16.msra.mxu1 %v5996_v56  ;;  %v289_v37 = vld [vmem:[%s6261_s16 + $0x6c] sm:$0xc]  ;;  %v291_v56 = vld [vmem:[%s6261_s16 + $0x78] sm:$0xc]  ;;  %v430_v41 = vsel %vm6274_vm2, %v428_v12, %v429_v62  ;;  %v4602_v50 = vcombine.low %v6360_v25, %v4570_v30  ;;  %v454_v62 = vrot.slane %v6575_v57, 6  ;;  %v6012_v12 = vld [vmem:[%s7194_s1 + $0x1a0] sm:$0xff]  }
  0x3e   : > { %5486 = vmatprep.subr.bf16.mxu0 %v5990_v4  ;;  %5294 = vmatprep.subr.bf16.mxu1 %v6000_v16  ;;  %v4280_v46 = vrot.slane %v289_v37, 10  ;;  %v4281_v59 = vrot.slane %v291_v56, 10  ;;  %v441_v37 = vsel %vm6274_vm2, %v4283_v31, %v440_v32  ;;  %v6018_v30 = vld [vmem:[%s7194_s1 + $0x1a8] sm:$0xff]   ;;  %v6024_v32 = vld [vmem:[%s7194_s1 + $0x1b0] sm:$0xff]  }
  0x3f   : > { %5263 = vmatmul.mubr.bf16.gmra.mrb[12].mxu1 %v4310_v17  ;;  %v4601_v17 = vcombine.low %v6336_v63, %v4569_v0  ;;  %v6006_v0 = vld [vmem:[%s7194_s1 + $0x198] sm:$0xff]  }
  0x40   : > { %5455 = vmatmul.mubr.bf16.gmra.mrb[12].mxu0 %v4550_v36  ;;  %v420_v53 = vsel %vm6274_vm2, %v4280_v46, %v419_v44  ;;  %5266 = vmatprep.mubr.bf16.mxu1 %v4311_v52  ;;  %v427_v9 = vsel %vm6274_vm2, %v4281_v59, %v426_v61  ;;  %v6562_v36 = vld [vmem:[%s6261_s16 + $0xa0] sm:$0xf]  ;;  %v4571_v44 = vld [vmem:[%s6261_s16 + $0x68] sm:$0xf]  ;;  %v300_v59 = vld [vmem:[%s6261_s16 + $0xb0] sm:$0x3] }
  0x41   : > { %5487 = vmatpush3.bf16.msra.mxu0 %v5990_v4  ;;  %5490 = vmatprep.mubr.bf16.mxu0 %v4599_v42  ;;  %v4312_v4 = vcombine.low %v420_v53, %v423_v58  ;;  %v4313_v23 = vcombine.low %v427_v9, %v430_v41  ;;  %v298_v42 = vld [vmem:[%s6261_s16 + $0xa4] sm:$0x3]  ;;  %v447_v45 = vrot.slane %v6562_v36, 6  ;;  %v4603_v56 = vcombine.low %v6391_v49, %v4571_v44  ;;  %v299_v58 = vld [vmem:[%s6261_s16 + $0xa8] sm:$0xc] }
  0x42   : > { %5488 = vmatprep.subr.bf16.mxu0 %v5991_v22  ;;  %5295 = vmatpush3.bf16.msra.mxu1 %v6000_v16  ;;  %v436_v16 = vrot.slane %v294_v8, 6  ;;  %v450_v52 = vrot.slane %v298_v42, 6  ;;  %v4285_v61 = vrot.slane %v299_v58, 10  ;;  %v457_v25 = vrot.slane %v300_v59, 6  ;;  %v6016_v59 = vld [vmem:[%s7194_s1 + $0x88] sm:$0xff]  }
  0x43   : > { %5296 = vmatprep.subr.bf16.mxu1 %v6004_v34  ;;  %v448_v49 = vsel %vm6274_vm2, %v4284_v47, %v447_v45  ;;  %v456_v8 = vrot.slane %v454_v62, 4  ;;  %v4491_v47 = vld [vmem:[%s6261_s16 + $0xa0] sm:$0xf] }
  0x44   : > { %v437_v63 = vsel %vm6274_vm2, %v435_v18, %v436_v16  ;;  %v302_v16 = vld [vmem:[%s6261_s16 + $0xbc] sm:$0x3] }
  0x45   : > { %5489 = vmatpush3.bf16.msra.mxu0 %v5991_v22  ;;  %v434_v22 = vsel %vm6274_vm2, %v4282_v13, %v433_v14  ;;  %v455_v13 = vsel %vm6274_vm2, %v4285_v61, %v454_v62  ;;  %v301_v14 = vld [vmem:[%s6261_s16 + $0xb4] sm:$0xc]  ;;  %v458_v41 = vsel %vm6274_vm2, %v456_v8, %v457_v25  ;;  %v229_v61 = vld [vmem:[%s6261_s16 + $0x24] sm:$0xf]  ;;  %v4497_v62 = vld [vmem:[%s6261_s16 + $0xb8] sm:$0xf] }
  0x46   : > { %5522 = vmatprep.subr.bf16.mxu0 %v5994_v51  ;;  %5297 = vmatpush3.bf16.msra.mxu1 %v6004_v34  ;;  %v443_v34 = vrot.slane %v296_v29, 6  ;;  %v4314_v46 = vcombine.low %v434_v22, %v437_v63  ;;  %v4286_v22 = vrot.slane %v301_v14, 10  ;;  %v464_v29 = vrot.slane %v302_v16, 6  ;;  %v4578_v25 = vld [vmem:[%s6261_s16 + $0xbc] sm:$0xf]  ;;  %v6034_v16 = vld [vmem:[%s7194_s1 + $0xa0] sm:$0xff]  }
  0x47   : > { %5267 = vmatmul.mubr.bf16.gmra.mrb[16].mxu1 %v4312_v4  ;;  %5330 = vmatprep.subr.bf16.mxu1 %v6529_v1  ;;  %v4580_v14 = vld [vmem:[%s6261_s16 + $0xd4] sm:$0xf] }
  0x48   : > { %5491 = vmatmul.mubr.bf16.vlgmr.msra.gmra.mrb[0].mxu0 %v4600_v2  ;;  %5270 = vmatprep.mubr.bf16.mxu1 %v4313_v23  ;;  %v444_v20 = vsel %vm6274_vm2, %v442_v43, %v443_v34  ;;  %v6584_v2 = vld [vmem:[%s6261_s16 + $0xb8] sm:$0xf]  ;;  %v4317_v23 = vcombine.low %v455_v13, %v458_v41  ;;  %v223_v34 = vld [vmem:[%s6261_s16] sm:$0xf]  ;;  %v4503_v13 = vld [vmem:[%s6261_s16 + $0xd0] sm:$0xf] }
  0x49   : > { %5523 = vmatpush3.bf16.msra.mxu0 %v5994_v51  ;;  %5494 = vmatprep.mubr.bf16.mxu0 %v4601_v17  ;;  %v449_v51 = vrot.slane %v447_v45, 4  ;;  %v4315_v53 = vcombine.low %v441_v37, %v444_v20  ;;  %v461_v9 = vrot.slane %v6584_v2, 6  ;;  %v4573_v17 = vld [vmem:[%s6261_s16 + $0x80] sm:$0xf]  ;;  %v4327_v43 = vcombine.low %v223_v34, %v6267_v11  ;;  %v6030_v45 = vld [vmem:[%s7194_s1 + $0x1b8] sm:$0xff]  }
  0x4a   : > { %5524 = vmatprep.subr.bf16.mxu0 %v5998_v19  ;;  %v4605_v63 = vcombine.low %v6446_v40, %v4573_v17  ;;  %v4574_v40 = vld [vmem:[%s6261_s16 + $0x8c] sm:$0xf]  ;;  %v4576_v11 = vld [vmem:[%s6261_s16 + $0xa4] sm:$0xf]  ;;  %v4581_v41 = vld [vmem:[%s6261_s16 + $0xe0] sm:$0xf] }
  0x4b   : > { %v451_v4 = vsel %vm6274_vm2, %v449_v51, %v450_v52  ;;  %v463_v26 = vrot.slane %v461_v9, 4  ;;  %v4606_v37 = vcombine.low %v6469_v3, %v4574_v40  ;;  %v6628_v3 = vld [vmem:[%s7194_s1 + $0x1c0] sm:$0xff]   ;;  %v4494_v20 = vld [vmem:[%s6261_s16 + $0xac] sm:$0xf]  ;;  %v4577_v51 = vld [vmem:[%s6261_s16 + $0xb0] sm:$0xf] }
  0x4c   : > { %v4316_v18 = vcombine.low %v448_v49, %v451_v4  ;;  %v4609_v58 = vcombine.low %v4494_v20, %v4577_v51  ;;  %v4579_v49 = vld [vmem:[%s6261_s16 + $0xc8] sm:$0xf]  ;;  %v4330_v4 = vcombine.low %v229_v61, %v6346_v7  ;;  %v6052_v40 = vld [vmem:[%s7194_s1 + $0xb8] sm:$0xff]   ;;  %v241_v34 = vld [vmem:[%s6261_s16 + $0x6c] sm:$0xf] }
  0x4d   : > { %5525 = vmatpush3.bf16.msra.mxu0 %v5998_v19  ;;  %v4604_v19 = vcombine.low %v6414_v10, %v4572_v6  ;;  %v462_v10 = vsel %vm6274_vm2, %v4286_v22, %v461_v9  ;;  %v465_v31 = vsel %vm6274_vm2, %v463_v26, %v464_v29  ;;  %v4610_v6 = vcombine.low %v4497_v62, %v4578_v25  ;;  %v6028_v9 = vld [vmem:[%s7194_s1 + $0x98] sm:$0xff]   ;;  %v235_v7 = vld [vmem:[%s6261_s16 + $0x48] sm:$0xf]  ;;  %v237_v26 = vld [vmem:[%s6261_s16 + $0x54] sm:$0xf] }
  0x4e   : > { %5526 = vmatprep.subr.bf16.mxu0 %v6002_v35  ;;  %v4318_v42 = vcombine.low %v462_v10, %v465_v31  ;;  %v6040_v22 = vld [vmem:[%s7194_s1 + $0xa8] sm:$0xff]   ;;  %v6047_v51 = vld [vmem:[%s6261_s16 + $0x9c] sm:$0xff]   ;;  %v6053_v61 = vld [vmem:[%s6261_s16 + $0xb4] sm:$0xff]  }
  0x4f   : > { %5271 = vmatmul.mubr.bf16.gmra.mrb[20].mxu1 %v4314_v46  ;;  %v225_v46 = vld [vmem:[%s6261_s16 + $0xc] sm:$0xf]  ;;  %v4509_v29 = vld [vmem:[%s6261_s16 + $0xe8] sm:$0xf]  ;;  %v6131_v62 = vld [vmem:[%s6261_s16 + $0x4] sm:$0xf] }
  0x50   : > { %5495 = vmatmul.mubr.bf16.gmra.mrb[4].mxu0 %v4602_v50  ;;  %5274 = vmatprep.mubr.bf16.mxu1 %v4315_v53  ;;  %v227_v50 = vld [vmem:[%s6261_s16 + $0x18] sm:$0xf]  ;;  %v4328_v52 = vcombine.low %v225_v46, %v6291_v28  ;;  %v4608_v53 = vcombine.low %v4491_v47, %v4576_v11  ;;  %v6022_v28 = vld [vmem:[%s7194_s1 + $0x90] sm:$0xff]   ;;  %v6041_v46 = vld [vmem:[%s6261_s16 + $0x84] sm:$0xff]  }
  0x51   : > { %5498 = vmatprep.mubr.bf16.mxu0 %v4603_v56  ;;  %5527 = vmatpush3.bf16.msra.mxu0 %v6002_v35  ;;  %v4488_v35 = vld [vmem:[%s6261_s16 + $0x94] sm:$0xf]  ;;  %v4329_v56 = vcombine.low %v227_v50, %v6324_v54  ;;  %v4500_v54 = vld [vmem:[%s6261_s16 + $0xc4] sm:$0xf]  ;;  %v249_v50 = vld [vmem:[%s6261_s16 + $0x9c] sm:$0xf] }
  0x52   : > { %5528 = vmatprep.subr.bf16.mxu0 %v6006_v0  ;;  %v4607_v44 = vcombine.low %v4488_v35, %v4575_v39  ;;  %v243_v35 = vld [vmem:[%s6261_s16 + $0x78] sm:$0xf]  ;;  %v6035_v39 = vld [vmem:[%s6261_s16 + $0x6c] sm:$0xff]   ;;  %v4340_v20 = vcombine.low %v249_v50, %v6562_v36  ;;  %v1045_v36 = vld [vmem:[%s6261_s16 + $0x8] sm:$0xf] }
  0x53   : > { %v6044_v11 = vld [vmem:[%s6261_s16 + $0x90] sm:$0xff]   ;;  %v4367_v25 = vcombine.low %v6131_v62, %v1045_v36 }
  0x55   : > { %5529 = vmatpush3.bf16.msra.mxu0 %v6006_v0  ;;  %v231_v0 = vld [vmem:[%s6261_s16 + $0x30] sm:$0xf] }
  0x56   : > { %5530 = vmatprep.subr.bf16.mxu0 %v6012_v12  ;;  %v4331_v8 = vcombine.low %v231_v0, %v6377_v38  ;;  %v4506_v38 = vld [vmem:[%s6261_s16 + $0xdc] sm:$0xf]  ;;  %v6056_v0 = vld [vmem:[%s6261_s16 + $0xc0] sm:$0xff]  }
  0x57   : > { %5275 = vmatmul.mubr.bf16.gmra.mrb[24].mxu1 %v4316_v18  ;;  %v4612_v18 = vcombine.low %v4503_v13, %v4580_v14  ;;  %v6064_v13 = vld [vmem:[%s7194_s1 + $0xc8] sm:$0xff]  }
  0x58   : > { %5499 = vmatmul.mubr.bf16.gmra.mrb[8].mxu0 %v4604_v19  ;;  %5278 = vmatprep.mubr.bf16.mxu1 %v4317_v23  ;;  %v4333_v19 = vcombine.low %v235_v7, %v6431_v27  ;;  %v4613_v23 = vcombine.low %v4506_v38, %v4581_v41  ;;  %v6046_v27 = vld [vmem:[%s7194_s1 + $0xb0] sm:$0xff]   ;;  %v1048_v14 = vld [vmem:[%s6261_s16 + $0x2c] sm:$0xf]  ;;  %v1049_v7 = vld [vmem:[%s6261_s16 + $0x38] sm:$0xf] }
  0x59   : > { %5502 = vmatprep.mubr.bf16.mxu0 %v4605_v63  ;;  %5531 = vmatpush3.bf16.msra.mxu0 %v6012_v12  ;;  %v233_v12 = vld [vmem:[%s6261_s16 + $0x3c] sm:$0xf]  ;;  %v4582_v63 = vld [vmem:[%s6261_s16 + $0xec] sm:$0xf]  ;;  %v6134_v38 = vld [vmem:[%s6261_s16 + $0x28] sm:$0xf] }
  0x5a   : > { %5532 = vmatprep.subr.bf16.mxu0 %v6018_v30  ;;  %v4332_v17 = vcombine.low %v233_v12, %v6401_v60  ;;  %v239_v60 = vld [vmem:[%s6261_s16 + $0x60] sm:$0xf]  ;;  %v4614_v10 = vcombine.low %v4509_v29, %v4582_v63  ;;  %v6062_v12 = vld [vmem:[%s6261_s16 + $0xd8] sm:$0xff]   ;;  %v4370_v41 = vcombine.low %v6134_v38, %v1048_v14  ;;  %v1050_v29 = vld [vmem:[%s6261_s16 + $0x44] sm:$0xf] }
  0x5b   : > { %v4335_v31 = vcombine.low %v239_v60, %v6486_v21  ;;  %v4336_v21 = vcombine.low %v241_v34, %v6498_v33  ;;  %v247_v33 = vld [vmem:[%s6261_s16 + $0x90] sm:$0xf]  ;;  %v4695_v60 = vld [vmem:[%s6261_s16 + $0x60] sm:$0xc]  ;;  %v6137_v34 = vld [vmem:[%s6261_s16 + $0x4c] sm:$0xf] }
  0x5c   : > { %v4339_v47 = vcombine.low %v247_v33, %v6549_v24  ;;  %v6060_v24 = vld [vmem:[%s7194_s1 + $0x1e0] sm:$0xff]   ;;  %v1051_v63 = vld [vmem:[%s6261_s16 + $0x50] sm:$0xf]  ;;  %v1053_v33 = vld [vmem:[%s6261_s16 + $0x68] sm:$0xf] }
  0x5d   : > { %5533 = vmatpush3.bf16.msra.mxu0 %v6018_v30  ;;  %v4334_v30 = vcombine.low %v237_v26, %v6453_v48  ;;  %v6687_v48 = vld [vmem:[%s7194_s1 + $0xc0] sm:$0xff]   ;;  %v6140_v38 = vld [vmem:[%s6261_s16 + $0x70] sm:$0xf] }
  0x5e   : > { %5534 = vmatprep.subr.bf16.mxu0 %v6024_v32  ;;  %v6763_v26 = vld [vmem:[%s6261_s16 + $0x64] sm:$0xf] }
  0x5f   : > { %5279 = vmatmul.mubr.bf16.gmra.mrb[28].mxu1 %v4318_v42  ;;  %v4337_v42 = vcombine.low %v243_v35, %v6518_v55  ;;  %v6048_v55 = vld [vmem:[%s7194_s1 + $0x1d0] sm:$0xff]   ;;  %v4373_v35 = vcombine.low %v6137_v34, %v1051_v63  ;;  %v4704_v14 = vld [vmem:[%s6261_s16 + $0x84] sm:$0xc] }
  0x60   : > { %5503 = vmatmul.mubr.bf16.gmra.mrb[12].mxu0 %v4606_v37  ;;  %5298 = vmatprep.mubr.bf16.mxu1 %v4327_v43  ;;  %v6038_v37 = vld [vmem:[%s6261_s16 + $0x78] sm:$0xff]   ;;  %v6042_v43 = vld [vmem:[%s7194_s1 + $0x1c8] sm:$0xff]   ;;  %v4746_v63 = vrot.slane %v4704_v14, 10  ;;  %v6840_v34 = vld [vmem:[%s7194_s1 + $0x100] sm:$0xff]  }
  0x61   : > { %5506 = vmatprep.mubr.bf16.mxu0 %v4607_v44  ;;  %5535 = vmatpush3.bf16.msra.mxu0 %v6024_v32  ;;  %v6032_v32 = vld [vmem:[%s6261_s16 + $0x60] sm:$0xff]  }
  0x62   : > { %5536 = vmatprep.subr.bf16.mxu0 %v6030_v45  ;;  %v245_v44 = vld [vmem:[%s6261_s16 + $0x84] sm:$0xf] }
  0x65   : > { %5537 = vmatpush3.bf16.msra.mxu0 %v6030_v45  ;;  %v4338_v45 = vcombine.low %v245_v44, %v6533_v5  ;;  %v251_v5 = vld [vmem:[%s6261_s16 + $0xa8] sm:$0xf] }
  0x66   : > { %5570 = vmatprep.subr.bf16.mxu0 %v6628_v3  ;;  %v6085_v44 = vld [vmem:[%s7194_s1 + $0xe8] sm:$0xff]  }
  0x67   : > { %5299 = vmatmul.mubr.bf16.vlgmr.msra.gmra.mrb[0].mxu1 %v4328_v52  ;;  %v4341_v52 = vcombine.low %v251_v5, %v6575_v57  ;;  %v6072_v57 = vld [vmem:[%s7194_s1 + $0x1f0] sm:$0xff]   ;;  %v4703_v5 = vld [vmem:[%s6261_s16 + $0x80] sm:$0x3] }
  0x68   : > { %5507 = vmatmul.mubr.bf16.gmra.mrb[16].mxu0 %v4608_v53  ;;  %5331 = vmatpush3.bf16.msra.mxu1 %v6529_v1  ;;  %v4611_v1 = vcombine.low %v4500_v54, %v4579_v49  ;;  %v6050_v53 = vld [vmem:[%s6261_s16 + $0xa8] sm:$0xff]   ;;  %v1046_v54 = vld [vmem:[%s6261_s16 + $0x14] sm:$0xf]  ;;  %v6739_v49 = vld [vmem:[%s7194_s1 + $0x200] sm:$0xff]  }
  0x69   : > { %5302 = vmatprep.mubr.bf16.mxu1 %v4329_v56  ;;  %5510 = vmatprep.mubr.bf16.mxu0 %v4609_v58  ;;  %v6066_v56 = vld [vmem:[%s7194_s1 + $0x1e8] sm:$0xff]   ;;  %v253_v58 = vld [vmem:[%s6261_s16 + $0xb4] sm:$0xf] }
  0x6a   : > { %5332 = vmatprep.subr.bf16.mxu1 %v6016_v59 }
  0x6c   : > { %5333 = vmatpush3.bf16.msra.mxu1 %v6016_v59  ;;  %v4342_v59 = vcombine.low %v253_v58, %v6584_v2  ;;  %v1047_v2 = vld [vmem:[%s6261_s16 + $0x20] sm:$0xf] }
  0x6d   : > { %5334 = vmatprep.subr.bf16.mxu1 %v6022_v28 }
  0x6f   : > { %5303 = vmatmul.mubr.bf16.gmra.mrb[4].mxu1 %v4330_v4  ;;  %v6132_v4 = vld [vmem:[%s6261_s16 + $0x10] sm:$0xf] }
  0x70   : > { %5511 = vmatmul.mubr.bf16.gmra.mrb[20].mxu0 %v4610_v6  ;;  %5306 = vmatprep.mubr.bf16.mxu1 %v4331_v8  ;;  %v4368_v6 = vcombine.low %v6132_v4, %v1046_v54  ;;  %v6059_v8 = vld [vmem:[%s6261_s16 + $0xcc] sm:$0xff]   ;;  %v6093_v54 = vld [vmem:[%s7194_s1 + $0xf8] sm:$0xff]   ;;  %v1054_v4 = vld [vmem:[%s6261_s16 + $0x74] sm:$0xf] }
  0x71   : > { %5514 = vmatprep.mubr.bf16.mxu0 %v4611_v1  ;;  %5335 = vmatpush3.bf16.msra.mxu1 %v6022_v28  ;;  %v6078_v28 = vld [vmem:[%s7194_s1 + $0x1f8] sm:$0xff]  }
  0x72   : > { %5336 = vmatprep.subr.bf16.mxu1 %v6028_v9 }
  0x75   : > { %5337 = vmatpush3.bf16.msra.mxu1 %v6028_v9  ;;  %v6133_v9 = vld [vmem:[%s6261_s16 + $0x1c] sm:$0xf] }
  0x76   : > { %5338 = vmatprep.subr.bf16.mxu1 %v6034_v16  ;;  %v4369_v1 = vcombine.low %v6133_v9, %v1047_v2  ;;  %v6811_v2 = vld [vmem:[%s6261_s16 + $0x94] sm:$0xf]  ;;  %v1055_v9 = vld [vmem:[%s6261_s16 + $0x80] sm:$0xf] }
  0x77   : > { %5307 = vmatmul.mubr.bf16.gmra.mrb[8].mxu1 %v4332_v17  ;;  %v6065_v17 = vld [vmem:[%s6261_s16 + $0xe4] sm:$0xff]  }
  0x78   : > { %5515 = vmatmul.mubr.bf16.gmra.mrb[24].mxu0 %v4612_v18  ;;  %5310 = vmatprep.mubr.bf16.mxu1 %v4333_v19  ;;  %v6135_v18 = vld [vmem:[%s6261_s16 + $0x34] sm:$0xf] }
  0x79   : > { %5518 = vmatprep.mubr.bf16.mxu0 %v4613_v23  ;;  %5339 = vmatpush3.bf16.msra.mxu1 %v6034_v16  ;;  %v6070_v16 = vld [vmem:[%s7194_s1 + $0xd0] sm:$0xff]   ;;  %v4371_v19 = vcombine.low %v6135_v18, %v1049_v7  ;;  %v4706_v7 = vld [vmem:[%s6261_s16 + $0x8c] sm:$0x3]  ;;  %v4709_v18 = vld [vmem:[%s6261_s16 + $0x98] sm:$0x3] }
  0x7a   : > { %5340 = vmatprep.subr.bf16.mxu1 %v6040_v22  ;;  %v6068_v23 = vld [vmem:[%s6261_s16 + $0xf0] sm:$0xff]  }
  0x7d   : > { %5341 = vmatpush3.bf16.msra.mxu1 %v6040_v22  ;;  %v6076_v22 = vld [vmem:[%s7194_s1 + $0xd8] sm:$0xff]  }
  0x7e   : > { %5342 = vmatprep.subr.bf16.mxu1 %v6046_v27 }
  0x7f   : > { %5311 = vmatmul.mubr.bf16.gmra.mrb[12].mxu1 %v4334_v30  ;;  %v3139_v30 = vrot.slane %v6763_v26, 6 }
  0x80   : > { %5519 = vmatmul.mubr.bf16.gmra.mrb[28].mxu0 %v4614_v10  ;;  %5314 = vmatprep.mubr.bf16.mxu1 %v4335_v31  ;;  %v6081_v10 = vld [vmem:[%s7194_s1 + $0xe0] sm:$0xff]  }
  0x81   : > { %5538 = vmatprep.mubr.bf16.mxu0 %v6032_v32  ;;  %5343 = vmatpush3.bf16.msra.mxu1 %v6046_v27  ;;  %v4697_v27 = vld [vmem:[%s6261_s16 + $0x68] sm:$0x3]  ;;  %v6136_v31 = vld [vmem:[%s6261_s16 + $0x40] sm:$0xf] }
  0x82   : > { %5344 = vmatprep.subr.bf16.mxu1 %v6052_v40  ;;  %v4372_v32 = vcombine.low %v6136_v31, %v1050_v29 }
  0x85   : > { %5345 = vmatpush3.bf16.msra.mxu1 %v6052_v40  ;;  %v6071_v40 = vld [vmem:[%s6261_s16 + $0xfc] sm:$0xff]  }
  0x86   : > { %5378 = vmatprep.subr.bf16.mxu1 %v6687_v48 }
  0x87   : > { %5315 = vmatmul.mubr.bf16.gmra.mrb[16].mxu1 %v4336_v21  ;;  %v4743_v21 = vrot.slane %v4695_v60, 10 }
  0x88   : > { %5539 = vmatmul.mubr.bf16.vlgmr.msra.gmra.mrb[0].mxu0 %v6035_v39  ;;  %5318 = vmatprep.mubr.bf16.mxu1 %v4337_v42  ;;  %v3142_v39 = vrot.slane %v4697_v27, 6  ;;  %v1052_v42 = vld [vmem:[%s6261_s16 + $0x5c] sm:$0xf]  ;;  %v3163_v27 = vrot.slane %v4706_v7, 6  ;;  %v6097_v7 = vld [vmem:[%s7194_s1 + $0x220] sm:$0xff]  }
  0x89   : > { %5571 = vmatpush3.bf16.msra.mxu0 %v6628_v3  ;;  %5542 = vmatprep.mubr.bf16.mxu0 %v6038_v37  ;;  %v6054_v3 = vld [vmem:[%s7194_s1 + $0x1d8] sm:$0xff]   ;;  %v3141_v37 = vrot.slane %v3139_v30, 4 }
  0x8a   : > { %5572 = vmatprep.subr.bf16.mxu0 %v6042_v43 }
  0x8b   : > { %v3143_v50 = vsel %vm6274_vm2, %v3141_v37, %v3142_v39 }
  0x8d   : > { %5573 = vmatpush3.bf16.msra.mxu0 %v6042_v43  ;;  %v6779_v43 = vld [vmem:[%s6261_s16 + $0x70] sm:$0xf] }
  0x8e   : > { %5574 = vmatprep.subr.bf16.mxu0 %v6048_v55 }
  0x8f   : > { %5319 = vmatmul.mubr.bf16.gmra.mrb[20].mxu1 %v4338_v45  ;;  %v6787_v45 = vld [vmem:[%s6261_s16 + $0x7c] sm:$0xf] }
  0x90   : > { %5543 = vmatmul.mubr.bf16.gmra.mrb[4].mxu0 %v6041_v46  ;;  %5322 = vmatprep.mubr.bf16.mxu1 %v4339_v47  ;;  %v4700_v46 = vld [vmem:[%s6261_s16 + $0x74] sm:$0x3]  ;;  %v3146_v47 = vrot.slane %v6779_v43, 6 }
  0x91   : > { %5546 = vmatprep.mubr.bf16.mxu0 %v6044_v11  ;;  %5575 = vmatpush3.bf16.msra.mxu0 %v6048_v55  ;;  %v4698_v55 = vld [vmem:[%s6261_s16 + $0x6c] sm:$0xc]  ;;  %v4701_v11 = vld [vmem:[%s6261_s16 + $0x78] sm:$0xc] }
  0x92   : > { %5576 = vmatprep.subr.bf16.mxu0 %v6054_v3  ;;  %v4744_v36 = vrot.slane %v4698_v55, 10  ;;  %v4745_v62 = vrot.slane %v4701_v11, 10  ;;  %v4712_v55 = vld [vmem:[%s6261_s16 + $0xa4] sm:$0x3]  ;;  %v6143_v11 = vld [vmem:[%s6261_s16 + $0x88] sm:$0xf] }
  0x95   : > { %5577 = vmatpush3.bf16.msra.mxu0 %v6054_v3  ;;  %v3140_v3 = vsel %vm6274_vm2, %v4743_v21, %v3139_v30  ;;  %v6086_v30 = vld [vmem:[%s7194_s1 + $0x208] sm:$0xff]  }
  0x96   : > { %5578 = vmatprep.subr.bf16.mxu0 %v6060_v24 }
  0x97   : > { %5323 = vmatmul.mubr.bf16.gmra.mrb[24].mxu1 %v4340_v20  ;;  %v6089_v20 = vld [vmem:[%s7194_s1 + $0xf0] sm:$0xff]  }
  0x98   : > { %5547 = vmatmul.mubr.bf16.gmra.mrb[8].mxu0 %v6047_v51  ;;  %5326 = vmatprep.mubr.bf16.mxu1 %v4341_v52  ;;  %v6138_v51 = vld [vmem:[%s6261_s16 + $0x58] sm:$0xf] }
  0x99   : > { %5550 = vmatprep.mubr.bf16.mxu0 %v6050_v53  ;;  %5579 = vmatpush3.bf16.msra.mxu0 %v6060_v24  ;;  %v3153_v24 = vrot.slane %v6787_v45, 6  ;;  %v4374_v52 = vcombine.low %v6138_v51, %v1052_v42  ;;  %v6077_v53 = vld [vmem:[%s6261_s16 + $0x114] sm:$0xff]  }
  0x9a   : > { %5580 = vmatprep.subr.bf16.mxu0 %v6066_v56  ;;  %v1057_v42 = vld [vmem:[%s6261_s16 + $0x98] sm:$0xf] }
  0x9d   : > { %5581 = vmatpush3.bf16.msra.mxu0 %v6066_v56  ;;  %v6139_v56 = vld [vmem:[%s6261_s16 + $0x64] sm:$0xf] }
  0x9e   : > { %5582 = vmatprep.subr.bf16.mxu0 %v6072_v57  ;;  %v4375_v58 = vcombine.low %v6139_v56, %v1053_v33 }
  0x9f   : > { %5327 = vmatmul.mubr.bf16.gmra.mrb[28].mxu1 %v4342_v59  ;;  %v4775_v59 = vcombine.low %v3140_v3, %v3143_v50  ;;  %v4713_v50 = vld [vmem:[%s6261_s16 + $0xa8] sm:$0xc] }
  0xa0   : > { %5551 = vmatmul.mubr.bf16.gmra.mrb[12].mxu0 %v6053_v61  ;;  %5346 = vmatprep.mubr.bf16.mxu1 %v4367_v25  ;;  %v3148_v61 = vrot.slane %v3146_v47, 4  ;;  %v3156_v25 = vrot.slane %v4703_v5, 6  ;;  %v4715_v5 = vld [vmem:[%s6261_s16 + $0xb0] sm:$0x3] }
  0xa1   : > { %5554 = vmatprep.mubr.bf16.mxu0 %v6056_v0  ;;  %5583 = vmatpush3.bf16.msra.mxu0 %v6072_v57  ;;  %v3149_v57 = vrot.slane %v4700_v46, 6  ;;  %v3155_v0 = vrot.slane %v3153_v24, 4  ;;  %v6090_v46 = vld [vmem:[%s7194_s1 + $0x210] sm:$0xff]  }
  0xa2   : > { %5584 = vmatprep.subr.bf16.mxu0 %v6078_v28 }
  0xa5   : > { %5585 = vmatpush3.bf16.msra.mxu0 %v6078_v28  ;;  %v6805_v28 = vld [vmem:[%s6261_s16 + $0x88] sm:$0xf] }
  0xa6   : > { %5618 = vmatprep.subr.bf16.mxu0 %v6739_v49 }
  0xa7   : > { %5347 = vmatmul.mubr.bf16.vlgmr.msra.gmra.mrb[0].mxu1 %v4368_v6  ;;  %v3147_v6 = vsel %vm6274_vm2, %v4744_v36, %v3146_v47  ;;  %v4749_v36 = vrot.slane %v4713_v50, 10  ;;  %v4725_v50 = vld [vmem:[%s6261_s16 + $0xd8] sm:$0xc] }
  0xa8   : > { %5555 = vmatmul.mubr.bf16.gmra.mrb[16].mxu0 %v6059_v8  ;;  %5379 = vmatpush3.bf16.msra.mxu1 %v6687_v48  ;;  %v6074_v48 = vld [vmem:[%s6261_s16 + $0x108] sm:$0xff]   ;;  %v3150_v8 = vsel %vm6274_vm2, %v3148_v61, %v3149_v57  ;;  %v6869_v61 = vld [vmem:[%s6261_s16 + $0xb8] sm:$0xf] }
  0xa9   : > { %5350 = vmatprep.mubr.bf16.mxu1 %v4369_v1  ;;  %5558 = vmatprep.mubr.bf16.mxu0 %v6062_v12  ;;  %v3160_v1 = vrot.slane %v6805_v28, 6  ;;  %v3154_v12 = vsel %vm6274_vm2, %v4745_v62, %v3153_v24  ;;  %v6094_v62 = vld [vmem:[%s7194_s1 + $0x218] sm:$0xff]  }
  0xaa   : > { %5380 = vmatprep.subr.bf16.mxu1 %v6064_v13 }
  0xab   : > { %v3162_v60 = vrot.slane %v3160_v1, 4  ;;  %v3161_v21 = vsel %vm6274_vm2, %v4746_v63, %v3160_v1 }
  0xac   : > { %5381 = vmatpush3.bf16.msra.mxu1 %v6064_v13  ;;  %v3157_v13 = vsel %vm6274_vm2, %v3155_v0, %v3156_v25  ;;  %v6875_v25 = vld [vmem:[%s6261_s16 + $0xc4] sm:$0xf] }
  0xad   : > { %5382 = vmatprep.subr.bf16.mxu1 %v6070_v16  ;;  %v4777_v29 = vcombine.low %v3154_v12, %v3157_v13  ;;  %v3164_v39 = vsel %vm6274_vm2, %v3162_v60, %v3163_v27  ;;  %v1058_v0 = vld [vmem:[%s6261_s16 + $0xa4] sm:$0xf]  ;;  %v4716_v12 = vld [vmem:[%s6261_s16 + $0xb4] sm:$0xc]  ;;  %v4718_v13 = vld [vmem:[%s6261_s16 + $0xbc] sm:$0x3] }
  0xae   : > { %v4778_v24 = vcombine.low %v3161_v21, %v3164_v39  ;;  %v3195_v14 = vrot.slane %v6875_v25, 6  ;;  %v3191_v60 = vrot.slane %v4718_v13, 6  ;;  %v1060_v21 = vld [vmem:[%s6261_s16 + $0xbc] sm:$0xf] }
  0xaf   : > { %5351 = vmatmul.mubr.bf16.gmra.mrb[4].mxu1 %v4370_v41  ;;  %v4376_v41 = vcombine.low %v6140_v38, %v1054_v4 }
  0xb0   : > { %5559 = vmatmul.mubr.bf16.gmra.mrb[20].mxu0 %v6065_v17  ;;  %5354 = vmatprep.mubr.bf16.mxu1 %v4371_v19  ;;  %v4707_v17 = vld [vmem:[%s6261_s16 + $0x90] sm:$0xc]  ;;  %v4776_v19 = vcombine.low %v3147_v6, %v3150_v8  ;;  %v3188_v8 = vrot.slane %v6869_v61, 6 }
  0xb1   : > { %5562 = vmatprep.mubr.bf16.mxu0 %v6068_v23  ;;  %5383 = vmatpush3.bf16.msra.mxu1 %v6070_v16  ;;  %v3167_v16 = vrot.slane %v6811_v2, 6  ;;  %v6141_v23 = vld [vmem:[%s6261_s16 + $0x7c] sm:$0xf]  ;;  %v1059_v6 = vld [vmem:[%s6261_s16 + $0xb0] sm:$0xf] }
  0xb2   : > { %5384 = vmatprep.subr.bf16.mxu1 %v6076_v22  ;;  %v3190_v63 = vrot.slane %v3188_v8, 4 }
  0xb3   : > { %v3169_v31 = vrot.slane %v3167_v16, 4 }
  0xb5   : > { %5385 = vmatpush3.bf16.msra.mxu1 %v6076_v22  ;;  %v4377_v22 = vcombine.low %v6141_v23, %v1055_v9 }
  0xb6   : > { %5386 = vmatprep.subr.bf16.mxu1 %v6081_v10 }
  0xb7   : > { %5355 = vmatmul.mubr.bf16.gmra.mrb[8].mxu1 %v4372_v32  ;;  %v3170_v32 = vrot.slane %v4709_v18, 6 }
  0xb8   : > { %5563 = vmatmul.mubr.bf16.gmra.mrb[24].mxu0 %v6071_v40  ;;  %5358 = vmatprep.mubr.bf16.mxu1 %v4373_v35  ;;  %v6835_v40 = vld [vmem:[%s6261_s16 + $0xa0] sm:$0xf]  ;;  %v6844_v35 = vld [vmem:[%s6261_s16 + $0xac] sm:$0xf] }
  0xb9   : > { %5566 = vmatprep.mubr.bf16.mxu0 %v6074_v48  ;;  %5387 = vmatpush3.bf16.msra.mxu1 %v6081_v10  ;;  %v4747_v10 = vrot.slane %v4707_v17, 10  ;;  %v1056_v48 = vld [vmem:[%s6261_s16 + $0x8c] sm:$0xf]  ;;  %v3174_v37 = vrot.slane %v6835_v40, 6  ;;  %v3171_v33 = vsel %vm6274_vm2, %v3169_v31, %v3170_v32  ;;  %v3181_v47 = vrot.slane %v6844_v35, 6 }
  0xba   : > { %5388 = vmatprep.subr.bf16.mxu1 %v6085_v44  ;;  %v4378_v3 = vcombine.low %v6143_v11, %v1056_v48  ;;  %v4721_v17 = vld [vmem:[%s6261_s16 + $0xc8] sm:$0x3]  ;;  %v6899_v31 = vld [vmem:[%s6261_s16 + $0xd0] sm:$0xf]  ;;  %v6905_v48 = vld [vmem:[%s6261_s16 + $0xdc] sm:$0xf] }
  0xbb   : > { %v3176_v56 = vrot.slane %v3174_v37, 4  ;;  %v3183_v57 = vrot.slane %v3181_v47, 4  ;;  %v3182_v9 = vsel %vm6274_vm2, %v4749_v36, %v3181_v47  ;;  %v6100_v32 = vld [vmem:[%s7194_s1 + $0x228] sm:$0xff]   ;;  %v6103_v47 = vld [vmem:[%s7194_s1 + $0x230] sm:$0xff]   ;;  %v6147_v11 = vld [vmem:[%s6261_s16 + $0xb8] sm:$0xf] }
  0xbd   : > { %5389 = vmatpush3.bf16.msra.mxu1 %v6085_v44  ;;  %v3168_v44 = vsel %vm6274_vm2, %v4747_v10, %v3167_v16  ;;  %v6145_v16 = vld [vmem:[%s6261_s16 + $0xa0] sm:$0xf]  ;;  %v3198_v10 = vrot.slane %v4721_v17, 6 }
  0xbe   : > { %5390 = vmatprep.subr.bf16.mxu1 %v6089_v20  ;;  %v4380_v38 = vcombine.low %v6145_v16, %v1058_v0  ;;  %v6934_v0 = vld [vmem:[%s6261_s16 + $0xf4] sm:$0xf]  ;;  %v4733_v16 = vld [vmem:[%s6261_s16 + $0xf8] sm:$0x3] }
  0xbf   : > { %5359 = vmatmul.mubr.bf16.gmra.mrb[12].mxu1 %v4374_v52  ;;  %v4779_v52 = vcombine.low %v3168_v44, %v3171_v33  ;;  %v3223_v13 = vrot.slane %v6934_v0, 6 }
  0xc0   : > { %5567 = vmatmul.mubr.bf16.gmra.mrb[28].mxu0 %v6077_v53  ;;  %5362 = vmatprep.mubr.bf16.mxu1 %v4375_v58  ;;  %v3177_v58 = vrot.slane %v4712_v55, 6  ;;  %v4724_v55 = vld [vmem:[%s6261_s16 + $0xd4] sm:$0x3] }
  0xc1   : > { %5586 = vmatprep.mubr.bf16.mxu0 %v4775_v59  ;;  %5391 = vmatpush3.bf16.msra.mxu1 %v6089_v20  ;;  %v6144_v20 = vld [vmem:[%s6261_s16 + $0x94] sm:$0xf]  ;;  %v3184_v59 = vrot.slane %v4715_v5, 6  ;;  %v4727_v5 = vld [vmem:[%s6261_s16 + $0xe0] sm:$0x3] }
  0xc2   : > { %5392 = vmatprep.subr.bf16.mxu1 %v6093_v54  ;;  %v4379_v51 = vcombine.low %v6144_v20, %v1057_v42  ;;  %v3178_v4 = vsel %vm6274_vm2, %v3176_v56, %v3177_v58  ;;  %v3192_v42 = vsel %vm6274_vm2, %v3190_v63, %v3191_v60  ;;  %v6095_v20 = vld [vmem:[%s6261_s16 + $0x30] sm:$0xff]   ;;  %v3205_v56 = vrot.slane %v4724_v55, 6  ;;  %v6953_v60 = vld [vmem:[%s6261_s16 + $0x100] sm:$0xf] }
  0xc3   : > { %v3185_v1 = vsel %vm6274_vm2, %v3183_v57, %v3184_v59  ;;  %v4753_v58 = vrot.slane %v4725_v50, 10  ;;  %v3212_v57 = vrot.slane %v4727_v5, 6  ;;  %v6928_v59 = vld [vmem:[%s6261_s16 + $0xe8] sm:$0xf]  ;;  %v3226_v63 = vrot.slane %v4733_v16, 6  ;;  %v6151_v16 = vld [vmem:[%s7194_s1 + $0x120] sm:$0xff]  }
  0xc4   : > { %v4739_v55 = vld [vmem:[%s6261_s16 + $0x110] sm:$0x3] }
  0xc5   : > { %5393 = vmatpush3.bf16.msra.mxu1 %v6093_v54 }
  0xc6   : > { %5666 = vmatprep.subr.bf16.mxu1 %v6840_v34 }
  0xc7   : > { %5363 = vmatmul.mubr.bf16.gmra.mrb[16].mxu1 %v4376_v41  ;;  %v4719_v41 = vld [vmem:[%s6261_s16 + $0xc0] sm:$0xc] }
  0xc8   : > { %5587 = vmatmul.mubr.bf16.vlgmr.msra.gmra.mrb[0].mxu0 %v4776_v19  ;;  %5366 = vmatprep.mubr.bf16.mxu1 %v4377_v22  ;;  %v6146_v19 = vld [vmem:[%s6261_s16 + $0xac] sm:$0xf]  ;;  %v4781_v22 = vcombine.low %v3182_v9, %v3185_v1  ;;  %v4751_v27 = vrot.slane %v4719_v41, 10  ;;  %v4728_v1 = vld [vmem:[%s6261_s16 + $0xe4] sm:$0xc] }
  0xc9   : > { %5619 = vmatpush3.bf16.msra.mxu0 %v6739_v49  ;;  %5590 = vmatprep.mubr.bf16.mxu0 %v4777_v29  ;;  %v4710_v49 = vld [vmem:[%s6261_s16 + $0x9c] sm:$0xc]  ;;  %v4381_v23 = vcombine.low %v6146_v19, %v1059_v6  ;;  %v4750_v29 = vrot.slane %v4716_v12, 10  ;;  %v3216_v6 = vrot.slane %v6928_v59, 6  ;;  %v4730_v12 = vld [vmem:[%s6261_s16 + $0xec] sm:$0x3] }
  0xca   : > { %5620 = vmatprep.subr.bf16.mxu0 %v6086_v30  ;;  %v4748_v53 = vrot.slane %v4710_v49, 10  ;;  %v3196_v44 = vsel %vm6274_vm2, %v4751_v27, %v3195_v14  ;;  %v4722_v49 = vld [vmem:[%s6261_s16 + $0xcc] sm:$0xc] }
  0xcb   : > { %v3189_v39 = vsel %vm6274_vm2, %v4750_v29, %v3188_v8  ;;  %v6098_v41 = vld [vmem:[%s6261_s16 + $0x48] sm:$0xff]   ;;  %v3218_v19 = vrot.slane %v3216_v6, 4  ;;  %v3225_v29 = vrot.slane %v3223_v13, 4 }
  0xcc   : > { %v3175_v54 = vsel %vm6274_vm2, %v4748_v53, %v3174_v37  ;;  %v3202_v37 = vrot.slane %v6899_v31, 6  ;;  %v6956_v27 = vld [vmem:[%s6261_s16 + $0x10c] sm:$0xf] }
  0xcd   : > { %5621 = vmatpush3.bf16.msra.mxu0 %v6086_v30  ;;  %v4780_v18 = vcombine.low %v3175_v54, %v3178_v4  ;;  %v3197_v30 = vrot.slane %v3195_v14, 4  ;;  %v6096_v14 = vld [vmem:[%s6261_s16 + $0x3c] sm:$0xff]  }
  0xce   : > { %5622 = vmatprep.subr.bf16.mxu0 %v6090_v46  ;;  %v3204_v53 = vrot.slane %v3202_v37, 4 }
  0xcf   : > { %5367 = vmatmul.mubr.bf16.gmra.mrb[20].mxu1 %v4378_v3  ;;  %v3199_v33 = vsel %vm6274_vm2, %v3197_v30, %v3198_v10  ;;  %v4382_v3 = vcombine.low %v6147_v11, %v1060_v21  ;;  %v6148_v21 = vld [vmem:[%s7194_s1 + $0x108] sm:$0xff]  }
  0xd0   : > { %5591 = vmatmul.mubr.bf16.gmra.mrb[4].mxu0 %v4778_v24  ;;  %5370 = vmatprep.mubr.bf16.mxu1 %v4379_v51  ;;  %v4782_v24 = vcombine.low %v3189_v39, %v3192_v42  ;;  %v4783_v51 = vcombine.low %v3196_v44, %v3199_v33  ;;  %v3206_v4 = vsel %vm6274_vm2, %v3204_v53, %v3205_v56  ;;  %v4734_v42 = vld [vmem:[%s6261_s16 + $0xfc] sm:$0xc]  ;;  %v3237_v44 = vrot.slane %v6956_v27, 6  ;;  %v6099_v33 = vld [vmem:[%s6261_s16 + $0x54] sm:$0xff]  }
  0xd1   : > { %5594 = vmatprep.mubr.bf16.mxu0 %v4779_v52  ;;  %5623 = vmatpush3.bf16.msra.mxu0 %v6090_v46  ;;  %v3209_v46 = vrot.slane %v6905_v48, 6  ;;  %v4752_v52 = vrot.slane %v4722_v49, 10  ;;  %v4737_v49 = vld [vmem:[%s6261_s16 + $0x108] sm:$0xc]  ;;  %v4756_v50 = vrot.slane %v4734_v42, 10 }
  0xd2   : > { %5624 = vmatprep.subr.bf16.mxu0 %v6094_v62  ;;  %v6982_v53 = vld [vmem:[%s6261_s16 + $0x118] sm:$0xf]  ;;  %v4802_v42 = vld [vmem:[%s6261_s16 + $0x8c] sm:$0xf] }
  0xd3   : > { %v3211_v36 = vrot.slane %v3209_v46, 4  ;;  %v3203_v54 = vsel %vm6274_vm2, %v4752_v52, %v3202_v37  ;;  %v3210_v8 = vsel %vm6274_vm2, %v4753_v58, %v3209_v46  ;;  %v4736_v37 = vld [vmem:[%s6261_s16 + $0x104] sm:$0x3]  ;;  %v3240_v52 = vrot.slane %v4739_v55, 6 }
  0xd5   : > { %5625 = vmatpush3.bf16.msra.mxu0 %v6094_v62  ;;  %v6106_v62 = vld [vmem:[%s7194_s1 + $0x238] sm:$0xff]   ;;  %v3213_v9 = vsel %vm6274_vm2, %v3211_v36, %v3212_v57  ;;  %v3244_v36 = vrot.slane %v6982_v53, 6 }
  0xd6   : > { %5626 = vmatprep.subr.bf16.mxu0 %v6097_v7  ;;  %v4785_v17 = vcombine.low %v3210_v8, %v3213_v9  ;;  %v6102_v8 = vld [vmem:[%s6261_s16 + $0x6c] sm:$0xff]  }
  0xd7   : > { %5371 = vmatmul.mubr.bf16.gmra.mrb[24].mxu1 %v4380_v38  ;;  %v4784_v38 = vcombine.low %v3203_v54, %v3206_v4  ;;  %v6150_v54 = vld [vmem:[%s7194_s1 + $0x118] sm:$0xff]   ;;  %v4740_v4 = vld [vmem:[%s6261_s16 + $0x114] sm:$0xc] }
  0xd8   : > { %5595 = vmatmul.mubr.bf16.gmra.mrb[8].mxu0 %v4780_v18  ;;  %5374 = vmatprep.mubr.bf16.mxu1 %v4381_v23  ;;  %v4754_v18 = vrot.slane %v4728_v1, 10  ;;  %v3219_v23 = vrot.slane %v4730_v12, 6  ;;  %v6104_v1 = vld [vmem:[%s6261_s16 + $0x78] sm:$0xff]  }
  0xd9   : > { %5598 = vmatprep.mubr.bf16.mxu0 %v4781_v22  ;;  %5627 = vmatpush3.bf16.msra.mxu0 %v6097_v7  ;;  %v4731_v7 = vld [vmem:[%s6261_s16 + $0xf0] sm:$0xc] }
  0xda   : > { %5628 = vmatprep.subr.bf16.mxu0 %v6100_v32  ;;  %v4755_v22 = vrot.slane %v4731_v7, 10  ;;  %v3217_v30 = vsel %vm6274_vm2, %v4754_v18, %v3216_v6  ;;  %v3220_v10 = vsel %vm6274_vm2, %v3218_v19, %v3219_v23  ;;  %v4742_v6 = vld [vmem:[%s6261_s16 + $0x11c] sm:$0x3]  ;;  %v6152_v18 = vld [vmem:[%s7194_s1 + $0x128] sm:$0xff]  }
  0xdb   : > { %v4786_v46 = vcombine.low %v3217_v30, %v3220_v10  ;;  %v3247_v7 = vrot.slane %v4742_v6, 6  ;;  %v6105_v19 = vld [vmem:[%s6261_s16 + $0x84] sm:$0xff]   ;;  %v4800_v30 = vld [vmem:[%s6261_s16 + $0x74] sm:$0xf]  ;;  %v4801_v10 = vld [vmem:[%s6261_s16 + $0x80] sm:$0xf] }
  0xdc   : > { %v3224_v39 = vsel %vm6274_vm2, %v4755_v22, %v3223_v13  ;;  %v4758_v13 = vrot.slane %v4740_v4, 10  ;;  %v6107_v22 = vld [vmem:[%s6261_s16 + $0x90] sm:$0xff]   ;;  %v4807_v4 = vld [vmem:[%s6261_s16 + $0xc8] sm:$0xf] }
  0xdd   : > { %5629 = vmatpush3.bf16.msra.mxu0 %v6100_v32  ;;  %v3230_v32 = vrot.slane %v6953_v60, 6  ;;  %v4493_v6 = vld [vmem:[%s6261_s16 + $0xa8] sm:$0xc] }
  0xde   : > { %5630 = vmatprep.subr.bf16.mxu0 %v6103_v47 }
  0xdf   : > { %5375 = vmatmul.mubr.bf16.gmra.mrb[28].mxu1 %v4382_v3  ;;  %v6149_v3 = vld [vmem:[%s7194_s1 + $0x110] sm:$0xff]   ;;  %v3232_v5 = vrot.slane %v3230_v32, 4  ;;  %v3231_v56 = vsel %vm6274_vm2, %v4756_v50, %v3230_v32  ;;  %v6109_v32 = vld [vmem:[%s6261_s16 + $0x9c] sm:$0xff]  }
  0xe0   : > { %5599 = vmatmul.mubr.bf16.gmra.mrb[12].mxu0 %v4782_v24  ;;  %5394 = vmatprep.mubr.bf16.mxu1 %v6095_v20  ;;  %v3233_v24 = vrot.slane %v4736_v37, 6  ;;  %v4757_v20 = vrot.slane %v4737_v49, 10  ;;  %v4803_v37 = vld [vmem:[%s6261_s16 + $0x98] sm:$0xf]  ;;  %v6117_v50 = vld [vmem:[%s6261_s16 + $0xcc] sm:$0xff]  }
  0xe1   : > { %5602 = vmatprep.mubr.bf16.mxu0 %v4783_v51  ;;  %5631 = vmatpush3.bf16.msra.mxu0 %v6103_v47  ;;  %v6101_v47 = vld [vmem:[%s6261_s16 + $0x60] sm:$0xff]   ;;  %v3239_v51 = vrot.slane %v3237_v44, 4  ;;  %v4835_v49 = vcombine.low %v6811_v2, %v4803_v37 }
  0xe2   : > { %5632 = vmatprep.subr.bf16.mxu0 %v6106_v62  ;;  %v3234_v58 = vsel %vm6274_vm2, %v3232_v5, %v3233_v24  ;;  %v3238_v57 = vsel %vm6274_vm2, %v4757_v20, %v3237_v44  ;;  %v6113_v44 = vld [vmem:[%s6261_s16 + $0xb4] sm:$0xff]  }
  0xe3   : > { %v4788_v9 = vcombine.low %v3231_v56, %v3234_v58  ;;  %v6119_v5 = vld [vmem:[%s6261_s16 + $0xd8] sm:$0xff]   ;;  %v6156_v56 = vld [vmem:[%s6261_s16 + $0xa0] sm:$0xf] }
  0xe4   : > { %v1931_v58 = vrot.slane %v6156_v56, 6  ;;  %v4507_v56 = vld [vmem:[%s6261_s16 + $0xe0] sm:$0x3] }
  0xe5   : > { %5633 = vmatpush3.bf16.msra.mxu0 %v6106_v62  ;;  %v3241_v62 = vsel %vm6274_vm2, %v3239_v51, %v3240_v52  ;;  %v4490_v52 = vld [vmem:[%s6261_s16 + $0x9c] sm:$0xc] }
  0xe6   : > { %v4789_v12 = vcombine.low %v3238_v57, %v3241_v62  ;;  %v6157_v57 = vld [vmem:[%s6261_s16 + $0xac] sm:$0xf]  ;;  %v4806_v62 = vld [vmem:[%s6261_s16 + $0xbc] sm:$0xf] }
  0xe7   : > { %5395 = vmatmul.mubr.bf16.vlgmr.msra.gmra.mrb[0].mxu1 %v6096_v14  ;;  %v3246_v14 = vrot.slane %v3244_v36, 4 }
  0xe8   : > { %5603 = vmatmul.mubr.bf16.gmra.mrb[16].mxu0 %v4784_v38  ;;  %5674 = vmatpush3.bf16.msra.mxu1 %v6840_v34  ;;  %v3227_v34 = vsel %vm6274_vm2, %v3225_v29, %v3226_v63  ;;  %v3245_v38 = vsel %vm6274_vm2, %v4758_v13, %v3244_v36  ;;  %v6153_v63 = vld [vmem:[%s7194_s1 + $0x130] sm:$0xff]   ;;  %v4492_v36 = vld [vmem:[%s6261_s16 + $0xa4] sm:$0x3] }
  0xe9   : > { %5398 = vmatprep.mubr.bf16.mxu1 %v6098_v41  ;;  %5606 = vmatprep.mubr.bf16.mxu0 %v4785_v17  ;;  %v4787_v11 = vcombine.low %v3224_v39, %v3227_v34  ;;  %v3248_v41 = vsel %vm6274_vm2, %v3246_v14, %v3247_v7  ;;  %v4799_v17 = vld [vmem:[%s6261_s16 + $0x68] sm:$0xf]  ;;  %v4833_v34 = vcombine.low %v6787_v45, %v4801_v10  ;;  %v6155_v45 = vld [vmem:[%s6261_s16 + $0x94] sm:$0xf]  ;;  %v1934_v13 = vrot.slane %v4492_v36, 6 }
  0xea   : > { %5667 = vmatprep.subr.bf16.mxu1 %v6148_v21  ;;  %v4790_v23 = vcombine.low %v3245_v38, %v3248_v41  ;;  %v4831_v29 = vcombine.low %v6763_v26, %v4799_v17  ;;  %v6154_v26 = vld [vmem:[%s7194_s1 + $0x138] sm:$0xff]   ;;  %v6111_v39 = vld [vmem:[%s6261_s16 + $0xa8] sm:$0xff]   ;;  %v1924_v55 = vrot.slane %v6155_v45, 6  ;;  %v4838_v14 = vcombine.low %v6869_v61, %v4806_v62  ;;  %v4496_v10 = vld [vmem:[%s6261_s16 + $0xb4] sm:$0xc] }
  0xeb   : > { %v4839_v38 = vcombine.low %v6875_v25, %v4807_v4  ;;  %v4521_v41 = vrot.slane %v4493_v6, 10  ;;  %v4808_v25 = vld [vmem:[%s6261_s16 + $0xd4] sm:$0xf] }
  0xec   : > { %5675 = vmatpush3.bf16.msra.mxu1 %v6148_v21  ;;  %v4832_v21 = vcombine.low %v6779_v43, %v4800_v30  ;;  %v4834_v43 = vcombine.low %v6805_v28, %v4802_v42  ;;  %v1926_v2 = vrot.slane %v1924_v55, 4  ;;  %v4840_v37 = vcombine.low %v6899_v31, %v4808_v25 }
  0xed   : > { %5668 = vmatprep.subr.bf16.mxu1 %v6149_v3 }
  0xef   : > { %5399 = vmatmul.mubr.bf16.gmra.mrb[4].mxu1 %v6099_v33  ;;  %v6115_v33 = vld [vmem:[%s6261_s16 + $0xc0] sm:$0xff]  }
  0xf0   : > { %5607 = vmatmul.mubr.bf16.gmra.mrb[20].mxu0 %v4786_v46  ;;  %5402 = vmatprep.mubr.bf16.mxu1 %v6101_v47  ;;  %v4804_v46 = vld [vmem:[%s6261_s16 + $0xa4] sm:$0xf]  ;;  %v4805_v47 = vld [vmem:[%s6261_s16 + $0xb0] sm:$0xf] }
  0xf1   : > { %5610 = vmatprep.mubr.bf16.mxu0 %v4787_v11  ;;  %5676 = vmatpush3.bf16.msra.mxu1 %v6149_v3  ;;  %v4487_v11 = vld [vmem:[%s6261_s16 + $0x90] sm:$0xc]  ;;  %v4489_v3 = vld [vmem:[%s6261_s16 + $0x98] sm:$0x3]  ;;  %v4836_v28 = vcombine.low %v6835_v40, %v4804_v46  ;;  %v4837_v24 = vcombine.low %v6844_v35, %v4805_v47  ;;  %v1938_v40 = vrot.slane %v6157_v57, 6 }
  0xf2   : > { %5669 = vmatprep.subr.bf16.mxu1 %v6150_v54  ;;  %v4519_v20 = vrot.slane %v4487_v11, 10  ;;  %v1927_v51 = vrot.slane %v4489_v3, 6  ;;  %v6160_v47 = vld [vmem:[%s6261_s16 + $0xd0] sm:$0xf]  ;;  %v6161_v3 = vld [vmem:[%s6261_s16 + $0xdc] sm:$0xf] }
  0xf3   : > { %v1959_v11 = vrot.slane %v6160_v47, 6 }
  0xf4   : > { %v1925_v35 = vsel %vm6274_vm2, %v4519_v20, %v1924_v55  ;;  %v4504_v20 = vld [vmem:[%s6261_s16 + $0xd4] sm:$0x3] }
  0xf5   : > { %5677 = vmatpush3.bf16.msra.mxu1 %v6150_v54  ;;  %v1928_v54 = vsel %vm6274_vm2, %v1926_v2, %v1927_v51  ;;  %v4811_v51 = vld [vmem:[%s6261_s16 + $0xf8] sm:$0xf] }
  0xf6   : > { %5670 = vmatprep.subr.bf16.mxu1 %v6151_v16  ;;  %v4551_v7 = vcombine.low %v1925_v35, %v1928_v54  ;;  %v1962_v35 = vrot.slane %v4504_v20, 6  ;;  %v4843_v4 = vcombine.low %v6934_v0, %v4811_v51 }
  0xf7   : > { %5403 = vmatmul.mubr.bf16.gmra.mrb[8].mxu1 %v6102_v8  ;;  %v4495_v8 = vld [vmem:[%s6261_s16 + $0xb0] sm:$0x3] }
  0xf8   : > { %5611 = vmatmul.mubr.bf16.gmra.mrb[24].mxu0 %v4788_v9  ;;  %5406 = vmatprep.mubr.bf16.mxu1 %v6104_v1  ;;  %v4520_v9 = vrot.slane %v4490_v52, 10  ;;  %v6121_v1 = vld [vmem:[%s6261_s16 + $0xe4] sm:$0xff]   ;;  %v1941_v17 = vrot.slane %v4495_v8, 6  ;;  %v4505_v52 = vld [vmem:[%s6261_s16 + $0xd8] sm:$0xc]  ;;  %v1969_v8 = vrot.slane %v4507_v56, 6 }
  0xf9   : > { %5614 = vmatprep.mubr.bf16.mxu0 %v4789_v12  ;;  %5678 = vmatpush3.bf16.msra.mxu1 %v6151_v16  ;;  %v1933_v12 = vrot.slane %v1931_v58, 4  ;;  %v1940_v16 = vrot.slane %v1938_v40, 4  ;;  %v4525_v6 = vrot.slane %v4505_v52, 10 }
  0xfa   : > { %5671 = vmatprep.subr.bf16.mxu1 %v6152_v18 }
  0xfb   : > { %v1935_v61 = vsel %vm6274_vm2, %v1933_v12, %v1934_v13  ;;  %v1942_v30 = vsel %vm6274_vm2, %v1940_v16, %v1941_v17  ;;  %v4812_v13 = vld [vmem:[%s6261_s16 + $0x104] sm:$0xf]  ;;  %v4510_v16 = vld [vmem:[%s6261_s16 + $0xec] sm:$0x3] }
  0xfd   : > { %5679 = vmatpush3.bf16.msra.mxu1 %v6152_v18  ;;  %v6158_v18 = vld [vmem:[%s6261_s16 + $0xb8] sm:$0xf] }
  0xfe   : > { %5672 = vmatprep.subr.bf16.mxu1 %v6153_v63 }
  0xff   : > { %5407 = vmatmul.mubr.bf16.gmra.mrb[12].mxu1 %v6105_v19  ;;  %v1945_v19 = vrot.slane %v6158_v18, 6  ;;  %v4844_v18 = vcombine.low %v6953_v60, %v4812_v13 }
 0x100   : > { %5615 = vmatmul.mubr.bf16.gmra.mrb[28].mxu0 %v4790_v23  ;;  %5410 = vmatprep.mubr.bf16.mxu1 %v6107_v22  ;;  %v1932_v23 = vsel %vm6274_vm2, %v4520_v9, %v1931_v58  ;;  %v6159_v22 = vld [vmem:[%s6261_s16 + $0xc4] sm:$0xf]  ;;  %v1961_v58 = vrot.slane %v1959_v11, 4  ;;  %v6162_v9 = vld [vmem:[%s6261_s16 + $0xe8] sm:$0xf] }
 0x101   : > { %5634 = vmatprep.mubr.bf16.mxu0 %v4831_v29  ;;  %5680 = vmatpush3.bf16.msra.mxu1 %v6153_v63  ;;  %v1952_v29 = vrot.slane %v6159_v22, 6  ;;  %v1939_v63 = vsel %vm6274_vm2, %v4521_v41, %v1938_v40  ;;  %v1947_v42 = vrot.slane %v1945_v19, 4 }
 0x102   : > { %5673 = vmatprep.subr.bf16.mxu1 %v6154_v26  ;;  %v1963_v12 = vsel %vm6274_vm2, %v1961_v58, %v1962_v35 }
 0x105   : > { %5681 = vmatpush3.bf16.msra.mxu1 %v6154_v26  ;;  %v4498_v26 = vld [vmem:[%s6261_s16 + $0xbc] sm:$0x3] }
 0x107   : > { %5411 = vmatmul.mubr.bf16.gmra.mrb[16].mxu1 %v6109_v32  ;;  %v4809_v32 = vld [vmem:[%s6261_s16 + $0xe0] sm:$0xf] }
 0x108   : > { %5635 = vmatmul.mubr.bf16.vlgmr.msra.gmra.mrb[0].mxu0 %v4832_v21  ;;  %5414 = vmatprep.mubr.bf16.mxu1 %v6111_v39  ;;  %v4499_v21 = vld [vmem:[%s6261_s16 + $0xc0] sm:$0xc]  ;;  %v4501_v39 = vld [vmem:[%s6261_s16 + $0xc8] sm:$0x3]  ;;  %v4841_v45 = vcombine.low %v6905_v48, %v4809_v32 }
 0x109   : > { %5638 = vmatprep.mubr.bf16.mxu0 %v4833_v34  ;;  %v4552_v34 = vcombine.low %v1932_v23, %v1935_v61  ;;  %v4523_v55 = vrot.slane %v4499_v21, 10  ;;  %v1955_v46 = vrot.slane %v4501_v39, 6  ;;  %v1976_v61 = vrot.slane %v4510_v16, 6 }
 0x10f   : > { %5415 = vmatmul.mubr.bf16.gmra.mrb[20].mxu1 %v6113_v44  ;;  %v4553_v44 = vcombine.low %v1939_v63, %v1942_v30  ;;  %v4814_v63 = vld [vmem:[%s6261_s16 + $0x11c] sm:$0xf] }
 0x110   : > { %5639 = vmatmul.mubr.bf16.gmra.mrb[4].mxu0 %v4834_v43  ;;  %5418 = vmatprep.mubr.bf16.mxu1 %v6115_v33  ;;  %v4522_v43 = vrot.slane %v4496_v10, 10  ;;  %v1948_v33 = vrot.slane %v4498_v26, 6  ;;  %v4846_v10 = vcombine.low %v6982_v53, %v4814_v63 }
 0x111   : > { %5642 = vmatprep.mubr.bf16.mxu0 %v4835_v49  ;;  %v1954_v49 = vrot.slane %v1952_v29, 4 }
 0x112   : > { %v1946_v31 = vsel %vm6274_vm2, %v4522_v43, %v1945_v19  ;;  %v1949_v48 = vsel %vm6274_vm2, %v1947_v42, %v1948_v33 }
 0x113   : > { %v1956_v2 = vsel %vm6274_vm2, %v1954_v49, %v1955_v46  ;;  %v4554_v36 = vcombine.low %v1946_v31, %v1949_v48  ;;  %v7124_v46 = vld [vmem:[%s7195_s2] ss:$0 sm:$0xff] }
 0x117   : > { %5419 = vmatmul.mubr.bf16.gmra.mrb[24].mxu1 %v6117_v50  ;;  %v1966_v50 = vrot.slane %v6161_v3, 6 }
 0x118   : > { %5643 = vmatmul.mubr.bf16.gmra.mrb[8].mxu0 %v4836_v28  ;;  %5422 = vmatprep.mubr.bf16.mxu1 %v6119_v5  ;;  %v4810_v28 = vld [vmem:[%s6261_s16 + $0xec] sm:$0xf]  ;;  %v1953_v5 = vsel %vm6274_vm2, %v4523_v55, %v1952_v29 }
 0x119   : > { %5646 = vmatprep.mubr.bf16.mxu0 %v4837_v24  ;;  %v4502_v24 = vld [vmem:[%s6261_s16 + $0xcc] sm:$0xc]  ;;  %v4842_v57 = vcombine.low %v6928_v59, %v4810_v28  ;;  %v4555_v40 = vcombine.low %v1953_v5, %v1956_v2  ;;  %v1968_v54 = vrot.slane %v1966_v50, 4 }
 0x11a   : > { %v4524_v62 = vrot.slane %v4502_v24, 10 }
 0x11b   : > { %v1970_v0 = vsel %vm6274_vm2, %v1968_v54, %v1969_v8 }
 0x11c   : > { %v1960_v59 = vsel %vm6274_vm2, %v4524_v62, %v1959_v11 }
 0x11d   : > { %v4556_v17 = vcombine.low %v1960_v59, %v1963_v12 }
 0x11f   : > { %5423 = vmatmul.mubr.bf16.gmra.mrb[28].mxu1 %v6121_v1  ;;  %v1973_v1 = vrot.slane %v6162_v9, 6 }
 0x120   : > { %5647 = vmatmul.mubr.bf16.gmra.mrb[12].mxu0 %v4838_v14  ;;  %5458 = vmatprep.mubr.bf16.mxu1 %v4551_v7  ;;  %v1967_v14 = vsel %vm6274_vm2, %v4525_v6, %v1966_v50  ;;  %v4508_v7 = vld [vmem:[%s6261_s16 + $0xe4] sm:$0xc] }
 0x121   : > { %5650 = vmatprep.mubr.bf16.mxu0 %v4839_v38  ;;  %v4813_v38 = vld [vmem:[%s6261_s16 + $0x110] sm:$0xf]  ;;  %v1975_v41 = vrot.slane %v1973_v1, 4  ;;  %v4557_v19 = vcombine.low %v1967_v14, %v1970_v0  ;;  %v4526_v23 = vrot.slane %v4508_v7, 10 }
 0x122   : > { %v4845_v22 = vcombine.low %v6956_v27, %v4813_v38 }
 0x123   : > { %v1974_v29 = vsel %vm6274_vm2, %v4526_v23, %v1973_v1  ;;  %v1977_v25 = vsel %vm6274_vm2, %v1975_v41, %v1976_v61 }
 0x124   : > { %v4558_v30 = vcombine.low %v1974_v29, %v1977_v25 }
 0x127   : > { %5459 = vmatmul.mubr.bf16.vlgmr.msra.gmra.mrb[16].mxu1 %v4552_v34 }
 0x128   : > { %5651 = vmatmul.mubr.bf16.gmra.mrb[16].mxu0 %v4840_v37  ;;  %5462 = vmatprep.mubr.bf16.mxu1 %v4553_v44 }
 0x129   : > { %5654 = vmatprep.mubr.bf16.mxu0 %v4841_v45 }
 0x12f   : > { %5463 = vmatmul.mubr.bf16.gmra.mrb[20].mxu1 %v4554_v36 }
 0x130   : > { %5655 = vmatmul.mubr.bf16.gmra.mrb[20].mxu0 %v4842_v57  ;;  %5466 = vmatprep.mubr.bf16.mxu1 %v4555_v40 }
 0x131   : > { %5658 = vmatprep.mubr.bf16.mxu0 %v4843_v4 }
 0x137   : > { %5467 = vmatmul.mubr.bf16.gmra.mrb[24].mxu1 %v4556_v17 }
 0x138   : > { %5659 = vmatmul.mubr.bf16.gmra.mrb[24].mxu0 %v4844_v18  ;;  %5470 = vmatprep.mubr.bf16.mxu1 %v4557_v19 }
 0x139   : > { %5662 = vmatprep.mubr.bf16.mxu0 %v4845_v22 }
 0x13f   : > { %5471 = vmatmul.mubr.bf16.gmra.mrb[28].mxu1 %v4558_v30 }
 0x140   : > { %5663 = vmatmul.mubr.bf16.gmra.mrb[28].mxu0 %v4846_v10 }
 0x1ba   : > { %v5396_v60 = vpop.f32.mrb[0].mxu1 }
 0x1bb   : > { %v1611_v26 = vpop.f32.mrb[1].mxu1 }
 0x1bc   : > { %v5397_v32 = vpop.f32.mrb[2].mxu1 }
 0x1bd   : > { %v1614_v27 = vpop.f32.mrb[3].mxu1 }
 0x1c2   : > { %v5400_v21 = vpop.f32.mrb[4].mxu1 }
 0x1c3   : > { %v1627_v39 = vpop.f32.mrb[5].mxu1 }
 0x1c4   : > { %v5401_v34 = vpop.f32.mrb[6].mxu1 }
 0x1c5   : > { %v1630_v42 = vpop.f32.mrb[7].mxu1 }
 0x1ca   : > { %v5404_v37 = vpop.f32.mrb[8].mxu1 }
 0x1cb   : > { %v1643_v44 = vpop.f32.mrb[9].mxu1 }
 0x1cc   : > { %v5405_v43 = vpop.f32.mrb[10].mxu1 }
 0x1cd   : > { %v1646_v15 = vpop.f32.mrb[11].mxu1 }
 0x1d2   : > { %v7113_v33 = vpop.f32.mrb[12].mxu1 }
 0x1d3   : > { %v7115_v49 = vpop.f32.mrb[13].mxu1 }
 0x1d4   : > { %v7117_v53 = vpop.f32.mrb[14].mxu1 }
 0x1d5   : > { %v7119_v45 = vpop.f32.mrb[15].mxu1 }
 0x1db   : > { %v5636_v55 = vpop.f32.mrb[0].mxu0 }
 0x1dc   : > { %v5682_v47 = vadd.f32 %v5636_v55, %v5396_v60  ;;  %v3766_v11 = vpop.f32.mrb[1].mxu0 }
 0x1dd   : > { %v5683_v3 = vadd.f32 %v3766_v11, %v1611_v26  ;;  %v5637_v50 = vpop.f32.mrb[2].mxu0 }
 0x1de   : > { %v3934_v31 = vadd.f32 %v5682_v47, %v7124_v46  ;;  %v5684_v48 = vadd.f32 %v5637_v50, %v5397_v32  ;;  %v3769_v28 = vpop.f32.mrb[3].mxu0 }
 0x1df   : > { %v3932_v5 = vadd.f32 %v5683_v3, %v7124_v46  ;;  %v5685_v2 = vadd.f32 %v3769_v28, %v1614_v27 }
 0x1e0   : > { %v3935_v24 = vadd.f32 %v5684_v48, %v7124_v46  ;;  %v3966_v51 = vmax.f32 %v3934_v31, 0.0 }
 0x1e1   : > { %v3933_v20 = vadd.f32 %v5685_v2, %v7124_v46  ;;  %v3964_v56 = vmax.f32 %v3932_v5, 0.0 }
 0x1e2   : > { %v3967_v52 = vmax.f32 %v3935_v24, 0.0 }
 0x1e3   : > { %v3965_v58 = vmax.f32 %v3933_v20, 0.0  ;;  %v5640_v36 = vpop.f32.mrb[4].mxu0 }
 0x1e4   : > { %v4931_v57 = vpack.c.bf16 %v3967_v52, %v3966_v51  ;;  %v5686_v40 = vadd.f32 %v5640_v36, %v5400_v21  ;;  %v3782_v62 = vpop.f32.mrb[5].mxu0 }
 0x1e5   : > { %v4926_v35 = vpack.c.bf16 %v3965_v58, %v3964_v56  ;;  %v5687_v54 = vadd.f32 %v3782_v62, %v1627_v39  ;;  %v5641_v4 = vpop.f32.mrb[6].mxu0 }
 0x1e6   : > { %5003 = vst [vmem:[%s7134_s29 + $0x8] sm:$0xff] %v4931_v57   ;;  %v3938_v6 = vadd.f32 %v5686_v40, %v7124_v46  ;;  %v5688_v8 = vadd.f32 %v5641_v4, %v5401_v34  ;;  %v3785_v9 = vpop.f32.mrb[7].mxu0 }
 0x1e7   : > { %4927 = vst [vmem:[%s7134_s29] sm:$0xff] %v4926_v35   ;;  %v3936_v1 = vadd.f32 %v5687_v54, %v7124_v46  ;;  %v5689_v59 = vadd.f32 %v3785_v9, %v1630_v42 }
 0x1e8   : > { %v3939_v12 = vadd.f32 %v5688_v8, %v7124_v46  ;;  %v3970_v14 = vmax.f32 %v3938_v6, 0.0 }
 0x1e9   : > { %v3937_v13 = vadd.f32 %v5689_v59, %v7124_v46  ;;  %v3968_v7 = vmax.f32 %v3936_v1, 0.0 }
 0x1ea   : > { %v3971_v0 = vmax.f32 %v3939_v12, 0.0 }
 0x1eb   : > { %v3969_v16 = vmax.f32 %v3937_v13, 0.0  ;;  %v5644_v38 = vpop.f32.mrb[8].mxu0 }
 0x1ec   : > { %v4941_v41 = vpack.c.bf16 %v3971_v0, %v3970_v14  ;;  %v5690_v17 = vadd.f32 %v5644_v38, %v5404_v37  ;;  %v3798_v18 = vpop.f32.mrb[9].mxu0 }
 0x1ed   : > { %v4936_v19 = vpack.c.bf16 %v3969_v16, %v3968_v7  ;;  %v5691_v23 = vadd.f32 %v3798_v18, %v1643_v44  ;;  %v5645_v61 = vpop.f32.mrb[10].mxu0 }
 0x1ee   : > { %5005 = vst [vmem:[%s7134_s29 + $0x18] sm:$0xff] %v4941_v41   ;;  %v3942_v22 = vadd.f32 %v5690_v17, %v7124_v46  ;;  %v5692_v29 = vadd.f32 %v5645_v61, %v5405_v43  ;;  %v3801_v25 = vpop.f32.mrb[11].mxu0 }
 0x1ef   : > { %5004 = vst [vmem:[%s7134_s29 + $0x10] sm:$0xff] %v4936_v19   ;;  %v3940_v63 = vadd.f32 %v5691_v23, %v7124_v46  ;;  %v5693_v30 = vadd.f32 %v3801_v25, %v1646_v15 }
 0x1f0   : > { %v3943_v10 = vadd.f32 %v5692_v29, %v7124_v46  ;;  %v3974_v26 = vmax.f32 %v3942_v22, 0.0 }
 0x1f1   : > { %v3941_v60 = vadd.f32 %v5693_v30, %v7124_v46  ;;  %v3972_v27 = vmax.f32 %v3940_v63, 0.0 }
 0x1f2   : > { %v3975_v32 = vmax.f32 %v3943_v10, 0.0 }
 0x1f3   : > { %v3973_v21 = vmax.f32 %v3941_v60, 0.0  ;;  %v5648_v39 = vpop.f32.mrb[12].mxu0 }
 0x1f4   : > { %v4951_v34 = vpack.c.bf16 %v3975_v32, %v3974_v26  ;;  %v5694_v42 = vadd.f32 %v5648_v39, %v7113_v33  ;;  %v3814_v37 = vpop.f32.mrb[13].mxu0 }
 0x1f5   : > { %v4946_v44 = vpack.c.bf16 %v3973_v21, %v3972_v27  ;;  %v5695_v43 = vadd.f32 %v3814_v37, %v7115_v49  ;;  %v5649_v55 = vpop.f32.mrb[14].mxu0 }
 0x1f6   : > { %5007 = vst [vmem:[%s7134_s29 + $0x28] sm:$0xff] %v4951_v34   ;;  %v3946_v15 = vadd.f32 %v5694_v42, %v7124_v46  ;;  %v5696_v47 = vadd.f32 %v5649_v55, %v7117_v53  ;;  %v3817_v11 = vpop.f32.mrb[15].mxu0 }
 0x1f7   : > { %5006 = vst [vmem:[%s7134_s29 + $0x20] sm:$0xff] %v4946_v44   ;;  %v3944_v3 = vadd.f32 %v5695_v43, %v7124_v46  ;;  %v5697_v50 = vadd.f32 %v3817_v11, %v7119_v45 }
 0x1f8   : > { %v3947_v31 = vadd.f32 %v5696_v47, %v7124_v46  ;;  %v3978_v48 = vmax.f32 %v3946_v15, 0.0 }
 0x1f9   : > { %v3945_v33 = vadd.f32 %v5697_v50, %v7124_v46  ;;  %v3976_v5 = vmax.f32 %v3944_v3, 0.0 }
 0x1fa   : > { %v3979_v28 = vmax.f32 %v3947_v31, 0.0  ;;  %v5460_v49 = vpop.f32.mrb[16].mxu1 }
 0x1fb   : > { %v3977_v2 = vmax.f32 %v3945_v33, 0.0  ;;  %v5652_v24 = vpop.f32.mrb[16].mxu0  ;;  %v2205_v20 = vpop.f32.mrb[17].mxu1 }
 0x1fc   : > { %v4961_v53 = vpack.c.bf16 %v3979_v28, %v3978_v48  ;;  %v5698_v51 = vadd.f32 %v5652_v24, %v5460_v49  ;;  %v3830_v52 = vpop.f32.mrb[17].mxu0  ;;  %v5461_v56 = vpop.f32.mrb[18].mxu1 }
 0x1fd   : > { %v4956_v58 = vpack.c.bf16 %v3977_v2, %v3976_v5  ;;  %v5699_v36 = vadd.f32 %v3830_v52, %v2205_v20  ;;  %v5653_v45 = vpop.f32.mrb[18].mxu0  ;;  %v2208_v57 = vpop.f32.mrb[19].mxu1 }
 0x1fe   : > { %5009 = vst [vmem:[%s7134_s29 + $0x38] sm:$0xff] %v4961_v53   ;;  %v3950_v40 = vadd.f32 %v5698_v51, %v7124_v46  ;;  %v5700_v62 = vadd.f32 %v5653_v45, %v5461_v56  ;;  %v3833_v35 = vpop.f32.mrb[19].mxu0 }
 0x1ff   : > { %5008 = vst [vmem:[%s7134_s29 + $0x30] sm:$0xff] %v4956_v58   ;;  %v3948_v54 = vadd.f32 %v5699_v36, %v7124_v46  ;;  %v5701_v4 = vadd.f32 %v3833_v35, %v2208_v57 }
 0x200   : > { %v3951_v6 = vadd.f32 %v5700_v62, %v7124_v46  ;;  %v3982_v9 = vmax.f32 %v3950_v40, 0.0 }
 0x201   : > { %v3949_v8 = vadd.f32 %v5701_v4, %v7124_v46  ;;  %v3980_v12 = vmax.f32 %v3948_v54, 0.0 }
 0x202   : > { %v3983_v1 = vmax.f32 %v3951_v6, 0.0  ;;  %v5464_v59 = vpop.f32.mrb[20].mxu1 }
 0x203   : > { %v3981_v13 = vmax.f32 %v3949_v8, 0.0  ;;  %v5656_v14 = vpop.f32.mrb[20].mxu0  ;;  %v2221_v0 = vpop.f32.mrb[21].mxu1 }
 0x204   : > { %v4971_v7 = vpack.c.bf16 %v3983_v1, %v3982_v9  ;;  %v5702_v16 = vadd.f32 %v5656_v14, %v5464_v59  ;;  %v3846_v38 = vpop.f32.mrb[21].mxu0  ;;  %v5465_v41 = vpop.f32.mrb[22].mxu1 }
 0x205   : > { %v4966_v17 = vpack.c.bf16 %v3981_v13, %v3980_v12  ;;  %v5703_v18 = vadd.f32 %v3846_v38, %v2221_v0  ;;  %v5657_v19 = vpop.f32.mrb[22].mxu0  ;;  %v2224_v23 = vpop.f32.mrb[23].mxu1 }
 0x206   : > { %5011 = vst [vmem:[%s7134_s29 + $0x48] sm:$0xff] %v4971_v7   ;;  %v3954_v61 = vadd.f32 %v5702_v16, %v7124_v46  ;;  %v5704_v22 = vadd.f32 %v5657_v19, %v5465_v41  ;;  %v3849_v29 = vpop.f32.mrb[23].mxu0 }
 0x207   : > { %5010 = vst [vmem:[%s7134_s29 + $0x40] sm:$0xff] %v4966_v17   ;;  %v3952_v25 = vadd.f32 %v5703_v18, %v7124_v46  ;;  %v5705_v63 = vadd.f32 %v3849_v29, %v2224_v23 }
 0x208   : > { %v3955_v30 = vadd.f32 %v5704_v22, %v7124_v46  ;;  %v3986_v60 = vmax.f32 %v3954_v61, 0.0 }
 0x209   : > { %v3953_v10 = vadd.f32 %v5705_v63, %v7124_v46  ;;  %v3984_v27 = vmax.f32 %v3952_v25, 0.0 }
 0x20a   : > { %v3987_v26 = vmax.f32 %v3955_v30, 0.0  ;;  %v5468_v32 = vpop.f32.mrb[24].mxu1 }
 0x20b   : > { %v3985_v21 = vmax.f32 %v3953_v10, 0.0  ;;  %v5660_v39 = vpop.f32.mrb[24].mxu0  ;;  %v2237_v34 = vpop.f32.mrb[25].mxu1 }
 0x20c   : > { %v4981_v42 = vpack.c.bf16 %v3987_v26, %v3986_v60  ;;  %v5706_v37 = vadd.f32 %v5660_v39, %v5468_v32  ;;  %v3862_v44 = vpop.f32.mrb[25].mxu0  ;;  %v5469_v43 = vpop.f32.mrb[26].mxu1 }
 0x20d   : > { %v4976_v55 = vpack.c.bf16 %v3985_v21, %v3984_v27  ;;  %v5707_v15 = vadd.f32 %v3862_v44, %v2237_v34  ;;  %v5661_v47 = vpop.f32.mrb[26].mxu0  ;;  %v2240_v11 = vpop.f32.mrb[27].mxu1 }
 0x20e   : > { %5013 = vst [vmem:[%s7134_s29 + $0x58] sm:$0xff] %v4981_v42   ;;  %v3958_v3 = vadd.f32 %v5706_v37, %v7124_v46  ;;  %v5708_v50 = vadd.f32 %v5661_v47, %v5469_v43  ;;  %v3865_v31 = vpop.f32.mrb[27].mxu0 }
 0x20f   : > { %5012 = vst [vmem:[%s7134_s29 + $0x50] sm:$0xff] %v4976_v55   ;;  %v3956_v33 = vadd.f32 %v5707_v15, %v7124_v46  ;;  %v5709_v48 = vadd.f32 %v3865_v31, %v2240_v11 }
 0x210   : > { %v3959_v28 = vadd.f32 %v5708_v50, %v7124_v46  ;;  %v3990_v5 = vmax.f32 %v3958_v3, 0.0 }
 0x211   : > { %v3957_v49 = vadd.f32 %v5709_v48, %v7124_v46  ;;  %v3988_v20 = vmax.f32 %v3956_v33, 0.0 }
 0x212   : > { %v3991_v2 = vmax.f32 %v3959_v28, 0.0  ;;  %v5472_v24 = vpop.f32.mrb[28].mxu1 }
 0x213   : > { %v3989_v53 = vmax.f32 %v3957_v49, 0.0  ;;  %v5664_v51 = vpop.f32.mrb[28].mxu0  ;;  %v2253_v52 = vpop.f32.mrb[29].mxu1 }
 0x214   : > { %v4991_v56 = vpack.c.bf16 %v3991_v2, %v3990_v5  ;;  %v5710_v58 = vadd.f32 %v5664_v51, %v5472_v24  ;;  %v3878_v36 = vpop.f32.mrb[29].mxu0  ;;  %v5473_v45 = vpop.f32.mrb[30].mxu1 }
 0x215   : > { %v4986_v57 = vpack.c.bf16 %v3989_v53, %v3988_v20  ;;  %v5711_v40 = vadd.f32 %v3878_v36, %v2253_v52  ;;  %v5665_v62 = vpop.f32.mrb[30].mxu0  ;;  %v2256_v35 = vpop.f32.mrb[31].mxu1 }
 0x216   : > { %5015 = vst [vmem:[%s7134_s29 + $0x68] sm:$0xff] %v4991_v56   ;;  %v3962_v54 = vadd.f32 %v5710_v58, %v7124_v46  ;;  %v5712_v4 = vadd.f32 %v5665_v62, %v5473_v45  ;;  %v3881_v6 = vpop.f32.mrb[31].mxu0 }
 0x217   : > { %5014 = vst [vmem:[%s7134_s29 + $0x60] sm:$0xff] %v4986_v57   ;;  %v3960_v8 = vadd.f32 %v5711_v40, %v7124_v46  ;;  %v5713_v9 = vadd.f32 %v3881_v6, %v2256_v35 }
 0x218   : > { %v3963_v1 = vadd.f32 %v5712_v4, %v7124_v46  ;;  %v3994_v12 = vmax.f32 %v3962_v54, 0.0 }
 0x219   : > { %v3961_v59 = vadd.f32 %v5713_v9, %v7124_v46  ;;  %v3992_v14 = vmax.f32 %v3960_v8, 0.0 }
 0x21a   : > { %v3995_v13 = vmax.f32 %v3963_v1, 0.0 }
 0x21b   : > { %v3993_v0 = vmax.f32 %v3961_v59, 0.0 }
 0x21c   : > { %v5001_v7 = vpack.c.bf16 %v3995_v13, %v3994_v12 }
 0x21d   : > { %v4996_v16 = vpack.c.bf16 %v3993_v0, %v3992_v14 }
 0x21e   : > { %5017 = vst [vmem:[%s7134_s29 + $0x78] sm:$0xff] %v5001_v7  }
 0x21f   : > { %5016 = vst [vmem:[%s7134_s29 + $0x70] sm:$0xff] %v4996_v16  }
 0x220 PF: > { %s13_s14 = sadd.s32 1, %s6185_s14   ;;  %s7199_s12 = smov %s6181_s13 }
 0x221   : > { %p10_p5 = scmp.ge.s32.totalorder %s13_s14, 6   ;;  %s7200_s13 = smov %s7202_s15 }
 0x223   :  { %12 = sbr.rel (!%p10_p5) target bundleno = 2 (0x2), region = 78 }

</bundles_post_ra>
